<compile_context>
chip_gen: v5e
topology: v5e:2x2
jax: 0.10.0
libtpu: 0.0.40
codegen_flags: <defaults>
</compile_context>

<pallas_src>
import functools

import numpy as np
import jax
import jax.numpy as jnp
from jax.experimental import pallas as pl
from jax.experimental.pallas import tpu as pltpu


def _gelu(v):
    # tanh-approximation of GELU (see TODO above).
    c = 0.7978845608028654  # sqrt(2/pi)
    return 0.5 * v * (1.0 + jnp.tanh(c * (v + 0.044715 * v * v * v)))


def _seam_kernel(W, x_ref, dwm_ref, pw_ref, fc1t_ref, fc2_ref, pc_ref, o_ref):
    # x_ref   : (B_blk, C, H*W)  B_blk images, channels x flattened-spatial (lane-dense)
    # dwm_ref : (9, C, H*W)      per-tap  mask * depthwise-weight  (folded in the wrapper)
    # pw_ref  : (C, C) bf16      1x1 conv weight (C_out, C_in)
    # fc1t_ref: (C, mid)         fc1 weight, transposed
    # fc2_ref : (C, mid)         fc2 weight
    # pc_ref  : (C, 6)           [dw_bias, bn1_scale, bn1_shift, pw_bias, bn2_scale, bn2_shift]
    B, C, HW = x_ref.shape

    # Per-channel folded params / small weights: load once per grid step.
    dwb, bs1, bh1 = pc_ref[:, 0:1], pc_ref[:, 1:2], pc_ref[:, 2:3]
    pwb, bs2, bh2 = pc_ref[:, 3:4], pc_ref[:, 4:5], pc_ref[:, 5:6]
    pw = pw_ref[...]            # (C, C) bf16
    fc1t = fc1t_ref[...]        # (C, mid)
    fc2 = fc2_ref[...]          # (C, mid)

    # Static unrolled loop over the images in this block (independent pipelines; the
    # scheduler is free to overlap their serial SE-gate latency chains).
    for b in range(B):
        xb = x_ref[b].astype(jnp.float32)                   # (C, HW)

        # ---- depthwise 3x3, stride 1, padding 1: 9 circular lane-rotations (XLU) ----
        # The precomputed masks in dwm zero every border / circularly-wrapped position.
        dwc = jnp.zeros((C, HW), jnp.float32)
        for t in range(9):
            oy, ox = t // 3 - 1, t % 3 - 1
            d = oy * W + ox                                  # flattened-spatial offset
            shifted = xb if d == 0 else pltpu.roll(xb, shift=(-d) % HW, axis=1)
            dwc = dwc + shifted * dwm_ref[t]                 # one FMA per tap
        dwc = dwc + dwb                                      # depthwise conv bias

        # ---- GELU -> BatchNorm1 (folded) -> residual add (re-read x, keep pressure low) ----
        t1 = _gelu(dwc) * bs1 + bh1 + x_ref[b].astype(jnp.float32)

        # ---- 1x1 conv on the MXU in bf16 (f32 accumulation) -> bias -> GELU -> BN2 ----
        z = jnp.dot(pw, t1.astype(jnp.bfloat16),
                    preferred_element_type=jnp.float32) + pwb
        t2 = _gelu(z) * bs2 + bh2                            # (C, HW)

        # ---- squeeze-excite: global avg pool -> fc1 -> ReLU -> fc2 -> sigmoid -> exp ----
        sb = jnp.mean(t2, axis=-1, keepdims=True)            # (C, 1)
        h = jnp.maximum(jnp.sum(fc1t * sb, axis=0, keepdims=True), 0.0)   # (1, mid)
        gb = jnp.sum(fc2 * h, axis=1, keepdims=True)          # (C, 1)
        gb = jnp.exp(jax.nn.sigmoid(gb))

        # ---- gate the ORIGINAL input (lane-dense store, HW lanes) ----
        o_ref[b] = (x_ref[b].astype(jnp.float32) * gb).astype(o_ref.dtype)


def seam_forward(x, params, *, reduction=16, eps=1e-5, block_n=8):
    """SEAM forward (n=1 DCovN block, eval-mode BN) as one fused Pallas TPU kernel."""
    N, C, H, W = x.shape
    HW = H * W
    mid = C // reduction
    assert mid >= 1, "c1 // reduction must be >= 1"

    (dw_w, dw_b, g1, b1, m1, v1,
     pw_w, pw_b, g2, b2, m2, v2,
     fc1_w, fc2_w) = params

    # Fold both BatchNorms (eval mode) into per-channel scale/shift.
    s1 = g1 / jnp.sqrt(v1 + eps)
    sh1 = b1 - m1 * s1
    s2 = g2 / jnp.sqrt(v2 + eps)
    sh2 = b2 - m2 * s2
    pc = jnp.stack([dw_b, s1, sh1, pw_b, s2, sh2], axis=1).astype(jnp.float32)  # (C, 6)

    # Per-tap validity masks for the flattened-spatial depthwise conv (padding=1). They zero
    # both true borders and every position a circular lane-rotation would wrap incorrectly.
    hh, ww = np.meshgrid(np.arange(H), np.arange(W), indexing="ij")
    masks = np.stack([
        ((hh + oy >= 0) & (hh + oy < H) & (ww + ox >= 0) & (ww + ox < W)).reshape(-1)
        for oy in (-1, 0, 1) for ox in (-1, 0, 1)
    ]).astype(np.float32)                                    # (9, HW)

    dw_flat = dw_w.reshape(C, 9).astype(jnp.float32)          # taps (ky, kx) row-major
    dwm = jnp.asarray(masks)[:, None, :] * dw_flat.T[:, :, None]   # (9, C, HW) resident

    pw = pw_w.reshape(C, C).astype(jnp.bfloat16)              # MXU-native input width
    fc1_t = jnp.transpose(fc1_w).astype(jnp.float32)          # (C, mid)
    fc2 = fc2_w.astype(jnp.float32)                           # (C, mid)

    # NCHW -> (N, C, H*W): a pure row-major reshape, no transpose / no extra HBM pass.
    x_flat = x.reshape(N, C, HW)

    # Batch several images per grid step; keep >= 2 grid steps when N >= 2 so both v7x
    # TensorCores get work on the "parallel" axis.
    b_blk = max(1, min(block_n, N))
    if N >= 2 and pl.cdiv(N, b_blk) < 2:
        b_blk = pl.cdiv(N, 2)
    n_blk = pl.cdiv(N, b_blk)
    n_pad = n_blk * b_blk
    if n_pad != N:
        x_flat = jnp.pad(x_flat, ((0, n_pad - N), (0, 0), (0, 0)))

    # VMEM budget from actual tile / resident sizes (not a fixed constant).
    tile_bytes = b_blk * C * HW * x.dtype.itemsize
    resident_bytes = (dwm.size + pc.size + fc1_t.size + fc2.size) * 4 + pw.size * 2
    vmem_limit = int(min(64 * 1024 * 1024,
                         max(16 * 1024 * 1024,
                             4 * tile_bytes          # double-buffered in + out tiles
                             + 2 * resident_bytes    # resident inputs (double-buffered)
                             + (8 << 20))))          # headroom for in-kernel temporaries

    kernel = functools.partial(_seam_kernel, W)
    out = pl.pallas_call(
        kernel,
        out_shape=jax.ShapeDtypeStruct((n_pad, C, HW), x.dtype),
        grid=(n_blk,),
        in_specs=[
            pl.BlockSpec((b_blk, C, HW), lambda n: (n, 0, 0)),   # B_blk images per step
            pl.BlockSpec((9, C, HW), lambda n: (0, 0, 0)),       # mask*dw taps (resident)
            pl.BlockSpec((C, C), lambda n: (0, 0)),              # 1x1 conv weight (bf16)
            pl.BlockSpec((C, mid), lambda n: (0, 0)),            # fc1^T (resident)
            pl.BlockSpec((C, mid), lambda n: (0, 0)),            # fc2 (resident)
            pl.BlockSpec((C, 6), lambda n: (0, 0)),              # folded per-channel params
        ],
        out_specs=pl.BlockSpec((b_blk, C, HW), lambda n: (n, 0, 0)),
        compiler_params=pltpu.CompilerParams(
            dimension_semantics=("parallel",),
            vmem_limit_bytes=vmem_limit,
        ),
    )(x_flat, dwm, pw, fc1_t, fc2, pc)

    return out[:N].reshape(N, C, H, W)


def seam_reference(x, params, *, eps=1e-5):
    """Pure-JAX reference with identical math (eval-mode BN, tanh GELU)."""
    (dw_w, dw_b, g1, b1, m1, v1,
     pw_w, pw_b, g2, b2, m2, v2,
     fc1_w, fc2_w) = params
    N, C, H, W = x.shape
    xp = jnp.pad(x, ((0, 0), (0, 0), (1, 1), (1, 1)))
    taps = jnp.stack([xp[:, :, ky:ky + H, kx:kx + W]
                      for ky in range(3) for kx in range(3)], axis=-1)   # (N,C,H,W,9)
    dwc = jnp.einsum("nchwt,ct->nchw", taps, dw_w.reshape(C, 9)) + dw_b[None, :, None, None]
    s1 = g1 / jnp.sqrt(v1 + eps)
    sh1 = b1 - m1 * s1
    t1 = _gelu(dwc) * s1[None, :, None, None] + sh1[None, :, None, None] + x
    z = jnp.einsum("oc,nchw->nohw", pw_w.reshape(C, C), t1) + pw_b[None, :, None, None]
    s2 = g2 / jnp.sqrt(v2 + eps)
    sh2 = b2 - m2 * s2
    t2 = _gelu(z) * s2[None, :, None, None] + sh2[None, :, None, None]
    s = t2.mean(axis=(2, 3))                                 # (N, C)
    h = jnp.maximum(s @ fc1_w.T, 0.0)                        # (N, mid)
    y = jnp.exp(jax.nn.sigmoid(h @ fc2_w.T))                 # (N, C)
    return x * y[:, :, None, None]


if __name__ == "__main__":
    key = jax.random.PRNGKey(0)
    # channels chosen so the SE bottleneck c // reduction >= 1 (the module requires it);
    # N=8 demonstrates the batched grid (B_blk=4 -> grid of 2 "parallel" steps).
    N, C, H, W = 8, 32, 16, 16
    reduction = 16
    mid = C // reduction

    ks = jax.random.split(key, 15)
    x = jax.random.normal(ks[0], (N, C, H, W), dtype=jnp.float32)
    # PyTorch parameter shapes: depthwise Conv2d weight (C,1,3,3), 1x1 Conv2d weight (C,C,1,1)
    dw_w = 0.2 * jax.random.normal(ks[1], (C, 1, 3, 3), dtype=jnp.float32)
    dw_b = 0.1 * jax.random.normal(ks[2], (C,), dtype=jnp.float32)
    g1 = 1.0 + 0.1 * jax.random.normal(ks[3], (C,), dtype=jnp.float32)
    b1 = 0.1 * jax.random.normal(ks[4], (C,), dtype=jnp.float32)
    m1 = 0.1 * jax.random.normal(ks[5], (C,), dtype=jnp.float32)
    v1 = jnp.abs(1.0 + 0.1 * jax.random.normal(ks[6], (C,), dtype=jnp.float32))
    pw_w = 0.15 * jax.random.normal(ks[7], (C, C, 1, 1), dtype=jnp.float32)
    pw_b = 0.1 * jax.random.normal(ks[8], (C,), dtype=jnp.float32)
    g2 = 1.0 + 0.1 * jax.random.normal(ks[9], (C,), dtype=jnp.float32)
    b2 = 0.1 * jax.random.normal(ks[10], (C,), dtype=jnp.float32)
    m2 = 0.1 * jax.random.normal(ks[11], (C,), dtype=jnp.float32)
    v2 = jnp.abs(1.0 + 0.1 * jax.random.normal(ks[12], (C,), dtype=jnp.float32))
    fc1_w = 0.05 * jax.random.normal(ks[13], (mid, C), dtype=jnp.float32)
    fc2_w = 0.05 * jax.random.normal(ks[14], (C, mid), dtype=jnp.float32)

    params = (dw_w, dw_b, g1, b1, m1, v1, pw_w, pw_b, g2, b2, m2, v2, fc1_w, fc2_w)

    out = seam_forward(x, params, reduction=reduction)
    out = jax.block_until_ready(out)
    assert out.shape == (N, C, H, W), out.shape

    ref = seam_reference(x, params)
    max_err = float(jnp.max(jnp.abs(out - ref)))
    assert jnp.allclose(out, ref, rtol=2e-3, atol=2e-3), max_err
    print("KERNEL_OK")
</pallas_src>

<mosaic_0001>
module attributes {stable_mosaic.version = 11 : i64} {
  func.func @_seam_kernel(%arg0: i32, %arg1: memref<4x32x256xf32, #tpu.memory_space<vmem>>, %arg2: memref<9x32x256xf32, #tpu.memory_space<vmem>>, %arg3: memref<32x32xbf16, #tpu.memory_space<vmem>>, %arg4: memref<32x2xf32, #tpu.memory_space<vmem>>, %arg5: memref<32x2xf32, #tpu.memory_space<vmem>>, %arg6: memref<32x6xf32, #tpu.memory_space<vmem>>, %arg7: memref<4x32x256xf32, #tpu.memory_space<vmem>>) attributes {dimension_semantics = [#tpu.dimension_semantics<parallel>], iteration_bounds = array<i64: 2>, scalar_prefetch = 0 : i64, scratch_operands = 0 : i64, tpu.core_type = #tpu.core_type<tc>, window_params = [{transform_indices = @transform_0, window_bounds = array<i64: 4, 32, 256>}, {pipeline_mode = #tpu.pipeline_mode<synchronous>, transform_indices = @transform_1, window_bounds = array<i64: 9, 32, 256>}, {pipeline_mode = #tpu.pipeline_mode<synchronous>, transform_indices = @transform_2, window_bounds = array<i64: 32, 32>}, {pipeline_mode = #tpu.pipeline_mode<synchronous>, transform_indices = @transform_3, window_bounds = array<i64: 32, 2>}, {pipeline_mode = #tpu.pipeline_mode<synchronous>, transform_indices = @transform_4, window_bounds = array<i64: 32, 2>}, {pipeline_mode = #tpu.pipeline_mode<synchronous>, transform_indices = @transform_5, window_bounds = array<i64: 32, 6>}, {transform_indices = @transform_6, window_bounds = array<i64: 4, 32, 256>}]} {
    %c0 = arith.constant 0 : index
    %c0_0 = arith.constant 0 : index
    %0 = vector.load %arg6[%c0, %c0_0] : memref<32x6xf32, #tpu.memory_space<vmem>>, vector<32x1xf32>
    %c0_1 = arith.constant 0 : index
    %c1 = arith.constant 1 : index
    %1 = vector.load %arg6[%c0_1, %c1] : memref<32x6xf32, #tpu.memory_space<vmem>>, vector<32x1xf32>
    %c0_2 = arith.constant 0 : index
    %c2 = arith.constant 2 : index
    %2 = vector.load %arg6[%c0_2, %c2] : memref<32x6xf32, #tpu.memory_space<vmem>>, vector<32x1xf32>
    %c0_3 = arith.constant 0 : index
    %c3 = arith.constant 3 : index
    %3 = vector.load %arg6[%c0_3, %c3] : memref<32x6xf32, #tpu.memory_space<vmem>>, vector<32x1xf32>
    %c0_4 = arith.constant 0 : index
    %c4 = arith.constant 4 : index
    %4 = vector.load %arg6[%c0_4, %c4] : memref<32x6xf32, #tpu.memory_space<vmem>>, vector<32x1xf32>
    %c0_5 = arith.constant 0 : index
    %c5 = arith.constant 5 : index
    %5 = vector.load %arg6[%c0_5, %c5] : memref<32x6xf32, #tpu.memory_space<vmem>>, vector<32x1xf32>
    %c0_6 = arith.constant 0 : index
    %c0_7 = arith.constant 0 : index
    %6 = vector.load %arg3[%c0_6, %c0_7] : memref<32x32xbf16, #tpu.memory_space<vmem>>, vector<32x32xbf16>
    %c0_8 = arith.constant 0 : index
    %c0_9 = arith.constant 0 : index
    %7 = vector.load %arg4[%c0_8, %c0_9] : memref<32x2xf32, #tpu.memory_space<vmem>>, vector<32x2xf32>
    %c0_10 = arith.constant 0 : index
    %c0_11 = arith.constant 0 : index
    %8 = vector.load %arg5[%c0_10, %c0_11] : memref<32x2xf32, #tpu.memory_space<vmem>>, vector<32x2xf32>
    %c0_12 = arith.constant 0 : index
    %c0_13 = arith.constant 0 : index
    %c0_14 = arith.constant 0 : index
    %9 = vector.load %arg1[%c0_12, %c0_13, %c0_14] : memref<4x32x256xf32, #tpu.memory_space<vmem>>, vector<1x32x256xf32>
    %10 = vector.shape_cast %9 : vector<1x32x256xf32> to vector<32x256xf32>
    %cst = arith.constant 0.000000e+00 : f32
    %11 = vector.broadcast %cst : f32 to vector<32x256xf32>
    %c17_i32 = arith.constant 17 : i32
    %12 = tpu.dynamic_rotate %10 by %c17_i32 dim 1 : vector<32x256xf32>, i32 -> vector<32x256xf32>
    %c0_15 = arith.constant 0 : index
    %c0_16 = arith.constant 0 : index
    %c0_17 = arith.constant 0 : index
    %13 = vector.load %arg2[%c0_15, %c0_16, %c0_17] : memref<9x32x256xf32, #tpu.memory_space<vmem>>, vector<1x32x256xf32>
    %14 = vector.shape_cast %13 : vector<1x32x256xf32> to vector<32x256xf32>
    %15 = arith.mulf %12, %14 : vector<32x256xf32>
    %16 = arith.addf %11, %15 : vector<32x256xf32>
    %c16_i32 = arith.constant 16 : i32
    %17 = tpu.dynamic_rotate %10 by %c16_i32 dim 1 : vector<32x256xf32>, i32 -> vector<32x256xf32>
    %c1_18 = arith.constant 1 : index
    %c0_19 = arith.constant 0 : index
    %c0_20 = arith.constant 0 : index
    %18 = vector.load %arg2[%c1_18, %c0_19, %c0_20] : memref<9x32x256xf32, #tpu.memory_space<vmem>>, vector<1x32x256xf32>
    %19 = vector.shape_cast %18 : vector<1x32x256xf32> to vector<32x256xf32>
    %20 = arith.mulf %17, %19 : vector<32x256xf32>
    %21 = arith.addf %16, %20 : vector<32x256xf32>
    %c15_i32 = arith.constant 15 : i32
    %22 = tpu.dynamic_rotate %10 by %c15_i32 dim 1 : vector<32x256xf32>, i32 -> vector<32x256xf32>
    %c2_21 = arith.constant 2 : index
    %c0_22 = arith.constant 0 : index
    %c0_23 = arith.constant 0 : index
    %23 = vector.load %arg2[%c2_21, %c0_22, %c0_23] : memref<9x32x256xf32, #tpu.memory_space<vmem>>, vector<1x32x256xf32>
    %24 = vector.shape_cast %23 : vector<1x32x256xf32> to vector<32x256xf32>
    %25 = arith.mulf %22, %24 : vector<32x256xf32>
    %26 = arith.addf %21, %25 : vector<32x256xf32>
    %c1_i32 = arith.constant 1 : i32
    %27 = tpu.dynamic_rotate %10 by %c1_i32 dim 1 : vector<32x256xf32>, i32 -> vector<32x256xf32>
    %c3_24 = arith.constant 3 : index
    %c0_25 = arith.constant 0 : index
    %c0_26 = arith.constant 0 : index
    %28 = vector.load %arg2[%c3_24, %c0_25, %c0_26] : memref<9x32x256xf32, #tpu.memory_space<vmem>>, vector<1x32x256xf32>
    %29 = vector.shape_cast %28 : vector<1x32x256xf32> to vector<32x256xf32>
    %30 = arith.mulf %27, %29 : vector<32x256xf32>
    %31 = arith.addf %26, %30 : vector<32x256xf32>
    %c4_27 = arith.constant 4 : index
    %c0_28 = arith.constant 0 : index
    %c0_29 = arith.constant 0 : index
    %32 = vector.load %arg2[%c4_27, %c0_28, %c0_29] : memref<9x32x256xf32, #tpu.memory_space<vmem>>, vector<1x32x256xf32>
    %33 = vector.shape_cast %32 : vector<1x32x256xf32> to vector<32x256xf32>
    %34 = arith.mulf %10, %33 : vector<32x256xf32>
    %35 = arith.addf %31, %34 : vector<32x256xf32>
    %c255_i32 = arith.constant 255 : i32
    %36 = tpu.dynamic_rotate %10 by %c255_i32 dim 1 : vector<32x256xf32>, i32 -> vector<32x256xf32>
    %c5_30 = arith.constant 5 : index
    %c0_31 = arith.constant 0 : index
    %c0_32 = arith.constant 0 : index
    %37 = vector.load %arg2[%c5_30, %c0_31, %c0_32] : memref<9x32x256xf32, #tpu.memory_space<vmem>>, vector<1x32x256xf32>
    %38 = vector.shape_cast %37 : vector<1x32x256xf32> to vector<32x256xf32>
    %39 = arith.mulf %36, %38 : vector<32x256xf32>
    %40 = arith.addf %35, %39 : vector<32x256xf32>
    %c241_i32 = arith.constant 241 : i32
    %41 = tpu.dynamic_rotate %10 by %c241_i32 dim 1 : vector<32x256xf32>, i32 -> vector<32x256xf32>
    %c6 = arith.constant 6 : index
    %c0_33 = arith.constant 0 : index
    %c0_34 = arith.constant 0 : index
    %42 = vector.load %arg2[%c6, %c0_33, %c0_34] : memref<9x32x256xf32, #tpu.memory_space<vmem>>, vector<1x32x256xf32>
    %43 = vector.shape_cast %42 : vector<1x32x256xf32> to vector<32x256xf32>
    %44 = arith.mulf %41, %43 : vector<32x256xf32>
    %45 = arith.addf %40, %44 : vector<32x256xf32>
    %c240_i32 = arith.constant 240 : i32
    %46 = tpu.dynamic_rotate %10 by %c240_i32 dim 1 : vector<32x256xf32>, i32 -> vector<32x256xf32>
    %c7 = arith.constant 7 : index
    %c0_35 = arith.constant 0 : index
    %c0_36 = arith.constant 0 : index
    %47 = vector.load %arg2[%c7, %c0_35, %c0_36] : memref<9x32x256xf32, #tpu.memory_space<vmem>>, vector<1x32x256xf32>
    %48 = vector.shape_cast %47 : vector<1x32x256xf32> to vector<32x256xf32>
    %49 = arith.mulf %46, %48 : vector<32x256xf32>
    %50 = arith.addf %45, %49 : vector<32x256xf32>
    %c239_i32 = arith.constant 239 : i32
    %51 = tpu.dynamic_rotate %10 by %c239_i32 dim 1 : vector<32x256xf32>, i32 -> vector<32x256xf32>
    %c8 = arith.constant 8 : index
    %c0_37 = arith.constant 0 : index
    %c0_38 = arith.constant 0 : index
    %52 = vector.load %arg2[%c8, %c0_37, %c0_38] : memref<9x32x256xf32, #tpu.memory_space<vmem>>, vector<1x32x256xf32>
    %53 = vector.shape_cast %52 : vector<1x32x256xf32> to vector<32x256xf32>
    %54 = arith.mulf %51, %53 : vector<32x256xf32>
    %55 = arith.addf %50, %54 : vector<32x256xf32>
    %56 = vector.broadcast %0 : vector<32x1xf32> to vector<32x256xf32>
    %57 = arith.addf %55, %56 : vector<32x256xf32>
    %cst_39 = arith.constant 5.000000e-01 : f32
    %58 = vector.broadcast %cst_39 : f32 to vector<32x256xf32>
    %59 = arith.mulf %58, %57 : vector<32x256xf32>
    %cst_40 = arith.constant 4.471500e-02 : f32
    %60 = vector.broadcast %cst_40 : f32 to vector<32x256xf32>
    %61 = arith.mulf %60, %57 : vector<32x256xf32>
    %62 = arith.mulf %61, %57 : vector<32x256xf32>
    %63 = arith.mulf %62, %57 : vector<32x256xf32>
    %64 = arith.addf %57, %63 : vector<32x256xf32>
    %cst_41 = arith.constant 0.797884583 : f32
    %65 = vector.broadcast %cst_41 : f32 to vector<32x256xf32>
    %66 = arith.mulf %65, %64 : vector<32x256xf32>
    %67 = math.tanh %66 : vector<32x256xf32>
    %cst_42 = arith.constant 1.000000e+00 : f32
    %68 = vector.broadcast %cst_42 : f32 to vector<32x256xf32>
    %69 = arith.addf %68, %67 : vector<32x256xf32>
    %70 = arith.mulf %59, %69 : vector<32x256xf32>
    %71 = vector.broadcast %1 : vector<32x1xf32> to vector<32x256xf32>
    %72 = arith.mulf %70, %71 : vector<32x256xf32>
    %73 = vector.broadcast %2 : vector<32x1xf32> to vector<32x256xf32>
    %74 = arith.addf %72, %73 : vector<32x256xf32>
    %c0_43 = arith.constant 0 : index
    %c0_44 = arith.constant 0 : index
    %c0_45 = arith.constant 0 : index
    %75 = vector.load %arg1[%c0_43, %c0_44, %c0_45] : memref<4x32x256xf32, #tpu.memory_space<vmem>>, vector<1x32x256xf32>
    %76 = vector.shape_cast %75 : vector<1x32x256xf32> to vector<32x256xf32>
    %77 = arith.addf %74, %76 : vector<32x256xf32>
    %78 = arith.truncf %77 : vector<32x256xf32> to vector<32x256xbf16>
    %cst_46 = arith.constant dense<0.000000e+00> : vector<32x256xf32>
    %79 = tpu.matmul %6, %78, %cst_46 {dimension_numbers = #tpu.dot_dimension_numbers<[1], [0], [0], [1], [0, 0, 1, 1], [], []>} : vector<32x32xbf16>, vector<32x256xbf16>, vector<32x256xf32> -> vector<32x256xf32>
    %80 = vector.broadcast %3 : vector<32x1xf32> to vector<32x256xf32>
    %81 = arith.addf %79, %80 : vector<32x256xf32>
    %cst_47 = arith.constant 5.000000e-01 : f32
    %82 = vector.broadcast %cst_47 : f32 to vector<32x256xf32>
    %83 = arith.mulf %82, %81 : vector<32x256xf32>
    %cst_48 = arith.constant 4.471500e-02 : f32
    %84 = vector.broadcast %cst_48 : f32 to vector<32x256xf32>
    %85 = arith.mulf %84, %81 : vector<32x256xf32>
    %86 = arith.mulf %85, %81 : vector<32x256xf32>
    %87 = arith.mulf %86, %81 : vector<32x256xf32>
    %88 = arith.addf %81, %87 : vector<32x256xf32>
    %cst_49 = arith.constant 0.797884583 : f32
    %89 = vector.broadcast %cst_49 : f32 to vector<32x256xf32>
    %90 = arith.mulf %89, %88 : vector<32x256xf32>
    %91 = math.tanh %90 : vector<32x256xf32>
    %cst_50 = arith.constant 1.000000e+00 : f32
    %92 = vector.broadcast %cst_50 : f32 to vector<32x256xf32>
    %93 = arith.addf %92, %91 : vector<32x256xf32>
    %94 = arith.mulf %83, %93 : vector<32x256xf32>
    %95 = vector.broadcast %4 : vector<32x1xf32> to vector<32x256xf32>
    %96 = arith.mulf %94, %95 : vector<32x256xf32>
    %97 = vector.broadcast %5 : vector<32x1xf32> to vector<32x256xf32>
    %98 = arith.addf %96, %97 : vector<32x256xf32>
    %cst_51 = arith.constant dense<0.000000e+00> : vector<32xf32>
    %99 = vector.multi_reduction <add>, %98, %cst_51 [1] : vector<32x256xf32> to vector<32xf32>
    %100 = vector.shape_cast %99 : vector<32xf32> to vector<32x1xf32>
    %cst_52 = arith.constant 2.560000e+02 : f32
    %101 = vector.broadcast %cst_52 : f32 to vector<32x1xf32>
    %102 = arith.divf %100, %101 : vector<32x1xf32>
    %103 = vector.broadcast %102 : vector<32x1xf32> to vector<32x2xf32>
    %104 = arith.mulf %7, %103 : vector<32x2xf32>
    %cst_53 = arith.constant dense<0.000000e+00> : vector<2xf32>
    %105 = vector.multi_reduction <add>, %104, %cst_53 [0] : vector<32x2xf32> to vector<2xf32>
    %106 = vector.shape_cast %105 : vector<2xf32> to vector<1x2xf32>
    %cst_54 = arith.constant 0.000000e+00 : f32
    %107 = vector.broadcast %cst_54 : f32 to vector<1x2xf32>
    %108 = arith.maximumf %106, %107 : vector<1x2xf32>
    %109 = vector.broadcast %108 : vector<1x2xf32> to vector<32x2xf32>
    %110 = arith.mulf %8, %109 : vector<32x2xf32>
    %cst_55 = arith.constant dense<0.000000e+00> : vector<32xf32>
    %111 = vector.multi_reduction <add>, %110, %cst_55 [1] : vector<32x2xf32> to vector<32xf32>
    %112 = vector.shape_cast %111 : vector<32xf32> to vector<32x1xf32>
    %113 = arith.negf %112 : vector<32x1xf32>
    %114 = math.exp %113 : vector<32x1xf32>
    %cst_56 = arith.constant 1.000000e+00 : f32
    %115 = vector.broadcast %cst_56 : f32 to vector<32x1xf32>
    %116 = arith.addf %115, %114 : vector<32x1xf32>
    %117 = arith.divf %115, %116 : vector<32x1xf32>
    %118 = math.exp %117 : vector<32x1xf32>
    %c0_57 = arith.constant 0 : index
    %c0_58 = arith.constant 0 : index
    %c0_59 = arith.constant 0 : index
    %119 = vector.load %arg1[%c0_57, %c0_58, %c0_59] : memref<4x32x256xf32, #tpu.memory_space<vmem>>, vector<1x32x256xf32>
    %120 = vector.shape_cast %119 : vector<1x32x256xf32> to vector<32x256xf32>
    %121 = vector.broadcast %118 : vector<32x1xf32> to vector<32x256xf32>
    %122 = arith.mulf %120, %121 : vector<32x256xf32>
    %c0_60 = arith.constant 0 : index
    %c0_61 = arith.constant 0 : index
    %c0_62 = arith.constant 0 : index
    %123 = vector.load %arg7[%c0_60, %c0_61, %c0_62] : memref<4x32x256xf32, #tpu.memory_space<vmem>>, vector<1x32x256xf32>
    %124 = vector.shape_cast %123 : vector<1x32x256xf32> to vector<32x256xf32>
    %125 = vector.shape_cast %122 : vector<32x256xf32> to vector<1x32x256xf32>
    tpu.vector_store %arg7[%c0_60, %c0_61, %c0_62], %125 {strides = array<i32>} : memref<4x32x256xf32, #tpu.memory_space<vmem>>, vector<1x32x256xf32>,
    %c1_63 = arith.constant 1 : index
    %c0_64 = arith.constant 0 : index
    %c0_65 = arith.constant 0 : index
    %126 = vector.load %arg1[%c1_63, %c0_64, %c0_65] : memref<4x32x256xf32, #tpu.memory_space<vmem>>, vector<1x32x256xf32>
    %127 = vector.shape_cast %126 : vector<1x32x256xf32> to vector<32x256xf32>
    %cst_66 = arith.constant 0.000000e+00 : f32
    %128 = vector.broadcast %cst_66 : f32 to vector<32x256xf32>
    %c17_i32_67 = arith.constant 17 : i32
    %129 = tpu.dynamic_rotate %127 by %c17_i32_67 dim 1 : vector<32x256xf32>, i32 -> vector<32x256xf32>
    %c0_68 = arith.constant 0 : index
    %c0_69 = arith.constant 0 : index
    %c0_70 = arith.constant 0 : index
    %130 = vector.load %arg2[%c0_68, %c0_69, %c0_70] : memref<9x32x256xf32, #tpu.memory_space<vmem>>, vector<1x32x256xf32>
    %131 = vector.shape_cast %130 : vector<1x32x256xf32> to vector<32x256xf32>
    %132 = arith.mulf %129, %131 : vector<32x256xf32>
    %133 = arith.addf %128, %132 : vector<32x256xf32>
    %c16_i32_71 = arith.constant 16 : i32
    %134 = tpu.dynamic_rotate %127 by %c16_i32_71 dim 1 : vector<32x256xf32>, i32 -> vector<32x256xf32>
    %c1_72 = arith.constant 1 : index
    %c0_73 = arith.constant 0 : index
    %c0_74 = arith.constant 0 : index
    %135 = vector.load %arg2[%c1_72, %c0_73, %c0_74] : memref<9x32x256xf32, #tpu.memory_space<vmem>>, vector<1x32x256xf32>
    %136 = vector.shape_cast %135 : vector<1x32x256xf32> to vector<32x256xf32>
    %137 = arith.mulf %134, %136 : vector<32x256xf32>
    %138 = arith.addf %133, %137 : vector<32x256xf32>
    %c15_i32_75 = arith.constant 15 : i32
    %139 = tpu.dynamic_rotate %127 by %c15_i32_75 dim 1 : vector<32x256xf32>, i32 -> vector<32x256xf32>
    %c2_76 = arith.constant 2 : index
    %c0_77 = arith.constant 0 : index
    %c0_78 = arith.constant 0 : index
    %140 = vector.load %arg2[%c2_76, %c0_77, %c0_78] : memref<9x32x256xf32, #tpu.memory_space<vmem>>, vector<1x32x256xf32>
    %141 = vector.shape_cast %140 : vector<1x32x256xf32> to vector<32x256xf32>
    %142 = arith.mulf %139, %141 : vector<32x256xf32>
    %143 = arith.addf %138, %142 : vector<32x256xf32>
    %c1_i32_79 = arith.constant 1 : i32
    %144 = tpu.dynamic_rotate %127 by %c1_i32_79 dim 1 : vector<32x256xf32>, i32 -> vector<32x256xf32>
    %c3_80 = arith.constant 3 : index
    %c0_81 = arith.constant 0 : index
    %c0_82 = arith.constant 0 : index
    %145 = vector.load %arg2[%c3_80, %c0_81, %c0_82] : memref<9x32x256xf32, #tpu.memory_space<vmem>>, vector<1x32x256xf32>
    %146 = vector.shape_cast %145 : vector<1x32x256xf32> to vector<32x256xf32>
    %147 = arith.mulf %144, %146 : vector<32x256xf32>
    %148 = arith.addf %143, %147 : vector<32x256xf32>
    %c4_83 = arith.constant 4 : index
    %c0_84 = arith.constant 0 : index
    %c0_85 = arith.constant 0 : index
    %149 = vector.load %arg2[%c4_83, %c0_84, %c0_85] : memref<9x32x256xf32, #tpu.memory_space<vmem>>, vector<1x32x256xf32>
    %150 = vector.shape_cast %149 : vector<1x32x256xf32> to vector<32x256xf32>
    %151 = arith.mulf %127, %150 : vector<32x256xf32>
    %152 = arith.addf %148, %151 : vector<32x256xf32>
    %c255_i32_86 = arith.constant 255 : i32
    %153 = tpu.dynamic_rotate %127 by %c255_i32_86 dim 1 : vector<32x256xf32>, i32 -> vector<32x256xf32>
    %c5_87 = arith.constant 5 : index
    %c0_88 = arith.constant 0 : index
    %c0_89 = arith.constant 0 : index
    %154 = vector.load %arg2[%c5_87, %c0_88, %c0_89] : memref<9x32x256xf32, #tpu.memory_space<vmem>>, vector<1x32x256xf32>
    %155 = vector.shape_cast %154 : vector<1x32x256xf32> to vector<32x256xf32>
    %156 = arith.mulf %153, %155 : vector<32x256xf32>
    %157 = arith.addf %152, %156 : vector<32x256xf32>
    %c241_i32_90 = arith.constant 241 : i32
    %158 = tpu.dynamic_rotate %127 by %c241_i32_90 dim 1 : vector<32x256xf32>, i32 -> vector<32x256xf32>
    %c6_91 = arith.constant 6 : index
    %c0_92 = arith.constant 0 : index
    %c0_93 = arith.constant 0 : index
    %159 = vector.load %arg2[%c6_91, %c0_92, %c0_93] : memref<9x32x256xf32, #tpu.memory_space<vmem>>, vector<1x32x256xf32>
    %160 = vector.shape_cast %159 : vector<1x32x256xf32> to vector<32x256xf32>
    %161 = arith.mulf %158, %160 : vector<32x256xf32>
    %162 = arith.addf %157, %161 : vector<32x256xf32>
    %c240_i32_94 = arith.constant 240 : i32
    %163 = tpu.dynamic_rotate %127 by %c240_i32_94 dim 1 : vector<32x256xf32>, i32 -> vector<32x256xf32>
    %c7_95 = arith.constant 7 : index
    %c0_96 = arith.constant 0 : index
    %c0_97 = arith.constant 0 : index
    %164 = vector.load %arg2[%c7_95, %c0_96, %c0_97] : memref<9x32x256xf32, #tpu.memory_space<vmem>>, vector<1x32x256xf32>
    %165 = vector.shape_cast %164 : vector<1x32x256xf32> to vector<32x256xf32>
    %166 = arith.mulf %163, %165 : vector<32x256xf32>
    %167 = arith.addf %162, %166 : vector<32x256xf32>
    %c239_i32_98 = arith.constant 239 : i32
    %168 = tpu.dynamic_rotate %127 by %c239_i32_98 dim 1 : vector<32x256xf32>, i32 -> vector<32x256xf32>
    %c8_99 = arith.constant 8 : index
    %c0_100 = arith.constant 0 : index
    %c0_101 = arith.constant 0 : index
    %169 = vector.load %arg2[%c8_99, %c0_100, %c0_101] : memref<9x32x256xf32, #tpu.memory_space<vmem>>, vector<1x32x256xf32>
    %170 = vector.shape_cast %169 : vector<1x32x256xf32> to vector<32x256xf32>
    %171 = arith.mulf %168, %170 : vector<32x256xf32>
    %172 = arith.addf %167, %171 : vector<32x256xf32>
    %173 = vector.broadcast %0 : vector<32x1xf32> to vector<32x256xf32>
    %174 = arith.addf %172, %173 : vector<32x256xf32>
    %cst_102 = arith.constant 5.000000e-01 : f32
    %175 = vector.broadcast %cst_102 : f32 to vector<32x256xf32>
    %176 = arith.mulf %175, %174 : vector<32x256xf32>
    %cst_103 = arith.constant 4.471500e-02 : f32
    %177 = vector.broadcast %cst_103 : f32 to vector<32x256xf32>
    %178 = arith.mulf %177, %174 : vector<32x256xf32>
    %179 = arith.mulf %178, %174 : vector<32x256xf32>
    %180 = arith.mulf %179, %174 : vector<32x256xf32>
    %181 = arith.addf %174, %180 : vector<32x256xf32>
    %cst_104 = arith.constant 0.797884583 : f32
    %182 = vector.broadcast %cst_104 : f32 to vector<32x256xf32>
    %183 = arith.mulf %182, %181 : vector<32x256xf32>
    %184 = math.tanh %183 : vector<32x256xf32>
    %cst_105 = arith.constant 1.000000e+00 : f32
    %185 = vector.broadcast %cst_105 : f32 to vector<32x256xf32>
    %186 = arith.addf %185, %184 : vector<32x256xf32>
    %187 = arith.mulf %176, %186 : vector<32x256xf32>
    %188 = vector.broadcast %1 : vector<32x1xf32> to vector<32x256xf32>
    %189 = arith.mulf %187, %188 : vector<32x256xf32>
    %190 = vector.broadcast %2 : vector<32x1xf32> to vector<32x256xf32>
    %191 = arith.addf %189, %190 : vector<32x256xf32>
    %c1_106 = arith.constant 1 : index
    %c0_107 = arith.constant 0 : index
    %c0_108 = arith.constant 0 : index
    %192 = vector.load %arg1[%c1_106, %c0_107, %c0_108] : memref<4x32x256xf32, #tpu.memory_space<vmem>>, vector<1x32x256xf32>
    %193 = vector.shape_cast %192 : vector<1x32x256xf32> to vector<32x256xf32>
    %194 = arith.addf %191, %193 : vector<32x256xf32>
    %195 = arith.truncf %194 : vector<32x256xf32> to vector<32x256xbf16>
    %cst_109 = arith.constant dense<0.000000e+00> : vector<32x256xf32>
    %196 = tpu.matmul %6, %195, %cst_109 {dimension_numbers = #tpu.dot_dimension_numbers<[1], [0], [0], [1], [0, 0, 1, 1], [], []>} : vector<32x32xbf16>, vector<32x256xbf16>, vector<32x256xf32> -> vector<32x256xf32>
    %197 = vector.broadcast %3 : vector<32x1xf32> to vector<32x256xf32>
    %198 = arith.addf %196, %197 : vector<32x256xf32>
    %cst_110 = arith.constant 5.000000e-01 : f32
    %199 = vector.broadcast %cst_110 : f32 to vector<32x256xf32>
    %200 = arith.mulf %199, %198 : vector<32x256xf32>
    %cst_111 = arith.constant 4.471500e-02 : f32
    %201 = vector.broadcast %cst_111 : f32 to vector<32x256xf32>
    %202 = arith.mulf %201, %198 : vector<32x256xf32>
    %203 = arith.mulf %202, %198 : vector<32x256xf32>
    %204 = arith.mulf %203, %198 : vector<32x256xf32>
    %205 = arith.addf %198, %204 : vector<32x256xf32>
    %cst_112 = arith.constant 0.797884583 : f32
    %206 = vector.broadcast %cst_112 : f32 to vector<32x256xf32>
    %207 = arith.mulf %206, %205 : vector<32x256xf32>
    %208 = math.tanh %207 : vector<32x256xf32>
    %cst_113 = arith.constant 1.000000e+00 : f32
    %209 = vector.broadcast %cst_113 : f32 to vector<32x256xf32>
    %210 = arith.addf %209, %208 : vector<32x256xf32>
    %211 = arith.mulf %200, %210 : vector<32x256xf32>
    %212 = vector.broadcast %4 : vector<32x1xf32> to vector<32x256xf32>
    %213 = arith.mulf %211, %212 : vector<32x256xf32>
    %214 = vector.broadcast %5 : vector<32x1xf32> to vector<32x256xf32>
    %215 = arith.addf %213, %214 : vector<32x256xf32>
    %cst_114 = arith.constant dense<0.000000e+00> : vector<32xf32>
    %216 = vector.multi_reduction <add>, %215, %cst_114 [1] : vector<32x256xf32> to vector<32xf32>
    %217 = vector.shape_cast %216 : vector<32xf32> to vector<32x1xf32>
    %cst_115 = arith.constant 2.560000e+02 : f32
    %218 = vector.broadcast %cst_115 : f32 to vector<32x1xf32>
    %219 = arith.divf %217, %218 : vector<32x1xf32>
    %220 = vector.broadcast %219 : vector<32x1xf32> to vector<32x2xf32>
    %221 = arith.mulf %7, %220 : vector<32x2xf32>
    %cst_116 = arith.constant dense<0.000000e+00> : vector<2xf32>
    %222 = vector.multi_reduction <add>, %221, %cst_116 [0] : vector<32x2xf32> to vector<2xf32>
    %223 = vector.shape_cast %222 : vector<2xf32> to vector<1x2xf32>
    %cst_117 = arith.constant 0.000000e+00 : f32
    %224 = vector.broadcast %cst_117 : f32 to vector<1x2xf32>
    %225 = arith.maximumf %223, %224 : vector<1x2xf32>
    %226 = vector.broadcast %225 : vector<1x2xf32> to vector<32x2xf32>
    %227 = arith.mulf %8, %226 : vector<32x2xf32>
    %cst_118 = arith.constant dense<0.000000e+00> : vector<32xf32>
    %228 = vector.multi_reduction <add>, %227, %cst_118 [1] : vector<32x2xf32> to vector<32xf32>
    %229 = vector.shape_cast %228 : vector<32xf32> to vector<32x1xf32>
    %230 = arith.negf %229 : vector<32x1xf32>
    %231 = math.exp %230 : vector<32x1xf32>
    %cst_119 = arith.constant 1.000000e+00 : f32
    %232 = vector.broadcast %cst_119 : f32 to vector<32x1xf32>
    %233 = arith.addf %232, %231 : vector<32x1xf32>
    %234 = arith.divf %232, %233 : vector<32x1xf32>
    %235 = math.exp %234 : vector<32x1xf32>
    %c1_120 = arith.constant 1 : index
    %c0_121 = arith.constant 0 : index
    %c0_122 = arith.constant 0 : index
    %236 = vector.load %arg1[%c1_120, %c0_121, %c0_122] : memref<4x32x256xf32, #tpu.memory_space<vmem>>, vector<1x32x256xf32>
    %237 = vector.shape_cast %236 : vector<1x32x256xf32> to vector<32x256xf32>
    %238 = vector.broadcast %235 : vector<32x1xf32> to vector<32x256xf32>
    %239 = arith.mulf %237, %238 : vector<32x256xf32>
    %c1_123 = arith.constant 1 : index
    %c0_124 = arith.constant 0 : index
    %c0_125 = arith.constant 0 : index
    %240 = vector.load %arg7[%c1_123, %c0_124, %c0_125] : memref<4x32x256xf32, #tpu.memory_space<vmem>>, vector<1x32x256xf32>
    %241 = vector.shape_cast %240 : vector<1x32x256xf32> to vector<32x256xf32>
    %242 = vector.shape_cast %239 : vector<32x256xf32> to vector<1x32x256xf32>
    tpu.vector_store %arg7[%c1_123, %c0_124, %c0_125], %242 {strides = array<i32>} : memref<4x32x256xf32, #tpu.memory_space<vmem>>, vector<1x32x256xf32>,
    %c2_126 = arith.constant 2 : index
    %c0_127 = arith.constant 0 : index
    %c0_128 = arith.constant 0 : index
    %243 = vector.load %arg1[%c2_126, %c0_127, %c0_128] : memref<4x32x256xf32, #tpu.memory_space<vmem>>, vector<1x32x256xf32>
    %244 = vector.shape_cast %243 : vector<1x32x256xf32> to vector<32x256xf32>
    %cst_129 = arith.constant 0.000000e+00 : f32
    %245 = vector.broadcast %cst_129 : f32 to vector<32x256xf32>
    %c17_i32_130 = arith.constant 17 : i32
    %246 = tpu.dynamic_rotate %244 by %c17_i32_130 dim 1 : vector<32x256xf32>, i32 -> vector<32x256xf32>
    %c0_131 = arith.constant 0 : index
    %c0_132 = arith.constant 0 : index
    %c0_133 = arith.constant 0 : index
    %247 = vector.load %arg2[%c0_131, %c0_132, %c0_133] : memref<9x32x256xf32, #tpu.memory_space<vmem>>, vector<1x32x256xf32>
    %248 = vector.shape_cast %247 : vector<1x32x256xf32> to vector<32x256xf32>
    %249 = arith.mulf %246, %248 : vector<32x256xf32>
    %250 = arith.addf %245, %249 : vector<32x256xf32>
    %c16_i32_134 = arith.constant 16 : i32
    %251 = tpu.dynamic_rotate %244 by %c16_i32_134 dim 1 : vector<32x256xf32>, i32 -> vector<32x256xf32>
    %c1_135 = arith.constant 1 : index
    %c0_136 = arith.constant 0 : index
    %c0_137 = arith.constant 0 : index
    %252 = vector.load %arg2[%c1_135, %c0_136, %c0_137] : memref<9x32x256xf32, #tpu.memory_space<vmem>>, vector<1x32x256xf32>
    %253 = vector.shape_cast %252 : vector<1x32x256xf32> to vector<32x256xf32>
    %254 = arith.mulf %251, %253 : vector<32x256xf32>
    %255 = arith.addf %250, %254 : vector<32x256xf32>
    %c15_i32_138 = arith.constant 15 : i32
    %256 = tpu.dynamic_rotate %244 by %c15_i32_138 dim 1 : vector<32x256xf32>, i32 -> vector<32x256xf32>
    %c2_139 = arith.constant 2 : index
    %c0_140 = arith.constant 0 : index
    %c0_141 = arith.constant 0 : index
    %257 = vector.load %arg2[%c2_139, %c0_140, %c0_141] : memref<9x32x256xf32, #tpu.memory_space<vmem>>, vector<1x32x256xf32>
    %258 = vector.shape_cast %257 : vector<1x32x256xf32> to vector<32x256xf32>
    %259 = arith.mulf %256, %258 : vector<32x256xf32>
    %260 = arith.addf %255, %259 : vector<32x256xf32>
    %c1_i32_142 = arith.constant 1 : i32
    %261 = tpu.dynamic_rotate %244 by %c1_i32_142 dim 1 : vector<32x256xf32>, i32 -> vector<32x256xf32>
    %c3_143 = arith.constant 3 : index
    %c0_144 = arith.constant 0 : index
    %c0_145 = arith.constant 0 : index
    %262 = vector.load %arg2[%c3_143, %c0_144, %c0_145] : memref<9x32x256xf32, #tpu.memory_space<vmem>>, vector<1x32x256xf32>
    %263 = vector.shape_cast %262 : vector<1x32x256xf32> to vector<32x256xf32>
    %264 = arith.mulf %261, %263 : vector<32x256xf32>
    %265 = arith.addf %260, %264 : vector<32x256xf32>
    %c4_146 = arith.constant 4 : index
    %c0_147 = arith.constant 0 : index
    %c0_148 = arith.constant 0 : index
    %266 = vector.load %arg2[%c4_146, %c0_147, %c0_148] : memref<9x32x256xf32, #tpu.memory_space<vmem>>, vector<1x32x256xf32>
    %267 = vector.shape_cast %266 : vector<1x32x256xf32> to vector<32x256xf32>
    %268 = arith.mulf %244, %267 : vector<32x256xf32>
    %269 = arith.addf %265, %268 : vector<32x256xf32>
    %c255_i32_149 = arith.constant 255 : i32
    %270 = tpu.dynamic_rotate %244 by %c255_i32_149 dim 1 : vector<32x256xf32>, i32 -> vector<32x256xf32>
    %c5_150 = arith.constant 5 : index
    %c0_151 = arith.constant 0 : index
    %c0_152 = arith.constant 0 : index
    %271 = vector.load %arg2[%c5_150, %c0_151, %c0_152] : memref<9x32x256xf32, #tpu.memory_space<vmem>>, vector<1x32x256xf32>
    %272 = vector.shape_cast %271 : vector<1x32x256xf32> to vector<32x256xf32>
    %273 = arith.mulf %270, %272 : vector<32x256xf32>
    %274 = arith.addf %269, %273 : vector<32x256xf32>
    %c241_i32_153 = arith.constant 241 : i32
    %275 = tpu.dynamic_rotate %244 by %c241_i32_153 dim 1 : vector<32x256xf32>, i32 -> vector<32x256xf32>
    %c6_154 = arith.constant 6 : index
    %c0_155 = arith.constant 0 : index
    %c0_156 = arith.constant 0 : index
    %276 = vector.load %arg2[%c6_154, %c0_155, %c0_156] : memref<9x32x256xf32, #tpu.memory_space<vmem>>, vector<1x32x256xf32>
    %277 = vector.shape_cast %276 : vector<1x32x256xf32> to vector<32x256xf32>
    %278 = arith.mulf %275, %277 : vector<32x256xf32>
    %279 = arith.addf %274, %278 : vector<32x256xf32>
    %c240_i32_157 = arith.constant 240 : i32
    %280 = tpu.dynamic_rotate %244 by %c240_i32_157 dim 1 : vector<32x256xf32>, i32 -> vector<32x256xf32>
    %c7_158 = arith.constant 7 : index
    %c0_159 = arith.constant 0 : index
    %c0_160 = arith.constant 0 : index
    %281 = vector.load %arg2[%c7_158, %c0_159, %c0_160] : memref<9x32x256xf32, #tpu.memory_space<vmem>>, vector<1x32x256xf32>
    %282 = vector.shape_cast %281 : vector<1x32x256xf32> to vector<32x256xf32>
    %283 = arith.mulf %280, %282 : vector<32x256xf32>
    %284 = arith.addf %279, %283 : vector<32x256xf32>
    %c239_i32_161 = arith.constant 239 : i32
    %285 = tpu.dynamic_rotate %244 by %c239_i32_161 dim 1 : vector<32x256xf32>, i32 -> vector<32x256xf32>
    %c8_162 = arith.constant 8 : index
    %c0_163 = arith.constant 0 : index
    %c0_164 = arith.constant 0 : index
    %286 = vector.load %arg2[%c8_162, %c0_163, %c0_164] : memref<9x32x256xf32, #tpu.memory_space<vmem>>, vector<1x32x256xf32>
    %287 = vector.shape_cast %286 : vector<1x32x256xf32> to vector<32x256xf32>
    %288 = arith.mulf %285, %287 : vector<32x256xf32>
    %289 = arith.addf %284, %288 : vector<32x256xf32>
    %290 = vector.broadcast %0 : vector<32x1xf32> to vector<32x256xf32>
    %291 = arith.addf %289, %290 : vector<32x256xf32>
    %cst_165 = arith.constant 5.000000e-01 : f32
    %292 = vector.broadcast %cst_165 : f32 to vector<32x256xf32>
    %293 = arith.mulf %292, %291 : vector<32x256xf32>
    %cst_166 = arith.constant 4.471500e-02 : f32
    %294 = vector.broadcast %cst_166 : f32 to vector<32x256xf32>
    %295 = arith.mulf %294, %291 : vector<32x256xf32>
    %296 = arith.mulf %295, %291 : vector<32x256xf32>
    %297 = arith.mulf %296, %291 : vector<32x256xf32>
    %298 = arith.addf %291, %297 : vector<32x256xf32>
    %cst_167 = arith.constant 0.797884583 : f32
    %299 = vector.broadcast %cst_167 : f32 to vector<32x256xf32>
    %300 = arith.mulf %299, %298 : vector<32x256xf32>
    %301 = math.tanh %300 : vector<32x256xf32>
    %cst_168 = arith.constant 1.000000e+00 : f32
    %302 = vector.broadcast %cst_168 : f32 to vector<32x256xf32>
    %303 = arith.addf %302, %301 : vector<32x256xf32>
    %304 = arith.mulf %293, %303 : vector<32x256xf32>
    %305 = vector.broadcast %1 : vector<32x1xf32> to vector<32x256xf32>
    %306 = arith.mulf %304, %305 : vector<32x256xf32>
    %307 = vector.broadcast %2 : vector<32x1xf32> to vector<32x256xf32>
    %308 = arith.addf %306, %307 : vector<32x256xf32>
    %c2_169 = arith.constant 2 : index
    %c0_170 = arith.constant 0 : index
    %c0_171 = arith.constant 0 : index
    %309 = vector.load %arg1[%c2_169, %c0_170, %c0_171] : memref<4x32x256xf32, #tpu.memory_space<vmem>>, vector<1x32x256xf32>
    %310 = vector.shape_cast %309 : vector<1x32x256xf32> to vector<32x256xf32>
    %311 = arith.addf %308, %310 : vector<32x256xf32>
    %312 = arith.truncf %311 : vector<32x256xf32> to vector<32x256xbf16>
    %cst_172 = arith.constant dense<0.000000e+00> : vector<32x256xf32>
    %313 = tpu.matmul %6, %312, %cst_172 {dimension_numbers = #tpu.dot_dimension_numbers<[1], [0], [0], [1], [0, 0, 1, 1], [], []>} : vector<32x32xbf16>, vector<32x256xbf16>, vector<32x256xf32> -> vector<32x256xf32>
    %314 = vector.broadcast %3 : vector<32x1xf32> to vector<32x256xf32>
    %315 = arith.addf %313, %314 : vector<32x256xf32>
    %cst_173 = arith.constant 5.000000e-01 : f32
    %316 = vector.broadcast %cst_173 : f32 to vector<32x256xf32>
    %317 = arith.mulf %316, %315 : vector<32x256xf32>
    %cst_174 = arith.constant 4.471500e-02 : f32
    %318 = vector.broadcast %cst_174 : f32 to vector<32x256xf32>
    %319 = arith.mulf %318, %315 : vector<32x256xf32>
    %320 = arith.mulf %319, %315 : vector<32x256xf32>
    %321 = arith.mulf %320, %315 : vector<32x256xf32>
    %322 = arith.addf %315, %321 : vector<32x256xf32>
    %cst_175 = arith.constant 0.797884583 : f32
    %323 = vector.broadcast %cst_175 : f32 to vector<32x256xf32>
    %324 = arith.mulf %323, %322 : vector<32x256xf32>
    %325 = math.tanh %324 : vector<32x256xf32>
    %cst_176 = arith.constant 1.000000e+00 : f32
    %326 = vector.broadcast %cst_176 : f32 to vector<32x256xf32>
    %327 = arith.addf %326, %325 : vector<32x256xf32>
    %328 = arith.mulf %317, %327 : vector<32x256xf32>
    %329 = vector.broadcast %4 : vector<32x1xf32> to vector<32x256xf32>
    %330 = arith.mulf %328, %329 : vector<32x256xf32>
    %331 = vector.broadcast %5 : vector<32x1xf32> to vector<32x256xf32>
    %332 = arith.addf %330, %331 : vector<32x256xf32>
    %cst_177 = arith.constant dense<0.000000e+00> : vector<32xf32>
    %333 = vector.multi_reduction <add>, %332, %cst_177 [1] : vector<32x256xf32> to vector<32xf32>
    %334 = vector.shape_cast %333 : vector<32xf32> to vector<32x1xf32>
    %cst_178 = arith.constant 2.560000e+02 : f32
    %335 = vector.broadcast %cst_178 : f32 to vector<32x1xf32>
    %336 = arith.divf %334, %335 : vector<32x1xf32>
    %337 = vector.broadcast %336 : vector<32x1xf32> to vector<32x2xf32>
    %338 = arith.mulf %7, %337 : vector<32x2xf32>
    %cst_179 = arith.constant dense<0.000000e+00> : vector<2xf32>
    %339 = vector.multi_reduction <add>, %338, %cst_179 [0] : vector<32x2xf32> to vector<2xf32>
    %340 = vector.shape_cast %339 : vector<2xf32> to vector<1x2xf32>
    %cst_180 = arith.constant 0.000000e+00 : f32
    %341 = vector.broadcast %cst_180 : f32 to vector<1x2xf32>
    %342 = arith.maximumf %340, %341 : vector<1x2xf32>
    %343 = vector.broadcast %342 : vector<1x2xf32> to vector<32x2xf32>
    %344 = arith.mulf %8, %343 : vector<32x2xf32>
    %cst_181 = arith.constant dense<0.000000e+00> : vector<32xf32>
    %345 = vector.multi_reduction <add>, %344, %cst_181 [1] : vector<32x2xf32> to vector<32xf32>
    %346 = vector.shape_cast %345 : vector<32xf32> to vector<32x1xf32>
    %347 = arith.negf %346 : vector<32x1xf32>
    %348 = math.exp %347 : vector<32x1xf32>
    %cst_182 = arith.constant 1.000000e+00 : f32
    %349 = vector.broadcast %cst_182 : f32 to vector<32x1xf32>
    %350 = arith.addf %349, %348 : vector<32x1xf32>
    %351 = arith.divf %349, %350 : vector<32x1xf32>
    %352 = math.exp %351 : vector<32x1xf32>
    %c2_183 = arith.constant 2 : index
    %c0_184 = arith.constant 0 : index
    %c0_185 = arith.constant 0 : index
    %353 = vector.load %arg1[%c2_183, %c0_184, %c0_185] : memref<4x32x256xf32, #tpu.memory_space<vmem>>, vector<1x32x256xf32>
    %354 = vector.shape_cast %353 : vector<1x32x256xf32> to vector<32x256xf32>
    %355 = vector.broadcast %352 : vector<32x1xf32> to vector<32x256xf32>
    %356 = arith.mulf %354, %355 : vector<32x256xf32>
    %c2_186 = arith.constant 2 : index
    %c0_187 = arith.constant 0 : index
    %c0_188 = arith.constant 0 : index
    %357 = vector.load %arg7[%c2_186, %c0_187, %c0_188] : memref<4x32x256xf32, #tpu.memory_space<vmem>>, vector<1x32x256xf32>
    %358 = vector.shape_cast %357 : vector<1x32x256xf32> to vector<32x256xf32>
    %359 = vector.shape_cast %356 : vector<32x256xf32> to vector<1x32x256xf32>
    tpu.vector_store %arg7[%c2_186, %c0_187, %c0_188], %359 {strides = array<i32>} : memref<4x32x256xf32, #tpu.memory_space<vmem>>, vector<1x32x256xf32>,
    %c3_189 = arith.constant 3 : index
    %c0_190 = arith.constant 0 : index
    %c0_191 = arith.constant 0 : index
    %360 = vector.load %arg1[%c3_189, %c0_190, %c0_191] : memref<4x32x256xf32, #tpu.memory_space<vmem>>, vector<1x32x256xf32>
    %361 = vector.shape_cast %360 : vector<1x32x256xf32> to vector<32x256xf32>
    %cst_192 = arith.constant 0.000000e+00 : f32
    %362 = vector.broadcast %cst_192 : f32 to vector<32x256xf32>
    %c17_i32_193 = arith.constant 17 : i32
    %363 = tpu.dynamic_rotate %361 by %c17_i32_193 dim 1 : vector<32x256xf32>, i32 -> vector<32x256xf32>
    %c0_194 = arith.constant 0 : index
    %c0_195 = arith.constant 0 : index
    %c0_196 = arith.constant 0 : index
    %364 = vector.load %arg2[%c0_194, %c0_195, %c0_196] : memref<9x32x256xf32, #tpu.memory_space<vmem>>, vector<1x32x256xf32>
    %365 = vector.shape_cast %364 : vector<1x32x256xf32> to vector<32x256xf32>
    %366 = arith.mulf %363, %365 : vector<32x256xf32>
    %367 = arith.addf %362, %366 : vector<32x256xf32>
    %c16_i32_197 = arith.constant 16 : i32
    %368 = tpu.dynamic_rotate %361 by %c16_i32_197 dim 1 : vector<32x256xf32>, i32 -> vector<32x256xf32>
    %c1_198 = arith.constant 1 : index
    %c0_199 = arith.constant 0 : index
    %c0_200 = arith.constant 0 : index
    %369 = vector.load %arg2[%c1_198, %c0_199, %c0_200] : memref<9x32x256xf32, #tpu.memory_space<vmem>>, vector<1x32x256xf32>
    %370 = vector.shape_cast %369 : vector<1x32x256xf32> to vector<32x256xf32>
    %371 = arith.mulf %368, %370 : vector<32x256xf32>
    %372 = arith.addf %367, %371 : vector<32x256xf32>
    %c15_i32_201 = arith.constant 15 : i32
    %373 = tpu.dynamic_rotate %361 by %c15_i32_201 dim 1 : vector<32x256xf32>, i32 -> vector<32x256xf32>
    %c2_202 = arith.constant 2 : index
    %c0_203 = arith.constant 0 : index
    %c0_204 = arith.constant 0 : index
    %374 = vector.load %arg2[%c2_202, %c0_203, %c0_204] : memref<9x32x256xf32, #tpu.memory_space<vmem>>, vector<1x32x256xf32>
    %375 = vector.shape_cast %374 : vector<1x32x256xf32> to vector<32x256xf32>
    %376 = arith.mulf %373, %375 : vector<32x256xf32>
    %377 = arith.addf %372, %376 : vector<32x256xf32>
    %c1_i32_205 = arith.constant 1 : i32
    %378 = tpu.dynamic_rotate %361 by %c1_i32_205 dim 1 : vector<32x256xf32>, i32 -> vector<32x256xf32>
    %c3_206 = arith.constant 3 : index
    %c0_207 = arith.constant 0 : index
    %c0_208 = arith.constant 0 : index
    %379 = vector.load %arg2[%c3_206, %c0_207, %c0_208] : memref<9x32x256xf32, #tpu.memory_space<vmem>>, vector<1x32x256xf32>
    %380 = vector.shape_cast %379 : vector<1x32x256xf32> to vector<32x256xf32>
    %381 = arith.mulf %378, %380 : vector<32x256xf32>
    %382 = arith.addf %377, %381 : vector<32x256xf32>
    %c4_209 = arith.constant 4 : index
    %c0_210 = arith.constant 0 : index
    %c0_211 = arith.constant 0 : index
    %383 = vector.load %arg2[%c4_209, %c0_210, %c0_211] : memref<9x32x256xf32, #tpu.memory_space<vmem>>, vector<1x32x256xf32>
    %384 = vector.shape_cast %383 : vector<1x32x256xf32> to vector<32x256xf32>
    %385 = arith.mulf %361, %384 : vector<32x256xf32>
    %386 = arith.addf %382, %385 : vector<32x256xf32>
    %c255_i32_212 = arith.constant 255 : i32
    %387 = tpu.dynamic_rotate %361 by %c255_i32_212 dim 1 : vector<32x256xf32>, i32 -> vector<32x256xf32>
    %c5_213 = arith.constant 5 : index
    %c0_214 = arith.constant 0 : index
    %c0_215 = arith.constant 0 : index
    %388 = vector.load %arg2[%c5_213, %c0_214, %c0_215] : memref<9x32x256xf32, #tpu.memory_space<vmem>>, vector<1x32x256xf32>
    %389 = vector.shape_cast %388 : vector<1x32x256xf32> to vector<32x256xf32>
    %390 = arith.mulf %387, %389 : vector<32x256xf32>
    %391 = arith.addf %386, %390 : vector<32x256xf32>
    %c241_i32_216 = arith.constant 241 : i32
    %392 = tpu.dynamic_rotate %361 by %c241_i32_216 dim 1 : vector<32x256xf32>, i32 -> vector<32x256xf32>
    %c6_217 = arith.constant 6 : index
    %c0_218 = arith.constant 0 : index
    %c0_219 = arith.constant 0 : index
    %393 = vector.load %arg2[%c6_217, %c0_218, %c0_219] : memref<9x32x256xf32, #tpu.memory_space<vmem>>, vector<1x32x256xf32>
    %394 = vector.shape_cast %393 : vector<1x32x256xf32> to vector<32x256xf32>
    %395 = arith.mulf %392, %394 : vector<32x256xf32>
    %396 = arith.addf %391, %395 : vector<32x256xf32>
    %c240_i32_220 = arith.constant 240 : i32
    %397 = tpu.dynamic_rotate %361 by %c240_i32_220 dim 1 : vector<32x256xf32>, i32 -> vector<32x256xf32>
    %c7_221 = arith.constant 7 : index
    %c0_222 = arith.constant 0 : index
    %c0_223 = arith.constant 0 : index
    %398 = vector.load %arg2[%c7_221, %c0_222, %c0_223] : memref<9x32x256xf32, #tpu.memory_space<vmem>>, vector<1x32x256xf32>
    %399 = vector.shape_cast %398 : vector<1x32x256xf32> to vector<32x256xf32>
    %400 = arith.mulf %397, %399 : vector<32x256xf32>
    %401 = arith.addf %396, %400 : vector<32x256xf32>
    %c239_i32_224 = arith.constant 239 : i32
    %402 = tpu.dynamic_rotate %361 by %c239_i32_224 dim 1 : vector<32x256xf32>, i32 -> vector<32x256xf32>
    %c8_225 = arith.constant 8 : index
    %c0_226 = arith.constant 0 : index
    %c0_227 = arith.constant 0 : index
    %403 = vector.load %arg2[%c8_225, %c0_226, %c0_227] : memref<9x32x256xf32, #tpu.memory_space<vmem>>, vector<1x32x256xf32>
    %404 = vector.shape_cast %403 : vector<1x32x256xf32> to vector<32x256xf32>
    %405 = arith.mulf %402, %404 : vector<32x256xf32>
    %406 = arith.addf %401, %405 : vector<32x256xf32>
    %407 = vector.broadcast %0 : vector<32x1xf32> to vector<32x256xf32>
    %408 = arith.addf %406, %407 : vector<32x256xf32>
    %cst_228 = arith.constant 5.000000e-01 : f32
    %409 = vector.broadcast %cst_228 : f32 to vector<32x256xf32>
    %410 = arith.mulf %409, %408 : vector<32x256xf32>
    %cst_229 = arith.constant 4.471500e-02 : f32
    %411 = vector.broadcast %cst_229 : f32 to vector<32x256xf32>
    %412 = arith.mulf %411, %408 : vector<32x256xf32>
    %413 = arith.mulf %412, %408 : vector<32x256xf32>
    %414 = arith.mulf %413, %408 : vector<32x256xf32>
    %415 = arith.addf %408, %414 : vector<32x256xf32>
    %cst_230 = arith.constant 0.797884583 : f32
    %416 = vector.broadcast %cst_230 : f32 to vector<32x256xf32>
    %417 = arith.mulf %416, %415 : vector<32x256xf32>
    %418 = math.tanh %417 : vector<32x256xf32>
    %cst_231 = arith.constant 1.000000e+00 : f32
    %419 = vector.broadcast %cst_231 : f32 to vector<32x256xf32>
    %420 = arith.addf %419, %418 : vector<32x256xf32>
    %421 = arith.mulf %410, %420 : vector<32x256xf32>
    %422 = vector.broadcast %1 : vector<32x1xf32> to vector<32x256xf32>
    %423 = arith.mulf %421, %422 : vector<32x256xf32>
    %424 = vector.broadcast %2 : vector<32x1xf32> to vector<32x256xf32>
    %425 = arith.addf %423, %424 : vector<32x256xf32>
    %c3_232 = arith.constant 3 : index
    %c0_233 = arith.constant 0 : index
    %c0_234 = arith.constant 0 : index
    %426 = vector.load %arg1[%c3_232, %c0_233, %c0_234] : memref<4x32x256xf32, #tpu.memory_space<vmem>>, vector<1x32x256xf32>
    %427 = vector.shape_cast %426 : vector<1x32x256xf32> to vector<32x256xf32>
    %428 = arith.addf %425, %427 : vector<32x256xf32>
    %429 = arith.truncf %428 : vector<32x256xf32> to vector<32x256xbf16>
    %cst_235 = arith.constant dense<0.000000e+00> : vector<32x256xf32>
    %430 = tpu.matmul %6, %429, %cst_235 {dimension_numbers = #tpu.dot_dimension_numbers<[1], [0], [0], [1], [0, 0, 1, 1], [], []>} : vector<32x32xbf16>, vector<32x256xbf16>, vector<32x256xf32> -> vector<32x256xf32>
    %431 = vector.broadcast %3 : vector<32x1xf32> to vector<32x256xf32>
    %432 = arith.addf %430, %431 : vector<32x256xf32>
    %cst_236 = arith.constant 5.000000e-01 : f32
    %433 = vector.broadcast %cst_236 : f32 to vector<32x256xf32>
    %434 = arith.mulf %433, %432 : vector<32x256xf32>
    %cst_237 = arith.constant 4.471500e-02 : f32
    %435 = vector.broadcast %cst_237 : f32 to vector<32x256xf32>
    %436 = arith.mulf %435, %432 : vector<32x256xf32>
    %437 = arith.mulf %436, %432 : vector<32x256xf32>
    %438 = arith.mulf %437, %432 : vector<32x256xf32>
    %439 = arith.addf %432, %438 : vector<32x256xf32>
    %cst_238 = arith.constant 0.797884583 : f32
    %440 = vector.broadcast %cst_238 : f32 to vector<32x256xf32>
    %441 = arith.mulf %440, %439 : vector<32x256xf32>
    %442 = math.tanh %441 : vector<32x256xf32>
    %cst_239 = arith.constant 1.000000e+00 : f32
    %443 = vector.broadcast %cst_239 : f32 to vector<32x256xf32>
    %444 = arith.addf %443, %442 : vector<32x256xf32>
    %445 = arith.mulf %434, %444 : vector<32x256xf32>
    %446 = vector.broadcast %4 : vector<32x1xf32> to vector<32x256xf32>
    %447 = arith.mulf %445, %446 : vector<32x256xf32>
    %448 = vector.broadcast %5 : vector<32x1xf32> to vector<32x256xf32>
    %449 = arith.addf %447, %448 : vector<32x256xf32>
    %cst_240 = arith.constant dense<0.000000e+00> : vector<32xf32>
    %450 = vector.multi_reduction <add>, %449, %cst_240 [1] : vector<32x256xf32> to vector<32xf32>
    %451 = vector.shape_cast %450 : vector<32xf32> to vector<32x1xf32>
    %cst_241 = arith.constant 2.560000e+02 : f32
    %452 = vector.broadcast %cst_241 : f32 to vector<32x1xf32>
    %453 = arith.divf %451, %452 : vector<32x1xf32>
    %454 = vector.broadcast %453 : vector<32x1xf32> to vector<32x2xf32>
    %455 = arith.mulf %7, %454 : vector<32x2xf32>
    %cst_242 = arith.constant dense<0.000000e+00> : vector<2xf32>
    %456 = vector.multi_reduction <add>, %455, %cst_242 [0] : vector<32x2xf32> to vector<2xf32>
    %457 = vector.shape_cast %456 : vector<2xf32> to vector<1x2xf32>
    %cst_243 = arith.constant 0.000000e+00 : f32
    %458 = vector.broadcast %cst_243 : f32 to vector<1x2xf32>
    %459 = arith.maximumf %457, %458 : vector<1x2xf32>
    %460 = vector.broadcast %459 : vector<1x2xf32> to vector<32x2xf32>
    %461 = arith.mulf %8, %460 : vector<32x2xf32>
    %cst_244 = arith.constant dense<0.000000e+00> : vector<32xf32>
    %462 = vector.multi_reduction <add>, %461, %cst_244 [1] : vector<32x2xf32> to vector<32xf32>
    %463 = vector.shape_cast %462 : vector<32xf32> to vector<32x1xf32>
    %464 = arith.negf %463 : vector<32x1xf32>
    %465 = math.exp %464 : vector<32x1xf32>
    %cst_245 = arith.constant 1.000000e+00 : f32
    %466 = vector.broadcast %cst_245 : f32 to vector<32x1xf32>
    %467 = arith.addf %466, %465 : vector<32x1xf32>
    %468 = arith.divf %466, %467 : vector<32x1xf32>
    %469 = math.exp %468 : vector<32x1xf32>
    %c3_246 = arith.constant 3 : index
    %c0_247 = arith.constant 0 : index
    %c0_248 = arith.constant 0 : index
    %470 = vector.load %arg1[%c3_246, %c0_247, %c0_248] : memref<4x32x256xf32, #tpu.memory_space<vmem>>, vector<1x32x256xf32>
    %471 = vector.shape_cast %470 : vector<1x32x256xf32> to vector<32x256xf32>
    %472 = vector.broadcast %469 : vector<32x1xf32> to vector<32x256xf32>
    %473 = arith.mulf %471, %472 : vector<32x256xf32>
    %c3_249 = arith.constant 3 : index
    %c0_250 = arith.constant 0 : index
    %c0_251 = arith.constant 0 : index
    %474 = vector.load %arg7[%c3_249, %c0_250, %c0_251] : memref<4x32x256xf32, #tpu.memory_space<vmem>>, vector<1x32x256xf32>
    %475 = vector.shape_cast %474 : vector<1x32x256xf32> to vector<32x256xf32>
    %476 = vector.shape_cast %473 : vector<32x256xf32> to vector<1x32x256xf32>
    tpu.vector_store %arg7[%c3_249, %c0_250, %c0_251], %476 {strides = array<i32>} : memref<4x32x256xf32, #tpu.memory_space<vmem>>, vector<1x32x256xf32>,
    return
  }
  func.func @transform_0(%arg0: i32) -> (i32, i32, i32) {
    %c0_i32 = arith.constant 0 : i32
    %c0_i32_0 = arith.constant 0 : i32
    %c0_i32_1 = arith.constant 0 : i32
    return %arg0, %c0_i32, %c0_i32_0 : i32, i32, i32
  }
  func.func @transform_1(%arg0: i32) -> (i32, i32, i32) {
    %c0_i32 = arith.constant 0 : i32
    %c0_i32_0 = arith.constant 0 : i32
    %c0_i32_1 = arith.constant 0 : i32
    %c0_i32_2 = arith.constant 0 : i32
    return %c0_i32, %c0_i32_0, %c0_i32_1 : i32, i32, i32
  }
  func.func @transform_2(%arg0: i32) -> (i32, i32) {
    %c0_i32 = arith.constant 0 : i32
    %c0_i32_0 = arith.constant 0 : i32
    %c0_i32_1 = arith.constant 0 : i32
    return %c0_i32, %c0_i32_0 : i32, i32
  }
  func.func @transform_3(%arg0: i32) -> (i32, i32) {
    %c0_i32 = arith.constant 0 : i32
    %c0_i32_0 = arith.constant 0 : i32
    %c0_i32_1 = arith.constant 0 : i32
    return %c0_i32, %c0_i32_0 : i32, i32
  }
  func.func @transform_4(%arg0: i32) -> (i32, i32) {
    %c0_i32 = arith.constant 0 : i32
    %c0_i32_0 = arith.constant 0 : i32
    %c0_i32_1 = arith.constant 0 : i32
    return %c0_i32, %c0_i32_0 : i32, i32
  }
  func.func @transform_5(%arg0: i32) -> (i32, i32) {
    %c0_i32 = arith.constant 0 : i32
    %c0_i32_0 = arith.constant 0 : i32
    %c0_i32_1 = arith.constant 0 : i32
    return %c0_i32, %c0_i32_0 : i32, i32
  }
  func.func @transform_6(%arg0: i32) -> (i32, i32, i32) {
    %c0_i32 = arith.constant 0 : i32
    %c0_i32_0 = arith.constant 0 : i32
    %c0_i32_1 = arith.constant 0 : i32
    return %arg0, %c0_i32, %c0_i32_0 : i32, i32, i32
  }
}

</mosaic_0001>

<bundles_post_ra>
// kernel: tpu_custom_call.1
= control target key start
LH: loop header
LB: loop body
LE: loop exit
PB: predicated region body
PF: predicated region fallthrough
CT: control target
= control target key end

     0   :  { %11 = vsyncpa [#allocation3], 0  ;;  %s7810_s0 = inlined_call_operand.hbm [shape: f32[8,32,256], index: 0, kind: input, shape index: {}]   ;;  %s7811_s1 = inlined_call_operand.hbm [shape: f32[9,32,256], index: 1, kind: input, shape index: {}]   ;;  %s7812_s2 = inlined_call_operand.vmem [shape: bf16[32,32], index: 2, kind: input, shape index: {}]   ;;  %s7813_s3 = inlined_call_operand.vmem [shape: f32[32,2], index: 3, kind: input, shape index: {}]   ;;  %s7814_s4 = inlined_call_operand.vmem [shape: f32[32,2], index: 4, kind: input, shape index: {}]   ;;  %s7815_s5 = inlined_call_operand.vmem [shape: f32[32,6], index: 5, kind: input, shape index: {}]   ;;  %s7816_s6 = inlined_call_operand.hbm [shape: f32[8,32,256], index: 6, kind: output, shape index: {}]  }
   0x1   :  { %13 = vsyncpa [#allocation3 + $0x1], 0 }
   0x2   :  { %14 = vsyncpa [#allocation6], 0 }
   0x3   :  { %15 = vsyncpa [#allocation4], 0 }
   0x4   :  { %17 = vsyncpa [#allocation4 + $0x1], 0  ;;  %s4450_s21 = smov 0   ;;  %s4452_s22 = smov 0  }
   0x5   :  { %s4454_s23 = smov 0   ;;  %s4456_s24 = smov 0  }
   0x6 LB: > { %s4471_s25 = sadd.s32 4294967295, %s4394_s24   ;;  %s3758_s26 = sadd.s32 4294967294, %s4394_s24   ;;  %s4394_s24 = sphi %s4456_s24, %s8238_s24   ;;  %s4390_s23 = sphi %s4454_s23, %s8237_s23   ;;  %s4386_s22 = sphi %s4452_s22, %s8236_s22   ;;  %s4382_s21 = sphi %s4450_s21, %s8235_s21  }
   0x7   : > { %p43_p0 = scmp.ne.s32.totalorder %s4386_s22, %s4382_s21  ;;  %p44_p1 = scmp.eq.s32.totalorder %s4471_s25, 0 }
   0x8   : > { %p172_p2 = scmp.eq.s32.totalorder %s4471_s25, 1  ;;  %p178_p3 = scmp.eq.s32.totalorder %s3758_s26, 1 }
   0x9   : > { %p4480_p4 = por %p44_p1, %p43_p0  ;;  %p3759_p5 = scmp.ge.s32.totalorder %s4394_s24, 1 }
   0xa   : > { %p4485_p6 = por %p178_p3, %p43_p0  ;;  %p185_p7 = scmp.lt.s32.totalorder %s4394_s24, 3 }
   0xb   : > { %s196_s7 = sshll.u32 %s7811_s1, 4  ;;  %s4396_s9 = smov [#allocation5]   ;;  %s197_s7 = int_to_ptr.hbm [resolvable:$true] %s196_s7 }
   0xc   : > { %p4493_p8 = pnand %p3759_p5, %p185_p7  ;;  %s198_s10 = sshll.u32 %s4396_s9, 4  ;;  %s199_s10 = int_to_ptr.vmem [resolvable:$true] %s198_s10 }
   0xd   : > { %s4503_s11 = sadd.s32 1, %s4394_s24   ;;  %s7817_s12 = smov 256  }
   0xe   : > { %p3878_p9 = pneg %p4493_p8  ;;  %s7818_s13 = smov 16  }
   0xf   : > { %s27_s14 = ssub.s32 %s4394_s24, %s4503_s11  ;;  %s30_s15 = sadd.s32 1, %s4390_s23 }
  0x10   : > { %p3879_p10 = pnand %p3878_p9, %p44_p1  ;;  %p28_p12 = scmp.eq.s32.totalorder %s27_s14, 0 }
  0x11   : > { %p37_p13 = scmp.ne.s32.totalorder %s4390_s23, %s4386_s22  ;;  %p38_p0 = scmp.eq.s32.totalorder %s4394_s24, 0 }
  0x12   : > { %3881 = dma.hbm_to_vmem [thread:$0]  (!%p3879_p10), %s197_s7, 9216, %s199_s10, [#allocation6], %s7817_s12, %s7817_s12, %s7818_s13  }
  0x13   : > { %s4515_s16 = scalar_select %p28_p12, %s4390_s23, %s30_s15  }
  0x14   : > { %p4519_p3 = por %p172_p2, %p37_p13  ;;  %p3891_p5 = scmp.lt.s32.totalorder %s4394_s24, 2 }
  0x15   : > { %s224_s18 = sand.u32 1, %s4390_s23   ;;  %s3865_s19 = sshll.u32 %s4394_s24, 8 }
  0x16   : > { %p39_p7 = por %p38_p0, %p37_p13  ;;  %s3762_s20 = sshll.u32 %s224_s18, 8 }
  0x17   : > { %s234_s30 = scalar_lea.hbm %s7810_s0, %s3865_s19  ;;  %s228_s9 = scalar_lea.vmem [#allocation2], %s3762_s20 }
  0x18   : > { %s235_s7 = sshll.u32 %s234_s30, 4  ;;  %s237_s10 = sshll.u32 %s228_s9, 4  ;;  %s236_s7 = int_to_ptr.hbm [resolvable:$true] %s235_s7  ;;  %s238_s10 = int_to_ptr.vmem [resolvable:$true] %s237_s10 }
  0x19   : > { %p4529_p9 = pnand %p3891_p5, %p39_p7  ;;  %s225_s15 = scalar_lea.sflag [#allocation3], %s224_s18 }
  0x1a   : > { %s4294_s12 = sshra.s32 %s236_s7, 4  ;;  %s4301_s20 = scalar_lea.hbm %s7810_s0, 512  ;;  %s4295_s12 = int_to_ptr.hbm [resolvable:$true] %s4294_s12 }
  0x1b   : > { %s4296_s13 = scalar_lea.hbm %s4295_s12, 256  ;;  %p4298_p10 = pneg %p4529_p9 }
  0x1c   : > { %p4297_p2 = scmp.ne.s32.totalorder %s4295_s12, %s4296_s13  ;;  %p4302_p0 = scmp.lt.s32.totalorder %s4295_s12, %s7810_s0 }
  0x1d   : > { %p4303_p5 = scmp.lt.s32.totalorder %s4301_s20, %s4296_s13 }
  0x1e   : > { %p4299_p12 = pnand %p4298_p10, %p4297_p2 }
  0x1f   : > { %p4304_p7 = por %p4303_p5, %p4302_p0 }
  0x20   : > { %p4300_p13 = pneg %p4299_p12 }
  0x22   : > { %p4305_p11 = pnand %p4304_p7, %p4300_p13 }
  0x24   : > { %4308 = shalt.err (!%p4305_p11)
}
  0x25   : > { %s7976_s18 = smov 16   ;;  %s7977_s9 = smov 256  }
  0x26   : > { %3885 = dma.hbm_to_vmem [thread:$0]  (!%p4529_p9), %s236_s7, 4096, %s238_s10, %s225_s15, %s7977_s9, %s7977_s9, %s7976_s18  }
  0x27   : > { %249 = sbr.rel (%p4493_p8) target bundleno = 2228 (0x8b4), region = 44 }
  0x2c   : > { %s4549_s19 = sand.u32 1, %s4386_s22  }
  0x2d   : > { %s3767_s12 = sshll.u32 %s4549_s19, 8  ;;  %s252_s13 = scalar_lea.sflag [#allocation3], %s4549_s19 }
  0x2e   : > { %s4555_s26 = scalar_lea.vmem [#allocation2], %s3767_s12 }
  0x2f   : > { %4369 = dma.done.wait (%p4480_p4), %s252_s13, 4096  }
  0x30   : > { %4371 = vsyncadd (%p4480_p4), %s252_s13, 4294963200 }
  0x31   : > { %4373 = dma.done.wait (%p44_p1), [#allocation6], 9216  }
  0x32   : > { %4375 = vsyncadd (%p44_p1), [#allocation6], 4294958080  ;;  %v4566_v0 = vld [vmem:[%s4555_s26 + $0x20] sm:$0xff]  ;;  %s4399_s27 = smov 17   ;;  %v4576_v2 = vld [vmem:[%s4555_s26 + $0x8] sm:$0xff]  ;;  %s4400_s8 = smov 16   ;;  %v333_v59 = vlaneseq }
  0x33   : > { %7978 = vst [vmem:[#allocation11_spill] sm:$0xff] %v4566_v0  ;;  %v4569_v1 = vld [vmem:[%s4555_s26] sm:$0xff]  ;;  %321 = vrot.lane.b32.xlu1 %v4566_v0, %s4399_s27  ;;  %325 = vrot.lane.b32.xlu2 %v4576_v2, %s4399_s27  ;;  %v4581_v3 = vld [vmem:[%s4555_s26 + $0x30] sm:$0xff]  ;;  %s4401_s7 = smov 15   ;;  %s4402_s10 = smov 1   ;;  %v4406_v20 = vmov 0  }
  0x34   : > { %317 = vrot.lane.b32.xlu0 %v4569_v1, %s4399_s27  ;;  %7979 = vst [vmem:[#allocation12_spill] sm:$0xff] %v4581_v3  ;;  %v4584_v4 = vld [vmem:[%s4555_s26 + $0x10] sm:$0xff]  ;;  %v4587_v5 = vld [vmem:[%s4555_s26 + $0x18] sm:$0xff]  ;;  %v4599_v7 = vld [vmem:[%s4555_s26 + $0x28] sm:$0xff]  ;;  %s4403_s14 = smov 127   ;;  %s7869_s15 = smov 113   ;;  %3945 = vset.pattern.permute.xlu1 %v4406_v20 }
  0x35   : > { %v4596_v6 = vld [vmem:[%s4555_s26 + $0x38] sm:$0xff]  ;;  %7981 = vst [vmem:[#allocation14_spill] sm:$0xff] %v4599_v7  ;;  %s7867_s20 = smov 112   ;;  %3947 = vset.pattern.permute.xlu0 %v4406_v20  ;;  %3946 = vset.pattern.permute.xlu2 %v4406_v20  ;;  %s4407_s29 = smov 111   ;;  %v4766_v33 = vld [vmem:[%s7815_s5] sm:$0xff]  ;;  %v4771_v34 = vld [vmem:[%s7815_s5 + $0x8] sm:$0xff] }
  0x36   : > { %7980 = vst [vmem:[#allocation13_spill] sm:$0xff] %v4596_v6  ;;  %v4786_v38 = vld [vmem:[%s7815_s5 + $0x10] sm:$0xff]  ;;  %v4791_v39 = vld [vmem:[%s7815_s5 + $0x18] sm:$0xff]  ;;  %v4408_v42 = vmov 1   ;;  %v4409_v47 = vmov 2   ;;  %v4837_v60 = vand.u32 127, %v333_v59 }
  0x37   : > { %7983 = vst [vmem:[#allocation16_spill] sm:$0xff] %v4766_v33  ;;  %v344_v20 = vld [vmem:[#allocation5] sm:$0xff]  ;;  %vm929_vm8 = vcmask 261120   ;;  %vm1121_vm10 = vcmask 15360   ;;  %s4344_s13 = scalar_lea.hbm %s7816_s6, 512 }
  0x38   : > { %7984 = vst [vmem:[#allocation17_spill] sm:$0xff] %v4771_v34  ;;  %vm335_vm0 = vcmp.lt.s32.totalorder %v4837_v60, 17  ;;  %vm384_vm1 = vcmp.lt.s32.totalorder %v4837_v60, 16  ;;  %vm434_vm2 = vcmp.lt.s32.totalorder %v4837_v60, 15  ;;  %vm484_vm3 = vcmp.lt.s32.totalorder %v4837_v60, 1 }
  0x39   : > { %7986 = vst [vmem:[#allocation19_spill] sm:$0xff] %v4786_v38  ;;  %vm559_vm4 = vcmp.lt.s32.totalorder %v4837_v60, 127  ;;  %vm609_vm5 = vcmp.lt.s32.totalorder %v4837_v60, 113  ;;  %vm7930_vm6 = vcmp.lt.s32.totalorder %v4837_v60, 112  ;;  %vm7929_vm7 = vcmp.lt.s32.totalorder %v4837_v60, 111 }
  0x3a   : > { %7987 = vst [vmem:[#allocation20_spill] sm:$0xff] %v4791_v39 }
  0x3b   : > { %323 = vrot.lane.b32.xlu1 %v4581_v3, %s4399_s27  ;;  %327 = vrot.lane.b32.xlu2 %v4587_v5, %s4399_s27 }
  0x3c   : > { %319 = vrot.lane.b32.xlu0 %v4584_v4, %s4399_s27 }
  0x43   : > { %331 = vrot.lane.b32.xlu1 %v4596_v6, %s4399_s27  ;;  %368 = vrot.lane.b32.xlu2 %v4569_v1, %s4400_s8 }
  0x44   : > { %329 = vrot.lane.b32.xlu0 %v4599_v7, %s4399_s27 }
  0x4b   : > { %372 = vrot.lane.b32.xlu1 %v4566_v0, %s4400_s8  ;;  %374 = vrot.lane.b32.xlu2 %v4581_v3, %s4400_s8 }
  0x4c   : > { %370 = vrot.lane.b32.xlu0 %v4584_v4, %s4400_s8 }
  0x53   : > { %378 = vrot.lane.b32.xlu1 %v4587_v5, %s4400_s8  ;;  %380 = vrot.lane.b32.xlu2 %v4599_v7, %s4400_s8 }
  0x54   : > { %376 = vrot.lane.b32.xlu0 %v4576_v2, %s4400_s8 }
  0x5b   : > { %418 = vrot.lane.b32.xlu1 %v4569_v1, %s4401_s7  ;;  %420 = vrot.lane.b32.xlu2 %v4584_v4, %s4401_s7 }
  0x5c   : > { %382 = vrot.lane.b32.xlu0 %v4596_v6, %s4400_s8 }
  0x63   : > { %424 = vrot.lane.b32.xlu1 %v4581_v3, %s4401_s7  ;;  %426 = vrot.lane.b32.xlu2 %v4576_v2, %s4401_s7 }
  0x64   : > { %422 = vrot.lane.b32.xlu0 %v4566_v0, %s4401_s7 }
  0x6b   : > { %430 = vrot.lane.b32.xlu1 %v4599_v7, %s4401_s7  ;;  %432 = vrot.lane.b32.xlu2 %v4596_v6, %s4401_s7 }
  0x6c   : > { %428 = vrot.lane.b32.xlu0 %v4587_v5, %s4401_s7 }
  0x73   : > { %470 = vrot.lane.b32.xlu1 %v4584_v4, %s4402_s10  ;;  %472 = vrot.lane.b32.xlu2 %v4566_v0, %s4402_s10 }
  0x74   : > { %468 = vrot.lane.b32.xlu0 %v4569_v1, %s4402_s10 }
  0x7b   : > { %476 = vrot.lane.b32.xlu1 %v4576_v2, %s4402_s10  ;;  %478 = vrot.lane.b32.xlu2 %v4587_v5, %s4402_s10 }
  0x7c   : > { %474 = vrot.lane.b32.xlu0 %v4581_v3, %s4402_s10 }
  0x83   : > { %482 = vrot.lane.b32.xlu1 %v4596_v6, %s4402_s10  ;;  %543 = vrot.lane.b32.xlu2 %v4569_v1, %s4403_s14 }
  0x84   : > { %480 = vrot.lane.b32.xlu0 %v4599_v7, %s4402_s10 }
  0x8b   : > { %547 = vrot.lane.b32.xlu1 %v4566_v0, %s4403_s14  ;;  %549 = vrot.lane.b32.xlu2 %v4581_v3, %s4403_s14 }
  0x8c   : > { %545 = vrot.lane.b32.xlu0 %v4584_v4, %s4403_s14 }
  0x8d   : > { %v4661_v8 = vpop.permute.xlu2 %325 }
  0x93   : > { %553 = vrot.lane.b32.xlu1 %v4587_v5, %s4403_s14  ;;  %555 = vrot.lane.b32.xlu2 %v4599_v7, %s4403_s14 }
  0x94   : > { %551 = vrot.lane.b32.xlu0 %v4576_v2, %s4403_s14 }
  0x95   : > { %v4669_v9 = vpop.permute.xlu2 %327 }
  0x9b   : > { %593 = vrot.lane.b32.xlu1 %v4569_v1, %s7869_s15  ;;  %595 = vrot.lane.b32.xlu2 %v4584_v4, %s7869_s15 }
  0x9c   : > { %557 = vrot.lane.b32.xlu0 %v4596_v6, %s4403_s14 }
  0x9d   : > { %v4677_v10 = vpop.permute.xlu2 %368 }
  0xa3   : > { %599 = vrot.lane.b32.xlu1 %v4581_v3, %s7869_s15  ;;  %601 = vrot.lane.b32.xlu2 %v4576_v2, %s7869_s15 }
  0xa4   : > { %597 = vrot.lane.b32.xlu0 %v4566_v0, %s7869_s15 }
  0xa5   : > { %v4683_v11 = vpop.permute.xlu1 %321  ;;  %v4689_v13 = vpop.permute.xlu2 %374 }
  0xa6   : > { %v4685_v12 = vpop.permute.xlu0 %317 }
  0xa7   : > { %v340_v59 = vsel %vm335_vm0, %v4661_v8, %v4685_v12 }
  0xab   : > { %605 = vrot.lane.b32.xlu1 %v4599_v7, %s7869_s15  ;;  %607 = vrot.lane.b32.xlu2 %v4596_v6, %s7869_s15 }
  0xac   : > { %603 = vrot.lane.b32.xlu0 %v4587_v5, %s7869_s15 }
  0xad   : > { %v4695_v14 = vpop.permute.xlu1 %323  ;;  %v4701_v16 = vpop.permute.xlu2 %380 }
  0xae   : > { %v4697_v15 = vpop.permute.xlu0 %319 }
  0xb3   : > { %645 = vrot.lane.b32.xlu1 %v4584_v4, %s7867_s20  ;;  %647 = vrot.lane.b32.xlu2 %v4566_v0, %s7867_s20 }
  0xb4   : > { %643 = vrot.lane.b32.xlu0 %v4569_v1, %s7867_s20 }
  0xb5   : > { %v4707_v17 = vpop.permute.xlu1 %331  ;;  %v4713_v19 = vpop.permute.xlu2 %420 }
  0xb6   : > { %v4709_v18 = vpop.permute.xlu0 %329 }
  0xbb   : > { %651 = vrot.lane.b32.xlu1 %v4576_v2, %s7867_s20  ;;  %653 = vrot.lane.b32.xlu2 %v4587_v5, %s7867_s20 }
  0xbc   : > { %649 = vrot.lane.b32.xlu0 %v4581_v3, %s7867_s20 }
  0xbd   : > { %v4719_v21 = vpop.permute.xlu1 %372  ;;  %v4725_v23 = vpop.permute.xlu2 %426 }
  0xbe   : > { %v4721_v22 = vpop.permute.xlu0 %370 }
  0xc3   : > { %657 = vrot.lane.b32.xlu1 %v4596_v6, %s7867_s20  ;;  %693 = vrot.lane.b32.xlu2 %v4569_v1, %s4407_s29 }
  0xc4   : > { %655 = vrot.lane.b32.xlu0 %v4599_v7, %s7867_s20 }
  0xc5   : > { %v4731_v24 = vpop.permute.xlu1 %378  ;;  %v4737_v26 = vpop.permute.xlu2 %432 }
  0xc6   : > { %v4733_v25 = vpop.permute.xlu0 %376 }
  0xcb   : > { %697 = vrot.lane.b32.xlu1 %v4566_v0, %s4407_s29  ;;  %699 = vrot.lane.b32.xlu2 %v4581_v3, %s4407_s29  ;;  %v400_v3 = vld [vmem:[#allocation5 + $0x70] sm:$0xff] }
  0xcc   : > { %695 = vrot.lane.b32.xlu0 %v4584_v4, %s4407_s29 }
  0xcd   : > { %v4743_v27 = vpop.permute.xlu1 %418  ;;  %v4749_v29 = vpop.permute.xlu2 %472 }
  0xce   : > { %v4745_v28 = vpop.permute.xlu0 %382  ;;  %7982 = vst [vmem:[#allocation15_spill] sm:$0xff] %v4749_v29 }
  0xd3   : > { %703 = vrot.lane.b32.xlu1 %v4587_v5, %s4407_s29  ;;  %705 = vrot.lane.b32.xlu2 %v4599_v7, %s4407_s29 }
  0xd4   : > { %701 = vrot.lane.b32.xlu0 %v4576_v2, %s4407_s29 }
  0xd5   : > { %v4755_v30 = vpop.permute.xlu1 %424  ;;  %v4761_v32 = vpop.permute.xlu2 %478 }
  0xd6   : > { %v4757_v31 = vpop.permute.xlu0 %422 }
  0xdb   : > { %745 = vperm.xlu1 %3945, %v4766_v33   ;;  %750 = vperm.xlu2 %3946, %v4771_v34  }
  0xdc   : > { %707 = vrot.lane.b32.xlu0 %v4596_v6, %s4407_s29 }
  0xdd   : > { %v4776_v35 = vpop.permute.xlu1 %430  ;;  %v4781_v37 = vpop.permute.xlu2 %543 }
  0xde   : > { %v4778_v36 = vpop.permute.xlu0 %428  ;;  %7985 = vst [vmem:[#allocation18_spill] sm:$0xff] %v4781_v37  ;;  %v444_v37 = vld [vmem:[#allocation5 + $0x80] sm:$0xff] }
  0xe3   : > { %760 = vperm.xlu1 %3945, %v4791_v39   ;;  %3948 = vset.pattern.permute.xlu2 %v4408_v42 }
  0xe4   : > { %755 = vperm.xlu0 %3947, %v4786_v38   ;;  %844 = vperm.xlu2 %3948, %v4766_v33  }
  0xe5   : > { %v4795_v40 = vpop.permute.xlu1 %470  ;;  %v4800_v43 = vpop.permute.xlu2 %549 }
  0xe6   : > { %v4797_v41 = vpop.permute.xlu0 %468  ;;  %7988 = vst [vmem:[#allocation21_spill] sm:$0xff] %v4800_v43 }
  0xeb   : > { %3949 = vset.pattern.permute.xlu1 %v4408_v42 }
  0xec   : > { %3950 = vset.pattern.permute.xlu0 %v4408_v42  ;;  %848 = vperm.xlu1 %3949, %v4771_v34   ;;  %v345_v42 = vld [vmem:[#allocation5 + $0x8] sm:$0xff] }
  0xed   : > { %856 = vperm.xlu0 %3950, %v4791_v39   ;;  %v4804_v44 = vpop.permute.xlu1 %476  ;;  %852 = vperm.xlu2 %3948, %v4786_v38   ;;  %v4809_v46 = vpop.permute.xlu2 %555 }
  0xee   : > { %v4806_v45 = vpop.permute.xlu0 %474  ;;  %7990 = vst [vmem:[#allocation23_spill] sm:$0xff] %v4809_v46 }
  0xef   : > { %7989 = vst [vmem:[#allocation22_spill] sm:$0xff] %v4806_v45 }
  0xf4   : > { %3951 = vset.pattern.permute.xlu1 %v4409_v47 }
  0xf5   : > { %v4811_v48 = vpop.permute.xlu1 %482  ;;  %868 = vperm.xlu1 %3951, %v4766_v33   ;;  %3952 = vset.pattern.permute.xlu2 %v4409_v47  ;;  %v4816_v50 = vpop.permute.xlu2 %595  ;;  %v336_v47 = vsel %vm335_vm0, %v4685_v12, %v4661_v8  ;;  %v341_v8 = vsel %vm335_vm0, %v4669_v9, %v4697_v15  ;;  %v398_v12 = vld [vmem:[#allocation5 + $0x60] sm:$0xff] }
  0xf6   : > { %7991 = vst [vmem:[#allocation24_spill] sm:$0xff] %v4811_v48  ;;  %v4813_v49 = vpop.permute.xlu0 %480  ;;  %872 = vperm.xlu2 %3952, %v4771_v34   ;;  %v522_v48 = vld [vmem:[#allocation5 + $0x118] sm:$0xff] }
  0xf7   : > { %7992 = vst [vmem:[#allocation25_spill] sm:$0xff] %v4813_v49 }
  0xf8   : > { %7993 = vst [vmem:[#allocation26_spill] sm:$0xff] %v4816_v50  ;;  %v394_v50 = vld [vmem:[#allocation5 + $0x40] sm:$0xff] }
  0xfd   : > { %v4819_v51 = vpop.permute.xlu1 %547  ;;  %876 = vperm.xlu1 %3951, %v4786_v38   ;;  %v4825_v53 = vpop.permute.xlu2 %601  ;;  %v353_v38 = vmul.f32 %v345_v42, %v336_v47  ;;  %v387_v42 = vsel %vm384_vm1, %v4719_v21, %v4701_v16  ;;  %v391_v47 = vsel %vm384_vm1, %v4701_v16, %v4719_v21  ;;  %v385_v16 = vsel %vm384_vm1, %v4677_v10, %v4733_v25 }
  0xfe   : > { %7994 = vst [vmem:[#allocation27_spill] sm:$0xff] %v4819_v51  ;;  %v4821_v52 = vpop.permute.xlu0 %545  ;;  %880 = vperm.xlu2 %3952, %v4791_v39   ;;  %v352_v39 = vmul.f32 %v344_v20, %v340_v59  ;;  %v399_v20 = vld [vmem:[#allocation5 + $0x68] sm:$0xff]  ;;  %v389_v21 = vsel %vm384_vm1, %v4733_v25, %v4677_v10  ;;  %v390_v10 = vsel %vm384_vm1, %v4731_v24, %v4721_v22 }
  0xff   : > { %7995 = vst [vmem:[#allocation28_spill] sm:$0xff] %v4821_v52  ;;  %v349_v25 = vld [vmem:[#allocation5 + $0x28] sm:$0xff]  ;;  %v406_v43 = vmul.f32 %v398_v12, %v391_v47  ;;  %v351_v52 = vld [vmem:[#allocation5 + $0x38] sm:$0xff]  ;;  %v392_v12 = vsel %vm384_vm1, %v4745_v28, %v4689_v13 }
 0x100   : > { %7996 = vst [vmem:[#allocation29_spill] sm:$0xff] %v4825_v53  ;;  %v386_v53 = vsel %vm384_vm1, %v4721_v22, %v4731_v24  ;;  %v401_v22 = vld [vmem:[#allocation5 + $0x78] sm:$0xff]  ;;  %v388_v24 = vsel %vm384_vm1, %v4689_v13, %v4745_v28  ;;  %v408_v46 = vmul.f32 %v400_v3, %v392_v12  ;;  %v520_v3 = vld [vmem:[#allocation5 + $0x108] sm:$0xff] }
 0x101   : > { %v409_v0 = vmul.f32 %v401_v22, %v388_v24 }
 0x105   : > { %v4827_v54 = vpop.permute.xlu1 %553  ;;  %v4831_v56 = vpop.permute.xlu2 %607 }
 0x106   : > { %7997 = vst [vmem:[#allocation30_spill] sm:$0xff] %v4827_v54  ;;  %v4829_v55 = vpop.permute.xlu0 %551  ;;  %v402_v54 = vmul.f32 %v394_v50, %v389_v21 }
 0x107   : > { %7998 = vst [vmem:[#allocation31_spill] sm:$0xff] %v4829_v55  ;;  %v445_v55 = vld [vmem:[#allocation5 + $0x88] sm:$0xff] }
 0x108   : > { %7999 = vst [vmem:[#allocation32_spill] sm:$0xff] %v4831_v56  ;;  %v338_v56 = vsel %vm335_vm0, %v4683_v11, %v4709_v18  ;;  %v410_v28 = vadd.f32 %v402_v54, %v352_v39  ;;  %v450_v54 = vld [vmem:[#allocation5 + $0xb0] sm:$0xff] }
 0x10d   : > { %v4833_v57 = vpop.permute.xlu1 %593  ;;  %v4839_v61 = vpop.permute.xlu2 %647 }
 0x10e   : > { %8000 = vst [vmem:[#allocation33_spill] sm:$0xff] %v4833_v57  ;;  %v4835_v58 = vpop.permute.xlu0 %557  ;;  %v397_v57 = vld [vmem:[#allocation5 + $0x58] sm:$0xff] }
 0x10f   : > { %8001 = vst [vmem:[#allocation34_spill] sm:$0xff] %v4835_v58  ;;  %v407_v58 = vmul.f32 %v399_v20, %v387_v42  ;;  %v405_v7 = vmul.f32 %v397_v57, %v386_v53  ;;  %v446_v57 = vld [vmem:[#allocation5 + $0x90] sm:$0xff] }
 0x110   : > { %8002 = vst [vmem:[#allocation35_spill] sm:$0xff] %v4839_v61  ;;  %v346_v61 = vld [vmem:[#allocation5 + $0x10] sm:$0xff] }
 0x111   : > { %v354_v20 = vmul.f32 %v346_v61, %v341_v8  ;;  %v447_v61 = vld [vmem:[#allocation5 + $0x98] sm:$0xff] }
 0x112   : > { %v497_v8 = vld [vmem:[#allocation5 + $0xd8] sm:$0xff] }
 0x115   : > { %v4841_v62 = vpop.permute.xlu1 %599  ;;  %v4876_v59 = vpop.permute.xlu2 %653 }
 0x116   : > { %8003 = vst [vmem:[#allocation36_spill] sm:$0xff] %v4841_v62  ;;  %v4843_v63 = vpop.permute.xlu0 %597  ;;  %v348_v62 = vld [vmem:[#allocation5 + $0x20] sm:$0xff] }
 0x117   : > { %8004 = vst [vmem:[#allocation37_spill] sm:$0xff] %v4843_v63  ;;  %v337_v63 = vsel %vm335_vm0, %v4697_v15, %v4669_v9  ;;  %v339_v9 = vsel %vm335_vm0, %v4695_v14, %v4707_v17  ;;  %v343_v15 = vsel %vm335_vm0, %v4707_v17, %v4695_v14  ;;  %v342_v14 = vsel %vm335_vm0, %v4709_v18, %v4683_v11  ;;  %v396_v17 = vld [vmem:[#allocation5 + $0x50] sm:$0xff] }
 0x118   : > { %8007 = vst [vmem:[#allocation40_spill] sm:$0xff] %v4876_v59  ;;  %v350_v59 = vld [vmem:[#allocation5 + $0x30] sm:$0xff]  ;;  %v435_v11 = vsel %vm434_vm2, %v4743_v27, %v4725_v23  ;;  %v439_v18 = vsel %vm434_vm2, %v4725_v23, %v4743_v27  ;;  %v404_v47 = vmul.f32 %v396_v17, %v390_v10  ;;  %v356_v23 = vmul.f32 %v348_v62, %v342_v14  ;;  %v495_v17 = vld [vmem:[#allocation5 + $0xc8] sm:$0xff] }
 0x119   : > { %v357_v27 = vmul.f32 %v349_v25, %v338_v56  ;;  %v452_v50 = vmul.f32 %v444_v37, %v439_v18  ;;  %v358_v21 = vmul.f32 %v350_v59, %v343_v15  ;;  %v359_v51 = vmul.f32 %v351_v52, %v339_v9 }
 0x11a   : > { %v4930_v29 = vadd.f32 %v406_v43, %v356_v23  ;;  %v412_v53 = vadd.f32 %v404_v47, %v354_v20  ;;  %v440_v43 = vsel %vm434_vm2, %v4778_v36, %v4713_v19  ;;  %v436_v62 = vsel %vm434_vm2, %v4713_v19, %v4778_v36  ;;  %v449_v36 = vld [vmem:[#allocation5 + $0xa8] sm:$0xff]  ;;  %v8010_v47 = vld [vmem:[#allocation22_spill] sm:$0xff] }
 0x11b   : > { %v4932_v13 = vadd.f32 %v407_v58, %v357_v27  ;;  %v4938_v52 = vadd.f32 %v452_v50, %v410_v28  ;;  %v416_v39 = vadd.f32 %v408_v46, %v358_v21  ;;  %v442_v58 = vsel %vm434_vm2, %v4737_v26, %v4755_v30  ;;  %v448_v46 = vld [vmem:[#allocation5 + $0xa0] sm:$0xff]  ;;  %v8011_v23 = vld [vmem:[#allocation24_spill] sm:$0xff]  ;;  %v501_v21 = vld [vmem:[#allocation5 + $0xf8] sm:$0xff] }
 0x11c   : > { %v4972_v19 = vmul.f32 %v520_v3, %v4576_v2  ;;  %v486_v59 = vsel %vm484_vm3, %v4795_v40, %v4761_v32  ;;  %v458_v15 = vmul.f32 %v450_v54, %v442_v58  ;;  %v455_v14 = vmul.f32 %v447_v61, %v436_v62  ;;  %v494_v2 = vld [vmem:[#allocation5 + $0xc0] sm:$0xff]  ;;  %v524_v62 = vld [vmem:[#allocation5 + $0x128] sm:$0xff] }
 0x11d   : > { %v4856_v33 = vpop.permute.xlu1 %605  ;;  %v485_v10 = vsel %vm484_vm3, %v4797_v41, %v4804_v44  ;;  %v505_v20 = vmul.f32 %v497_v8, %v486_v59  ;;  %v488_v28 = vsel %vm484_vm3, %v8010_v47, %v8011_v23  ;;  %v8014_v8 = vld [vmem:[#allocation27_spill] sm:$0xff] }
 0x11e   : > { %8005 = vst [vmem:[#allocation38_spill] sm:$0xff] %v4856_v33  ;;  %v4858_v34 = vpop.permute.xlu0 %603  ;;  %v347_v33 = vld [vmem:[#allocation5 + $0x18] sm:$0xff]  ;;  %v466_v3 = vadd.f32 %v458_v15, %v416_v39 }
 0x11f   : > { %8006 = vst [vmem:[#allocation39_spill] sm:$0xff] %v4858_v34  ;;  %v395_v34 = vld [vmem:[#allocation5 + $0x48] sm:$0xff]  ;;  %v355_v42 = vmul.f32 %v347_v33, %v337_v63  ;;  %v451_v63 = vld [vmem:[#allocation5 + $0xb8] sm:$0xff] }
 0x120   : > { %v403_v6 = vmul.f32 %v395_v34, %v385_v16  ;;  %v453_v34 = vmul.f32 %v445_v55, %v435_v11  ;;  %v521_v16 = vld [vmem:[#allocation5 + $0x110] sm:$0xff] }
 0x121   : > { %v413_v56 = vadd.f32 %v405_v7, %v355_v42  ;;  %v4936_v37 = vmul.f32 %v521_v16, %v4584_v4  ;;  %v519_v7 = vld [vmem:[#allocation5 + $0x100] sm:$0xff]  ;;  %v417_v4 = vadd.f32 %v409_v0, %v359_v51  ;;  %v441_v0 = vsel %vm434_vm2, %v4776_v35, %v4757_v31  ;;  %v8009_v11 = vld [vmem:[#allocation25_spill] sm:$0xff] }
 0x122   : > { %v411_v33 = vadd.f32 %v403_v6, %v353_v38  ;;  %v4947_v6 = vmul.f32 %v522_v48, %v4587_v5  ;;  %v4949_v38 = vpop.permute.xlu2 %693  ;;  %v438_v5 = vsel %vm434_vm2, %v4755_v30, %v4737_v26  ;;  %v496_v48 = vld [vmem:[#allocation5 + $0xd0] sm:$0xff]  ;;  %v490_v51 = vsel %vm484_vm3, %v4761_v32, %v4795_v40  ;;  %v498_v40 = vld [vmem:[#allocation5 + $0xe0] sm:$0xff] }
 0x123   : > { %v437_v26 = vsel %vm434_vm2, %v4757_v31, %v4776_v35  ;;  %v454_v30 = vmul.f32 %v446_v57, %v440_v43  ;;  %v4983_v9 = vmul.f32 %v519_v7, %v4569_v1  ;;  %v489_v31 = vsel %vm484_vm3, %v4804_v44, %v4797_v41  ;;  %v8008_v1 = vld [vmem:[#allocation15_spill] sm:$0xff]  ;;  %v500_v42 = vld [vmem:[#allocation5 + $0xf0] sm:$0xff]  ;;  %v499_v44 = vld [vmem:[#allocation5 + $0xe8] sm:$0xff] }
 0x124   : > { %v4940_v55 = vadd.f32 %v453_v34, %v411_v33  ;;  %v459_v35 = vmul.f32 %v451_v63, %v438_v5  ;;  %v456_v25 = vmul.f32 %v448_v46, %v441_v0  ;;  %v504_v32 = vmul.f32 %v496_v48, %v490_v51  ;;  %v523_v33 = vld [vmem:[#allocation5 + $0x120] sm:$0xff]  ;;  %v526_v63 = vld [vmem:[#allocation5 + $0x138] sm:$0xff] }
 0x125   : > { %v4926_v45 = vpop.permute.xlu1 %645  ;;  %v491_v18 = vsel %vm484_vm3, %v8009_v11, %v8008_v1  ;;  %v457_v12 = vmul.f32 %v449_v36, %v437_v26  ;;  %v492_v41 = vsel %vm484_vm3, %v8011_v23, %v8010_v47  ;;  %v487_v27 = vsel %vm484_vm3, %v8008_v1, %v8009_v11  ;;  %v8012_v48 = vld [vmem:[#allocation11_spill] sm:$0xff]  ;;  %v572_v23 = vld [vmem:[#allocation5 + $0x158] sm:$0xff] }
 0x126   : > { %v4928_v49 = vpop.permute.xlu0 %643  ;;  %v462_v50 = vadd.f32 %v454_v30, %v412_v53  ;;  %v502_v34 = vmul.f32 %v494_v2, %v489_v31  ;;  %v503_v16 = vmul.f32 %v495_v17, %v485_v10  ;;  %v463_v57 = vadd.f32 %v455_v14, %v413_v56  ;;  %v525_v53 = vld [vmem:[#allocation5 + $0x130] sm:$0xff]  ;;  %v573_v26 = vld [vmem:[#allocation5 + $0x160] sm:$0xff]  ;;  %v8016_v2 = vld [vmem:[#allocation12_spill] sm:$0xff] }
 0x127   : > { %v506_v43 = vmul.f32 %v498_v40, %v491_v18  ;;  %v467_v7 = vadd.f32 %v459_v35, %v417_v4  ;;  %v508_v58 = vmul.f32 %v500_v42, %v492_v41  ;;  %v507_v61 = vmul.f32 %v499_v44, %v487_v27  ;;  %v8013_v30 = vld [vmem:[#allocation23_spill] sm:$0xff]  ;;  %v8017_v10 = vld [vmem:[#allocation13_spill] sm:$0xff]  ;;  %v8019_v42 = vld [vmem:[#allocation28_spill] sm:$0xff] }
 0x128   : > { %v512_v54 = vadd.f32 %v504_v32, %v462_v50  ;;  %v464_v5 = vadd.f32 %v456_v25, %v4930_v29  ;;  %v513_v46 = vadd.f32 %v505_v20, %v463_v57  ;;  %v509_v0 = vmul.f32 %v501_v21, %v488_v28  ;;  %v8015_v29 = vld [vmem:[#allocation14_spill] sm:$0xff]  ;;  %v571_v18 = vld [vmem:[#allocation5 + $0x150] sm:$0xff] }
 0x129   : > { %v531_v51 = vmul.f32 %v523_v33, %v8012_v48  ;;  %v465_v56 = vadd.f32 %v457_v12, %v4932_v13  ;;  %v510_v39 = vadd.f32 %v502_v34, %v4938_v52  ;;  %v511_v4 = vadd.f32 %v503_v16, %v4940_v55  ;;  %v574_v13 = vld [vmem:[#allocation5 + $0x168] sm:$0xff]  ;;  %v8018_v20 = vld [vmem:[#allocation30_spill] sm:$0xff]  ;;  %v8020_v16 = vld [vmem:[#allocation31_spill] sm:$0xff] }
 0x12a   : > { %v5016_v36 = vpop.permute.xlu2 %699  ;;  %v562_v59 = vsel %vm559_vm4, %v8014_v8, %v8013_v30  ;;  %v514_v15 = vadd.f32 %v506_v43, %v464_v5  ;;  %v532_v14 = vmul.f32 %v524_v62, %v8015_v29  ;;  %v533_v17 = vmul.f32 %v525_v53, %v8016_v2  ;;  %v570_v34 = vld [vmem:[#allocation5 + $0x148] sm:$0xff]  ;;  %v8021_v21 = vld [vmem:[#allocation18_spill] sm:$0xff] }
 0x12b   : > { %v534_v31 = vmul.f32 %v526_v63, %v8017_v10  ;;  %v516_v35 = vadd.f32 %v508_v58, %v466_v3  ;;  %v515_v25 = vadd.f32 %v507_v61, %v465_v56  ;;  %v566_v52 = vsel %vm559_vm4, %v8013_v30, %v8014_v8  ;;  %v8022_v43 = vld [vmem:[#allocation34_spill] sm:$0xff]  ;;  %v620_v48 = vld [vmem:[#allocation5 + $0x188] sm:$0xff]  ;;  %v8025_v56 = vld [vmem:[#allocation33_spill] sm:$0xff] }
 0x12c   : > { %v537_v55 = vadd.f32 %v4936_v37, %v512_v54  ;;  %v517_v1 = vadd.f32 %v509_v0, %v467_v7  ;;  %v581_v11 = vmul.f32 %v573_v26, %v562_v59  ;;  %v538_v12 = vadd.f32 %v4947_v6, %v513_v46  ;;  %v569_v6 = vld [vmem:[#allocation5 + $0x140] sm:$0xff]  ;;  %v8023_v7 = vld [vmem:[#allocation21_spill] sm:$0xff]  ;;  %v576_v53 = vld [vmem:[#allocation5 + $0x178] sm:$0xff] }
 0x12d   : > { %v4997_v22 = vpop.permute.xlu1 %651  ;;  %v561_v47 = vsel %vm559_vm4, %v8019_v42, %v8018_v20  ;;  %v565_v37 = vsel %vm559_vm4, %v8018_v20, %v8019_v42  ;;  %v536_v41 = vadd.f32 %v4972_v19, %v511_v4  ;;  %v535_v44 = vadd.f32 %v4983_v9, %v510_v39  ;;  %v575_v9 = vld [vmem:[#allocation5 + $0x170] sm:$0xff]  ;;  %v619_v0 = vld [vmem:[#allocation5 + $0x180] sm:$0xff]  ;;  %v626_v59 = vld [vmem:[#allocation5 + $0x1b8] sm:$0xff] }
 0x12e   : > { %v4999_v24 = vpop.permute.xlu0 %649  ;;  %v539_v27 = vadd.f32 %v531_v51, %v514_v15  ;;  %v582_v50 = vmul.f32 %v574_v13, %v566_v52  ;;  %v560_v28 = vsel %vm559_vm4, %v8021_v21, %v8020_v16  ;;  %v564_v33 = vsel %vm559_vm4, %v8020_v16, %v8021_v21  ;;  %v8024_v51 = vld [vmem:[#allocation29_spill] sm:$0xff]  ;;  %v8026_v15 = vld [vmem:[#allocation32_spill] sm:$0xff]  ;;  %v8029_v13 = vld [vmem:[#allocation26_spill] sm:$0xff] }
 0x12f   : > { %v540_v3 = vadd.f32 %v532_v14, %v515_v25  ;;  %v579_v19 = vmul.f32 %v571_v18, %v561_v47  ;;  %v541_v57 = vadd.f32 %v533_v17, %v516_v35  ;;  %v563_v54 = vsel %vm559_vm4, %v8023_v7, %v8022_v43  ;;  %v625_v8 = vld [vmem:[#allocation5 + $0x1b0] sm:$0xff]  ;;  %v8027_v29 = vld [vmem:[#allocation36_spill] sm:$0xff]  ;;  %v8028_v25 = vld [vmem:[#allocation39_spill] sm:$0xff] }
 0x130   : > { %v5061_v58 = vadd.f32 %v581_v11, %v539_v27  ;;  %v580_v61 = vmul.f32 %v572_v23, %v565_v37  ;;  %v542_v62 = vadd.f32 %v534_v31, %v517_v1  ;;  %v567_v63 = vsel %vm559_vm4, %v8022_v43, %v8023_v7  ;;  %v621_v35 = vld [vmem:[#allocation5 + $0x190] sm:$0xff]  ;;  %v622_v47 = vld [vmem:[#allocation5 + $0x198] sm:$0xff] }
 0x131   : > { %v577_v5 = vmul.f32 %v569_v6, %v560_v28  ;;  %v578_v46 = vmul.f32 %v570_v34, %v564_v33  ;;  %v610_v39 = vsel %vm609_vm5, %v8025_v56, %v8024_v51  ;;  %v614_v4 = vsel %vm609_vm5, %v8024_v51, %v8025_v56  ;;  %v671_v16 = vld [vmem:[#allocation5 + $0x1d0] sm:$0xff]  ;;  %v672_v21 = vld [vmem:[#allocation5 + $0x1d8] sm:$0xff]  ;;  %v8030_v28 = vld [vmem:[#allocation40_spill] sm:$0xff] }
 0x132   : > { %v5075_v26 = vadd.f32 %v582_v50, %v540_v3  ;;  %v583_v30 = vmul.f32 %v575_v9, %v563_v54  ;;  %v613_v14 = vsel %vm609_vm5, %v8027_v29, %v8026_v15  ;;  %v617_v2 = vsel %vm609_vm5, %v8026_v15, %v8027_v29  ;;  %v5085_v17 = vpop.permute.xlu2 %705  ;;  %v8032_v9 = vld [vmem:[#allocation37_spill] sm:$0xff]  ;;  %v719_v29 = vld [vmem:[#allocation5 + $0x200] sm:$0xff] }
 0x133   : > { %v587_v10 = vadd.f32 %v579_v19, %v537_v55  ;;  %v584_v31 = vmul.f32 %v576_v53, %v567_v63  ;;  %v611_v52 = vsel %vm609_vm5, %v8029_v13, %v8028_v25  ;;  %v588_v18 = vadd.f32 %v580_v61, %v538_v12  ;;  %v623_v19 = vld [vmem:[#allocation5 + $0x1a0] sm:$0xff]  ;;  %v670_v63 = vld [vmem:[#allocation5 + $0x1c8] sm:$0xff] }
 0x134   : > { %v627_v20 = vmul.f32 %v619_v0, %v610_v39  ;;  %v628_v42 = vmul.f32 %v620_v48, %v614_v4  ;;  %v615_v55 = vsel %vm609_vm5, %v8028_v25, %v8029_v13  ;;  %v585_v23 = vadd.f32 %v577_v5, %v535_v44  ;;  %v624_v44 = vld [vmem:[#allocation5 + $0x1a8] sm:$0xff]  ;;  %v669_v53 = vld [vmem:[#allocation5 + $0x1c0] sm:$0xff]  ;;  %v721_v4 = vld [vmem:[#allocation5 + $0x210] sm:$0xff] }
 0x135   : > { %v5033_v32 = vpop.permute.xlu1 %657  ;;  %v586_v37 = vadd.f32 %v578_v46, %v536_v41  ;;  %v633_v27 = vmul.f32 %v625_v8, %v613_v14  ;;  %v634_v50 = vmul.f32 %v626_v59, %v617_v2  ;;  %v591_v6 = vadd.f32 %v583_v30, %v541_v57  ;;  %v8031_v41 = vld [vmem:[#allocation38_spill] sm:$0xff]  ;;  %v720_v14 = vld [vmem:[#allocation5 + $0x208] sm:$0xff] }
 0x136   : > { %v5035_v40 = vpop.permute.xlu0 %655  ;;  %v629_v34 = vmul.f32 %v621_v35, %v611_v52  ;;  %v661_v12 = vsel %vm7930_vm6, %v4926_v45, %v8030_v28  ;;  %v665_v33 = vsel %vm7930_vm6, %v8030_v28, %v4926_v45  ;;  %v592_v3 = vadd.f32 %v584_v31, %v542_v62  ;;  %v722_v30 = vld [vmem:[#allocation5 + $0x218] sm:$0xff]  ;;  %v675_v31 = vld [vmem:[#allocation5 + $0x1f0] sm:$0xff] }
 0x137   : > { %v612_v57 = vsel %vm609_vm5, %v8032_v9, %v8031_v41  ;;  %v616_v43 = vsel %vm609_vm5, %v8031_v41, %v8032_v9  ;;  %v630_v7 = vmul.f32 %v622_v47, %v615_v55  ;;  %v635_v54 = vadd.f32 %v627_v20, %v585_v23  ;;  %v676_v55 = vld [vmem:[#allocation5 + $0x1f8] sm:$0xff]  ;;  %v673_v23 = vld [vmem:[#allocation5 + $0x1e0] sm:$0xff]  ;;  %v724_v9 = vld [vmem:[#allocation5 + $0x228] sm:$0xff] }
 0x138   : > { %v636_v61 = vadd.f32 %v628_v42, %v586_v37  ;;  %v660_v45 = vsel %vm7930_vm6, %v4928_v49, %v4997_v22  ;;  %v664_v62 = vsel %vm7930_vm6, %v4997_v22, %v4928_v49  ;;  %v641_v5 = vadd.f32 %v633_v27, %v591_v6  ;;  %v8034_v37 = vld [vmem:[#allocation35_spill] sm:$0xff] }
 0x139   : > { %v5122_v46 = vadd.f32 %v634_v50, %v592_v3  ;;  %v679_v0 = vmul.f32 %v671_v16, %v661_v12  ;;  %v680_v48 = vmul.f32 %v672_v21, %v665_v33  ;;  %v631_v51 = vmul.f32 %v623_v19, %v612_v57  ;;  %v674_v3 = vld [vmem:[#allocation5 + $0x1e8] sm:$0xff]  ;;  %v723_v41 = vld [vmem:[#allocation5 + $0x220] sm:$0xff] }
 0x13a   : > { %v632_v56 = vmul.f32 %v624_v44, %v616_v43  ;;  %v637_v39 = vadd.f32 %v629_v34, %v587_v10  ;;  %v638_v8 = vadd.f32 %v630_v7, %v588_v18  ;;  %v677_v59 = vmul.f32 %v669_v53, %v660_v45  ;;  %v5139_v47 = vpop.permute.xlu2 %750  ;;  %v726_v53 = vld [vmem:[#allocation5 + $0x238] sm:$0xff] }
 0x13b   : > { %v678_v15 = vmul.f32 %v670_v63, %v664_v62  ;;  %v663_v49 = vsel %vm7930_vm6, %v4999_v24, %v5033_v32  ;;  %8033 = vst [vmem:[#allocation15_spill] sm:$0xff] %v5139_v47  ;;  %v662_v27 = vsel %vm7930_vm6, %v8034_v37, %v5035_v40  ;;  %v639_v6 = vadd.f32 %v631_v51, %v5061_v58 }
 0x13c   : > { %v687_v52 = vadd.f32 %v679_v0, %v637_v39  ;;  %v688_v18 = vadd.f32 %v680_v48, %v638_v8  ;;  %v683_v34 = vmul.f32 %v675_v31, %v663_v49  ;;  %v640_v28 = vadd.f32 %v632_v56, %v5075_v26 }
 0x13d   : > { %v5092_v1 = vpop.permute.xlu1 %697  ;;  %v685_v12 = vadd.f32 %v677_v59, %v635_v54  ;;  %v686_v33 = vadd.f32 %v678_v15, %v636_v61  ;;  %v681_v19 = vmul.f32 %v673_v23, %v662_v27  ;;  %v725_v61 = vld [vmem:[#allocation5 + $0x230] sm:$0xff]  ;;  %v4410_v8 = vmov 3  }
 0x13e   : > { %v696_v11 = vpop.permute.xlu0 %695  ;;  %v712_v26 = vsel %vm7929_vm7, %v5092_v1, %v5085_v17  ;;  %v691_v7 = vadd.f32 %v683_v34, %v641_v5  ;;  %3954 = vset.pattern.permute.xlu1 %v4410_v8  ;;  %3953 = vset.pattern.permute.xlu0 %v4410_v8 }
 0x13f   : > { %v731_v51 = vmul.f32 %v723_v41, %v712_v26  ;;  %3955 = vset.pattern.permute.xlu2 %v4410_v8  ;;  %v8042_v41 = vld [vmem:[#allocation20_spill] sm:$0xff] }
 0x145   : > { %v704_v22 = vpop.permute.xlu1 %703 }
 0x146   : > { %v702_v2 = vpop.permute.xlu0 %701  ;;  %v711_v10 = vsel %vm7929_vm7, %v696_v11, %v704_v22  ;;  %v715_v35 = vsel %vm7929_vm7, %v704_v22, %v696_v11  ;;  %v667_v11 = vsel %vm7930_vm6, %v5033_v32, %v4999_v24  ;;  %v666_v24 = vsel %vm7930_vm6, %v5035_v40, %v8034_v37  ;;  %v5188_v22 = vpop.permute.xlu2 %844 }
 0x147   : > { %v710_v25 = vsel %vm7929_vm7, %v4949_v38, %v702_v2  ;;  %v714_v13 = vsel %vm7929_vm7, %v702_v2, %v4949_v38  ;;  %v729_v20 = vmul.f32 %v721_v4, %v711_v10  ;;  %v730_v42 = vmul.f32 %v722_v30, %v715_v35  ;;  %8036 = vst [vmem:[#allocation22_spill] sm:$0xff] %v5188_v22 }
 0x148   : > { %v727_v50 = vmul.f32 %v719_v29, %v710_v25  ;;  %v728_v38 = vmul.f32 %v720_v14, %v714_v13  ;;  %v684_v32 = vmul.f32 %v676_v55, %v667_v11  ;;  %v716_v40 = vsel %vm7929_vm7, %v5085_v17, %v5092_v1  ;;  %v8037_v29 = vld [vmem:[#allocation17_spill] sm:$0xff]  ;;  %v8038_v25 = vld [vmem:[#allocation16_spill] sm:$0xff] }
 0x149   : > { %v737_v16 = vadd.f32 %v729_v20, %v687_v52  ;;  %v738_v21 = vadd.f32 %v730_v42, %v688_v18  ;;  %v682_v54 = vmul.f32 %v674_v3, %v666_v24  ;;  %v732_v56 = vmul.f32 %v724_v9, %v716_v40  ;;  %908 = vperm.xlu1 %3954, %v8037_v29   ;;  %v8039_v42 = vld [vmem:[#allocation19_spill] sm:$0xff] }
 0x14a   : > { %v735_v57 = vadd.f32 %v727_v50, %v685_v12  ;;  %v736_v43 = vadd.f32 %v728_v38, %v686_v33  ;;  %v692_v31 = vadd.f32 %v684_v32, %v5122_v46  ;;  %904 = vperm.xlu0 %3953, %v8038_v25   ;;  %912 = vperm.xlu2 %3955, %v8039_v42  }
 0x14b   : > { %v5156_v44 = vadd.f32 %v5139_v47, %v737_v16  ;;  %v5159_v58 = vadd.f32 %v5139_v47, %v738_v21  ;;  %v690_v49 = vadd.f32 %v682_v54, %v640_v28 }
 0x14d   : > { %v5169_v45 = vpop.permute.xlu1 %745  ;;  %v781_v62 = vmul.f32 0.044715, %v5156_v44  ;;  %v782_v0 = vmul.f32 0.044715, %v5159_v58  ;;  %v740_v52 = vadd.f32 %v732_v56, %v690_v49 }
 0x14e   : > { %v708_v63 = vpop.permute.xlu0 %707  ;;  %8035 = vst [vmem:[#allocation25_spill] sm:$0xff] %v5169_v45  ;;  %v5180_v1 = vadd.f32 %v5169_v45, %v735_v57  ;;  %v5183_v5 = vadd.f32 %v5169_v45, %v736_v43  ;;  %v5228_v43 = vpop.permute.xlu2 %852  ;;  %v1285_v45 = vld [vmem:[#allocation5] sm:$0xff] }
 0x14f   : > { %v713_v48 = vsel %vm7929_vm7, %v5016_v36, %v708_v63  ;;  %v717_v17 = vsel %vm7929_vm7, %v708_v63, %v5016_v36  ;;  %v789_v39 = vmul.f32 %v781_v62, %v5156_v44  ;;  %v689_v36 = vadd.f32 %v681_v19, %v639_v6  ;;  %8043 = vst [vmem:[#allocation23_spill] sm:$0xff] %v5228_v43 }
 0x150   : > { %v733_v4 = vmul.f32 %v725_v61, %v713_v48  ;;  %v734_v30 = vmul.f32 %v726_v53, %v717_v17  ;;  %v779_v59 = vmul.f32 0.044715, %v5180_v1  ;;  %v780_v15 = vmul.f32 0.044715, %v5183_v5 }
 0x151   : > { %v797_v14 = vmul.f32 %v789_v39, %v5156_v44  ;;  %v790_v2 = vmul.f32 %v782_v0, %v5159_v58  ;;  %v739_v13 = vadd.f32 %v731_v51, %v689_v36  ;;  %916 = vperm.xlu1 %3954, %v8042_v41  }
 0x152   : > { %v787_v10 = vmul.f32 %v779_v59, %v5180_v1  ;;  %v788_v35 = vmul.f32 %v780_v15, %v5183_v5  ;;  %v741_v55 = vadd.f32 %v733_v4, %v691_v7  ;;  %v742_v11 = vadd.f32 %v734_v30, %v692_v31 }
 0x153   : > { %v805_v18 = vadd.f32 %v797_v14, %v5156_v44  ;;  %v798_v20 = vmul.f32 %v790_v2, %v5159_v58  ;;  %v4411_v30 = vmov 4  }
 0x154   : > { %v795_v23 = vmul.f32 %v787_v10, %v5180_v1  ;;  %v796_v46 = vmul.f32 %v788_v35, %v5183_v5  ;;  %3957 = vset.pattern.permute.xlu0 %v4411_v30  ;;  %3956 = vset.pattern.permute.xlu2 %v4411_v30  ;;  %v771_v10 = vmul.f32 0.5, %v5180_v1 }
 0x155   : > { %v5204_v27 = vpop.permute.xlu1 %760  ;;  %v806_v50 = vadd.f32 %v798_v20, %v5159_v58  ;;  %v813_v28 = vmul.f32 0.7978846, %v805_v18  ;;  %1051 = vperm.xlu0 %3957, %v8037_v29   ;;  %1047 = vperm.xlu2 %3956, %v8038_v25   ;;  %v773_v18 = vmul.f32 0.5, %v5156_v44 }
 0x156   : > { %v5202_v37 = vpop.permute.xlu0 %755  ;;  %8041 = vst [vmem:[#allocation11_spill] sm:$0xff] %v5204_v27  ;;  %v5211_v6 = vadd.f32 %v5204_v27, %v741_v55  ;;  %v5217_v16 = vadd.f32 %v5204_v27, %v742_v11  ;;  %v803_v21 = vadd.f32 %v795_v23, %v5180_v1  ;;  %v804_v12 = vadd.f32 %v796_v46, %v5183_v5  ;;  %v5245_v31 = vpop.permute.xlu2 %872 }
 0x157   : > { %8040 = vst [vmem:[#allocation24_spill] sm:$0xff] %v5202_v37  ;;  %v5208_v38 = vadd.f32 %v5202_v37, %v739_v13  ;;  %v5214_v34 = vadd.f32 %v5202_v37, %v740_v52  ;;  %v814_v19 = vmul.f32 0.7978846, %v806_v50  ;;  %3962 = vtanh.f32 %v813_v28  ;;  %v307_v37 = vld [vmem:[%s7814_s4 + $0x10] sm:$0xff] }
 0x158   : > { %v785_v3 = vmul.f32 0.044715, %v5211_v6  ;;  %v786_v32 = vmul.f32 0.044715, %v5217_v16  ;;  %v811_v40 = vmul.f32 0.7978846, %v803_v21 }
 0x159   : > { %v783_v33 = vmul.f32 0.044715, %v5208_v38  ;;  %v784_v24 = vmul.f32 0.044715, %v5214_v34  ;;  %v812_v57 = vmul.f32 0.7978846, %v804_v12  ;;  %3958 = vset.pattern.permute.xlu1 %v4411_v30 }
 0x15a   : > { %v793_v26 = vmul.f32 %v785_v3, %v5211_v6  ;;  %v794_v54 = vmul.f32 %v786_v32, %v5217_v16  ;;  %3964 = vtanh.f32 %v811_v40  ;;  %1055 = vperm.xlu1 %3958, %v8039_v42   ;;  %8045 = vst [vmem:[#allocation14_spill] sm:$0xff] %v5245_v31  ;;  %v772_v23 = vmul.f32 0.5, %v5183_v5 }
 0x15b   : > { %v791_v9 = vmul.f32 %v783_v33, %v5208_v38  ;;  %v792_v7 = vmul.f32 %v784_v24, %v5214_v34  ;;  %3966 = vtanh.f32 %v812_v57  ;;  %v775_v50 = vmul.f32 0.5, %v5208_v38 }
 0x15c   : > { %v801_v53 = vmul.f32 %v793_v26, %v5211_v6  ;;  %v802_v62 = vmul.f32 %v794_v54, %v5217_v16  ;;  %3968 = vtanh.f32 %v814_v19  ;;  %v774_v12 = vmul.f32 0.5, %v5159_v58 }
 0x15d   : > { %v799_v61 = vmul.f32 %v791_v9, %v5208_v38  ;;  %v800_v63 = vmul.f32 %v792_v7, %v5214_v34  ;;  %v3963_v8 = vpop.eup %3962  ;;  %v777_v1 = vmul.f32 0.5, %v5211_v6  ;;  %v776_v24 = vmul.f32 0.5, %v5214_v34  ;;  %1059 = vperm.xlu2 %3956, %v8042_v41  }
 0x15e   : > { %v5236_v0 = vpop.permute.xlu1 %848  ;;  %v809_v17 = vadd.f32 %v801_v53, %v5211_v6  ;;  %v810_v56 = vadd.f32 %v802_v62, %v5217_v16  ;;  %v829_v35 = vadd.f32 1.0, %v3963_v8  ;;  %v778_v58 = vmul.f32 0.5, %v5217_v16 }
 0x15f   : > { %8044 = vst [vmem:[#allocation27_spill] sm:$0xff] %v5236_v0  ;;  %v807_v48 = vadd.f32 %v799_v61, %v5208_v38  ;;  %v808_v51 = vadd.f32 %v800_v63, %v5214_v34  ;;  %v5257_v19 = vpop.permute.xlu0 %856  ;;  %v5265_v63 = vpop.permute.xlu2 %880 }
 0x160   : > { %v817_v4 = vmul.f32 0.7978846, %v809_v17  ;;  %v818_v15 = vmul.f32 0.7978846, %v810_v56  ;;  %v3965_v36 = vpop.eup %3964  ;;  %v837_v28 = vmul.f32 %v829_v35, %v773_v18  ;;  %8047 = vst [vmem:[#allocation13_spill] sm:$0xff] %v5257_v19  ;;  %v4192_v18 = vld [vmem:[%s4555_s26] sm:$0xff] }
 0x161   : > { %v815_v39 = vmul.f32 0.7978846, %v807_v48  ;;  %v816_v59 = vmul.f32 0.7978846, %v808_v51  ;;  %v3967_v49 = vpop.eup %3966  ;;  %v827_v14 = vadd.f32 1.0, %v3965_v36  ;;  %8048 = vst [vmem:[#allocation30_spill] sm:$0xff] %v5265_v63 }
 0x162   : > { %v3969_v2 = vpop.eup %3968  ;;  %v828_v13 = vadd.f32 1.0, %v3967_v49  ;;  %v861_v34 = vmul.f32 %v5236_v0, %v837_v28  ;;  %v4189_v36 = vld [vmem:[%s4555_s26 + $0x30] sm:$0xff]  ;;  %v5291_v28 = vld [vmem:[%s4555_s26 + $0x60] sm:$0xff] }
 0x163   : > { %3970 = vtanh.f32 %v815_v39  ;;  %v835_v20 = vmul.f32 %v827_v14, %v771_v10  ;;  %v830_v55 = vadd.f32 1.0, %v3969_v2  ;;  %v4190_v10 = vld [vmem:[%s4555_s26 + $0x28] sm:$0xff]  ;;  %8050 = vst [vmem:[#allocation31_spill] sm:$0xff] %v5291_v28 }
 0x164   : > { %3972 = vtanh.f32 %v817_v4  ;;  %v836_v32 = vmul.f32 %v828_v13, %v772_v23  ;;  %v4412_v4 = vmov 5   ;;  %v885_v8 = vadd.f32 %v5245_v31, %v861_v34  ;;  %v4191_v13 = vld [vmem:[%s4555_s26 + $0x38] sm:$0xff]  ;;  %v4193_v23 = vld [vmem:[%s4555_s26 + $0x10] sm:$0xff] }
 0x165   : > { %3974 = vtanh.f32 %v816_v59  ;;  %v859_v38 = vmul.f32 %v5188_v22, %v835_v20  ;;  %v838_v26 = vmul.f32 %v830_v55, %v774_v12  ;;  %3961 = vset.pattern.permute.xlu0 %v4412_v4  ;;  %3959 = vset.pattern.permute.xlu1 %v4412_v4  ;;  %v4188_v59 = vld [vmem:[%s4555_s26 + $0x20] sm:$0xff]  ;;  %v4195_v12 = vld [vmem:[%s4555_s26 + $0x18] sm:$0xff] }
 0x166   : > { %3976 = vtanh.f32 %v818_v15  ;;  %v860_v53 = vmul.f32 %v5188_v22, %v836_v32  ;;  %1079 = vperm.xlu0 %3961, %v8039_v42   ;;  %1071 = vperm.xlu1 %3959, %v8038_v25   ;;  %v5307_v32 = vld [vmem:[%s4555_s26 + $0x48] sm:$0xff] }
 0x167   : > { %v5248_v52 = vpop.permute.xlu1 %868  ;;  %v862_v17 = vmul.f32 %v5236_v0, %v838_v26  ;;  %3960 = vset.pattern.permute.xlu2 %v4412_v4  ;;  %v5339_v26 = vld [vmem:[%s4555_s26 + $0x68] sm:$0xff] }
 0x168   : > { %8046 = vst [vmem:[#allocation12_spill] sm:$0xff] %v5248_v52  ;;  %v883_v16 = vadd.f32 %v5248_v52, %v859_v38  ;;  %v884_v2 = vadd.f32 %v5248_v52, %v860_v53  ;;  %1075 = vperm.xlu2 %3960, %v8037_v29   ;;  %v3867_v38 = vld [vmem:[%s7812_s2 + $0x8] sm:$0xff] }
 0x169   : > { %v3971_v11 = vpop.eup %3970  ;;  %v886_v55 = vadd.f32 %v5245_v31, %v862_v17  ;;  %8053 = vst [vmem:[#allocation21_spill] sm:$0xff] %v5339_v26 }
 0x16a   : > { %v3973_v46 = vpop.eup %3972  ;;  %v831_v21 = vadd.f32 1.0, %v3971_v11  ;;  %v891_v20 = vadd.f32 %v4192_v18, %v883_v16 }
 0x16b   : > { %v3975_v33 = vpop.eup %3974  ;;  %v833_v3 = vadd.f32 1.0, %v3973_v46  ;;  %v893_v46 = vadd.f32 %v4193_v23, %v885_v8 }
 0x16c   : > { %v3977_v44 = vpop.eup %3976  ;;  %v839_v5 = vmul.f32 %v831_v21, %v775_v50  ;;  %v832_v9 = vadd.f32 1.0, %v3975_v33  ;;  %v4194_v50 = vld [vmem:[%s4555_s26 + $0x8] sm:$0xff]  ;;  %v894_v33 = vadd.f32 %v4195_v12, %v886_v55 }
 0x16d   : > { %v841_v40 = vmul.f32 %v833_v3, %v777_v1  ;;  %v834_v57 = vadd.f32 1.0, %v3977_v44  ;;  %v892_v21 = vadd.f32 %v4194_v50, %v884_v2  ;;  %v899_v29 = vpack.c.bf16 %v893_v46, %v891_v20  ;;  %v3866_v1 = vld [vmem:[%s7812_s2] sm:$0xff] }
 0x16e   : > { %v863_v6 = vmul.f32 %v5228_v43, %v839_v5  ;;  %v840_v7 = vmul.f32 %v832_v9, %v776_v24  ;;  %1265 = vrot.lane.b32.xlu0 %v5291_v28, %s4399_s27  ;;  %1083 = vperm.xlu1 %3959, %v8042_v41   ;;  %v5301_v24 = vld [vmem:[%s4555_s26 + $0x50] sm:$0xff]  ;;  %v5310_v44 = vld [vmem:[%s4555_s26 + $0x40] sm:$0xff]  ;;  %v5318_v41 = vld [vmem:[%s4555_s26 + $0x58] sm:$0xff] }
 0x16f   : > { %v865_v54 = vmul.f32 %v5257_v19, %v841_v40  ;;  %v842_v61 = vmul.f32 %v834_v57, %v778_v58  ;;  %v5267_v62 = vpop.permute.xlu1 %876  ;;  %v900_v3 = vpack.c.bf16 %v894_v33, %v892_v21  ;;  %v5323_v5 = vld [vmem:[%s4555_s26 + $0x78] sm:$0xff]  ;;  %v5326_v9 = vld [vmem:[%s4555_s26 + $0x70] sm:$0xff] }
 0x170   : > { %8049 = vst [vmem:[#allocation28_spill] sm:$0xff] %v5267_v62  ;;  %v864_v48 = vmul.f32 %v5228_v43, %v840_v7  ;;  %v887_v51 = vadd.f32 %v5267_v62, %v863_v6  ;;  %1263 = vrot.lane.b32.xlu2 %v5301_v24, %s4399_s27 }
 0x171   : > { %v889_v56 = vadd.f32 %v5265_v63, %v865_v54  ;;  %v866_v39 = vmul.f32 %v5257_v19, %v842_v61  ;;  %8051 = vst [vmem:[#allocation18_spill] sm:$0xff] %v5323_v5 }
 0x172   : > { %v888_v30 = vadd.f32 %v5267_v62, %v864_v48  ;;  %v895_v15 = vadd.f32 %v4188_v59, %v887_v51  ;;  %8052 = vst [vmem:[#allocation34_spill] sm:$0xff] %v5326_v9 }
 0x173   : > { %v897_v49 = vadd.f32 %v4189_v36, %v889_v56  ;;  %v890_v14 = vadd.f32 %v5265_v63, %v866_v39 }
 0x174   : > { %v896_v35 = vadd.f32 %v4190_v10, %v888_v30 }
 0x175   : > { %v901_v42 = vpack.c.bf16 %v897_v49, %v895_v15  ;;  %v898_v25 = vadd.f32 %v4191_v13, %v890_v14 }
 0x176   : > { %1269 = vrot.lane.b32.xlu0 %v5307_v32, %s4399_s27  ;;  %1261 = vrot.lane.b32.xlu1 %v5310_v44, %s4399_s27 }
 0x177   : > { %942 = vmatpush.bf16.msra.mxu0 %v901_v42  ;;  %v902_v11 = vpack.c.bf16 %v898_v25, %v896_v35 }
 0x178   : > { %1271 = vrot.lane.b32.xlu2 %v5318_v41, %s4399_s27 }
 0x179   : > { %961 = vmatpush.bf16.msra.mxu1 %v902_v11 }
 0x17b   : > { %943 = vmatpush.bf16.msra.mxu0 %v899_v29 }
 0x17d   : > { %962 = vmatpush.bf16.msra.mxu1 %v900_v3 }
 0x17e   : > { %3778 = vmatmul.msk.bf16.vlgmr.msra.gmra.mxu0 %vm929_vm8, %v3866_v1  ;;  %1275 = vrot.lane.b32.xlu0 %v5323_v5, %s4399_s27 }
 0x17f   : > { %1267 = vrot.lane.b32.xlu1 %v5326_v9, %s4399_s27 }
 0x180   : > { %3780 = vmatmul.msk.bf16.vlgmr.msra.gmra.mxu1 %vm929_vm8, %v3866_v1  ;;  %1309 = vrot.lane.b32.xlu2 %v5310_v44, %s4400_s8 }
 0x186   : > { %1313 = vrot.lane.b32.xlu0 %v5291_v28, %s4400_s8 }
 0x187   : > { %1273 = vrot.lane.b32.xlu1 %v5339_v26, %s4399_s27 }
 0x188   : > { %1315 = vrot.lane.b32.xlu2 %v5326_v9, %s4400_s8 }
 0x18e   : > { %3779 = vmatmul.msk.bf16.gmra.mxu0 %vm929_vm8, %v3867_v38  ;;  %1319 = vrot.lane.b32.xlu0 %v5318_v41, %s4400_s8 }
 0x18f   : > { %1311 = vrot.lane.b32.xlu1 %v5301_v24, %s4400_s8 }
 0x190   : > { %3781 = vmatmul.msk.bf16.gmra.mxu1 %vm929_vm8, %v3867_v38  ;;  %1321 = vrot.lane.b32.xlu2 %v5339_v26, %s4400_s8 }
 0x196   : > { %1357 = vrot.lane.b32.xlu0 %v5310_v44, %s4401_s7 }
 0x197   : > { %1317 = vrot.lane.b32.xlu1 %v5307_v32, %s4400_s8 }
 0x1a4   : > { %v5364_v61 = vpop.permute.xlu2 %912 }
 0x1a5   : > { %8056 = vst [vmem:[#allocation32_spill] sm:$0xff] %v5364_v61 }
 0x1af   : > { %v5370_v10 = vpop.permute.xlu2 %1047 }
 0x1b0   : > { %8058 = vst [vmem:[#allocation39_spill] sm:$0xff] %v5370_v10 }
 0x1bb   : > { %v5358_v40 = vpop.permute.xlu1 %908 }
 0x1bc   : > { %8054 = vst [vmem:[#allocation29_spill] sm:$0xff] %v5358_v40  ;;  %v5360_v58 = vpop.permute.xlu0 %904 }
 0x1bd   : > { %8055 = vst [vmem:[#allocation33_spill] sm:$0xff] %v5360_v58 }
 0x1c3   : > { %v5366_v53 = vpop.permute.xlu1 %916 }
 0x1c4   : > { %8057 = vst [vmem:[#allocation36_spill] sm:$0xff] %v5366_v53 }
 0x1cc   : > { %v5372_v42 = vpop.permute.xlu1 %1055 }
 0x1cd   : > { %8059 = vst [vmem:[#allocation26_spill] sm:$0xff] %v5372_v42 }
 0x1fb   : > { %v945_v57 = vpop.f32.mrf.mxu0 }
 0x1fc   : > { %v946_v6 = vadd.f32 %v945_v57, %v5360_v58 }
 0x1fd   : > { %v964_v7 = vpop.f32.mrf.mxu1 }
 0x1fe   : > { %v982_v34 = vmul.f32 0.044715, %v946_v6  ;;  %v965_v54 = vadd.f32 %v964_v7, %v5360_v58  ;;  %v974_v33 = vmul.f32 0.5, %v946_v6 }
 0x200   : > { %v990_v48 = vmul.f32 %v982_v34, %v946_v6  ;;  %v983_v16 = vmul.f32 0.044715, %v965_v54  ;;  %v975_v34 = vmul.f32 0.5, %v965_v54 }
 0x202   : > { %v998_v17 = vmul.f32 %v990_v48, %v946_v6  ;;  %v991_v51 = vmul.f32 %v983_v16, %v965_v54 }
 0x203   : > { %v947_v56 = vpop.f32.mrf.mxu0 }
 0x204   : > { %v999_v39 = vmul.f32 %v991_v51, %v965_v54  ;;  %v948_v4 = vadd.f32 %v947_v56, %v5358_v40  ;;  %v1006_v30 = vadd.f32 %v998_v17, %v946_v6  ;;  %v5376_v56 = vpop.permute.xlu2 %1059 }
 0x205   : > { %v966_v8 = vpop.f32.mrf.mxu1  ;;  %8060 = vst [vmem:[#allocation40_spill] sm:$0xff] %v5376_v56 }
 0x206   : > { %v984_v59 = vmul.f32 0.044715, %v948_v4  ;;  %v967_v15 = vadd.f32 %v966_v8, %v5358_v40  ;;  %v1007_v36 = vadd.f32 %v999_v39, %v965_v54  ;;  %v1014_v49 = vmul.f32 0.7978846, %v1006_v30  ;;  %v5379_v8 = vpop.permute.xlu1 %1071 }
 0x207   : > { %8061 = vst [vmem:[#allocation38_spill] sm:$0xff] %v5379_v8 }
 0x208   : > { %v992_v14 = vmul.f32 %v984_v59, %v948_v4  ;;  %v985_v2 = vmul.f32 0.044715, %v967_v15  ;;  %v1015_v35 = vmul.f32 0.7978846, %v1007_v36  ;;  %3978 = vtanh.f32 %v1014_v49 }
 0x20a   : > { %v1000_v13 = vmul.f32 %v992_v14, %v948_v4  ;;  %v993_v25 = vmul.f32 %v985_v2, %v967_v15  ;;  %3980 = vtanh.f32 %v1015_v35 }
 0x20b   : > { %v950_v18 = vpop.f32.mrf.mxu0 }
 0x20c   : > { %v1001_v20 = vmul.f32 %v993_v25, %v967_v15  ;;  %v951_v55 = vadd.f32 %v950_v18, %v5364_v61  ;;  %v1008_v11 = vadd.f32 %v1000_v13, %v948_v4  ;;  %v976_v13 = vmul.f32 0.5, %v948_v4 }
 0x20d   : > { %v969_v23 = vpop.f32.mrf.mxu1 }
 0x20e   : > { %v3979_v46 = vpop.eup %3978  ;;  %v986_v50 = vmul.f32 0.044715, %v951_v55  ;;  %v970_v21 = vadd.f32 %v969_v23, %v5364_v61  ;;  %v1009_v29 = vadd.f32 %v1001_v20, %v967_v15  ;;  %v1016_v12 = vmul.f32 0.7978846, %v1008_v11  ;;  %v304_v61 = vld [vmem:[%s7813_s3 + $0x18] sm:$0xff] }
 0x20f   : > { %v1030_v1 = vadd.f32 1.0, %v3979_v46  ;;  %v977_v23 = vmul.f32 0.5, %v967_v15 }
 0x210   : > { %v3981_v3 = vpop.eup %3980  ;;  %v994_v38 = vmul.f32 %v986_v50, %v951_v55  ;;  %v987_v57 = vmul.f32 0.044715, %v970_v21  ;;  %v1017_v7 = vmul.f32 0.7978846, %v1009_v29  ;;  %3982 = vtanh.f32 %v1016_v12  ;;  %v5384_v29 = vpop.permute.xlu0 %1051 }
 0x211   : > { %v1031_v48 = vadd.f32 1.0, %v3981_v3  ;;  %v1038_v16 = vmul.f32 %v1030_v1, %v974_v33  ;;  %8062 = vst [vmem:[#allocation37_spill] sm:$0xff] %v5384_v29  ;;  %v5387_v1 = vpop.permute.xlu2 %1075 }
 0x212   : > { %v1002_v17 = vmul.f32 %v994_v38, %v951_v55  ;;  %v995_v51 = vmul.f32 %v987_v57, %v970_v21  ;;  %3984 = vtanh.f32 %v1017_v7  ;;  %8063 = vst [vmem:[#allocation35_spill] sm:$0xff] %v5387_v1  ;;  %v978_v7 = vmul.f32 0.5, %v951_v55 }
 0x213   : > { %v1039_v39 = vmul.f32 %v1031_v48, %v975_v34  ;;  %v1062_v30 = vmul.f32 %v5370_v10, %v1038_v16  ;;  %v979_v16 = vmul.f32 0.5, %v970_v21 }
 0x214   : > { %v1003_v6 = vmul.f32 %v995_v51, %v970_v21  ;;  %v1010_v59 = vadd.f32 %v1002_v17, %v951_v55  ;;  %v952_v55 = vpop.f32.mrf.mxu0 }
 0x215   : > { %v1063_v36 = vmul.f32 %v5370_v10, %v1039_v39  ;;  %v1086_v49 = vadd.f32 %v5379_v8, %v1062_v30 }
 0x216   : > { %v3983_v14 = vpop.eup %3982  ;;  %v1011_v54 = vadd.f32 %v1003_v6, %v970_v21  ;;  %v1018_v2 = vmul.f32 0.7978846, %v1010_v59  ;;  %v953_v21 = vadd.f32 %v952_v55, %v5366_v53 }
 0x217   : > { %v1087_v35 = vadd.f32 %v5379_v8, %v1063_v36  ;;  %v1032_v25 = vadd.f32 1.0, %v3983_v14  ;;  %v301_v8 = vld [vmem:[%s7813_s3] sm:$0xff] }
 0x218   : > { %v3985_v18 = vpop.eup %3984  ;;  %v1019_v20 = vmul.f32 0.7978846, %v1011_v54  ;;  %3986 = vtanh.f32 %v1018_v2  ;;  %v5393_v6 = vpop.permute.xlu0 %1079 }
 0x219   : > { %v1094_v11 = vadd.f32 %v1087_v35, %v1086_v49  ;;  %v1033_v46 = vadd.f32 1.0, %v3985_v18  ;;  %v1040_v50 = vmul.f32 %v1032_v25, %v976_v13  ;;  %8064 = vst [vmem:[#allocation17_spill] sm:$0xff] %v5393_v6  ;;  %v971_v54 = vpop.f32.mrf.mxu1  ;;  %v988_v35 = vmul.f32 0.044715, %v953_v21 }
 0x21a   : > { %3988 = vtanh.f32 %v1019_v20  ;;  %v972_v2 = vadd.f32 %v971_v54, %v5366_v53 }
 0x21b   : > { %1095 = vadd.xlane.f32.xlu2 %v1094_v11  ;;  %v1041_v12 = vmul.f32 %v1033_v46, %v977_v23  ;;  %v1064_v33 = vmul.f32 %v5384_v29, %v1040_v50  ;;  %v996_v25 = vmul.f32 %v988_v35, %v953_v21 }
 0x21c   : > { %v989_v13 = vmul.f32 0.044715, %v972_v2 }
 0x21d   : > { %v1065_v3 = vmul.f32 %v5384_v29, %v1041_v12  ;;  %v1088_v4 = vadd.f32 %v5387_v1, %v1064_v33  ;;  %v1004_v20 = vmul.f32 %v996_v25, %v953_v21 }
 0x21e   : > { %v3987_v38 = vpop.eup %3986  ;;  %v997_v18 = vmul.f32 %v989_v13, %v972_v2 }
 0x21f   : > { %v1089_v57 = vadd.f32 %v5387_v1, %v1065_v3  ;;  %v1034_v15 = vadd.f32 1.0, %v3987_v38  ;;  %v1012_v23 = vadd.f32 %v1004_v20, %v953_v21 }
 0x220   : > { %v3989_v34 = vpop.eup %3988  ;;  %v1005_v11 = vmul.f32 %v997_v18, %v972_v2 }
 0x221   : > { %v1097_v48 = vadd.f32 %v1089_v57, %v1088_v4  ;;  %v1035_v17 = vadd.f32 1.0, %v3989_v34  ;;  %v1042_v51 = vmul.f32 %v1034_v15, %v978_v7  ;;  %v1020_v50 = vmul.f32 0.7978846, %v1012_v23 }
 0x222   : > { %v1013_v46 = vadd.f32 %v1005_v11, %v972_v2  ;;  %v980_v57 = vmul.f32 0.5, %v953_v21  ;;  %v981_v7 = vmul.f32 0.5, %v972_v2  ;;  %v5472_v2 = vpop.permute.xlu2 %1263 }
 0x223   : > { %1098 = vadd.xlane.f32.xlu1 %v1097_v48  ;;  %v1043_v39 = vmul.f32 %v1035_v17, %v979_v16  ;;  %v1066_v30 = vmul.f32 %v5372_v42, %v1042_v51  ;;  %3990 = vtanh.f32 %v1020_v50  ;;  %v5424_v17 = vpop.permute.xlu1 %1083 }
 0x224   : > { %v1021_v12 = vmul.f32 0.7978846, %v1013_v46  ;;  %8065 = vst [vmem:[#allocation16_spill] sm:$0xff] %v5424_v17 }
 0x225   : > { %v1067_v59 = vmul.f32 %v5372_v42, %v1043_v39  ;;  %v1090_v36 = vadd.f32 %v5393_v6, %v1066_v30 }
 0x226   : > { %3992 = vtanh.f32 %v1021_v12 }
 0x227   : > { %v1091_v49 = vadd.f32 %v5393_v6, %v1067_v59  ;;  %v5436_v59 = vpop.permute.xlu0 %1265 }
 0x229   : > { %v1100_v14 = vadd.f32 %v1091_v49, %v1090_v36  ;;  %v3991_v33 = vpop.eup %3990 }
 0x22a   : > { %v1036_v4 = vadd.f32 1.0, %v3991_v33  ;;  %v5484_v25 = vpop.permute.xlu2 %1271 }
 0x22b   : > { %1101 = vadd.xlane.f32.xlu0 %v1100_v14  ;;  %v5444_v36 = vpop.permute.xlu1 %1261 }
 0x22c   : > { %v3993_v3 = vpop.eup %3992  ;;  %v1044_v15 = vmul.f32 %v1036_v4, %v980_v57  ;;  %v4413_v4 = vmov 256.0  }
 0x22d   : > { %v1037_v38 = vadd.f32 1.0, %v3993_v3  ;;  %3994 = vrcp.f32 %v4413_v4 }
 0x22e   : > { %v1068_v48 = vmul.f32 %v5376_v56, %v1044_v15 }
 0x22f   : > { %v1045_v34 = vmul.f32 %v1037_v38, %v981_v7  ;;  %v5446_v49 = vpop.permute.xlu0 %1269 }
 0x230   : > { %v1092_v51 = vadd.f32 %v5424_v17, %v1068_v48  ;;  %v1281_v47 = vsel %vm335_vm0, %v5446_v49, %v5444_v36 }
 0x231   : > { %v1069_v16 = vmul.f32 %v5376_v56, %v1045_v34 }
 0x232   : > { %v5494_v20 = vpop.permute.xlu2 %1309 }
 0x233   : > { %1359 = vrot.lane.b32.xlu2 %v5301_v24, %s4401_s7  ;;  %v1093_v39 = vadd.f32 %v5424_v17, %v1069_v16  ;;  %v5454_v14 = vpop.permute.xlu1 %1267  ;;  %v3995_v7 = vpop.eup %3994 }
 0x234   : > { %v1107_v34 = vmul.f32 256.0, %v3995_v7  ;;  %vm1111_vm9 = vweird.f32 %v3995_v7 }
 0x235   : > { %v1103_v30 = vadd.f32 %v1093_v39, %v1092_v51 }
 0x236   : > { %v1108_v16 = vsub.f32 1.0, %v1107_v34 }
 0x237   : > { %v5456_v55 = vpop.permute.xlu0 %1275 }
 0x238   : > { %v1109_v39 = vmul.f32 %v3995_v7, %v1108_v16  ;;  %v302_v16 = vld [vmem:[%s7813_s3 + $0x8] sm:$0xff] }
 0x23a   : > { %v5506_v46 = vpop.permute.xlu2 %1315  ;;  %v1110_v17 = vadd.f32 %v3995_v7, %v1109_v39 }
 0x23b   : > { %1365 = vrot.lane.b32.xlu2 %v5307_v32, %s4401_s7  ;;  %v5464_v54 = vpop.permute.xlu1 %1273 }
 0x23c   : > { %1323 = vrot.lane.b32.xlu1 %v5323_v5, %s4400_s8  ;;  %v5546_v6 = vsel %vm1111_vm9, %v3995_v7, %v1110_v17  ;;  %v303_v17 = vld [vmem:[%s7813_s3 + $0x10] sm:$0xff] }
 0x23d   : > { %8066 = vst [vmem:[#allocation19_spill] sm:$0xff] %v5546_v6 }
 0x23f   : > { %1363 = vrot.lane.b32.xlu0 %v5326_v9, %s4401_s7  ;;  %v5470_v21 = vpop.permute.xlu0 %1313 }
 0x242   : > { %v5518_v3 = vpop.permute.xlu2 %1321 }
 0x243   : > { %v5480_v35 = vpop.permute.xlu1 %1311 }
 0x244   : > { %1361 = vrot.lane.b32.xlu1 %v5291_v28, %s4401_s7 }
 0x247   : > { %1369 = vrot.lane.b32.xlu0 %v5339_v26, %s4401_s7  ;;  %v5482_v13 = vpop.permute.xlu0 %1319 }
 0x24b   : > { %v5492_v18 = vpop.permute.xlu1 %1317 }
 0x24c   : > { %1367 = vrot.lane.b32.xlu1 %v5318_v41, %s4401_s7 }
 0x24f   : > { %1407 = vrot.lane.b32.xlu0 %v5301_v24, %s4402_s10  ;;  %v5496_v11 = vpop.permute.xlu0 %1357 }
 0x254   : > { %1405 = vrot.lane.b32.xlu1 %v5310_v44, %s4402_s10 }
 0x257   : > { %1413 = vrot.lane.b32.xlu0 %v5307_v32, %s4402_s10 }
 0x25c   : > { %1411 = vrot.lane.b32.xlu1 %v5326_v9, %s4402_s10 }
 0x25f   : > { %1419 = vrot.lane.b32.xlu0 %v5323_v5, %s4402_s10 }
 0x264   : > { %1104 = vadd.xlane.f32.xlu2 %v1103_v30  ;;  %1417 = vrot.lane.b32.xlu1 %v5339_v26, %s4402_s10 }
 0x267   : > { %1481 = vrot.lane.b32.xlu0 %v5291_v28, %s4403_s14 }
 0x26c   : > { %1479 = vrot.lane.b32.xlu1 %v5301_v24, %s4403_s14 }
 0x26f   : > { %1487 = vrot.lane.b32.xlu0 %v5318_v41, %s4403_s14 }
 0x274   : > { %1485 = vrot.lane.b32.xlu1 %v5307_v32, %s4403_s14 }
 0x277   : > { %1525 = vrot.lane.b32.xlu0 %v5310_v44, %s7869_s15 }
 0x27c   : > { %1371 = vrot.lane.b32.xlu2 %v5323_v5, %s4401_s7  ;;  %1491 = vrot.lane.b32.xlu1 %v5323_v5, %s4403_s14 }
 0x27f   : > { %1531 = vrot.lane.b32.xlu0 %v5326_v9, %s7869_s15 }
 0x284   : > { %1409 = vrot.lane.b32.xlu2 %v5291_v28, %s4402_s10  ;;  %1529 = vrot.lane.b32.xlu1 %v5291_v28, %s7869_s15 }
 0x287   : > { %1537 = vrot.lane.b32.xlu0 %v5339_v26, %s7869_s15 }
 0x28c   : > { %1415 = vrot.lane.b32.xlu2 %v5318_v41, %s4402_s10  ;;  %1535 = vrot.lane.b32.xlu1 %v5318_v41, %s7869_s15 }
 0x28e   : > { %v1096_v15 = vpop.xlane.xlu2 %1095 }
 0x28f   : > { %1575 = vrot.lane.b32.xlu0 %v5301_v24, %s7867_s20  ;;  %v1113_v39 = vmul.f32 %v5546_v6, %v1096_v15 }
 0x291   : > { %v1117_v53 = vmul.f32 %v1113_v39, %v301_v8 }
 0x293   : > { %v1122_v58 = vsel %vm1121_vm10, %v1117_v53, 0.0 }
 0x294   : > { %1477 = vrot.lane.b32.xlu2 %v5310_v44, %s4403_s14  ;;  %1573 = vrot.lane.b32.xlu1 %v5310_v44, %s7867_s20 }
 0x296   : > { %v1099_v23 = vpop.xlane.xlu1 %1098  ;;  %v5538_v30 = vpop.permute.xlu2 %1359 }
 0x297   : > { %1581 = vrot.lane.b32.xlu0 %v5307_v32, %s7867_s20  ;;  %v1114_v34 = vmul.f32 %v5546_v6, %v1099_v23 }
 0x299   : > { %v1118_v7 = vmul.f32 %v1114_v34, %v302_v16 }
 0x29b   : > { %v1123_v15 = vsel %vm1121_vm10, %v1118_v7, 0.0 }
 0x29c   : > { %1483 = vrot.lane.b32.xlu2 %v5326_v9, %s4403_s14  ;;  %1579 = vrot.lane.b32.xlu1 %v5326_v9, %s7867_s20 }
 0x29e   : > { %v1102_v50 = vpop.xlane.xlu0 %1101  ;;  %v5554_v1 = vpop.permute.xlu2 %1365 }
 0x29f   : > { %1587 = vrot.lane.b32.xlu0 %v5323_v5, %s7867_s20  ;;  %v1115_v29 = vmul.f32 %v5546_v6, %v1102_v50 }
 0x2a1   : > { %v1119_v10 = vmul.f32 %v1115_v29, %v303_v17  ;;  %v1124_v29 = vadd.f32 %v1123_v15, %v1122_v58 }
 0x2a3   : > { %v1125_v31 = vsel %vm1121_vm10, %v1119_v10, 0.0 }
 0x2a4   : > { %1489 = vrot.lane.b32.xlu2 %v5339_v26, %s4403_s14  ;;  %1585 = vrot.lane.b32.xlu1 %v5339_v26, %s7867_s20  ;;  %v1126_v39 = vadd.f32 %v1125_v31, %v1124_v29 }
 0x2a7   : > { %1625 = vrot.lane.b32.xlu0 %v5291_v28, %s4407_s29 }
 0x2ac   : > { %1527 = vrot.lane.b32.xlu2 %v5301_v24, %s7869_s15  ;;  %1623 = vrot.lane.b32.xlu1 %v5301_v24, %s4407_s29 }
 0x2ae   : > { %v5512_v12 = vpop.permute.xlu1 %1323 }
 0x2af   : > { %1631 = vrot.lane.b32.xlu0 %v5318_v41, %s4407_s29 }
 0x2b1   : > { %v5516_v33 = vpop.permute.xlu0 %1363 }
 0x2b4   : > { %1533 = vrot.lane.b32.xlu2 %v5307_v32, %s7869_s15  ;;  %1629 = vrot.lane.b32.xlu1 %v5307_v32, %s4407_s29 }
 0x2b6   : > { %v5524_v38 = vpop.permute.xlu1 %1361 }
 0x2b9   : > { %v5526_v57 = vpop.permute.xlu0 %1369 }
 0x2bc   : > { %1539 = vrot.lane.b32.xlu2 %v5323_v5, %s7869_s15  ;;  %1635 = vrot.lane.b32.xlu1 %v5323_v5, %s4407_s29  ;;  %s6024_s15 = scalar_lea.vmem [#allocation7], %s3767_s12 }
 0x2be   : > { %v5532_v48 = vpop.permute.xlu1 %1367 }
 0x2c1   : > { %v5534_v51 = vpop.permute.xlu0 %1407 }
 0x2c4   : > { %1577 = vrot.lane.b32.xlu2 %v5291_v28, %s7867_s20  ;;  %v1338_v28 = vld [vmem:[#allocation5 + $0x68] sm:$0xff] }
 0x2c6   : > { %v5540_v4 = vpop.permute.xlu1 %1405 }
 0x2c9   : > { %v5542_v56 = vpop.permute.xlu0 %1413 }
 0x2cc   : > { %1583 = vrot.lane.b32.xlu2 %v5318_v41, %s7867_s20 }
 0x2ce   : > { %v5549_v42 = vpop.permute.xlu1 %1411 }
 0x2d1   : > { %v5564_v23 = vpop.permute.xlu0 %1419 }
 0x2d4   : > { %1621 = vrot.lane.b32.xlu2 %v5310_v44, %s4407_s29 }
 0x2d6   : > { %v5569_v50 = vpop.permute.xlu1 %1417 }
 0x2d7   : > { %v1105_v40 = vpop.xlane.xlu2 %1104 }
 0x2d8   : > { %v1116_v8 = vmul.f32 %v5546_v6, %v1105_v40 }
 0x2d9   : > { %v5577_v34 = vpop.permute.xlu0 %1481 }
 0x2da   : > { %8067 = vst [vmem:[#allocation20_spill] sm:$0xff] %v5577_v34  ;;  %v1120_v16 = vmul.f32 %v1116_v8, %v304_v61 }
 0x2dc   : > { %v1127_v17 = vsel %vm1121_vm10, %v1120_v16, 0.0  ;;  %1627 = vrot.lane.b32.xlu2 %v5326_v9, %s4407_s29  ;;  %v308_v16 = vld [vmem:[%s7814_s4 + $0x18] sm:$0xff] }
 0x2dd   : > { %v1128_v7 = vadd.f32 %v1127_v17, %v1126_v39 }
 0x2de   : > { %v5582_v52 = vpop.permute.xlu1 %1479 }
 0x2df   : > { %8068 = vst [vmem:[#allocation41_spill] sm:$0xff] %v5582_v52  ;;  %v1129_v62 = vrot.slane %v1128_v7, 4  ;;  %v5584_v63 = vpop.permute.xlu2 %1371 }
 0x2e1   : > { %v1130_v53 = vadd.f32 %v1129_v62, %v1128_v7  ;;  %v5586_v10 = vpop.permute.xlu0 %1487  ;;  %v306_v62 = vld [vmem:[%s7814_s4 + $0x8] sm:$0xff] }
 0x2e2   : > { %8069 = vst [vmem:[#allocation42_spill] sm:$0xff] %v5586_v10 }
 0x2e3   : > { %v1131_v40 = vrot.slane %v1130_v53, 2 }
 0x2e4   : > { %1633 = vrot.lane.b32.xlu2 %v5339_v26, %s4407_s29 }
 0x2e5   : > { %v1132_v58 = vadd.f32 %v1131_v40, %v1130_v53 }
 0x2e6   : > { %v5590_v31 = vpop.permute.xlu1 %1485 }
 0x2e7   : > { %8070 = vst [vmem:[#allocation43_spill] sm:$0xff] %v5590_v31  ;;  %v1133_v61 = vrot.slane %v1132_v58, 1  ;;  %v5592_v15 = vpop.permute.xlu2 %1409 }
 0x2e8   : > { %8071 = vst [vmem:[#allocation44_spill] sm:$0xff] %v5592_v15 }
 0x2e9   : > { %v1134_v8 = vadd.f32 %v1133_v61, %v1132_v58  ;;  %v5594_v29 = vpop.permute.xlu0 %1525 }
 0x2ea   : > { %8072 = vst [vmem:[#allocation45_spill] sm:$0xff] %v5594_v29  ;;  %v1290_v29 = vld [vmem:[#allocation5 + $0x28] sm:$0xff] }
 0x2eb   : > { %v1135_v39 = vmax.f32 %v1134_v8, 0.0 }
 0x2ed   : > { %v1139_v17 = vmul.f32 %v1135_v39, %v308_v16  ;;  %v1137_v7 = vmul.f32 %v1135_v39, %v306_v62 }
 0x2ee   : > { %v5602_v53 = vpop.permute.xlu1 %1491 }
 0x2ef   : > { %8073 = vst [vmem:[#allocation46_spill] sm:$0xff] %v5602_v53  ;;  %v5604_v40 = vpop.permute.xlu2 %1415  ;;  %v1149_v6 = vsel %vm1121_vm10, %v1139_v17, 0.0  ;;  %v1143_v58 = vsel %vm1121_vm10, %v1137_v7, 0.0  ;;  %v305_v17 = vld [vmem:[%s7814_s4] sm:$0xff]  ;;  %v1325_v53 = vsel %vm384_vm1, %v5494_v20, %v5492_v18 }
 0x2f0   : > { %1150 = vadd.xlane.f32.xlu0 %v1149_v6  ;;  %1144 = vadd.xlane.f32.xlu1 %v1143_v58  ;;  %v1136_v7 = vmul.f32 %v1135_v39, %v305_v17  ;;  %v1277_v17 = vsel %vm335_vm0, %v5444_v36, %v5446_v49  ;;  %v1288_v36 = vld [vmem:[#allocation5 + $0x18] sm:$0xff]  ;;  %v1278_v49 = vsel %vm335_vm0, %v5472_v2, %v5484_v25 }
 0x2f1   : > { %v5608_v61 = vpop.permute.xlu0 %1531  ;;  %v1296_v26 = vmul.f32 %v1288_v36, %v1278_v49  ;;  %v1382_v36 = vld [vmem:[#allocation5 + $0x88] sm:$0xff]  ;;  %v1373_v49 = vsel %vm434_vm2, %v5496_v11, %v5554_v1 }
 0x2f2   : > { %8074 = vst [vmem:[#allocation47_spill] sm:$0xff] %v5608_v61  ;;  %v1140_v19 = vsel %vm1121_vm10, %v1136_v7, 0.0  ;;  %v1282_v7 = vsel %vm335_vm0, %v5484_v25, %v5472_v2  ;;  %v1286_v61 = vld [vmem:[#allocation5 + $0x8] sm:$0xff]  ;;  %v1329_v2 = vsel %vm384_vm1, %v5492_v18, %v5494_v20  ;;  %v1289_v25 = vld [vmem:[#allocation5 + $0x20] sm:$0xff]  ;;  %v1377_v18 = vsel %vm434_vm2, %v5554_v1, %v5496_v11  ;;  %v1339_v11 = vld [vmem:[#allocation5 + $0x70] sm:$0xff] }
 0x2f6   : > { %v5612_v0 = vpop.permute.xlu1 %1529 }
 0x2f7   : > { %v5610_v43 = vpop.permute.xlu2 %1477  ;;  %8076 = vst [vmem:[#allocation49_spill] sm:$0xff] %v5612_v0  ;;  %v1293_v0 = vmul.f32 %v1285_v45, %v1281_v47  ;;  %v1279_v47 = vsel %vm335_vm0, %v5436_v59, %v5464_v54  ;;  %v1335_v45 = vld [vmem:[#allocation5 + $0x50] sm:$0xff] }
 0x2f8   : > { %8075 = vst [vmem:[#allocation48_spill] sm:$0xff] %v5610_v43  ;;  %v1298_v52 = vmul.f32 %v1290_v29, %v1279_v47  ;;  %v1376_v47 = vsel %vm434_vm2, %v5516_v33, %v5584_v63 }
 0x2f9   : > { %v5614_v22 = vpop.permute.xlu0 %1537 }
 0x2fa   : > { %8077 = vst [vmem:[#allocation50_spill] sm:$0xff] %v5614_v22  ;;  %v1280_v22 = vsel %vm335_vm0, %v5454_v14, %v5456_v55 }
 0x2fe   : > { %v5618_v16 = vpop.permute.xlu1 %1535 }
 0x2ff   : > { %v5616_v8 = vpop.permute.xlu2 %1483  ;;  %8079 = vst [vmem:[#allocation52_spill] sm:$0xff] %v5618_v16 }
 0x300   : > { %8078 = vst [vmem:[#allocation51_spill] sm:$0xff] %v5616_v8  ;;  %v1334_v8 = vld [vmem:[#allocation5 + $0x48] sm:$0xff] }
 0x301   : > { %v5620_v62 = vpop.permute.xlu0 %1575  ;;  %v1342_v31 = vmul.f32 %v1334_v8, %v1325_v53  ;;  %v1332_v53 = vsel %vm384_vm1, %v5512_v12, %v5506_v46  ;;  %v1328_v8 = vsel %vm384_vm1, %v5506_v46, %v5512_v12  ;;  %v1378_v46 = vsel %vm434_vm2, %v5532_v48, %v5538_v30 }
 0x302   : > { %8080 = vst [vmem:[#allocation53_spill] sm:$0xff] %v5620_v62  ;;  %v1284_v62 = vsel %vm335_vm0, %v5456_v55, %v5454_v14  ;;  %v1330_v14 = vsel %vm384_vm1, %v5482_v13, %v5480_v35  ;;  %v1333_v55 = vld [vmem:[#allocation5 + $0x40] sm:$0xff] }
 0x303   : > { %v1341_v5 = vmul.f32 %v1333_v55, %v1329_v2 }
 0x305   : > { %v1349_v1 = vadd.f32 %v1341_v5, %v1293_v0 }
 0x306   : > { %v5627_v58 = vpop.permute.xlu1 %1573 }
 0x307   : > { %v5625_v6 = vpop.permute.xlu2 %1489  ;;  %8082 = vst [vmem:[#allocation55_spill] sm:$0xff] %v5627_v58  ;;  %v1283_v58 = vsel %vm335_vm0, %v5464_v54, %v5436_v59  ;;  %v1327_v59 = vsel %vm384_vm1, %v5470_v21, %v5518_v3  ;;  %v1381_v54 = vld [vmem:[#allocation5 + $0x80] sm:$0xff] }
 0x308   : > { %8081 = vst [vmem:[#allocation54_spill] sm:$0xff] %v5625_v6  ;;  %v1138_v6 = vmul.f32 %v1135_v39, %v307_v37  ;;  %v1336_v37 = vld [vmem:[#allocation5 + $0x58] sm:$0xff]  ;;  %v1326_v39 = vsel %vm384_vm1, %v5480_v35, %v5482_v13  ;;  %v1337_v35 = vld [vmem:[#allocation5 + $0x60] sm:$0xff]  ;;  %v1331_v13 = vsel %vm384_vm1, %v5518_v3, %v5470_v21  ;;  %v1294_v3 = vmul.f32 %v1286_v61, %v1277_v17 }
 0x309   : > { %v5633_v27 = vpop.permute.xlu0 %1581  ;;  %v1344_v16 = vmul.f32 %v1336_v37, %v1326_v39  ;;  %v1297_v43 = vmul.f32 %v1289_v25, %v1283_v58  ;;  %v1345_v9 = vmul.f32 %v1337_v35, %v1331_v13  ;;  %v1389_v10 = vmul.f32 %v1381_v54, %v1377_v18  ;;  %v1388_v17 = vld [vmem:[#allocation5 + $0xb8] sm:$0xff] }
 0x30a   : > { %8083 = vst [vmem:[#allocation56_spill] sm:$0xff] %v5633_v27  ;;  %v1146_v20 = vsel %vm1121_vm10, %v1138_v6, 0.0  ;;  %v1346_v6 = vmul.f32 %v1338_v28, %v1327_v59  ;;  %v1350_v61 = vadd.f32 %v1342_v31, %v1294_v3  ;;  %v1340_v28 = vld [vmem:[#allocation5 + $0x78] sm:$0xff]  ;;  %v1422_v59 = vsel %vm484_vm3, %v5534_v51, %v5604_v40  ;;  %v1435_v3 = vld [vmem:[#allocation5 + $0xf0] sm:$0xff] }
 0x30b   : > { %v1352_v2 = vadd.f32 %v1344_v16, %v1296_v26  ;;  %v1353_v29 = vadd.f32 %v1345_v9, %v1297_v43  ;;  %v5720_v5 = vadd.f32 %v1389_v10, %v1349_v1  ;;  %v1386_v26 = vld [vmem:[#allocation5 + $0xa8] sm:$0xff]  ;;  %v1375_v43 = vsel %vm434_vm2, %v5524_v38, %v5526_v57  ;;  %v1383_v9 = vld [vmem:[#allocation5 + $0x90] sm:$0xff]  ;;  %v1384_v31 = vld [vmem:[#allocation5 + $0x98] sm:$0xff] }
 0x30c   : > { %v1354_v0 = vadd.f32 %v1346_v6, %v1298_v52  ;;  %v1374_v52 = vsel %vm434_vm2, %v5538_v30, %v5532_v48  ;;  %v1387_v10 = vld [vmem:[#allocation5 + $0xb0] sm:$0xff]  ;;  %v1348_v16 = vmul.f32 %v1340_v28, %v1328_v8  ;;  %v1394_v35 = vmul.f32 %v1386_v26, %v1375_v43  ;;  %v1432_v13 = vld [vmem:[#allocation5 + $0xd8] sm:$0xff] }
 0x30d   : > { %1141 = vadd.xlane.f32.xlu2 %v1140_v19  ;;  %v1287_v19 = vld [vmem:[#allocation5 + $0x10] sm:$0xff]  ;;  %v1391_v48 = vmul.f32 %v1383_v9, %v1378_v46  ;;  %v1426_v54 = vsel %vm484_vm3, %v5604_v40, %v5534_v51  ;;  %v1392_v18 = vmul.f32 %v1384_v31, %v1374_v52  ;;  %v1421_v51 = vsel %vm484_vm3, %v5540_v4, %v5542_v56  ;;  %v1433_v31 = vld [vmem:[#allocation5 + $0xe0] sm:$0xff]  ;;  %v1434_v52 = vld [vmem:[#allocation5 + $0xe8] sm:$0xff] }
 0x30e   : > { %v1295_v27 = vmul.f32 %v1287_v19, %v1282_v7  ;;  %v1291_v19 = vld [vmem:[#allocation5 + $0x30] sm:$0xff]  ;;  %v1292_v7 = vld [vmem:[#allocation5 + $0x38] sm:$0xff]  ;;  %v5702_v21 = vpop.permute.xlu1 %1579  ;;  %v1396_v40 = vmul.f32 %v1388_v17, %v1376_v47  ;;  %v1428_v6 = vsel %vm484_vm3, %v5564_v23, %v5549_v42 }
 0x30f   : > { %v5639_v34 = vpop.permute.xlu2 %1527  ;;  %v1299_v37 = vmul.f32 %v1291_v19, %v1284_v62  ;;  %v1300_v39 = vmul.f32 %v1292_v7, %v1280_v22  ;;  %v1385_v62 = vld [vmem:[#allocation5 + $0xa0] sm:$0xff]  ;;  %v1379_v22 = vsel %vm434_vm2, %v5526_v57, %v5524_v38  ;;  %v1380_v38 = vsel %vm434_vm2, %v5584_v63, %v5516_v33  ;;  %v1454_v57 = vld [vmem:[#allocation5 + $0x108] sm:$0xff]  ;;  %v1431_v30 = vld [vmem:[#allocation5 + $0xd0] sm:$0xff] }
 0x310   : > { %8084 = vst [vmem:[#allocation57_spill] sm:$0xff] %v5639_v34  ;;  %v1343_v34 = vmul.f32 %v1335_v45, %v1330_v14  ;;  %v1390_v14 = vmul.f32 %v1382_v36, %v1373_v49  ;;  %v1393_v58 = vmul.f32 %v1385_v62, %v1379_v22  ;;  %v1425_v63 = vsel %vm484_vm3, %v5542_v56, %v5540_v4  ;;  %v1430_v49 = vld [vmem:[#allocation5 + $0xc8] sm:$0xff]  ;;  %v1459_v43 = vld [vmem:[#allocation5 + $0x130] sm:$0xff]  ;;  %v8088_v47 = vld [vmem:[#allocation34_spill] sm:$0xff] }
 0x311   : > { %v5706_v45 = vpop.permute.xlu0 %1587  ;;  %v5760_v33 = vmul.f32 %v5307_v32, %v1454_v57  ;;  %v1356_v32 = vadd.f32 %v1348_v16, %v1300_v39  ;;  %v1439_v1 = vmul.f32 %v1431_v30, %v1426_v54  ;;  %v1402_v4 = vadd.f32 %v1394_v35, %v1354_v0  ;;  %v1504_v57 = vld [vmem:[#allocation5 + $0x158] sm:$0xff]  ;;  %v8087_v16 = vld [vmem:[#allocation41_spill] sm:$0xff]  ;;  %v1501_v30 = vld [vmem:[#allocation5 + $0x140] sm:$0xff] }
 0x312   : > { %v1351_v55 = vadd.f32 %v1343_v34, %v1295_v27  ;;  %v1453_v27 = vld [vmem:[#allocation5 + $0x100] sm:$0xff]  ;;  %v5730_v12 = vadd.f32 %v1390_v14, %v1350_v61  ;;  %v1347_v34 = vmul.f32 %v1339_v11, %v1332_v53  ;;  %v1436_v14 = vld [vmem:[#allocation5 + $0xf8] sm:$0xff]  ;;  %v1440_v11 = vmul.f32 %v1432_v13, %v1422_v59  ;;  %v1455_v53 = vld [vmem:[#allocation5 + $0x110] sm:$0xff] }
 0x313   : > { %v5745_v25 = vmul.f32 %v5310_v44, %v1453_v27  ;;  %v1395_v44 = vmul.f32 %v1387_v10, %v1380_v38  ;;  %v1456_v61 = vld [vmem:[#allocation5 + $0x118] sm:$0xff]  ;;  %v1401_v56 = vadd.f32 %v1393_v58, %v1353_v29  ;;  %v1400_v22 = vadd.f32 %v1392_v18, %v1352_v2  ;;  %v8085_v10 = vld [vmem:[#allocation44_spill] sm:$0xff]  ;;  %v8089_v13 = vld [vmem:[#allocation43_spill] sm:$0xff] }
 0x314   : > { %v1355_v36 = vadd.f32 %v1347_v34, %v1299_v37  ;;  %v1424_v37 = vsel %vm484_vm3, %v5549_v42, %v5564_v23  ;;  %v1399_v8 = vadd.f32 %v1391_v48, %v1351_v55  ;;  %v1438_v27 = vmul.f32 %v1430_v49, %v1421_v51  ;;  %v1460_v23 = vld [vmem:[#allocation5 + $0x138] sm:$0xff] }
 0x315   : > { %1147 = vadd.xlane.f32.xlu2 %v1146_v20  ;;  %v1429_v20 = vld [vmem:[#allocation5 + $0xc0] sm:$0xff]  ;;  %v1443_v39 = vmul.f32 %v1435_v3, %v1428_v6  ;;  %v1404_v9 = vadd.f32 %v1396_v40, %v1356_v32  ;;  %v1444_v46 = vmul.f32 %v1436_v14, %v1424_v37  ;;  %v1463_v34 = vmul.f32 %v5301_v24, %v1455_v53  ;;  %v1503_v24 = vld [vmem:[#allocation5 + $0x150] sm:$0xff]  ;;  %v8091_v54 = vld [vmem:[#allocation18_spill] sm:$0xff] }
 0x316   : > { %v5764_v7 = vpop.permute.xlu1 %1585  ;;  %v1437_v62 = vmul.f32 %v1429_v20, %v1425_v63  ;;  %v1403_v26 = vadd.f32 %v1395_v44, %v1355_v36  ;;  %v1464_v42 = vmul.f32 %v5318_v41, %v1456_v61  ;;  %v1423_v55 = vsel %vm484_vm3, %v8085_v10, %v5569_v50  ;;  %v8086_v41 = vld [vmem:[#allocation42_spill] sm:$0xff]  ;;  %v1457_v20 = vld [vmem:[#allocation5 + $0x120] sm:$0xff]  ;;  %v1458_v63 = vld [vmem:[#allocation5 + $0x128] sm:$0xff] }
 0x317   : > { %v5704_v15 = vpop.permute.xlu2 %1533  ;;  %v1427_v2 = vsel %vm484_vm3, %v5569_v50, %v8085_v10  ;;  %v1447_v29 = vadd.f32 %v1439_v1, %v1399_v8  ;;  %v1448_v0 = vadd.f32 %v1440_v11, %v1400_v22  ;;  %v1494_v58 = vsel %vm559_vm4, %v8087_v16, %v8086_v41  ;;  %v1551_v40 = vld [vmem:[#allocation5 + $0x190] sm:$0xff]  ;;  %v8092_v3 = vld [vmem:[#allocation52_spill] sm:$0xff]  ;;  %v8094_v8 = vld [vmem:[#allocation31_spill] sm:$0xff] }
 0x318   : > { %v1445_v38 = vadd.f32 %v1437_v62, %v5720_v5  ;;  %v1498_v17 = vsel %vm559_vm4, %v8086_v41, %v8087_v16  ;;  %v1467_v35 = vmul.f32 %v8088_v47, %v1459_v43  ;;  %v1446_v50 = vadd.f32 %v1438_v27, %v5730_v12  ;;  %v8090_v5 = vld [vmem:[#allocation48_spill] sm:$0xff]  ;;  %v8093_v6 = vld [vmem:[#allocation57_spill] sm:$0xff]  ;;  %v1600_v41 = vld [vmem:[#allocation5 + $0x1d8] sm:$0xff] }
 0x319   : > { %v5778_v28 = vpop.permute.xlu0 %1625  ;;  %v1451_v48 = vadd.f32 %v1443_v39, %v1403_v26  ;;  %v1493_v59 = vsel %vm559_vm4, %v8090_v5, %v8089_v13  ;;  %v1468_v18 = vmul.f32 %v8091_v54, %v1460_v23  ;;  %v1452_v36 = vadd.f32 %v1444_v46, %v1404_v9  ;;  %v8095_v22 = vld [vmem:[#allocation21_spill] sm:$0xff]  ;;  %v1502_v39 = vld [vmem:[#allocation5 + $0x148] sm:$0xff]  ;;  %v1552_v9 = vld [vmem:[#allocation5 + $0x198] sm:$0xff] }
 0x31a   : > { %v1441_v49 = vmul.f32 %v1433_v31, %v1427_v2  ;;  %v1442_v51 = vmul.f32 %v1434_v52, %v1423_v55  ;;  %v1542_v12 = vsel %vm609_vm5, %v8093_v6, %v8092_v3  ;;  %v1471_v32 = vadd.f32 %v1463_v34, %v1447_v29  ;;  %v1549_v55 = vld [vmem:[#allocation5 + $0x180] sm:$0xff]  ;;  %v1550_v2 = vld [vmem:[#allocation5 + $0x188] sm:$0xff]  ;;  %v8096_v29 = vld [vmem:[#allocation45_spill] sm:$0xff] }
 0x31b   : > { %v1472_v14 = vadd.f32 %v1464_v42, %v1448_v0  ;;  %v1511_v37 = vmul.f32 %v1503_v24, %v1494_v58  ;;  %v1512_v1 = vmul.f32 %v1504_v57, %v1498_v17  ;;  %v1469_v53 = vadd.f32 %v5745_v25, %v1445_v38  ;;  %v1599_v57 = vld [vmem:[#allocation5 + $0x1d0] sm:$0xff]  ;;  %v1508_v47 = vld [vmem:[#allocation5 + $0x178] sm:$0xff] }
 0x31c   : > { %v1509_v61 = vmul.f32 %v1501_v30, %v1493_v59  ;;  %v5814_v62 = vmul.f32 %v8094_v8, %v1457_v20  ;;  %v5817_v27 = vmul.f32 %v8095_v22, %v1458_v63  ;;  %v1470_v26 = vadd.f32 %v5760_v33, %v1446_v50  ;;  %v1647_v16 = vld [vmem:[#allocation5 + $0x210] sm:$0xff]  ;;  %v8098_v50 = vld [vmem:[#allocation51_spill] sm:$0xff]  ;;  %v8102_v22 = vld [vmem:[#allocation50_spill] sm:$0xff] }
 0x31d   : > { %v1497_v43 = vsel %vm559_vm4, %v8089_v13, %v8090_v5  ;;  %v1546_v25 = vsel %vm609_vm5, %v8092_v3, %v8093_v6  ;;  %v1559_v46 = vmul.f32 %v1551_v40, %v1542_v12  ;;  %v5828_v42 = vadd.f32 %v1441_v49, %v1401_v56  ;;  %v1507_v17 = vld [vmem:[#allocation5 + $0x170] sm:$0xff]  ;;  %v8099_v13 = vld [vmem:[#allocation56_spill] sm:$0xff]  ;;  %v8100_v5 = vld [vmem:[#allocation55_spill] sm:$0xff] }
 0x31e   : > { %v1624_v11 = vpop.permute.xlu1 %1623  ;;  %v5830_v23 = vadd.f32 %v1442_v51, %v1402_v4  ;;  %v1475_v31 = vadd.f32 %v1467_v35, %v1451_v48  ;;  %v1476_v33 = vadd.f32 %v1468_v18, %v1452_v36  ;;  %v1519_v52 = vadd.f32 %v1511_v37, %v1471_v32  ;;  %v8097_v35 = vld [vmem:[#allocation46_spill] sm:$0xff]  ;;  %v1597_v63 = vld [vmem:[#allocation5 + $0x1c0] sm:$0xff]  ;;  %v8101_v36 = vld [vmem:[#allocation53_spill] sm:$0xff] }
 0x31f   : > { %v5762_v19 = vpop.permute.xlu2 %1539  ;;  %v1520_v10 = vadd.f32 %v1512_v1, %v1472_v14  ;;  %v1541_v0 = vsel %vm609_vm5, %v8096_v29, %v5704_v15  ;;  %v1545_v38 = vsel %vm609_vm5, %v5704_v15, %v8096_v29  ;;  %v1510_v56 = vmul.f32 %v1502_v39, %v1497_v43  ;;  %v1648_v6 = vld [vmem:[#allocation5 + $0x218] sm:$0xff]  ;;  %v8103_v39 = vld [vmem:[#allocation49_spill] sm:$0xff] }
 0x320   : > { %v1517_v24 = vadd.f32 %v1509_v61, %v1469_v53  ;;  %v1560_v4 = vmul.f32 %v1552_v9, %v1546_v25  ;;  %v1496_v48 = vsel %vm559_vm4, %v8098_v50, %v8097_v35  ;;  %v1500_v15 = vsel %vm559_vm4, %v8097_v35, %v8098_v50  ;;  %v1598_v53 = vld [vmem:[#allocation5 + $0x1c8] sm:$0xff]  ;;  %v1505_v35 = vld [vmem:[#allocation5 + $0x160] sm:$0xff] }
 0x321   : > { %v1632_v34 = vpop.permute.xlu0 %1631  ;;  %v1567_v30 = vadd.f32 %v1559_v46, %v1519_v52  ;;  %v1589_v59 = vsel %vm7930_vm6, %v8100_v5, %v8099_v13  ;;  %v1557_v18 = vmul.f32 %v1549_v55, %v1541_v0  ;;  %v1558_v20 = vmul.f32 %v1550_v2, %v1545_v38  ;;  %v8104_v52 = vld [vmem:[#allocation47_spill] sm:$0xff]  ;;  %v1506_v50 = vld [vmem:[#allocation5 + $0x168] sm:$0xff] }
 0x322   : > { %v1638_v58 = vsel %vm7929_vm7, %v1624_v11, %v1632_v34  ;;  %v1642_v12 = vsel %vm7929_vm7, %v1632_v34, %v1624_v11  ;;  %v1515_v14 = vmul.f32 %v1507_v17, %v1496_v48  ;;  %v1516_v37 = vmul.f32 %v1508_v47, %v1500_v15  ;;  %v1555_v34 = vld [vmem:[#allocation5 + $0x1b0] sm:$0xff]  ;;  %v1645_v17 = vld [vmem:[#allocation5 + $0x200] sm:$0xff]  ;;  %v1646_v47 = vld [vmem:[#allocation5 + $0x208] sm:$0xff] }
 0x323   : > { %v1655_v32 = vmul.f32 %v1647_v16, %v1638_v58  ;;  %v1568_v1 = vadd.f32 %v1560_v4, %v1520_v10  ;;  %v1593_v61 = vsel %vm7930_vm6, %v8099_v13, %v8100_v5  ;;  %v1518_v8 = vadd.f32 %v1510_v56, %v1470_v26  ;;  %v1556_v16 = vld [vmem:[#allocation5 + $0x1b8] sm:$0xff]  ;;  %v8107_v15 = vld [vmem:[#allocation15_spill] sm:$0xff]  ;;  %v1603_v5 = vld [vmem:[#allocation5 + $0x1f0] sm:$0xff] }
 0x324   : > { %v1543_v43 = vsel %vm609_vm5, %v8103_v39, %v8102_v22  ;;  %v1605_v9 = vmul.f32 %v1597_v63, %v1589_v59  ;;  %v1565_v11 = vadd.f32 %v1557_v18, %v1517_v24  ;;  %v1544_v10 = vsel %vm609_vm5, %v8104_v52, %v5762_v19  ;;  %v8106_v24 = vld [vmem:[#allocation20_spill] sm:$0xff] }
 0x325   : > { %v1656_v2 = vmul.f32 %v1648_v6, %v1642_v12  ;;  %v1547_v26 = vsel %vm609_vm5, %v8102_v22, %v8103_v39  ;;  %v1566_v29 = vadd.f32 %v1558_v20, %v1518_v8  ;;  %v1606_v0 = vmul.f32 %v1598_v53, %v1593_v61  ;;  %v1553_v20 = vld [vmem:[#allocation5 + $0x1a0] sm:$0xff]  ;;  %v1604_v6 = vld [vmem:[#allocation5 + $0x1f8] sm:$0xff] }
 0x326   : > { %v1630_v46 = vpop.permute.xlu1 %1629  ;;  %v1523_v56 = vadd.f32 %v1515_v14, %v1475_v31  ;;  %v1524_v4 = vadd.f32 %v1516_v37, %v1476_v33  ;;  %v1548_v58 = vsel %vm609_vm5, %v5762_v19, %v8104_v52  ;;  %v1563_v33 = vmul.f32 %v1555_v34, %v1544_v10  ;;  %v1554_v14 = vld [vmem:[#allocation5 + $0x1a8] sm:$0xff] }
 0x327   : > { %v5806_v44 = vpop.permute.xlu2 %1577  ;;  %v1592_v48 = vsel %vm7930_vm6, %v5702_v21, %v5706_v45  ;;  %v1613_v19 = vadd.f32 %v1605_v9, %v1565_v11  ;;  %v1614_v63 = vadd.f32 %v1606_v0, %v1566_v29  ;;  %v1596_v12 = vsel %vm7930_vm6, %v5706_v45, %v5702_v21  ;;  %v8108_v21 = vld [vmem:[#allocation25_spill] sm:$0xff] }
 0x328   : > { %v1571_v37 = vadd.f32 %v1563_v33, %v1523_v56  ;;  %v1473_v8 = vadd.f32 %v5814_v62, %v5828_v42  ;;  %v1474_v22 = vadd.f32 %v5817_v27, %v5830_v23  ;;  %v1561_v39 = vmul.f32 %v1553_v20, %v1543_v43  ;;  %v1651_v62 = vld [vmem:[#allocation5 + $0x230] sm:$0xff]  ;;  %v1652_v42 = vld [vmem:[#allocation5 + $0x238] sm:$0xff]  ;;  %v1601_v43 = vld [vmem:[#allocation5 + $0x1e0] sm:$0xff] }
 0x329   : > { %v1595_v29 = vsel %vm7930_vm6, %v5764_v7, %v5806_v44  ;;  %v1649_v20 = vld [vmem:[#allocation5 + $0x220] sm:$0xff] }
 0x32e   : > { %v1636_v34 = vpop.permute.xlu1 %1635 }
 0x32f   : > { %v1584_v54 = vpop.permute.xlu2 %1583 }
 0x330   : > { %v1590_v49 = vsel %vm7930_vm6, %v8101_v36, %v1584_v54  ;;  %v1594_v51 = vsel %vm7930_vm6, %v1584_v54, %v8101_v36  ;;  %v1564_v36 = vmul.f32 %v1556_v16, %v1548_v58 }
 0x331   : > { %v1607_v40 = vmul.f32 %v1599_v57, %v1590_v49  ;;  %v1608_v3 = vmul.f32 %v1600_v41, %v1594_v51  ;;  %v8105_v57 = vld [vmem:[#allocation54_spill] sm:$0xff] }
 0x332   : > { %v1495_v41 = vsel %vm559_vm4, %v8106_v24, %v8105_v57  ;;  %v1499_v31 = vsel %vm559_vm4, %v8105_v57, %v8106_v24 }
 0x333   : > { %v1615_v25 = vadd.f32 %v1607_v40, %v1567_v30  ;;  %v1616_v55 = vadd.f32 %v1608_v3, %v1568_v1  ;;  %v1513_v40 = vmul.f32 %v1505_v35, %v1495_v41  ;;  %v1514_v3 = vmul.f32 %v1506_v50, %v1499_v31 }
 0x334   : > { %v1611_v1 = vmul.f32 %v1603_v5, %v1592_v48 }
 0x335   : > { %v1663_v38 = vadd.f32 %v1655_v32, %v1615_v25  ;;  %v1664_v59 = vadd.f32 %v1656_v2, %v1616_v55  ;;  %v1572_v25 = vadd.f32 %v1564_v36, %v1524_v4  ;;  %v1521_v52 = vadd.f32 %v1513_v40, %v1473_v8 }
 0x336   : > { %v1522_v10 = vadd.f32 %v1514_v3, %v1474_v22  ;;  %v1562_v55 = vmul.f32 %v1554_v14, %v1547_v26  ;;  %v1619_v23 = vadd.f32 %v1611_v1, %v1571_v37  ;;  %v1591_v2 = vsel %vm7930_vm6, %v5806_v44, %v5764_v7  ;;  %v1602_v26 = vld [vmem:[#allocation5 + $0x1e8] sm:$0xff] }
 0x337   : > { %v5895_v30 = vadd.f32 %v1663_v38, %v8107_v15  ;;  %v1622_v13 = vpop.permute.xlu2 %1621  ;;  %v5911_v9 = vadd.f32 %v1664_v59, %v8107_v15  ;;  %v1609_v7 = vmul.f32 %v1601_v43, %v1591_v2  ;;  %v1610_v35 = vmul.f32 %v1602_v26, %v1595_v29  ;;  %v8109_v59 = vld [vmem:[#allocation11_spill] sm:$0xff] }
 0x338   : > { %v1637_v54 = vsel %vm7929_vm7, %v1622_v13, %v1630_v46  ;;  %v1641_v18 = vsel %vm7929_vm7, %v1630_v46, %v1622_v13  ;;  %v1612_v46 = vmul.f32 %v1604_v6, %v1596_v12  ;;  %v1570_v5 = vadd.f32 %v1562_v55, %v1522_v10 }
 0x339   : > { %v1653_v49 = vmul.f32 %v1645_v17, %v1637_v54  ;;  %v1654_v51 = vmul.f32 %v1646_v47, %v1641_v18  ;;  %v1687_v32 = vmul.f32 0.044715, %v5895_v30  ;;  %v1688_v24 = vmul.f32 0.044715, %v5911_v9 }
 0x33a   : > { %v1620_v41 = vadd.f32 %v1612_v46, %v1572_v25  ;;  %v1618_v40 = vadd.f32 %v1610_v35, %v1570_v5 }
 0x33b   : > { %v1661_v53 = vadd.f32 %v1653_v49, %v1613_v19  ;;  %v1662_v61 = vadd.f32 %v1654_v51, %v1614_v63  ;;  %v1695_v27 = vmul.f32 %v1687_v32, %v5895_v30  ;;  %v1696_v48 = vmul.f32 %v1688_v24, %v5911_v9  ;;  %v1650_v63 = vld [vmem:[#allocation5 + $0x228] sm:$0xff] }
 0x33c   : > { %v1569_v19 = vadd.f32 %v1561_v39, %v1521_v52 }
 0x33d   : > { %v5914_v45 = vadd.f32 %v1661_v53, %v8108_v21  ;;  %v5917_v11 = vadd.f32 %v1662_v61, %v8108_v21  ;;  %v1703_v44 = vmul.f32 %v1695_v27, %v5895_v30  ;;  %v1704_v37 = vmul.f32 %v1696_v48, %v5911_v9 }
 0x33e   : > { %v1617_v51 = vadd.f32 %v1609_v7, %v1569_v19 }
 0x33f   : > { %v1628_v0 = vpop.permute.xlu2 %1627  ;;  %v1685_v38 = vmul.f32 0.044715, %v5914_v45  ;;  %v1686_v57 = vmul.f32 0.044715, %v5917_v11  ;;  %v1711_v49 = vadd.f32 %v1703_v44, %v5895_v30  ;;  %v1712_v55 = vadd.f32 %v1704_v37, %v5911_v9 }
 0x340   : > { %v1640_v56 = vsel %vm7929_vm7, %v1628_v0, %v1636_v34  ;;  %v1644_v4 = vsel %vm7929_vm7, %v1636_v34, %v1628_v0  ;;  %v1680_v37 = vmul.f32 0.5, %v5911_v9 }
 0x341   : > { %v1659_v16 = vmul.f32 %v1651_v62, %v1640_v56  ;;  %v1660_v58 = vmul.f32 %v1652_v42, %v1644_v4  ;;  %v1693_v17 = vmul.f32 %v1685_v38, %v5914_v45  ;;  %v1694_v47 = vmul.f32 %v1686_v57, %v5917_v11  ;;  %v8110_v42 = vld [vmem:[#allocation24_spill] sm:$0xff] }
 0x342   : > { %v1719_v25 = vmul.f32 0.7978846, %v1711_v49  ;;  %v1720_v26 = vmul.f32 0.7978846, %v1712_v55  ;;  %v1677_v49 = vmul.f32 0.5, %v5914_v45  ;;  %v8113_v55 = vld [vmem:[#allocation27_spill] sm:$0xff] }
 0x343   : > { %v1667_v50 = vadd.f32 %v1659_v16, %v1619_v23  ;;  %v1668_v31 = vadd.f32 %v1660_v58, %v1620_v41  ;;  %v1701_v33 = vmul.f32 %v1693_v17, %v5914_v45  ;;  %v1702_v13 = vmul.f32 %v1694_v47, %v5917_v11 }
 0x344   : > { %3996 = vtanh.f32 %v1719_v25 }
 0x345   : > { %v1675_v54 = vadd.f32 %v1667_v50, %v8109_v59  ;;  %v1676_v18 = vadd.f32 %v1668_v31, %v8109_v59  ;;  %v1709_v36 = vadd.f32 %v1701_v33, %v5914_v45  ;;  %v1710_v1 = vadd.f32 %v1702_v13, %v5917_v11 }
 0x347   : > { %v1634_v3 = vpop.permute.xlu2 %1633  ;;  %v1691_v6 = vmul.f32 0.044715, %v1675_v54  ;;  %v1692_v12 = vmul.f32 0.044715, %v1676_v18  ;;  %v1717_v39 = vmul.f32 0.7978846, %v1709_v36 }
 0x348   : > { %v1639_v32 = vsel %vm7929_vm7, %v5778_v28, %v1634_v3  ;;  %v1643_v14 = vsel %vm7929_vm7, %v1634_v3, %v5778_v28  ;;  %v1718_v62 = vmul.f32 0.7978846, %v1710_v1  ;;  %v1683_v13 = vmul.f32 0.5, %v1675_v54 }
 0x349   : > { %v1657_v53 = vmul.f32 %v1649_v20, %v1639_v32  ;;  %v1658_v61 = vmul.f32 %v1650_v63, %v1643_v14  ;;  %v1699_v8 = vmul.f32 %v1691_v6, %v1675_v54  ;;  %v1700_v22 = vmul.f32 %v1692_v12, %v1676_v18 }
 0x34a   : > { %3998 = vtanh.f32 %v1717_v39  ;;  %v3997_v24 = vpop.eup %3996  ;;  %v1684_v5 = vmul.f32 0.5, %v1676_v18  ;;  %v1678_v3 = vmul.f32 0.5, %v5917_v11 }
 0x34b   : > { %v1665_v46 = vadd.f32 %v1657_v53, %v1617_v51  ;;  %v1666_v34 = vadd.f32 %v1658_v61, %v1618_v40  ;;  %v1707_v52 = vmul.f32 %v1699_v8, %v1675_v54  ;;  %v1708_v10 = vmul.f32 %v1700_v22, %v1676_v18  ;;  %v8111_v61 = vld [vmem:[#allocation13_spill] sm:$0xff] }
 0x34c   : > { %4000 = vtanh.f32 %v1718_v62  ;;  %v1735_v20 = vadd.f32 1.0, %v3997_v24  ;;  %v1679_v40 = vmul.f32 0.5, %v5895_v30 }
 0x34d   : > { %v1673_v27 = vadd.f32 %v1665_v46, %v8110_v42  ;;  %v1674_v28 = vadd.f32 %v1666_v34, %v8110_v42  ;;  %v1715_v23 = vadd.f32 %v1707_v52, %v1675_v54  ;;  %v1716_v43 = vadd.f32 %v1708_v10, %v1676_v18  ;;  %v8112_v46 = vld [vmem:[#allocation22_spill] sm:$0xff] }
 0x34e   : > { %v1743_v14 = vmul.f32 %v1735_v20, %v1679_v40  ;;  %v6001_v40 = vld [vmem:[%s4555_s26 + $0x50] sm:$0xff] }
 0x34f   : > { %v1689_v2 = vmul.f32 0.044715, %v1673_v27  ;;  %v1723_v29 = vmul.f32 0.7978846, %v1715_v23  ;;  %v1690_v0 = vmul.f32 0.044715, %v1674_v28 }
 0x350   : > { %v1724_v38 = vmul.f32 0.7978846, %v1716_v43  ;;  %v3999_v16 = vpop.eup %3998  ;;  %v1681_v53 = vmul.f32 0.5, %v1673_v27  ;;  %v1682_v22 = vmul.f32 0.5, %v1674_v28  ;;  %v1751_v9 = vmul.f32 %v1743_v14, %v8113_v55  ;;  %v8114_v43 = vld [vmem:[#allocation23_spill] sm:$0xff] }
 0x351   : > { %v1697_v56 = vmul.f32 %v1689_v2, %v1673_v27  ;;  %4002 = vtanh.f32 %v1723_v29  ;;  %v1698_v4 = vmul.f32 %v1690_v0, %v1674_v28  ;;  %v1733_v19 = vadd.f32 1.0, %v3999_v16  ;;  %v8115_v2 = vld [vmem:[#allocation30_spill] sm:$0xff] }
 0x352   : > { %4004 = vtanh.f32 %v1724_v38  ;;  %v4001_v17 = vpop.eup %4000 }
 0x353   : > { %v1705_v57 = vmul.f32 %v1697_v56, %v1673_v27  ;;  %v1706_v41 = vmul.f32 %v1698_v4, %v1674_v28  ;;  %4006 = vtanh.f32 %v1720_v26  ;;  %v1734_v63 = vadd.f32 1.0, %v4001_v17  ;;  %v8116_v56 = vld [vmem:[#allocation28_spill] sm:$0xff] }
 0x354   : > { %v1741_v12 = vmul.f32 %v1733_v19, %v1677_v49 }
 0x355   : > { %v1713_v58 = vadd.f32 %v1705_v57, %v1673_v27  ;;  %v1714_v7 = vadd.f32 %v1706_v41, %v1674_v28  ;;  %v1742_v54 = vmul.f32 %v1734_v63, %v1678_v3  ;;  %v8117_v57 = vld [vmem:[#allocation12_spill] sm:$0xff] }
 0x356   : > { %v1749_v11 = vmul.f32 %v1741_v12, %v8112_v46 }
 0x357   : > { %v4003_v44 = vpop.eup %4002  ;;  %v1721_v47 = vmul.f32 0.7978846, %v1713_v58  ;;  %v1722_v31 = vmul.f32 0.7978846, %v1714_v7  ;;  %v1750_v62 = vmul.f32 %v1742_v54, %v8112_v46  ;;  %v5975_v58 = vld [vmem:[%s4555_s26 + $0x60] sm:$0xff]  ;;  %v5979_v7 = vld [vmem:[%s4555_s26 + $0x70] sm:$0xff] }
 0x358   : > { %v4005_v35 = vpop.eup %4004  ;;  %v1739_v50 = vadd.f32 1.0, %v4003_v44  ;;  %v1757_v24 = vadd.f32 %v1749_v11, %v8117_v57 }
 0x359   : > { %4008 = vtanh.f32 %v1721_v47  ;;  %v1740_v33 = vadd.f32 1.0, %v4005_v35  ;;  %v4007_v48 = vpop.eup %4006  ;;  %v1758_v16 = vadd.f32 %v1750_v62, %v8117_v57  ;;  %v8118_v47 = vld [vmem:[#allocation14_spill] sm:$0xff] }
 0x35a   : > { %4010 = vtanh.f32 %v1722_v31  ;;  %v1747_v36 = vmul.f32 %v1739_v50, %v1683_v13  ;;  %v1736_v6 = vadd.f32 1.0, %v4007_v48  ;;  %v1759_v35 = vadd.f32 %v1751_v9, %v8118_v47  ;;  %v5984_v50 = vld [vmem:[%s4555_s26 + $0x68] sm:$0xff] }
 0x35b   : > { %v1748_v51 = vmul.f32 %v1740_v33, %v1684_v5  ;;  %v5988_v33 = vld [vmem:[%s4555_s26 + $0x78] sm:$0xff]  ;;  %v5993_v5 = vld [vmem:[%s4555_s26 + $0x40] sm:$0xff] }
 0x35c   : > { %v1755_v8 = vmul.f32 %v1747_v36, %v8111_v61  ;;  %v1744_v25 = vmul.f32 %v1736_v6, %v1680_v37  ;;  %v1765_v20 = vadd.f32 %v5993_v5, %v1757_v24  ;;  %v5997_v36 = vld [vmem:[%s4555_s26 + $0x48] sm:$0xff]  ;;  %v1767_v3 = vadd.f32 %v6001_v40, %v1759_v35 }
 0x35d   : > { %v1756_v45 = vmul.f32 %v1748_v51, %v8111_v61  ;;  %v1766_v49 = vadd.f32 %v5997_v36, %v1758_v16 }
 0x35e   : > { %v1763_v29 = vadd.f32 %v1755_v8, %v8115_v2  ;;  %v1752_v26 = vmul.f32 %v1744_v25, %v8113_v55  ;;  %v1773_v54 = vpack.c.bf16 %v1767_v3, %v1765_v20 }
 0x35f   : > { %v4009_v32 = vpop.eup %4008  ;;  %v1764_v38 = vadd.f32 %v1756_v45, %v8115_v2 }
 0x360   : > { %v4011_v1 = vpop.eup %4010  ;;  %v1737_v18 = vadd.f32 1.0, %v4009_v32  ;;  %v1771_v44 = vadd.f32 %v5979_v7, %v1763_v29  ;;  %v1760_v13 = vadd.f32 %v1752_v26, %v8118_v47  ;;  %v6005_v32 = vld [vmem:[%s4555_s26 + $0x58] sm:$0xff] }
 0x361   : > { %v1738_v39 = vadd.f32 1.0, %v4011_v1  ;;  %v1772_v48 = vadd.f32 %v5988_v33, %v1764_v38 }
 0x362   : > { %v1745_v30 = vmul.f32 %v1737_v18, %v1681_v53  ;;  %v1768_v14 = vadd.f32 %v6005_v32, %v1760_v13  ;;  %v4204_v53 = vld [vmem:[%s7812_s2] sm:$0xff] }
 0x363   : > { %v1151_v34 = vpop.xlane.xlu0 %1150  ;;  %v1145_v52 = vpop.xlane.xlu1 %1144  ;;  %v1746_v10 = vmul.f32 %v1738_v39, %v1682_v22 }
 0x364   : > { %v3785_v27 = vmul.f32 -1.442695, %v1151_v34  ;;  %v3783_v23 = vmul.f32 -1.442695, %v1145_v52  ;;  %v1753_v28 = vmul.f32 %v1745_v30, %v8114_v43  ;;  %v1774_v1 = vpack.c.bf16 %v1768_v14, %v1766_v49 }
 0x365   : > { %v1754_v0 = vmul.f32 %v1746_v10, %v8114_v43 }
 0x366   : > { %4012 = vpow2.f32 %v3785_v27  ;;  %v1761_v4 = vadd.f32 %v1753_v28, %v8116_v56 }
 0x367   : > { %4014 = vpow2.f32 %v3783_v23  ;;  %v1762_v41 = vadd.f32 %v1754_v0, %v8116_v56 }
 0x368   : > { %v1769_v17 = vadd.f32 %v5975_v58, %v1761_v4 }
 0x369   : > { %v1770_v31 = vadd.f32 %v5984_v50, %v1762_v41 }
 0x36a   : > { %v1775_v19 = vpack.c.bf16 %v1771_v44, %v1769_v17  ;;  %v4205_v17 = vld [vmem:[%s7812_s2 + $0x8] sm:$0xff] }
 0x36b   : > { %v1776_v63 = vpack.c.bf16 %v1772_v48, %v1770_v31  ;;  %v4206_v48 = vld [vmem:[%s4555_s26 + $0x30] sm:$0xff] }
 0x36c   : > { %v4013_v51 = vpop.eup %4012  ;;  %1783 = vmatpush.bf16.msra.mxu2 %v1775_v19  ;;  %v4207_v19 = vld [vmem:[%s4555_s26 + $0x38] sm:$0xff] }
 0x36d   : > { %v4015_v6 = vpop.eup %4014  ;;  %v1167_v12 = vadd.f32 1.0, %v4013_v51  ;;  %1802 = vmatpush.bf16.msra.mxu3 %v1776_v63  ;;  %v4208_v51 = vld [vmem:[%s4555_s26 + $0x10] sm:$0xff] }
 0x36e   : > { %v1165_v37 = vadd.f32 1.0, %v4015_v6  ;;  %v4209_v6 = vld [vmem:[%s4555_s26 + $0x18] sm:$0xff] }
 0x36f   : > { %4016 = vrcp.f32 %v1167_v12  ;;  %v1224_v25 = vand.u32 2147483648, %v1167_v12  ;;  %v1222_v34 = vand.u32 2147483647, %v1167_v12  ;;  %vm1218_vm13 = vweird.f32 %v1167_v12 }
 0x370   : > { %4018 = vrcp.f32 %v1165_v37  ;;  %1784 = vmatpush.bf16.msra.mxu2 %v1773_v54  ;;  %v1194_v52 = vand.u32 2147483648, %v1165_v37  ;;  %v1192_v9 = vand.u32 2147483647, %v1165_v37  ;;  %vm1188_vm15 = vweird.f32 %v1165_v37 }
 0x371   : > { %1803 = vmatpush.bf16.msra.mxu3 %v1774_v1  ;;  %v1225_v27 = vor.u32 1.1754944e-38, %v1224_v25  ;;  %vm1223_vm9 = vcmp.eq.f32.partialorder %v1222_v34, 8.507059e+37 }
 0x372   : > { %v1195_v29 = vor.u32 1.1754944e-38, %v1194_v52  ;;  %vm1193_vm6 = vcmp.eq.f32.partialorder %v1192_v9, 8.507059e+37 }
 0x373   : > { %3794 = vmatmul.msk.bf16.vlgmr.msra.gmra.mxu2 %vm929_vm8, %v4204_v53 }
 0x374   : > { %3796 = vmatmul.msk.bf16.vlgmr.msra.gmra.mxu3 %vm929_vm8, %v4204_v53 }
 0x375   : > { %v4017_v18 = vpop.eup %4016 }
 0x376   : > { %v4019_v8 = vpop.eup %4018  ;;  %v1214_v22 = vmul.f32 %v4017_v18, %v1167_v12  ;;  %vm1219_vm11 = vweird.f32 %v4017_v18 }
 0x377   : > { %v1184_v39 = vmul.f32 %v4019_v8, %v1165_v37  ;;  %vm1189_vm12 = vweird.f32 %v4019_v8  ;;  %vm1220_vm14 = vmor %vm1218_vm13, %vm1219_vm11 }
 0x378   : > { %v1215_v45 = vsub.f32 1.0, %v1214_v22  ;;  %vm1190_vm7 = vmor %vm1188_vm15, %vm1189_vm12 }
 0x379   : > { %v1185_v30 = vsub.f32 1.0, %v1184_v39 }
 0x37a   : > { %v1216_v11 = vmul.f32 %v4017_v18, %v1215_v45 }
 0x37b   : > { %v1186_v10 = vmul.f32 %v4019_v8, %v1185_v30 }
 0x37c   : > { %v1217_v62 = vadd.f32 %v4017_v18, %v1216_v11 }
 0x37d   : > { %v1187_v23 = vadd.f32 %v4019_v8, %v1186_v10 }
 0x37e   : > { %v1221_v28 = vsel %vm1220_vm14, %v4017_v18, %v1217_v62 }
 0x37f   : > { %v1226_v0 = vsel %vm1223_vm9, %v1225_v27, %v1221_v28  ;;  %v1191_v38 = vsel %vm1190_vm7, %v4019_v8, %v1187_v23 }
 0x380   : > { %v1234_v26 = vmul.f32 1.442695, %v1226_v0  ;;  %v1196_v4 = vsel %vm1193_vm6, %v1195_v29, %v1191_v38  ;;  %v1142_v24 = vpop.xlane.xlu2 %1141 }
 0x381   : > { %v1230_v41 = vmul.f32 1.442695, %v1196_v4  ;;  %v3782_v16 = vmul.f32 -1.442695, %v1142_v24  ;;  %v4210_v24 = vld [vmem:[%s4555_s26] sm:$0xff] }
 0x382   : > { %4020 = vpow2.f32 %v1234_v26 }
 0x383   : > { %4022 = vpow2.f32 %v1230_v41  ;;  %3795 = vmatmul.msk.bf16.gmra.mxu2 %vm929_vm8, %v4205_v17 }
 0x384   : > { %4024 = vpow2.f32 %v3782_v16  ;;  %3797 = vmatmul.msk.bf16.gmra.mxu3 %vm929_vm8, %v4205_v17  ;;  %v4211_v16 = vld [vmem:[%s4555_s26 + $0x8] sm:$0xff] }
 0x388   : > { %v4021_v44 = vpop.eup %4020  ;;  %v1148_v35 = vpop.xlane.xlu2 %1147 }
 0x389   : > { %v4023_v31 = vpop.eup %4022  ;;  %v1242_v13 = vmul.f32 %v4206_v48, %v4021_v44  ;;  %v1243_v20 = vmul.f32 %v4207_v19, %v4021_v44  ;;  %v3784_v63 = vmul.f32 -1.442695, %v1148_v35  ;;  %v4212_v35 = vld [vmem:[%s4555_s26 + $0x20] sm:$0xff]  ;;  %v4213_v48 = vld [vmem:[%s4555_s26 + $0x28] sm:$0xff] }
 0x38a   : > { %v4025_v49 = vpop.eup %4024  ;;  %v1238_v3 = vmul.f32 %v4208_v51, %v4023_v31  ;;  %v1239_v12 = vmul.f32 %v4209_v6, %v4023_v31 }
 0x38b   : > { %1250 = vst [vmem:[%s6024_s15 + $0x30] sm:$0xff] %v1242_v13  ;;  %v1164_v14 = vadd.f32 1.0, %v4025_v49  ;;  %4026 = vpow2.f32 %v3784_v63 }
 0x38c   : > { %1251 = vst [vmem:[%s6024_s15 + $0x38] sm:$0xff] %v1243_v20  ;;  %v8119_v20 = vld [vmem:[#allocation33_spill] sm:$0xff] }
 0x38d   : > { %1246 = vst [vmem:[%s6024_s15 + $0x10] sm:$0xff] %v1238_v3  ;;  %4028 = vrcp.f32 %v1164_v14  ;;  %v1179_v8 = vand.u32 2147483648, %v1164_v14  ;;  %v1177_v39 = vand.u32 2147483647, %v1164_v14  ;;  %vm1173_vm7 = vweird.f32 %v1164_v14 }
 0x38e   : > { %1247 = vst [vmem:[%s6024_s15 + $0x18] sm:$0xff] %v1239_v12 }
 0x38f   : > { %v1180_v30 = vor.u32 1.1754944e-38, %v1179_v8  ;;  %vm1178_vm12 = vcmp.eq.f32.partialorder %v1177_v39, 8.507059e+37 }
 0x391   : > { %v4027_v37 = vpop.eup %4026 }
 0x392   : > { %v1166_v54 = vadd.f32 1.0, %v4027_v37 }
 0x393   : > { %v4029_v1 = vpop.eup %4028 }
 0x394   : > { %v1169_v53 = vmul.f32 %v4029_v1, %v1164_v14  ;;  %4030 = vrcp.f32 %v1166_v54  ;;  %vm1174_vm6 = vweird.f32 %v4029_v1  ;;  %v1209_v62 = vand.u32 2147483648, %v1166_v54 }
 0x395   : > { %vm1175_vm11 = vmor %vm1173_vm7, %vm1174_vm6  ;;  %v1207_v23 = vand.u32 2147483647, %v1166_v54  ;;  %vm1203_vm14 = vweird.f32 %v1166_v54 }
 0x396   : > { %v1170_v18 = vsub.f32 1.0, %v1169_v53  ;;  %v1210_v29 = vor.u32 1.1754944e-38, %v1209_v62 }
 0x397   : > { %vm1208_vm9 = vcmp.eq.f32.partialorder %v1207_v23, 8.507059e+37 }
 0x398   : > { %v1171_v22 = vmul.f32 %v4029_v1, %v1170_v18  ;;  %v8120_v18 = vld [vmem:[#allocation29_spill] sm:$0xff] }
 0x39a   : > { %v4031_v45 = vpop.eup %4030  ;;  %v1172_v25 = vadd.f32 %v4029_v1, %v1171_v22 }
 0x39b   : > { %v1199_v11 = vmul.f32 %v4031_v45, %v1166_v54  ;;  %vm1204_vm13 = vweird.f32 %v4031_v45 }
 0x39c   : > { %v1176_v34 = vsel %vm1175_vm11, %v4029_v1, %v1172_v25  ;;  %vm1205_vm15 = vmor %vm1203_vm14, %vm1204_vm13 }
 0x39d   : > { %v1181_v52 = vsel %vm1178_vm12, %v1180_v30, %v1176_v34  ;;  %v1200_v10 = vsub.f32 1.0, %v1199_v11 }
 0x39e   : > { %v1228_v9 = vmul.f32 1.442695, %v1181_v52 }
 0x39f   : > { %v1201_v27 = vmul.f32 %v4031_v45, %v1200_v10 }
 0x3a0   : > { %4032 = vpow2.f32 %v1228_v9 }
 0x3a1   : > { %v1202_v28 = vadd.f32 %v4031_v45, %v1201_v27 }
 0x3a3   : > { %v1206_v0 = vsel %vm1205_vm15, %v4031_v45, %v1202_v28  ;;  %v8121_v28 = vld [vmem:[#allocation32_spill] sm:$0xff] }
 0x3a4   : > { %v1211_v38 = vsel %vm1208_vm9, %v1210_v29, %v1206_v0 }
 0x3a5   : > { %v1232_v26 = vmul.f32 1.442695, %v1211_v38 }
 0x3a6   : > { %v4033_v4 = vpop.eup %4032 }
 0x3a7   : > { %v1236_v41 = vmul.f32 %v4210_v24, %v4033_v4  ;;  %v1237_v17 = vmul.f32 %v4211_v16, %v4033_v4  ;;  %4034 = vpow2.f32 %v1232_v26 }
 0x3a9   : > { %1244 = vst [vmem:[%s6024_s15] sm:$0xff] %v1236_v41 }
 0x3aa   : > { %1245 = vst [vmem:[%s6024_s15 + $0x8] sm:$0xff] %v1237_v17 }
 0x3ad   : > { %v4035_v44 = vpop.eup %4034 }
 0x3ae   : > { %v1240_v31 = vmul.f32 %v4212_v35, %v4035_v44  ;;  %v1241_v13 = vmul.f32 %v4213_v48, %v4035_v44 }
 0x3b0   : > { %1248 = vst [vmem:[%s6024_s15 + $0x20] sm:$0xff] %v1240_v31 }
 0x3b1   : > { %1249 = vst [vmem:[%s6024_s15 + $0x28] sm:$0xff] %v1241_v13 }
 0x3f6   : > { %v1786_v19 = vpop.f32.mrf.mxu2 }
 0x3f7   : > { %v1787_v63 = vadd.f32 %v1786_v19, %v8119_v20  ;;  %v1805_v49 = vpop.f32.mrf.mxu3 }
 0x3f8   : > { %v1806_v51 = vadd.f32 %v1805_v49, %v8119_v20 }
 0x3f9   : > { %v1823_v3 = vmul.f32 0.044715, %v1787_v63  ;;  %v1815_v35 = vmul.f32 0.5, %v1787_v63 }
 0x3fa   : > { %v1824_v6 = vmul.f32 0.044715, %v1806_v51  ;;  %v1816_v13 = vmul.f32 0.5, %v1806_v51 }
 0x3fb   : > { %v1831_v12 = vmul.f32 %v1823_v3, %v1787_v63 }
 0x3fc   : > { %v1832_v14 = vmul.f32 %v1824_v6, %v1806_v51 }
 0x3fd   : > { %v1839_v37 = vmul.f32 %v1831_v12, %v1787_v63 }
 0x3fe   : > { %v1840_v54 = vmul.f32 %v1832_v14, %v1806_v51  ;;  %v1788_v1 = vpop.f32.mrf.mxu2 }
 0x3ff   : > { %v1847_v53 = vadd.f32 %v1839_v37, %v1787_v63  ;;  %v1789_v8 = vadd.f32 %v1788_v1, %v8120_v18  ;;  %v1807_v22 = vpop.f32.mrf.mxu3 }
 0x400   : > { %v1848_v39 = vadd.f32 %v1840_v54, %v1806_v51  ;;  %v1808_v45 = vadd.f32 %v1807_v22, %v8120_v18  ;;  %v8122_v54 = vld [vmem:[#allocation39_spill] sm:$0xff]  ;;  %v8123_v22 = vld [vmem:[#allocation36_spill] sm:$0xff] }
 0x401   : > { %v1855_v25 = vmul.f32 0.7978846, %v1847_v53  ;;  %v1825_v30 = vmul.f32 0.044715, %v1789_v8 }
 0x402   : > { %v1856_v11 = vmul.f32 0.7978846, %v1848_v39  ;;  %v1826_v34 = vmul.f32 0.044715, %v1808_v45 }
 0x403   : > { %v1833_v52 = vmul.f32 %v1825_v30, %v1789_v8  ;;  %4036 = vtanh.f32 %v1855_v25 }
 0x404   : > { %v1834_v10 = vmul.f32 %v1826_v34, %v1808_v45  ;;  %4038 = vtanh.f32 %v1856_v11  ;;  %v8124_v11 = vld [vmem:[#allocation38_spill] sm:$0xff] }
 0x405   : > { %v1841_v9 = vmul.f32 %v1833_v52, %v1789_v8 }
 0x406   : > { %v1842_v62 = vmul.f32 %v1834_v10, %v1808_v45  ;;  %v1791_v27 = vpop.f32.mrf.mxu2 }
 0x407   : > { %v1849_v23 = vadd.f32 %v1841_v9, %v1789_v8  ;;  %v1792_v29 = vadd.f32 %v1791_v27, %v8121_v28  ;;  %v1810_v0 = vpop.f32.mrf.mxu3  ;;  %v1817_v27 = vmul.f32 0.5, %v1789_v8 }
 0x408   : > { %v1850_v38 = vadd.f32 %v1842_v62, %v1808_v45  ;;  %v1811_v26 = vadd.f32 %v1810_v0, %v8121_v28 }
 0x409   : > { %v4037_v4 = vpop.eup %4036  ;;  %v1857_v24 = vmul.f32 0.7978846, %v1849_v23  ;;  %v1827_v41 = vmul.f32 0.044715, %v1792_v29 }
 0x40a   : > { %v4039_v16 = vpop.eup %4038  ;;  %v1858_v17 = vmul.f32 0.7978846, %v1850_v38  ;;  %v1828_v44 = vmul.f32 0.044715, %v1811_v26  ;;  %v1871_v31 = vadd.f32 1.0, %v4037_v4  ;;  %v1818_v4 = vmul.f32 0.5, %v1808_v45 }
 0x40b   : > { %v1835_v48 = vmul.f32 %v1827_v41, %v1792_v29  ;;  %v1872_v19 = vadd.f32 1.0, %v4039_v16  ;;  %4040 = vtanh.f32 %v1857_v24 }
 0x40c   : > { %v1836_v49 = vmul.f32 %v1828_v44, %v1811_v26  ;;  %v1879_v3 = vmul.f32 %v1871_v31, %v1815_v35  ;;  %4042 = vtanh.f32 %v1858_v17 }
 0x40d   : > { %v1843_v6 = vmul.f32 %v1835_v48, %v1792_v29  ;;  %v1880_v12 = vmul.f32 %v1872_v19, %v1816_v13  ;;  %v8125_v19 = vld [vmem:[#allocation37_spill] sm:$0xff] }
 0x40e   : > { %v1844_v14 = vmul.f32 %v1836_v49, %v1811_v26  ;;  %v1793_v37 = vpop.f32.mrf.mxu2  ;;  %v1887_v1 = vmul.f32 %v1879_v3, %v8122_v54 }
 0x40f   : > { %v1851_v53 = vadd.f32 %v1843_v6, %v1792_v29  ;;  %v1794_v39 = vadd.f32 %v1793_v37, %v8123_v22  ;;  %v1812_v25 = vpop.f32.mrf.mxu3  ;;  %v1888_v63 = vmul.f32 %v1880_v12, %v8122_v54  ;;  %v8126_v12 = vld [vmem:[#allocation35_spill] sm:$0xff] }
 0x410   : > { %v1852_v30 = vadd.f32 %v1844_v14, %v1811_v26  ;;  %v1813_v51 = vadd.f32 %v1812_v25, %v8123_v22  ;;  %v1895_v34 = vadd.f32 %v1887_v1, %v8124_v11 }
 0x411   : > { %v4041_v52 = vpop.eup %4040  ;;  %v1859_v10 = vmul.f32 0.7978846, %v1851_v53  ;;  %v1829_v9 = vmul.f32 0.044715, %v1794_v39  ;;  %v1896_v62 = vadd.f32 %v1888_v63, %v8124_v11  ;;  %v1819_v63 = vmul.f32 0.5, %v1792_v29 }
 0x412   : > { %v4043_v23 = vpop.eup %4042  ;;  %v1860_v0 = vmul.f32 0.7978846, %v1852_v30  ;;  %v1830_v38 = vmul.f32 0.044715, %v1813_v51  ;;  %v1873_v24 = vadd.f32 1.0, %v4041_v52  ;;  %v1820_v52 = vmul.f32 0.5, %v1811_v26 }
 0x413   : > { %v1837_v41 = vmul.f32 %v1829_v9, %v1794_v39  ;;  %v1903_v16 = vadd.f32 %v1896_v62, %v1895_v34  ;;  %v1874_v17 = vadd.f32 1.0, %v4043_v23  ;;  %4044 = vtanh.f32 %v1859_v10 }
 0x414   : > { %v1838_v44 = vmul.f32 %v1830_v38, %v1813_v51  ;;  %v1881_v35 = vmul.f32 %v1873_v24, %v1817_v27  ;;  %4046 = vtanh.f32 %v1860_v0  ;;  %v8127_v27 = vld [vmem:[#allocation26_spill] sm:$0xff]  ;;  %v8128_v38 = vld [vmem:[#allocation17_spill] sm:$0xff]  ;;  %v1821_v29 = vmul.f32 0.5, %v1794_v39 }
 0x415   : > { %v1845_v31 = vmul.f32 %v1837_v41, %v1794_v39  ;;  %1904 = vadd.xlane.f32.xlu0 %v1903_v16  ;;  %v1882_v48 = vmul.f32 %v1874_v17, %v1818_v4  ;;  %v1822_v26 = vmul.f32 0.5, %v1813_v51 }
 0x416   : > { %v1846_v13 = vmul.f32 %v1838_v44, %v1813_v51  ;;  %v1889_v49 = vmul.f32 %v1881_v35, %v8125_v19 }
 0x417   : > { %v1853_v3 = vadd.f32 %v1845_v31, %v1794_v39  ;;  %v1890_v8 = vmul.f32 %v1882_v48, %v8125_v19  ;;  %v8131_v39 = vld [vmem:[#allocation19_spill] sm:$0xff] }
 0x418   : > { %v1854_v6 = vadd.f32 %v1846_v13, %v1813_v51  ;;  %v1897_v45 = vadd.f32 %v1889_v49, %v8126_v12  ;;  %v8129_v13 = vld [vmem:[#allocation40_spill] sm:$0xff] }
 0x419   : > { %v4045_v14 = vpop.eup %4044  ;;  %v1861_v37 = vmul.f32 0.7978846, %v1853_v3  ;;  %v1898_v1 = vadd.f32 %v1890_v8, %v8126_v12  ;;  %v8130_v8 = vld [vmem:[#allocation16_spill] sm:$0xff] }
 0x41a   : > { %v4047_v53 = vpop.eup %4046  ;;  %v1862_v25 = vmul.f32 0.7978846, %v1854_v6  ;;  %v1875_v30 = vadd.f32 1.0, %v4045_v14 }
 0x41b   : > { %v1906_v34 = vadd.f32 %v1898_v1, %v1897_v45  ;;  %v1876_v10 = vadd.f32 1.0, %v4047_v53  ;;  %4048 = vtanh.f32 %v1861_v37 }
 0x41c   : > { %v1883_v9 = vmul.f32 %v1875_v30, %v1819_v63  ;;  %4050 = vtanh.f32 %v1862_v25  ;;  %v4214_v30 = vld [vmem:[%s7813_s3 + $0x8] sm:$0xff] }
 0x41d   : > { %1907 = vadd.xlane.f32.xlu2 %v1906_v34  ;;  %v1884_v62 = vmul.f32 %v1876_v10, %v1820_v52  ;;  %v4215_v52 = vld [vmem:[%s7813_s3] sm:$0xff] }
 0x41e   : > { %v1891_v23 = vmul.f32 %v1883_v9, %v8127_v27  ;;  %v4216_v9 = vld [vmem:[%s7813_s3 + $0x10] sm:$0xff] }
 0x41f   : > { %v1892_v0 = vmul.f32 %v1884_v62, %v8127_v27 }
 0x420   : > { %v1899_v4 = vadd.f32 %v1891_v23, %v8128_v38 }
 0x421   : > { %v4049_v24 = vpop.eup %4048  ;;  %v1900_v41 = vadd.f32 %v1892_v0, %v8128_v38 }
 0x422   : > { %v4051_v16 = vpop.eup %4050  ;;  %v1877_v17 = vadd.f32 1.0, %v4049_v24 }
 0x423   : > { %v1909_v44 = vadd.f32 %v1900_v41, %v1899_v4  ;;  %v1878_v35 = vadd.f32 1.0, %v4051_v16 }
 0x424   : > { %v1885_v31 = vmul.f32 %v1877_v17, %v1821_v29  ;;  %v4217_v29 = vld [vmem:[%s7813_s3 + $0x18] sm:$0xff] }
 0x425   : > { %1910 = vadd.xlane.f32.xlu1 %v1909_v44  ;;  %v1886_v48 = vmul.f32 %v1878_v35, %v1822_v26 }
 0x426   : > { %v1893_v49 = vmul.f32 %v1885_v31, %v8129_v13 }
 0x427   : > { %v1894_v3 = vmul.f32 %v1886_v48, %v8129_v13 }
 0x428   : > { %v1901_v6 = vadd.f32 %v1893_v49, %v8130_v8 }
 0x429   : > { %v1902_v45 = vadd.f32 %v1894_v3, %v8130_v8 }
 0x42b   : > { %v1912_v14 = vadd.f32 %v1902_v45, %v1901_v6 }
 0x42d   : > { %1913 = vadd.xlane.f32.xlu0 %v1912_v14 }
 0x488   : > { %v1905_v1 = vpop.xlane.xlu0 %1904 }
 0x489   : > { %v1915_v51 = vmul.f32 %v1905_v1, %v8131_v39 }
 0x48b   : > { %v1919_v10 = vmul.f32 %v4215_v52, %v1915_v51  ;;  %v4220_v51 = vld [vmem:[%s7814_s4] sm:$0xff] }
 0x48d   : > { %v1923_v4 = vsel %vm1121_vm10, %v1919_v10, 0.0  ;;  %v4221_v10 = vld [vmem:[%s7814_s4 + $0x18] sm:$0xff] }
 0x490   : > { %v1908_v37 = vpop.xlane.xlu2 %1907 }
 0x491   : > { %v1916_v53 = vmul.f32 %v1908_v37, %v8131_v39  ;;  %v4218_v37 = vld [vmem:[%s7814_s4 + $0x10] sm:$0xff] }
 0x493   : > { %v1920_v34 = vmul.f32 %v4214_v30, %v1916_v53  ;;  %v4219_v53 = vld [vmem:[%s7814_s4 + $0x8] sm:$0xff] }
 0x495   : > { %v1924_v23 = vsel %vm1121_vm10, %v1920_v34, 0.0 }
 0x496   : > { %v1925_v16 = vadd.f32 %v1924_v23, %v1923_v4  ;;  %v6099_v23 = vld [vmem:[%s4555_s26 + $0x90] sm:$0xff] }
 0x497   : > { %v6109_v4 = vld [vmem:[%s4555_s26 + $0xb0] sm:$0xff] }
 0x498   : > { %v1911_v25 = vpop.xlane.xlu1 %1910 }
 0x499   : > { %v1917_v63 = vmul.f32 %v1911_v25, %v8131_v39 }
 0x49b   : > { %v1921_v62 = vmul.f32 %v4216_v9, %v1917_v63 }
 0x49d   : > { %v1926_v24 = vsel %vm1121_vm10, %v1921_v62, 0.0 }
 0x49e   : > { %v1927_v44 = vadd.f32 %v1926_v24, %v1925_v16  ;;  %v6114_v24 = vld [vmem:[%s4555_s26 + $0x88] sm:$0xff] }
 0x49f   : > { %v6122_v16 = vld [vmem:[%s4555_s26 + $0xa8] sm:$0xff] }
 0x4a0   : > { %v1914_v0 = vpop.xlane.xlu0 %1913 }
 0x4a1   : > { %v1918_v41 = vmul.f32 %v1914_v0, %v8131_v39  ;;  %v6104_v0 = vld [vmem:[%s4555_s26 + $0x80] sm:$0xff] }
 0x4a3   : > { %v1922_v17 = vmul.f32 %v4217_v29, %v1918_v41  ;;  %v6117_v41 = vld [vmem:[%s4555_s26 + $0xa0] sm:$0xff]  ;;  %v6129_v29 = vld [vmem:[%s4555_s26 + $0xb8] sm:$0xff] }
 0x4a5   : > { %v1928_v26 = vsel %vm1121_vm10, %v1922_v17, 0.0  ;;  %v6132_v17 = vld [vmem:[%s4555_s26 + $0x98] sm:$0xff] }
 0x4a6   : > { %v1929_v35 = vadd.f32 %v1928_v26, %v1927_v44  ;;  %v6143_v44 = vld [vmem:[%s4555_s26 + $0xf0] sm:$0xff]  ;;  %v6150_v26 = vld [vmem:[%s4555_s26 + $0xe8] sm:$0xff] }
 0x4a8   : > { %v1930_v31 = vrot.slane %v1929_v35, 4 }
 0x4aa   : > { %v1931_v48 = vadd.f32 %v1930_v31, %v1929_v35  ;;  %v6153_v35 = vld [vmem:[%s4555_s26 + $0xe0] sm:$0xff]  ;;  %v6162_v31 = vld [vmem:[%s4555_s26 + $0xf8] sm:$0xff] }
 0x4ac   : > { %v1932_v49 = vrot.slane %v1931_v48, 2 }
 0x4ae   : > { %v1933_v3 = vadd.f32 %v1932_v49, %v1931_v48  ;;  %v6179_v48 = vld [vmem:[%s4555_s26 + $0xd0] sm:$0xff]  ;;  %v6186_v49 = vld [vmem:[%s4555_s26 + $0xc8] sm:$0xff] }
 0x4b0   : > { %v1934_v6 = vrot.slane %v1933_v3, 1 }
 0x4b2   : > { %v1935_v45 = vadd.f32 %v1934_v6, %v1933_v3  ;;  %v6189_v3 = vld [vmem:[%s4555_s26 + $0xc0] sm:$0xff]  ;;  %v6198_v6 = vld [vmem:[%s4555_s26 + $0xd8] sm:$0xff] }
 0x4b4   : > { %v1936_v14 = vmax.f32 %v1935_v45, 0.0 }
 0x4b6   : > { %v1939_v1 = vmul.f32 %v4218_v37, %v1936_v14  ;;  %v1938_v25 = vmul.f32 %v4219_v53, %v1936_v14  ;;  %v1937_v63 = vmul.f32 %v4220_v51, %v1936_v14  ;;  %v1940_v9 = vmul.f32 %v4221_v10, %v1936_v14 }
 0x4b8   : > { %v1947_v30 = vsel %vm1121_vm10, %v1939_v1, 0.0  ;;  %v1944_v34 = vsel %vm1121_vm10, %v1938_v25, 0.0  ;;  %v1941_v52 = vsel %vm1121_vm10, %v1937_v63, 0.0  ;;  %v1950_v62 = vsel %vm1121_vm10, %v1940_v9, 0.0 }
 0x4b9   : > { %1948 = vadd.xlane.f32.xlu0 %v1947_v30  ;;  %1945 = vadd.xlane.f32.xlu1 %v1944_v34 }
 0x4ba   : > { %1942 = vadd.xlane.f32.xlu2 %v1941_v52 }
 0x4c2   : > { %1951 = vadd.xlane.f32.xlu2 %v1950_v62 }
 0x4cd   : > { %2065 = vrot.lane.b32.xlu0 %v6099_v23, %s4399_s27 }
 0x4d2   : > { %2063 = vrot.lane.b32.xlu1 %v6104_v0, %s4399_s27 }
 0x4d5   : > { %2069 = vrot.lane.b32.xlu0 %v6109_v4, %s4399_s27 }
 0x4da   : > { %2071 = vrot.lane.b32.xlu1 %v6114_v24, %s4399_s27  ;;  %2067 = vrot.lane.b32.xlu2 %v6117_v41, %s4399_s27 }
 0x4dd   : > { %2075 = vrot.lane.b32.xlu0 %v6122_v16, %s4399_s27 }
 0x4e2   : > { %2077 = vrot.lane.b32.xlu1 %v6129_v29, %s4399_s27  ;;  %2073 = vrot.lane.b32.xlu2 %v6132_v17, %s4399_s27 }
 0x4e5   : > { %2113 = vrot.lane.b32.xlu0 %v6099_v23, %s4400_s8 }
 0x4ea   : > { %2115 = vrot.lane.b32.xlu1 %v6117_v41, %s4400_s8  ;;  %2111 = vrot.lane.b32.xlu2 %v6104_v0, %s4400_s8 }
 0x4ed   : > { %2871 = vrot.lane.b32.xlu0 %v6143_v44, %s4399_s27 }
 0x4f2   : > { %2877 = vrot.lane.b32.xlu1 %v6150_v26, %s4399_s27  ;;  %2869 = vrot.lane.b32.xlu2 %v6153_v35, %s4399_s27 }
 0x4f5   : > { %2917 = vrot.lane.b32.xlu0 %v6153_v35, %s4400_s8 }
 0x4fa   : > { %2919 = vrot.lane.b32.xlu1 %v6143_v44, %s4400_s8  ;;  %2879 = vrot.lane.b32.xlu2 %v6162_v31, %s4399_s27 }
 0x4fd   : > { %2927 = vrot.lane.b32.xlu0 %v6162_v31, %s4400_s8 }
 0x502   : > { %2965 = vrot.lane.b32.xlu1 %v6153_v35, %s4401_s7  ;;  %2925 = vrot.lane.b32.xlu2 %v6150_v26, %s4400_s8 }
 0x505   : > { %2973 = vrot.lane.b32.xlu0 %v6150_v26, %s4401_s7 }
 0x50a   : > { %2975 = vrot.lane.b32.xlu1 %v6162_v31, %s4401_s7  ;;  %2967 = vrot.lane.b32.xlu2 %v6143_v44, %s4401_s7 }
 0x50d   : > { %2867 = vrot.lane.b32.xlu0 %v6179_v48, %s4399_s27 }
 0x512   : > { %2873 = vrot.lane.b32.xlu1 %v6186_v49, %s4399_s27  ;;  %2865 = vrot.lane.b32.xlu2 %v6189_v3, %s4399_s27 }
 0x515   : > { %2913 = vrot.lane.b32.xlu0 %v6189_v3, %s4400_s8 }
 0x51a   : > { %2915 = vrot.lane.b32.xlu1 %v6179_v48, %s4400_s8  ;;  %2875 = vrot.lane.b32.xlu2 %v6198_v6, %s4399_s27  ;;  %s8134_s27 = smov 113  }
 0x51d   : > { %2923 = vrot.lane.b32.xlu0 %v6198_v6, %s4400_s8 }
 0x522   : > { %3013 = vrot.lane.b32.xlu1 %v6153_v35, %s4402_s10  ;;  %2921 = vrot.lane.b32.xlu2 %v6186_v49, %s4400_s8 }
 0x525   : > { %3021 = vrot.lane.b32.xlu0 %v6150_v26, %s4402_s10 }
 0x52a   : > { %3023 = vrot.lane.b32.xlu1 %v6162_v31, %s4402_s10  ;;  %3015 = vrot.lane.b32.xlu2 %v6143_v44, %s4402_s10 }
 0x52c   : > { %v1949_v45 = vpop.xlane.xlu0 %1948  ;;  %v1946_v14 = vpop.xlane.xlu1 %1945 }
 0x52d   : > { %v3800_v37 = vmul.f32 -1.442695, %v1949_v45  ;;  %v3799_v1 = vmul.f32 -1.442695, %v1946_v14  ;;  %v1943_v53 = vpop.xlane.xlu2 %1942  ;;  %2123 = vrot.lane.b32.xlu0 %v6122_v16, %s4400_s8 }
 0x52e   : > { %v3798_v25 = vmul.f32 -1.442695, %v1943_v53 }
 0x52f   : > { %4052 = vpow2.f32 %v3800_v37 }
 0x530   : > { %4054 = vpow2.f32 %v3799_v1 }
 0x531   : > { %4056 = vpow2.f32 %v3798_v25 }
 0x532   : > { %2125 = vrot.lane.b32.xlu1 %v6129_v29, %s4400_s8  ;;  %2117 = vrot.lane.b32.xlu2 %v6109_v4, %s4400_s8 }
 0x535   : > { %v4053_v51 = vpop.eup %4052  ;;  %v1952_v63 = vpop.xlane.xlu2 %1951  ;;  %2963 = vrot.lane.b32.xlu0 %v6179_v48, %s4401_s7 }
 0x536   : > { %v4055_v30 = vpop.eup %4054  ;;  %v1967_v34 = vadd.f32 1.0, %v4053_v51  ;;  %v3801_v52 = vmul.f32 -1.442695, %v1952_v63 }
 0x537   : > { %v4057_v10 = vpop.eup %4056  ;;  %v1966_v9 = vadd.f32 1.0, %v4055_v30 }
 0x538   : > { %4058 = vrcp.f32 %v1967_v34  ;;  %v6224_v62 = vadd.f32 1.0, %v4057_v10  ;;  %v2008_v51 = vand.u32 2147483647, %v1967_v34  ;;  %vm2004_vm6 = vweird.f32 %v1967_v34 }
 0x539   : > { %4060 = vrcp.f32 %v1966_v9  ;;  %v1995_v10 = vand.u32 2147483648, %v1966_v9  ;;  %vm1989_vm7 = vweird.f32 %v1966_v9 }
 0x53a   : > { %4062 = vpow2.f32 %v3801_v52  ;;  %2969 = vrot.lane.b32.xlu1 %v6186_v49, %s4401_s7  ;;  %2961 = vrot.lane.b32.xlu2 %v6189_v3, %s4401_s7  ;;  %v2010_v52 = vand.u32 2147483648, %v1967_v34  ;;  %vm6243_vm12 = vcmp.eq.f32.partialorder %v2008_v51, 8.507059e+37  ;;  %v1978_v51 = vand.u32 2147483647, %v6224_v62 }
 0x53b   : > { %4064 = vrcp.f32 %v6224_v62  ;;  %v1996_v11 = vor.u32 1.1754944e-38, %v1995_v10  ;;  %v1980_v28 = vand.u32 2147483648, %v6224_v62 }
 0x53c   : > { %v2011_v22 = vor.u32 1.1754944e-38, %v2010_v52 }
 0x53d   : > { %v6231_v45 = vpop.permute.xlu2 %2067  ;;  %2163 = vrot.lane.b32.xlu0 %v6117_v41, %s4401_s7 }
 0x53e   : > { %v4059_v14 = vpop.eup %4058 }
 0x53f   : > { %v4061_v37 = vpop.eup %4060  ;;  %v2000_v1 = vmul.f32 %v4059_v14, %v1967_v34  ;;  %v2066_v53 = vpop.permute.xlu0 %2065  ;;  %vm2005_vm11 = vweird.f32 %v4059_v14 }
 0x540   : > { %v4063_v25 = vpop.eup %4062  ;;  %v1985_v63 = vmul.f32 %v4061_v37, %v1966_v9  ;;  %vm1990_vm13 = vweird.f32 %v4061_v37  ;;  %vm2006_vm14 = vmor %vm2004_vm6, %vm2005_vm11  ;;  %vm1974_vm11 = vweird.f32 %v6224_v62 }
 0x541   : > { %v2001_v30 = vsub.f32 1.0, %v2000_v1  ;;  %v6235_v39 = vadd.f32 1.0, %v4063_v25  ;;  %v4065_v8 = vpop.eup %4064  ;;  %vm1991_vm15 = vmor %vm1989_vm7, %vm1990_vm13  ;;  %v6286_v1 = vld [vmem:[#allocation5 + $0x20] sm:$0xff] }
 0x542   : > { %v1986_v13 = vsub.f32 1.0, %v1985_v63  ;;  %2165 = vrot.lane.b32.xlu1 %v6109_v4, %s4401_s7  ;;  %2971 = vrot.lane.b32.xlu2 %v6198_v6, %s4401_s7  ;;  %v1970_v19 = vmul.f32 %v4065_v8, %v6224_v62  ;;  %v1993_v63 = vand.u32 2147483647, %v1966_v9  ;;  %vm1975_vm9 = vweird.f32 %v4065_v8 }
 0x543   : > { %v2002_v12 = vmul.f32 %v4059_v14, %v2001_v30  ;;  %4066 = vrcp.f32 %v6235_v39  ;;  %vm1976_vm7 = vmor %vm1974_vm11, %vm1975_vm9 }
 0x544   : > { %v1987_v25 = vmul.f32 %v4061_v37, %v1986_v13  ;;  %v2064_v38 = vpop.permute.xlu1 %2063  ;;  %v1971_v54 = vsub.f32 1.0, %v1970_v19  ;;  %vm1994_vm6 = vcmp.eq.f32.partialorder %v1993_v63, 8.507059e+37  ;;  %v6288_v63 = vld [vmem:[#allocation5 + $0x28] sm:$0xff] }
 0x545   : > { %v2003_v27 = vadd.f32 %v4059_v14, %v2002_v12  ;;  %v2074_v18 = vpop.permute.xlu2 %2073  ;;  %2173 = vrot.lane.b32.xlu0 %v6129_v29, %s4401_s7 }
 0x546   : > { %v1988_v30 = vadd.f32 %v4061_v37, %v1987_v25  ;;  %v6254_v13 = vsel %vm335_vm0, %v2066_v53, %v2074_v18  ;;  %v1972_v19 = vmul.f32 %v4065_v8, %v1971_v54  ;;  %v6260_v12 = vsel %vm335_vm0, %v2074_v18, %v2066_v53 }
 0x547   : > { %v2007_v20 = vsel %vm2006_vm14, %v4059_v14, %v2003_v27  ;;  %v6262_v34 = vpop.permute.xlu0 %2069  ;;  %v1981_v54 = vor.u32 1.1754944e-38, %v1980_v28  ;;  %v2023_v53 = vand.u32 2147483647, %v6235_v39  ;;  %vm2019_vm14 = vweird.f32 %v6235_v39 }
 0x548   : > { %v2012_v52 = vsel %vm6243_vm12, %v2011_v22, %v2007_v20  ;;  %v1992_v10 = vsel %vm1991_vm15, %v4061_v37, %v1988_v30  ;;  %v1973_v27 = vadd.f32 %v4065_v8, %v1972_v19  ;;  %vm1979_vm12 = vcmp.eq.f32.partialorder %v1978_v51, 8.507059e+37 }
 0x549   : > { %v4067_v25 = vpop.eup %4066  ;;  %v2033_v47 = vmul.f32 1.442695, %v2012_v52  ;;  %v1997_v57 = vsel %vm1994_vm6, %v1996_v11, %v1992_v10  ;;  %vm2024_vm9 = vcmp.eq.f32.partialorder %v2023_v53, 8.507059e+37  ;;  %vm8167_vm6 = vcmp.lt.s32.totalorder %v4837_v60, 111 }
 0x54a   : > { %v2031_v9 = vmul.f32 1.442695, %v1997_v57  ;;  %v2015_v14 = vmul.f32 %v4067_v25, %v6235_v39  ;;  %3009 = vrot.lane.b32.xlu1 %v6189_v3, %s4402_s10  ;;  %2171 = vrot.lane.b32.xlu2 %v6122_v16, %s4401_s7  ;;  %v1977_v20 = vsel %vm1976_vm7, %v4065_v8, %v1973_v27  ;;  %v2025_v57 = vand.u32 2147483648, %v6235_v39  ;;  %vm8168_vm11 = vmmov %vm8167_vm6 }
 0x54b   : > { %4068 = vpow2.f32 %v2033_v47  ;;  %v1982_v18 = vsel %vm1979_vm12, %v1981_v54, %v1977_v20  ;;  %vm2020_vm13 = vweird.f32 %v4067_v25  ;;  %vm8170_vm7 = vmmov %vm8167_vm6 }
 0x54c   : > { %4070 = vpow2.f32 %v2031_v9  ;;  %v2016_v22 = vsub.f32 1.0, %v2015_v14  ;;  %v2072_v11 = vpop.permute.xlu1 %2071  ;;  %v2029_v37 = vmul.f32 1.442695, %v1982_v18  ;;  %vm2021_vm15 = vmor %vm2019_vm14, %vm2020_vm13  ;;  %v2026_v10 = vor.u32 1.1754944e-38, %v2025_v57 }
 0x54d   : > { %v6275_v28 = vsel %vm335_vm0, %v2064_v38, %v2072_v11  ;;  %v6279_v62 = vsel %vm335_vm0, %v2072_v11, %v2064_v38  ;;  %3017 = vrot.lane.b32.xlu0 %v6186_v49, %s4402_s10  ;;  %v6283_v47 = vpop.permute.xlu2 %2111  ;;  %v6311_v11 = vld [vmem:[#allocation5 + $0x30] sm:$0xff]  ;;  %vm8171_vm12 = vmmov %vm8167_vm6 }
 0x54e   : > { %v2017_v8 = vmul.f32 %v4067_v25, %v2016_v22  ;;  %4072 = vpow2.f32 %v2029_v37  ;;  %vm8179_vm14 = vmmov %vm8167_vm6 }
 0x54f   : > { %v2076_v30 = vpop.permute.xlu0 %2075 }
 0x550   : > { %v2018_v51 = vadd.f32 %v4067_v25, %v2017_v8  ;;  %v2081_v38 = vsel %vm335_vm0, %v6231_v45, %v2076_v30  ;;  %v2085_v19 = vsel %vm335_vm0, %v2076_v30, %v6231_v45 }
 0x551   : > { %v4069_v52 = vpop.eup %4068  ;;  %v6298_v27 = vmul.f32 %v6286_v1, %v2085_v19  ;;  %v6301_v9 = vmul.f32 %v6288_v63, %v2081_v38 }
 0x552   : > { %v4071_v54 = vpop.eup %4070  ;;  %v2041_v39 = vmul.f32 %v5975_v58, %v4069_v52  ;;  %v2042_v14 = vmul.f32 %v5984_v50, %v4069_v52  ;;  %v2022_v20 = vsel %vm2021_vm15, %v4067_v25, %v2018_v51  ;;  %3019 = vrot.lane.b32.xlu1 %v6198_v6, %s4402_s10  ;;  %3011 = vrot.lane.b32.xlu2 %v6179_v48, %s4402_s10  ;;  %v2094_v50 = vld [vmem:[#allocation5 + $0x38] sm:$0xff]  ;;  %vm8180_vm15 = vmmov %vm8167_vm6 }
 0x553   : > { %v2039_v45 = vmul.f32 %v6001_v40, %v4071_v54  ;;  %v2040_v18 = vmul.f32 %v6005_v32, %v4071_v54  ;;  %v2027_v22 = vsel %vm2024_vm9, %v2026_v10, %v2022_v20 }
 0x554   : > { %3806 = vst [vmem:[%s6024_s15 + $0x60] sm:$0xff] %v2041_v39  ;;  %v2035_v58 = vmul.f32 1.442695, %v2027_v22  ;;  %v2078_v25 = vpop.permute.xlu1 %2077  ;;  %v4073_v37 = vpop.eup %4072 }
 0x555   : > { %3807 = vst [vmem:[%s6024_s15 + $0x68] sm:$0xff] %v2042_v14  ;;  %v2082_v57 = vsel %vm335_vm0, %v6262_v34, %v2078_v25  ;;  %v2086_v40 = vsel %vm335_vm0, %v2078_v25, %v6262_v34  ;;  %3087 = vrot.lane.b32.xlu0 %v6143_v44, %s4403_s14  ;;  %v2870_v32 = vpop.permute.xlu2 %2869  ;;  %v2037_v8 = vmul.f32 %v5993_v5, %v4073_v37 }
 0x556   : > { %3804 = vst [vmem:[%s6024_s15 + $0x50] sm:$0xff] %v2039_v45  ;;  %v2038_v53 = vmul.f32 %v5997_v36, %v4073_v37  ;;  %4074 = vpow2.f32 %v2035_v58  ;;  %v6327_v30 = vmul.f32 %v6311_v11, %v2086_v40  ;;  %v6330_v51 = vmul.f32 %v2094_v50, %v2082_v57  ;;  %v6362_v45 = vld [vmem:[#allocation5 + $0x60] sm:$0xff] }
 0x557   : > { %3805 = vst [vmem:[%s6024_s15 + $0x58] sm:$0xff] %v2040_v18  ;;  %v6332_v38 = vpop.permute.xlu0 %2113  ;;  %v6364_v18 = vld [vmem:[#allocation5 + $0x68] sm:$0xff] }
 0x558   : > { %3802 = vst [vmem:[%s6024_s15 + $0x40] sm:$0xff] %v2037_v8 }
 0x559   : > { %3803 = vst [vmem:[%s6024_s15 + $0x48] sm:$0xff] %v2038_v53 }
 0x55a   : > { %3093 = vrot.lane.b32.xlu1 %v6150_v26, %s4403_s14  ;;  %3085 = vrot.lane.b32.xlu2 %v6153_v35, %s4403_s14 }
 0x55c   : > { %v4075_v5 = vpop.eup %4074  ;;  %v6340_v36 = vpop.permute.xlu1 %2115 }
 0x55d   : > { %v2043_v34 = vmul.f32 %v5979_v7, %v4075_v5  ;;  %v2044_v19 = vmul.f32 %v5988_v33, %v4075_v5  ;;  %2119 = vrot.lane.b32.xlu0 %v6114_v24, %s4400_s8  ;;  %v2880_v52 = vpop.permute.xlu2 %2879 }
 0x55f   : > { %3808 = vst [vmem:[%s6024_s15 + $0x70] sm:$0xff] %v2043_v34  ;;  %v2872_v10 = vpop.permute.xlu0 %2871 }
 0x560   : > { %3809 = vst [vmem:[%s6024_s15 + $0x78] sm:$0xff] %v2044_v19  ;;  %v2884_v54 = vsel %vm335_vm0, %v2872_v10, %v2880_v52  ;;  %v2888_v39 = vsel %vm335_vm0, %v2880_v52, %v2872_v10 }
 0x562   : > { %2121 = vrot.lane.b32.xlu1 %v6132_v17, %s4400_s8  ;;  %3095 = vrot.lane.b32.xlu2 %v6162_v31, %s4403_s14 }
 0x564   : > { %v2878_v7 = vpop.permute.xlu1 %2877 }
 0x565   : > { %v2883_v33 = vsel %vm335_vm0, %v2870_v32, %v2878_v7  ;;  %v2887_v14 = vsel %vm335_vm0, %v2878_v7, %v2870_v32  ;;  %2213 = vrot.lane.b32.xlu0 %v6109_v4, %s4402_s10  ;;  %v2926_v20 = vpop.permute.xlu2 %2925  ;;  %v2903_v7 = vmul.f32 %v2888_v39, %v6311_v11  ;;  %v6399_v11 = vld [vmem:[#allocation5 + $0xa8] sm:$0xff] }
 0x566   : > { %v2901_v37 = vmul.f32 %v2887_v14, %v6286_v1  ;;  %v2902_v57 = vmul.f32 %v2883_v33, %v6288_v63  ;;  %v6380_v1 = vld [vmem:[#allocation5 + $0x70] sm:$0xff]  ;;  %v6382_v63 = vld [vmem:[#allocation5 + $0x78] sm:$0xff]  ;;  %v2904_v33 = vmul.f32 %v2884_v54, %v2094_v50 }
 0x567   : > { %v2918_v22 = vpop.permute.xlu0 %2917 }
 0x568   : > { %v2931_v58 = vsel %vm384_vm1, %v2918_v22, %v2926_v20  ;;  %v2935_v25 = vsel %vm384_vm1, %v2926_v20, %v2918_v22 }
 0x569   : > { %v2949_v40 = vmul.f32 %v6362_v45, %v2935_v25  ;;  %v2950_v32 = vmul.f32 %v6364_v18, %v2931_v58 }
 0x56a   : > { %2219 = vrot.lane.b32.xlu1 %v6122_v16, %s4402_s10  ;;  %2211 = vrot.lane.b32.xlu2 %v6117_v41, %s4402_s10 }
 0x56b   : > { %v2957_v8 = vadd.f32 %v2949_v40, %v2901_v37  ;;  %v2958_v53 = vadd.f32 %v2950_v32, %v2902_v57  ;;  %v6397_v57 = vld [vmem:[#allocation5 + $0xa0] sm:$0xff] }
 0x56c   : > { %v2920_v5 = vpop.permute.xlu1 %2919 }
 0x56d   : > { %3133 = vrot.lane.b32.xlu0 %v6153_v35, %s8134_s27  ;;  %v2968_v34 = vpop.permute.xlu2 %2967 }
 0x56f   : > { %v2928_v19 = vpop.permute.xlu0 %2927 }
 0x570   : > { %v2932_v52 = vsel %vm384_vm1, %v2920_v5, %v2928_v19  ;;  %v2936_v10 = vsel %vm384_vm1, %v2928_v19, %v2920_v5 }
 0x571   : > { %v2951_v14 = vmul.f32 %v6380_v1, %v2936_v10  ;;  %v2952_v20 = vmul.f32 %v6382_v63, %v2932_v52  ;;  %v6415_v52 = vld [vmem:[#allocation5 + $0xb0] sm:$0xff]  ;;  %v6417_v10 = vld [vmem:[#allocation5 + $0xb8] sm:$0xff] }
 0x572   : > { %3135 = vrot.lane.b32.xlu1 %v6143_v44, %s8134_s27  ;;  %2221 = vrot.lane.b32.xlu2 %v6129_v29, %s4402_s10 }
 0x573   : > { %v2959_v22 = vadd.f32 %v2951_v14, %v2903_v7  ;;  %v2960_v58 = vadd.f32 %v2952_v20, %v2904_v33 }
 0x574   : > { %v2966_v25 = vpop.permute.xlu1 %2965 }
 0x575   : > { %3143 = vrot.lane.b32.xlu0 %v6162_v31, %s8134_s27  ;;  %v2866_v37 = vpop.permute.xlu2 %2865 }
 0x577   : > { %v2974_v50 = vpop.permute.xlu0 %2973 }
 0x578   : > { %v2979_v54 = vsel %vm434_vm2, %v2966_v25, %v2974_v50  ;;  %v2983_v39 = vsel %vm434_vm2, %v2974_v50, %v2966_v25 }
 0x579   : > { %v2997_v40 = vmul.f32 %v6397_v57, %v2983_v39  ;;  %v2998_v32 = vmul.f32 %v6399_v11, %v2979_v54 }
 0x57a   : > { %2159 = vrot.lane.b32.xlu1 %v6104_v0, %s4401_s7  ;;  %3141 = vrot.lane.b32.xlu2 %v6150_v26, %s8134_s27 }
 0x57b   : > { %v6411_v5 = vadd.f32 %v2997_v40, %v2957_v8  ;;  %v6413_v19 = vadd.f32 %v2998_v32, %v2958_v53 }
 0x57c   : > { %v2976_v7 = vpop.permute.xlu1 %2975 }
 0x57d   : > { %v2980_v33 = vsel %vm434_vm2, %v2968_v34, %v2976_v7  ;;  %v2984_v14 = vsel %vm434_vm2, %v2976_v7, %v2968_v34  ;;  %2167 = vrot.lane.b32.xlu0 %v6114_v24, %s4401_s7  ;;  %v2876_v20 = vpop.permute.xlu2 %2875  ;;  %v6445_v7 = vld [vmem:[#allocation5 + $0x40] sm:$0xff] }
 0x57e   : > { %v2999_v8 = vmul.f32 %v6415_v52, %v2984_v14  ;;  %v3000_v53 = vmul.f32 %v6417_v10, %v2980_v33  ;;  %v6447_v33 = vld [vmem:[#allocation5 + $0x48] sm:$0xff] }
 0x57f   : > { %v2868_v25 = vpop.permute.xlu0 %2867 }
 0x580   : > { %v6427_v50 = vadd.f32 %v2999_v8, %v2959_v22  ;;  %v6429_v54 = vadd.f32 %v3000_v53, %v2960_v58  ;;  %v2882_v39 = vsel %vm335_vm0, %v2868_v25, %v2876_v20  ;;  %v2886_v40 = vsel %vm335_vm0, %v2876_v20, %v2868_v25  ;;  %v6449_v20 = vld [vmem:[#allocation5] sm:$0xff]  ;;  %v6451_v8 = vld [vmem:[#allocation5 + $0x8] sm:$0xff] }
 0x582   : > { %2169 = vrot.lane.b32.xlu1 %v6132_v17, %s4401_s7  ;;  %2161 = vrot.lane.b32.xlu2 %v6099_v23, %s4401_s7  ;;  %s8135_s7 = smov 112  }
 0x584   : > { %v2874_v34 = vpop.permute.xlu1 %2873 }
 0x585   : > { %v2881_v32 = vsel %vm335_vm0, %v2866_v37, %v2874_v34  ;;  %v2885_v22 = vsel %vm335_vm0, %v2874_v34, %v2866_v37  ;;  %3083 = vrot.lane.b32.xlu0 %v6179_v48, %s4403_s14  ;;  %v2922_v58 = vpop.permute.xlu2 %2921  ;;  %vm8163_vm0 = vcmp.lt.s32.totalorder %v4837_v60, 112 }
 0x586   : > { %v2897_v37 = vmul.f32 %v2885_v22, %v6449_v20  ;;  %v2898_v34 = vmul.f32 %v2881_v32, %v6451_v8  ;;  %v6471_v32 = vld [vmem:[#allocation5 + $0x50] sm:$0xff]  ;;  %vm8178_vm13 = vmmov %vm8163_vm0 }
 0x587   : > { %v2914_v14 = vpop.permute.xlu0 %2913  ;;  %8136 = vst [vmem:[#allocation44_spill] sm:$0xff] %v6471_v32  ;;  %vm8181_vm9 = vmmov %vm8163_vm0 }
 0x588   : > { %v2929_v53 = vsel %vm384_vm1, %v2914_v14, %v2922_v58  ;;  %v2933_v25 = vsel %vm384_vm1, %v2922_v58, %v2914_v14  ;;  %v6473_v58 = vld [vmem:[#allocation5 + $0x58] sm:$0xff] }
 0x589   : > { %v2945_v55 = vmul.f32 %v6445_v7, %v2933_v25  ;;  %v2946_v46 = vmul.f32 %v6447_v33, %v2929_v53  ;;  %8137 = vst [vmem:[#allocation42_spill] sm:$0xff] %v6473_v58  ;;  %v6475_v53 = vld [vmem:[#allocation5 + $0x10] sm:$0xff]  ;;  %v6477_v25 = vld [vmem:[#allocation5 + $0x18] sm:$0xff] }
 0x58a   : > { %3089 = vrot.lane.b32.xlu1 %v6186_v49, %s4403_s14  ;;  %3081 = vrot.lane.b32.xlu2 %v6189_v3, %s4403_s14 }
 0x58b   : > { %v6465_v15 = vadd.f32 %v2945_v55, %v2897_v37  ;;  %v6467_v21 = vadd.f32 %v2946_v46, %v2898_v34  ;;  %v2899_v37 = vmul.f32 %v2886_v40, %v6475_v53  ;;  %v2900_v34 = vmul.f32 %v2882_v39, %v6477_v25  ;;  %v6493_v40 = vld [vmem:[#allocation5 + $0xe0] sm:$0xff]  ;;  %v6495_v39 = vld [vmem:[#allocation5 + $0xe8] sm:$0xff] }
 0x58c   : > { %v2916_v2 = vpop.permute.xlu1 %2915  ;;  %8138 = vst [vmem:[#allocation41_spill] sm:$0xff] %v6493_v40 }
 0x58d   : > { %3181 = vrot.lane.b32.xlu0 %v6153_v35, %s8135_s7  ;;  %v3016_v22 = vpop.permute.xlu2 %3015  ;;  %8139 = vst [vmem:[#allocation34_spill] sm:$0xff] %v6495_v39 }
 0x58f   : > { %v2924_v14 = vpop.permute.xlu0 %2923 }
 0x590   : > { %v2930_v55 = vsel %vm384_vm1, %v2916_v2, %v2924_v14  ;;  %v2934_v46 = vsel %vm384_vm1, %v2924_v14, %v2916_v2 }
 0x591   : > { %v2947_v56 = vmul.f32 %v6471_v32, %v2934_v46  ;;  %v2948_v61 = vmul.f32 %v6473_v58, %v2930_v55  ;;  %v6515_v32 = vld [vmem:[#allocation5 + $0xf8] sm:$0xff] }
 0x592   : > { %3183 = vrot.lane.b32.xlu1 %v6143_v44, %s8135_s7  ;;  %3091 = vrot.lane.b32.xlu2 %v6198_v6, %s4403_s14 }
 0x593   : > { %v2955_v43 = vadd.f32 %v2947_v56, %v2899_v37  ;;  %v2956_v59 = vadd.f32 %v2948_v61, %v2900_v34  ;;  %v6513_v34 = vld [vmem:[#allocation5 + $0xf0] sm:$0xff] }
 0x594   : > { %v3014_v42 = vpop.permute.xlu1 %3013 }
 0x595   : > { %3191 = vrot.lane.b32.xlu0 %v6162_v31, %s8135_s7  ;;  %v2118_v2 = vpop.permute.xlu2 %2117 }
 0x597   : > { %v3022_v14 = vpop.permute.xlu0 %3021 }
 0x598   : > { %v3027_v55 = vsel %vm484_vm3, %v3014_v42, %v3022_v14  ;;  %v3031_v46 = vsel %vm484_vm3, %v3022_v14, %v3014_v42 }
 0x599   : > { %v3045_v58 = vmul.f32 %v6493_v40, %v3031_v46  ;;  %v3046_v61 = vmul.f32 %v6495_v39, %v3027_v55 }
 0x59a   : > { %2207 = vrot.lane.b32.xlu1 %v6104_v0, %s4402_s10  ;;  %3189 = vrot.lane.b32.xlu2 %v6150_v26, %s8135_s7 }
 0x59b   : > { %v6508_v56 = vadd.f32 %v3045_v58, %v6411_v5  ;;  %v6511_v37 = vadd.f32 %v3046_v61, %v6413_v19 }
 0x59c   : > { %v3024_v42 = vpop.permute.xlu1 %3023 }
 0x59d   : > { %v3028_v14 = vsel %vm484_vm3, %v3016_v22, %v3024_v42  ;;  %v3032_v55 = vsel %vm484_vm3, %v3024_v42, %v3016_v22  ;;  %2215 = vrot.lane.b32.xlu0 %v6114_v24, %s4402_s10  ;;  %v2962_v46 = vpop.permute.xlu2 %2961 }
 0x59e   : > { %v3047_v5 = vmul.f32 %v6513_v34, %v3032_v55  ;;  %v3048_v19 = vmul.f32 %v6515_v32, %v3028_v14 }
 0x59f   : > { %v2124_v58 = vpop.permute.xlu0 %2123 }
 0x5a0   : > { %v6526_v61 = vadd.f32 %v3047_v5, %v6427_v50  ;;  %v6529_v39 = vadd.f32 %v3048_v19, %v6429_v54  ;;  %v2129_v40 = vsel %vm384_vm1, %v6340_v36, %v2124_v58  ;;  %v2133_v22 = vsel %vm384_vm1, %v2124_v58, %v6340_v36  ;;  %v6553_v19 = vld [vmem:[#allocation5 + $0x90] sm:$0xff] }
 0x5a1   : > { %v2147_v42 = vmul.f32 %v6362_v45, %v2133_v22  ;;  %v2148_v55 = vmul.f32 %v6364_v18, %v2129_v40 }
 0x5a2   : > { %2217 = vrot.lane.b32.xlu1 %v6132_v17, %s4402_s10  ;;  %2209 = vrot.lane.b32.xlu2 %v6099_v23, %s4402_s10 }
 0x5a3   : > { %v2155_v50 = vadd.f32 %v2147_v42, %v6298_v27  ;;  %v2156_v54 = vadd.f32 %v2148_v55, %v6301_v9  ;;  %v6555_v27 = vld [vmem:[#allocation5 + $0x98] sm:$0xff] }
 0x5a4   : > { %v2126_v14 = vpop.permute.xlu1 %2125 }
 0x5a5   : > { %v2130_v5 = vsel %vm384_vm1, %v2118_v2, %v2126_v14  ;;  %v2134_v36 = vsel %vm384_vm1, %v2126_v14, %v2118_v2  ;;  %2285 = vrot.lane.b32.xlu0 %v6109_v4, %s4403_s14  ;;  %v2972_v45 = vpop.permute.xlu2 %2971  ;;  %v6575_v14 = vld [vmem:[#allocation5 + $0x88] sm:$0xff] }
 0x5a6   : > { %v2149_v18 = vmul.f32 %v6380_v1, %v2134_v36  ;;  %v2150_v40 = vmul.f32 %v6382_v63, %v2130_v5 }
 0x5a7   : > { %v2964_v9 = vpop.permute.xlu0 %2963 }
 0x5a8   : > { %v2157_v58 = vadd.f32 %v2149_v18, %v6327_v30  ;;  %v2158_v22 = vadd.f32 %v2150_v40, %v6330_v51  ;;  %v2978_v2 = vsel %vm434_vm2, %v2964_v9, %v2972_v45  ;;  %v2982_v42 = vsel %vm434_vm2, %v2972_v45, %v2964_v9  ;;  %v6573_v51 = vld [vmem:[#allocation5 + $0x80] sm:$0xff] }
 0x5a9   : > { %v2995_v55 = vmul.f32 %v6553_v19, %v2982_v42  ;;  %v2996_v1 = vmul.f32 %v6555_v27, %v2978_v2 }
 0x5aa   : > { %2291 = vrot.lane.b32.xlu1 %v6122_v16, %s4403_s14  ;;  %2283 = vrot.lane.b32.xlu2 %v6117_v41, %s4403_s14 }
 0x5ab   : > { %v6569_v63 = vadd.f32 %v2995_v55, %v2955_v43  ;;  %v6571_v30 = vadd.f32 %v2996_v1, %v2956_v59 }
 0x5ac   : > { %v2970_v5 = vpop.permute.xlu1 %2969 }
 0x5ad   : > { %v2977_v36 = vsel %vm434_vm2, %v2962_v46, %v2970_v5  ;;  %v2981_v45 = vsel %vm434_vm2, %v2970_v5, %v2962_v46  ;;  %3129 = vrot.lane.b32.xlu0 %v6189_v3, %s8134_s27  ;;  %v2172_v18 = vpop.permute.xlu2 %2171 }
 0x5ae   : > { %v2993_v43 = vmul.f32 %v6573_v51, %v2981_v45  ;;  %v2994_v59 = vmul.f32 %v6575_v14, %v2977_v36 }
 0x5af   : > { %v2164_v40 = vpop.permute.xlu0 %2163 }
 0x5b0   : > { %v3001_v9 = vadd.f32 %v2993_v43, %v6465_v15  ;;  %v3002_v2 = vadd.f32 %v2994_v59, %v6467_v21  ;;  %v2177_v42 = vsel %vm434_vm2, %v2164_v40, %v2172_v18  ;;  %v2181_v55 = vsel %vm434_vm2, %v2172_v18, %v2164_v40 }
 0x5b1   : > { %v2195_v46 = vmul.f32 %v6397_v57, %v2181_v55  ;;  %v2196_v1 = vmul.f32 %v6399_v11, %v2177_v42  ;;  %v6619_v42 = vld [vmem:[#allocation5 + $0xc0] sm:$0xff] }
 0x5b2   : > { %3131 = vrot.lane.b32.xlu1 %v6179_v48, %s8134_s27  ;;  %2293 = vrot.lane.b32.xlu2 %v6129_v29, %s4403_s14  ;;  %8140 = vst [vmem:[#allocation43_spill] sm:$0xff] %v6619_v42 }
 0x5b3   : > { %v6597_v5 = vadd.f32 %v2195_v46, %v2155_v50  ;;  %v6599_v15 = vadd.f32 %v2196_v1, %v2156_v54  ;;  %v6631_v1 = vld [vmem:[#allocation5 + $0x130] sm:$0xff] }
 0x5b4   : > { %v2166_v21 = vpop.permute.xlu1 %2165 }
 0x5b5   : > { %3139 = vrot.lane.b32.xlu0 %v6198_v6, %s8134_s27  ;;  %v3012_v36 = vpop.permute.xlu2 %3011 }
 0x5b7   : > { %v2174_v45 = vpop.permute.xlu0 %2173 }
 0x5b8   : > { %v2178_v57 = vsel %vm434_vm2, %v2166_v21, %v2174_v45  ;;  %v2182_v11 = vsel %vm434_vm2, %v2174_v45, %v2166_v21  ;;  %v6633_v21 = vld [vmem:[#allocation5 + $0x138] sm:$0xff] }
 0x5b9   : > { %v2197_v18 = vmul.f32 %v6415_v52, %v2182_v11  ;;  %v2198_v43 = vmul.f32 %v6417_v10, %v2178_v57  ;;  %v6621_v52 = vld [vmem:[#allocation5 + $0xc8] sm:$0xff]  ;;  %v6641_v11 = vld [vmem:[#allocation5 + $0xd0] sm:$0xff] }
 0x5ba   : > { %3229 = vrot.lane.b32.xlu1 %v6153_v35, %s4407_s29  ;;  %3137 = vrot.lane.b32.xlu2 %v6186_v49, %s8134_s27  ;;  %8141 = vst [vmem:[#allocation48_spill] sm:$0xff] %v6621_v52 }
 0x5bb   : > { %v6613_v50 = vadd.f32 %v2197_v18, %v2157_v58  ;;  %v6615_v54 = vadd.f32 %v2198_v43, %v2158_v22  ;;  %8144 = vst [vmem:[#allocation57_spill] sm:$0xff] %v6641_v11  ;;  %v6643_v18 = vld [vmem:[#allocation5 + $0xd8] sm:$0xff] }
 0x5bc   : > { %v3010_v59 = vpop.permute.xlu1 %3009  ;;  %8145 = vst [vmem:[#allocation31_spill] sm:$0xff] %v6643_v18 }
 0x5bd   : > { %3237 = vrot.lane.b32.xlu0 %v6150_v26, %s4407_s29  ;;  %v3086_v40 = vpop.permute.xlu2 %3085 }
 0x5bf   : > { %v3018_v10 = vpop.permute.xlu0 %3017 }
 0x5c0   : > { %v3025_v55 = vsel %vm484_vm3, %v3010_v59, %v3018_v10  ;;  %v3029_v46 = vsel %vm484_vm3, %v3018_v10, %v3010_v59 }
 0x5c1   : > { %v3041_v58 = vmul.f32 %v6619_v42, %v3029_v46  ;;  %v3042_v22 = vmul.f32 %v6621_v52, %v3025_v55  ;;  %v6659_v52 = vld [vmem:[#allocation5 + $0x178] sm:$0xff] }
 0x5c2   : > { %3239 = vrot.lane.b32.xlu1 %v6162_v31, %s4407_s29  ;;  %3231 = vrot.lane.b32.xlu2 %v6143_v44, %s4407_s29 }
 0x5c3   : > { %v6637_v45 = vadd.f32 %v3041_v58, %v3001_v9  ;;  %v6639_v57 = vadd.f32 %v3042_v22, %v3002_v2  ;;  %v3071_v9 = vmul.f32 %v6143_v44, %v6631_v1  ;;  %v3072_v2 = vmul.f32 %v6162_v31, %v6633_v21  ;;  %v6657_v22 = vld [vmem:[#allocation5 + $0x170] sm:$0xff] }
 0x5c4   : > { %v3020_v43 = vpop.permute.xlu1 %3019 }
 0x5c5   : > { %8142 = vst [vmem:[#allocation18_spill] sm:$0xff] %v6637_v45  ;;  %v3026_v59 = vsel %vm484_vm3, %v3012_v36, %v3020_v43  ;;  %v3030_v10 = vsel %vm484_vm3, %v3020_v43, %v3012_v36  ;;  %2333 = vrot.lane.b32.xlu0 %v6109_v4, %s8134_s27  ;;  %v3096_v55 = vpop.permute.xlu2 %3095  ;;  %v6661_v36 = vld [vmem:[#allocation5 + $0x120] sm:$0xff]  ;;  %v6663_v43 = vld [vmem:[#allocation5 + $0x128] sm:$0xff] }
 0x5c6   : > { %8143 = vst [vmem:[#allocation52_spill] sm:$0xff] %v6639_v57  ;;  %v3043_v46 = vmul.f32 %v6641_v11, %v3030_v10  ;;  %v3044_v58 = vmul.f32 %v6643_v18, %v3026_v59  ;;  %v3079_v10 = vadd.f32 %v3071_v9, %v6526_v61  ;;  %v3080_v18 = vadd.f32 %v3072_v2, %v6529_v39  ;;  %v6691_v39 = vld [vmem:[#allocation5 + $0x160] sm:$0xff]  ;;  %v6693_v9 = vld [vmem:[#allocation5 + $0x168] sm:$0xff] }
 0x5c7   : > { %v3088_v42 = vpop.permute.xlu0 %3087 }
 0x5c8   : > { %v6666_v57 = vadd.f32 %v3043_v46, %v6569_v63  ;;  %v6669_v44 = vadd.f32 %v3044_v58, %v6571_v30  ;;  %v3100_v31 = vsel %vm559_vm4, %v3088_v42, %v3096_v55  ;;  %v3104_v59 = vsel %vm559_vm4, %v3096_v55, %v3088_v42 }
 0x5c9   : > { %v3119_v11 = vmul.f32 %v6657_v22, %v3100_v31  ;;  %v3120_v45 = vmul.f32 %v6659_v52, %v3104_v59  ;;  %v3069_v63 = vmul.f32 %v6153_v35, %v6661_v36  ;;  %v3070_v30 = vmul.f32 %v6150_v26, %v6663_v43 }
 0x5ca   : > { %2339 = vrot.lane.b32.xlu1 %v6122_v16, %s8134_s27  ;;  %2331 = vrot.lane.b32.xlu2 %v6117_v41, %s8134_s27 }
 0x5cb   : > { %v6687_v42 = vadd.f32 %v3119_v11, %v3079_v10  ;;  %v6689_v61 = vadd.f32 %v3120_v45, %v3080_v18  ;;  %v3077_v41 = vadd.f32 %v3069_v63, %v6508_v56  ;;  %v3078_v45 = vadd.f32 %v3070_v30, %v6511_v37 }
 0x5cc   : > { %v3094_v2 = vpop.permute.xlu1 %3093  ;;  %v2095_v56 = vmul.f32 %v6449_v20, %v6279_v62  ;;  %v2096_v37 = vmul.f32 %v6451_v8, %v6275_v28  ;;  %v2098_v20 = vmul.f32 %v6477_v25, %v6254_v13  ;;  %v8146_v8 = vld [vmem:[#allocation44_spill] sm:$0xff]  ;;  %v2269_v13 = vmul.f32 %v6109_v4, %v6631_v1 }
 0x5cd   : > { %v3099_v16 = vsel %vm559_vm4, %v3086_v40, %v3094_v2  ;;  %v3103_v35 = vsel %vm559_vm4, %v3094_v2, %v3086_v40  ;;  %3177 = vrot.lane.b32.xlu0 %v6189_v3, %s8135_s7  ;;  %v2212_v26 = vpop.permute.xlu2 %2211  ;;  %v2270_v25 = vmul.f32 %v6129_v29, %v6633_v21 }
 0x5ce   : > { %v3117_v11 = vmul.f32 %v6691_v39, %v3099_v16  ;;  %v3118_v18 = vmul.f32 %v6693_v9, %v3103_v35  ;;  %v8147_v16 = vld [vmem:[#allocation42_spill] sm:$0xff] }
 0x5cf   : > { %v2120_v55 = vpop.permute.xlu0 %2119 }
 0x5d0   : > { %v3125_v46 = vadd.f32 %v3117_v11, %v3077_v41  ;;  %v3126_v58 = vadd.f32 %v3118_v18, %v3078_v45  ;;  %v2127_v31 = vsel %vm384_vm1, %v6283_v47, %v2120_v55  ;;  %v2131_v40 = vsel %vm384_vm1, %v2120_v55, %v6283_v47 }
 0x5d1   : > { %v2143_v59 = vmul.f32 %v6445_v7, %v2131_v40  ;;  %v2144_v10 = vmul.f32 %v6447_v33, %v2127_v31  ;;  %v2097_v33 = vmul.f32 %v6475_v53, %v6260_v12 }
 0x5d2   : > { %3179 = vrot.lane.b32.xlu1 %v6179_v48, %s8135_s7  ;;  %2341 = vrot.lane.b32.xlu2 %v6129_v29, %s8134_s27 }
 0x5d3   : > { %v6721_v63 = vadd.f32 %v2143_v59, %v2095_v56  ;;  %v6723_v30 = vadd.f32 %v2144_v10, %v2096_v37  ;;  %v6773_v37 = vld [vmem:[#allocation5 + $0x1a8] sm:$0xff] }
 0x5d4   : > { %v2122_v47 = vpop.permute.xlu1 %2121 }
 0x5d5   : > { %v2128_v62 = vsel %vm384_vm1, %v6332_v38, %v2122_v47  ;;  %v2132_v28 = vsel %vm384_vm1, %v2122_v47, %v6332_v38  ;;  %3187 = vrot.lane.b32.xlu0 %v6198_v6, %s8135_s7  ;;  %v2222_v7 = vpop.permute.xlu2 %2221  ;;  %vm8164_vm1 = vmmov %vm8163_vm0 }
 0x5d6   : > { %v2145_v2 = vmul.f32 %v8146_v8, %v2132_v28  ;;  %v2146_v35 = vmul.f32 %v8147_v16, %v2128_v62  ;;  %v6799_v8 = vld [vmem:[#allocation5 + $0x1b8] sm:$0xff]  ;;  %v6808_v16 = vld [vmem:[%s4555_s26 + $0xa8] sm:$0xff] }
 0x5d7   : > { %v2214_v41 = vpop.permute.xlu0 %2213 }
 0x5d8   : > { %v6739_v45 = vadd.f32 %v2145_v2, %v2097_v33  ;;  %v6741_v11 = vadd.f32 %v2146_v35, %v2098_v20  ;;  %v2226_v38 = vsel %vm484_vm3, %v2214_v41, %v2222_v7  ;;  %v2230_v18 = vsel %vm484_vm3, %v2222_v7, %v2214_v41  ;;  %v6797_v20 = vld [vmem:[#allocation5 + $0x1b0] sm:$0xff] }
 0x5d9   : > { %v2245_v12 = vmul.f32 %v6513_v34, %v2230_v18  ;;  %v2246_v53 = vmul.f32 %v6515_v32, %v2226_v38 }
 0x5da   : > { %2279 = vrot.lane.b32.xlu1 %v6104_v0, %s4403_s14  ;;  %3185 = vrot.lane.b32.xlu2 %v6186_v49, %s8135_s7  ;;  %v8148_v49 = vld [vmem:[#allocation41_spill] sm:$0xff] }
 0x5db   : > { %v2253_v55 = vadd.f32 %v2245_v12, %v6613_v50  ;;  %v2254_v31 = vadd.f32 %v2246_v53, %v6615_v54  ;;  %v8149_v50 = vld [vmem:[#allocation34_spill] sm:$0xff]  ;;  %v6771_v54 = vld [vmem:[#allocation5 + $0x1a0] sm:$0xff] }
 0x5dc   : > { %v2220_v40 = vpop.permute.xlu1 %2219 }
 0x5dd   : > { %v2225_v32 = vsel %vm484_vm3, %v2212_v26, %v2220_v40  ;;  %v2229_v34 = vsel %vm484_vm3, %v2220_v40, %v2212_v26  ;;  %2287 = vrot.lane.b32.xlu0 %v6114_v24, %s4403_s14  ;;  %v3142_v29 = vpop.permute.xlu2 %3141  ;;  %v6765_v1 = vadd.f32 %v2269_v13, %v2253_v55  ;;  %v6767_v0 = vadd.f32 %v2270_v25, %v2254_v31  ;;  %v6835_v55 = vld [vmem:[#allocation5 + $0x118] sm:$0xff] }
 0x5de   : > { %v2243_v21 = vmul.f32 %v8148_v49, %v2229_v34  ;;  %v2244_v56 = vmul.f32 %v8149_v50, %v2225_v32  ;;  %v6855_v32 = vld [vmem:[%s4555_s26 + $0xd0] sm:$0xff]  ;;  %v6865_v50 = vld [vmem:[#allocation5 + $0x158] sm:$0xff] }
 0x5df   : > { %v3134_v59 = vpop.permute.xlu0 %3133  ;;  %8151 = vst [vmem:[#allocation45_spill] sm:$0xff] %v6855_v32 }
 0x5e0   : > { %v6776_v10 = vadd.f32 %v2243_v21, %v6597_v5  ;;  %v6779_v26 = vadd.f32 %v2244_v56, %v6599_v15  ;;  %v3147_v24 = vsel %vm609_vm5, %v3134_v59, %v3142_v29  ;;  %v3151_v47 = vsel %vm609_vm5, %v3142_v29, %v3134_v59  ;;  %v6863_v21 = vld [vmem:[#allocation5 + $0x150] sm:$0xff]  ;;  %v6867_v59 = vld [vmem:[#allocation5 + $0x100] sm:$0xff] }
 0x5e1   : > { %v3165_v62 = vmul.f32 %v6771_v54, %v3147_v24  ;;  %v3166_v28 = vmul.f32 %v6773_v37, %v3151_v47  ;;  %v6869_v24 = vld [vmem:[#allocation5 + $0x108] sm:$0xff] }
 0x5e2   : > { %2289 = vrot.lane.b32.xlu1 %v6132_v17, %s4403_s14  ;;  %2281 = vrot.lane.b32.xlu2 %v6099_v23, %s4403_s14 }
 0x5e3   : > { %v6791_v5 = vadd.f32 %v3165_v62, %v3125_v46  ;;  %v6793_v15 = vadd.f32 %v3166_v28, %v3126_v58 }
 0x5e4   : > { %v3136_v7 = vpop.permute.xlu1 %3135 }
 0x5e5   : > { %2381 = vrot.lane.b32.xlu0 %v6109_v4, %s8135_s7  ;;  %v2162_v33 = vpop.permute.xlu2 %2161  ;;  %v6813_v4 = vld [vmem:[%s4555_s26 + $0xa0] sm:$0xff] }
 0x5e7   : > { %v3144_v2 = vpop.permute.xlu0 %3143 }
 0x5e8   : > { %v3148_v17 = vsel %vm609_vm5, %v3136_v7, %v3144_v2  ;;  %v3152_v23 = vsel %vm609_vm5, %v3144_v2, %v3136_v7 }
 0x5e9   : > { %v3167_v46 = vmul.f32 %v6797_v20, %v3148_v17  ;;  %v3168_v58 = vmul.f32 %v6799_v8, %v3152_v23  ;;  %v6896_v17 = vld [vmem:[%s4555_s26 + $0xc8] sm:$0xff] }
 0x5ea   : > { %2387 = vrot.lane.b32.xlu1 %v6808_v16, %s8135_s7  ;;  %2379 = vrot.lane.b32.xlu2 %v6813_v4, %s8135_s7  ;;  %8152 = vst [vmem:[#allocation46_spill] sm:$0xff] %v6896_v17 }
 0x5eb   : > { %v6818_v35 = vadd.f32 %v3167_v46, %v6687_v42  ;;  %v6821_v41 = vadd.f32 %v3168_v58, %v6689_v61  ;;  %v6833_v61 = vld [vmem:[#allocation5 + $0x110] sm:$0xff]  ;;  %v6906_v46 = vld [vmem:[#allocation5 + $0x140] sm:$0xff]  ;;  %v6908_v58 = vld [vmem:[#allocation5 + $0x148] sm:$0xff] }
 0x5ec   : > { %v2160_v38 = vpop.permute.xlu1 %2159  ;;  %v3067_v34 = vmul.f32 %v6855_v32, %v6833_v61 }
 0x5ed   : > { %3225 = vrot.lane.b32.xlu0 %v6189_v3, %s4407_s29  ;;  %v3082_v18 = vpop.permute.xlu2 %3081  ;;  %v6838_v3 = vld [vmem:[%s4555_s26 + $0xb8] sm:$0xff] }
 0x5ee   : > { %8150 = vst [vmem:[#allocation21_spill] sm:$0xff] %v6838_v3  ;;  %v3075_v62 = vadd.f32 %v3067_v34, %v6666_v57  ;;  %v3066_v57 = vmul.f32 %v6896_v17, %v6869_v24 }
 0x5ef   : > { %v2168_v12 = vpop.permute.xlu0 %2167 }
 0x5f0   : > { %v2175_v53 = vsel %vm434_vm2, %v2160_v38, %v2168_v12  ;;  %v2179_v13 = vsel %vm434_vm2, %v2168_v12, %v2160_v38 }
 0x5f1   : > { %v2191_v25 = vmul.f32 %v6573_v51, %v2179_v13  ;;  %v2192_v42 = vmul.f32 %v6575_v14, %v2175_v53  ;;  %v6915_v13 = vld [vmem:[%s4555_s26 + $0x88] sm:$0xff] }
 0x5f2   : > { %3227 = vrot.lane.b32.xlu1 %v6179_v48, %s4407_s29  ;;  %2389 = vrot.lane.b32.xlu2 %v6838_v3, %s8135_s7 }
 0x5f3   : > { %v6843_v31 = vadd.f32 %v2191_v25, %v6721_v63  ;;  %v6846_v40 = vadd.f32 %v2192_v42, %v6723_v30  ;;  %v3068_v63 = vmul.f32 %v6198_v6, %v6835_v55  ;;  %v8153_v42 = vld [vmem:[#allocation18_spill] sm:$0xff] }
 0x5f4   : > { %v2170_v51 = vpop.permute.xlu1 %2169 }
 0x5f5   : > { %v2176_v14 = vsel %vm434_vm2, %v2162_v33, %v2170_v51  ;;  %v2180_v48 = vsel %vm434_vm2, %v2170_v51, %v2162_v33  ;;  %3235 = vrot.lane.b32.xlu0 %v6198_v6, %s4407_s29  ;;  %v3092_v30 = vpop.permute.xlu2 %3091  ;;  %v3076_v28 = vadd.f32 %v3068_v63, %v6669_v44  ;;  %vm8165_vm2 = vmmov %vm8163_vm0 }
 0x5f6   : > { %v2193_v29 = vmul.f32 %v6553_v19, %v2180_v48  ;;  %v2194_v49 = vmul.f32 %v6555_v27, %v2176_v14  ;;  %v8154_v14 = vld [vmem:[#allocation52_spill] sm:$0xff] }
 0x5f7   : > { %v3084_v56 = vpop.permute.xlu0 %3083  ;;  %v3074_v48 = vadd.f32 %v3066_v57, %v8154_v14 }
 0x5f8   : > { %v6872_v47 = vadd.f32 %v2193_v29, %v6739_v45  ;;  %v6875_v6 = vadd.f32 %v2194_v49, %v6741_v11  ;;  %v3098_v19 = vsel %vm559_vm4, %v3084_v56, %v3092_v30  ;;  %v3102_v27 = vsel %vm559_vm4, %v3092_v30, %v3084_v56  ;;  %v6886_v45 = vld [vmem:[%s4555_s26 + $0x80] sm:$0xff]  ;;  %v6932_v49 = vld [vmem:[%s4555_s26 + $0x98] sm:$0xff]  ;;  %v6937_v56 = vld [vmem:[%s4555_s26 + $0x90] sm:$0xff] }
 0x5f9   : > { %v3115_v7 = vmul.f32 %v6863_v21, %v3098_v19  ;;  %v3116_v33 = vmul.f32 %v6865_v50, %v3102_v27  ;;  %v6891_v11 = vld [vmem:[%s4555_s26 + $0xc0] sm:$0xff]  ;;  %8155 = vst [vmem:[#allocation51_spill] sm:$0xff] %v6932_v49  ;;  %v6944_v27 = vld [vmem:[%s4555_s26 + $0xb0] sm:$0xff] }
 0x5fa   : > { %2327 = vrot.lane.b32.xlu1 %v6886_v45, %s8134_s27  ;;  %v3065_v2 = vmul.f32 %v6891_v11, %v6867_v59  ;;  %3233 = vrot.lane.b32.xlu2 %v6896_v17, %s4407_s29  ;;  %8156 = vst [vmem:[#allocation56_spill] sm:$0xff] %v6944_v27 }
 0x5fb   : > { %v6902_v44 = vadd.f32 %v3115_v7, %v3075_v62  ;;  %v6904_v23 = vadd.f32 %v3116_v33, %v3076_v28 }
 0x5fc   : > { %v3090_v38 = vpop.permute.xlu1 %3089  ;;  %v3073_v51 = vadd.f32 %v3065_v2, %v8153_v42  ;;  %v8158_v42 = vld [vmem:[#allocation48_spill] sm:$0xff] }
 0x5fd   : > { %v3097_v12 = vsel %vm559_vm4, %v3082_v18, %v3090_v38  ;;  %v3101_v53 = vsel %vm559_vm4, %v3090_v38, %v3082_v18  ;;  %2335 = vrot.lane.b32.xlu0 %v6915_v13, %s8134_s27  ;;  %v6919_v25 = vpop.permute.xlu2 %3189 }
 0x5fe   : > { %v3113_v34 = vmul.f32 %v6906_v46, %v3097_v12  ;;  %v3114_v63 = vmul.f32 %v6908_v58, %v3101_v53  ;;  %v8157_v12 = vld [vmem:[#allocation43_spill] sm:$0xff] }
 0x5ff   : > { %v6925_v30 = vpop.permute.xlu0 %3181 }
 0x600   : > { %v6927_v29 = vadd.f32 %v3113_v34, %v3073_v51  ;;  %v6929_v18 = vadd.f32 %v3114_v63, %v3074_v48 }
 0x602   : > { %2337 = vrot.lane.b32.xlu1 %v6932_v49, %s8134_s27  ;;  %2329 = vrot.lane.b32.xlu2 %v6937_v56, %s8134_s27  ;;  %s3869_s27 = sshll.u32 %s4471_s25, 8  ;;  %s3659_s25 = scalar_lea.sflag [#allocation4], %s4549_s19 }
 0x603   : > { %s3671_s14 = scalar_lea.hbm %s7816_s6, %s3869_s27 }
 0x604   : > { %v6941_v19 = vpop.permute.xlu1 %3183  ;;  %s3674_s30 = sshll.u32 %s3671_s14, 4  ;;  %s3675_s30 = int_to_ptr.hbm [resolvable:$true] %s3674_s30 }
 0x605   : > { %2429 = vrot.lane.b32.xlu0 %v6944_v27, %s4407_s29  ;;  %v2210_v62 = vpop.permute.xlu2 %2209  ;;  %s4338_s18 = sshra.s32 %s3675_s30, 4  ;;  %s4339_s18 = int_to_ptr.hbm [resolvable:$true] %s4338_s18 }
 0x606   : > { %s4340_s12 = scalar_lea.hbm %s4339_s18, 256  ;;  %p4345_p11 = scmp.lt.s32.totalorder %s4339_s18, %s7816_s6 }
 0x607   : > { %v6948_v28 = vpop.permute.xlu0 %3191  ;;  %p4341_p1 = scmp.ne.s32.totalorder %s4339_s18, %s4340_s12  ;;  %p4346_p9 = scmp.lt.s32.totalorder %s4344_s13, %s4340_s12 }
 0x609   : > { %p4342_p4 = pnand %p4341_p1, %p4519_p3  ;;  %p4347_p2 = por %p4346_p9, %p4345_p11 }
 0x60a   : > { %2435 = vrot.lane.b32.xlu1 %v6808_v16, %s4407_s29  ;;  %2427 = vrot.lane.b32.xlu2 %v6813_v4, %s4407_s29 }
 0x60b   : > { %p4343_p8 = pneg %p4342_p4 }
 0x60c   : > { %v2208_v7 = vpop.permute.xlu1 %2207 }
 0x60d   : > { %2375 = vrot.lane.b32.xlu0 %v6886_v45, %s8135_s7  ;;  %v2284_v33 = vpop.permute.xlu2 %2283  ;;  %p4348_p10 = pnand %p4347_p2, %p4343_p8 }
 0x60f   : > { %v2216_v2 = vpop.permute.xlu0 %2215 }
 0x610   : > { %v2223_v57 = vsel %vm484_vm3, %v2208_v7, %v2216_v2  ;;  %v2227_v38 = vsel %vm484_vm3, %v2216_v2, %v2208_v7 }
 0x611   : > { %v2239_v53 = vmul.f32 %v8157_v12, %v2227_v38  ;;  %v2240_v51 = vmul.f32 %v8158_v42, %v2223_v57  ;;  %v8159_v57 = vld [vmem:[#allocation57_spill] sm:$0xff]  ;;  %v8160_v12 = vld [vmem:[#allocation31_spill] sm:$0xff] }
 0x612   : > { %2377 = vrot.lane.b32.xlu1 %v6937_v56, %s8135_s7  ;;  %2437 = vrot.lane.b32.xlu2 %v6838_v3, %s4407_s29 }
 0x613   : > { %v6967_v14 = vadd.f32 %v2239_v53, %v6843_v31  ;;  %v6970_v48 = vadd.f32 %v2240_v51, %v6846_v40 }
 0x614   : > { %v2218_v34 = vpop.permute.xlu1 %2217 }
 0x615   : > { %v2224_v63 = vsel %vm484_vm3, %v2210_v62, %v2218_v34  ;;  %v2228_v7 = vsel %vm484_vm3, %v2218_v34, %v2210_v62  ;;  %2385 = vrot.lane.b32.xlu0 %v6932_v49, %s8135_s7  ;;  %v2294_v2 = vpop.permute.xlu2 %2293  ;;  %vm8166_vm3 = vmmov %vm8163_vm0 }
 0x616   : > { %v2241_v38 = vmul.f32 %v8159_v57, %v2228_v7  ;;  %v2242_v42 = vmul.f32 %v8160_v12, %v2224_v63 }
 0x617   : > { %v2286_v31 = vpop.permute.xlu0 %2285 }
 0x618   : > { %v6981_v53 = vadd.f32 %v2241_v38, %v6872_v47  ;;  %v6984_v40 = vadd.f32 %v2242_v42, %v6875_v6  ;;  %v2298_v51 = vsel %vm559_vm4, %v2286_v31, %v2294_v2  ;;  %v2302_v62 = vsel %vm559_vm4, %v2294_v2, %v2286_v31 }
 0x619   : > { %v2317_v34 = vmul.f32 %v6657_v22, %v2298_v51  ;;  %v2318_v3 = vmul.f32 %v6659_v52, %v2302_v62  ;;  %v2267_v47 = vmul.f32 %v6813_v4, %v6661_v36  ;;  %v2268_v6 = vmul.f32 %v6808_v16, %v6663_v43  ;;  %v7016_v4 = vld [vmem:[#allocation5 + $0x180] sm:$0xff]  ;;  %v7040_v62 = vld [vmem:[#allocation5 + $0x190] sm:$0xff] }
 0x61a   : > { %2423 = vrot.lane.b32.xlu1 %v6886_v45, %s4407_s29  ;;  %2383 = vrot.lane.b32.xlu2 %v6915_v13, %s8135_s7  ;;  %8161 = vst [vmem:[#allocation55_spill] sm:$0xff] %v7040_v62 }
 0x61b   : > { %v7001_v63 = vadd.f32 %v2317_v34, %v6765_v1  ;;  %v7004_v7 = vadd.f32 %v2318_v3, %v6767_v0  ;;  %v2275_v43 = vadd.f32 %v2267_v47, %v6776_v10  ;;  %v2276_v16 = vadd.f32 %v2268_v6, %v6779_v26  ;;  %v7018_v3 = vld [vmem:[#allocation5 + $0x188] sm:$0xff]  ;;  %v7042_v34 = vld [vmem:[#allocation5 + $0x198] sm:$0xff] }
 0x61c   : > { %v2292_v22 = vpop.permute.xlu1 %2291  ;;  %8162 = vst [vmem:[#allocation53_spill] sm:$0xff] %v7042_v34 }
 0x61d   : > { %v2297_v52 = vsel %vm559_vm4, %v2284_v33, %v2292_v22  ;;  %v2301_v2 = vsel %vm559_vm4, %v2292_v22, %v2284_v33  ;;  %2431 = vrot.lane.b32.xlu0 %v6915_v13, %s4407_s29  ;;  %v3138_v36 = vpop.permute.xlu2 %3137 }
 0x61e   : > { %v2315_v1 = vmul.f32 %v6691_v39, %v2297_v52  ;;  %v2316_v0 = vmul.f32 %v6693_v9, %v2301_v2  ;;  %v7050_v2 = vld [vmem:[#allocation5 + $0x1e0] sm:$0xff] }
 0x61f   : > { %v3130_v57 = vpop.permute.xlu0 %3129 }
 0x620   : > { %v7020_v38 = vadd.f32 %v2315_v1, %v2275_v43  ;;  %v7022_v33 = vadd.f32 %v2316_v0, %v2276_v16  ;;  %v3145_v12 = vsel %vm609_vm5, %v3130_v57, %v3138_v36  ;;  %v3149_v10 = vsel %vm609_vm5, %v3138_v36, %v3130_v57 }
 0x621   : > { %v3161_v26 = vmul.f32 %v7016_v4, %v3145_v12  ;;  %v3162_v39 = vmul.f32 %v7018_v3, %v3149_v10  ;;  %v3195_v36 = vsel %vm8163_vm0, %v6925_v30, %v6919_v25  ;;  %v3199_v43 = vsel %vm8164_vm1, %v6919_v25, %v6925_v30  ;;  %vm8183_vm1 = vmmov %vm8167_vm6 }
 0x622   : > { %2433 = vrot.lane.b32.xlu1 %v6932_v49, %s4407_s29  ;;  %2425 = vrot.lane.b32.xlu2 %v6937_v56, %s4407_s29  ;;  %v3213_v57 = vmul.f32 %v7050_v2, %v3195_v36  ;;  %s3672_s29 = sshll.u32 %s6024_s15, 4  ;;  %s3673_s29 = int_to_ptr.vmem [resolvable:$true] %s3672_s29 }
 0x623   : > { %v7035_v9 = vadd.f32 %v3161_v26, %v6927_v29  ;;  %v7038_v42 = vadd.f32 %v3162_v39, %v6929_v18  ;;  %v7052_v18 = vld [vmem:[#allocation5 + $0x1e8] sm:$0xff]  ;;  %v7070_v26 = vld [vmem:[#allocation5 + $0x220] sm:$0xff] }
 0x624   : > { %v3132_v31 = vpop.permute.xlu1 %3131  ;;  %v3214_v12 = vmul.f32 %v7052_v18, %v3199_v43  ;;  %v7072_v39 = vld [vmem:[#allocation5 + $0x228] sm:$0xff] }
 0x625   : > { %v3232_v51 = vpop.permute.xlu2 %3231 }
 0x627   : > { %v3140_v47 = vpop.permute.xlu0 %3139 }
 0x628   : > { %v3146_v6 = vsel %vm609_vm5, %v3132_v31, %v3140_v47  ;;  %v3150_v22 = vsel %vm609_vm5, %v3140_v47, %v3132_v31  ;;  %v7074_v31 = vld [vmem:[#allocation5 + $0x1f0] sm:$0xff]  ;;  %v7076_v47 = vld [vmem:[#allocation5 + $0x1f8] sm:$0xff] }
 0x629   : > { %v3163_v52 = vmul.f32 %v7040_v62, %v3146_v6  ;;  %v3164_v29 = vmul.f32 %v7042_v34, %v3150_v22  ;;  %v3221_v22 = vadd.f32 %v3213_v57, %v6791_v5  ;;  %v7096_v34 = vld [vmem:[#allocation5 + $0x230] sm:$0xff]  ;;  %v7098_v62 = vld [vmem:[#allocation5 + $0x238] sm:$0xff] }
 0x62b   : > { %v7063_v16 = vadd.f32 %v3163_v52, %v6902_v44  ;;  %v7066_v1 = vadd.f32 %v3164_v29, %v6904_v23  ;;  %v3196_v44 = vsel %vm8165_vm2, %v6941_v19, %v6948_v28  ;;  %v3200_v23 = vsel %vm8166_vm3, %v6948_v28, %v6941_v19  ;;  %vm8184_vm2 = vmmov %vm8183_vm1 }
 0x62c   : > { %v3230_v0 = vpop.permute.xlu1 %3229  ;;  %v3222_v52 = vadd.f32 %v3214_v12, %v6793_v15  ;;  %v3215_v43 = vmul.f32 %v7074_v31, %v3196_v44  ;;  %v3216_v27 = vmul.f32 %v7076_v47, %v3200_v23  ;;  %vm8186_vm3 = vmmov %vm8163_vm0 }
 0x62d   : > { %v2332_v10 = vpop.permute.xlu2 %2331 }
 0x62e   : > { %v3223_v44 = vadd.f32 %v3215_v43, %v6818_v35  ;;  %v3224_v23 = vadd.f32 %v3216_v27, %v6821_v41  ;;  %v8172_v43 = vld [vmem:[#allocation11_spill] sm:$0xff] }
 0x62f   : > { %v3238_v25 = vpop.permute.xlu0 %3237 }
 0x630   : > { %v3243_v30 = vsel %vm8167_vm6, %v3230_v0, %v3238_v25  ;;  %v3247_v6 = vsel %vm8168_vm11, %v3238_v25, %v3230_v0  ;;  %v8169_v0 = vld [vmem:[#allocation24_spill] sm:$0xff]  ;;  %vm8187_vm6 = vmmov %vm8163_vm0 }
 0x631   : > { %v3261_v29 = vmul.f32 %v7070_v26, %v3243_v30  ;;  %v3262_v36 = vmul.f32 %v7072_v39, %v3247_v6  ;;  %vm8188_vm11 = vmmov %vm8163_vm0 }
 0x633   : > { %v3269_v19 = vadd.f32 %v3261_v29, %v3221_v22  ;;  %v3270_v28 = vadd.f32 %v3262_v36, %v3222_v52 }
 0x634   : > { %v3240_v17 = vpop.permute.xlu1 %3239 }
 0x635   : > { %v3277_v25 = vadd.f32 %v3269_v19, %v8169_v0  ;;  %v3278_v5 = vadd.f32 %v3270_v28, %v8169_v0  ;;  %v3244_v15 = vsel %vm8170_vm7, %v3232_v51, %v3240_v17  ;;  %v3248_v57 = vsel %vm8171_vm12, %v3240_v17, %v3232_v51  ;;  %v2342_v12 = vpop.permute.xlu2 %2341  ;;  %vm8189_vm7 = vmmov %vm8163_vm0 }
 0x636   : > { %v3263_v30 = vmul.f32 %v7096_v34, %v3244_v15  ;;  %v3264_v6 = vmul.f32 %v7098_v62, %v3248_v57  ;;  %vm8190_vm12 = vmmov %vm8183_vm1 }
 0x637   : > { %v3293_v22 = vmul.f32 0.044715, %v3277_v25  ;;  %v3294_v52 = vmul.f32 0.044715, %v3278_v5  ;;  %v2334_v29 = vpop.permute.xlu0 %2333 }
 0x638   : > { %v3271_v36 = vadd.f32 %v3263_v30, %v3223_v44  ;;  %v3272_v19 = vadd.f32 %v3264_v6, %v3224_v23  ;;  %v2346_v28 = vsel %vm609_vm5, %v2334_v29, %v2342_v12  ;;  %v2350_v17 = vsel %vm609_vm5, %v2342_v12, %v2334_v29 }
 0x639   : > { %v2365_v51 = vmul.f32 %v6797_v20, %v2346_v28  ;;  %v2366_v35 = vmul.f32 %v6799_v8, %v2350_v17  ;;  %v3301_v41 = vmul.f32 %v3293_v22, %v3277_v25  ;;  %v3302_v27 = vmul.f32 %v3294_v52, %v3278_v5 }
 0x63a   : > { %v3279_v15 = vadd.f32 %v3271_v36, %v8172_v43  ;;  %v3280_v57 = vadd.f32 %v3272_v19, %v8172_v43 }
 0x63b   : > { %v7119_v32 = vadd.f32 %v2365_v51, %v7001_v63  ;;  %v7122_v44 = vadd.f32 %v2366_v35, %v7004_v7  ;;  %v3309_v23 = vmul.f32 %v3301_v41, %v3277_v25  ;;  %v3310_v30 = vmul.f32 %v3302_v27, %v3278_v5 }
 0x63c   : > { %v3295_v6 = vmul.f32 0.044715, %v3279_v15  ;;  %v3296_v12 = vmul.f32 0.044715, %v3280_v57  ;;  %v2340_v29 = vpop.permute.xlu1 %2339 }
 0x63d   : > { %v2345_v20 = vsel %vm609_vm5, %v2332_v10, %v2340_v29  ;;  %v2349_v8 = vsel %vm609_vm5, %v2340_v29, %v2332_v10  ;;  %v7128_v22 = vpop.permute.xlu2 %3185  ;;  %v3317_v52 = vadd.f32 %v3309_v23, %v3277_v25  ;;  %v3318_v36 = vadd.f32 %v3310_v30, %v3278_v5 }
 0x63e   : > { %v2363_v63 = vmul.f32 %v6771_v54, %v2345_v20  ;;  %v2364_v7 = vmul.f32 %v6773_v37, %v2349_v8  ;;  %v3303_v19 = vmul.f32 %v3295_v6, %v3279_v15  ;;  %v3304_v28 = vmul.f32 %v3296_v12, %v3280_v57 }
 0x63f   : > { %v7132_v17 = vpop.permute.xlu0 %3177  ;;  %v3325_v51 = vmul.f32 0.7978846, %v3317_v52  ;;  %v3326_v35 = vmul.f32 0.7978846, %v3318_v36  ;;  %v3285_v52 = vmul.f32 0.5, %v3277_v25  ;;  %v8173_v25 = vld [vmem:[#allocation23_spill] sm:$0xff] }
 0x640   : > { %v7135_v41 = vadd.f32 %v2363_v63, %v7020_v38  ;;  %v7138_v27 = vadd.f32 %v2364_v7, %v7022_v33  ;;  %v3311_v10 = vmul.f32 %v3303_v19, %v3279_v15  ;;  %v3312_v23 = vmul.f32 %v3304_v28, %v3280_v57 }
 0x641   : > { %4076 = vtanh.f32 %v3325_v51  ;;  %v3286_v33 = vmul.f32 0.5, %v3278_v5  ;;  %v2263_v51 = vmul.f32 %v6886_v45, %v6867_v59  ;;  %v2265_v5 = vmul.f32 %v6937_v56, %v6833_v61 }
 0x642   : > { %4078 = vtanh.f32 %v3326_v35  ;;  %v3319_v30 = vadd.f32 %v3311_v10, %v3279_v15  ;;  %v3320_v37 = vadd.f32 %v3312_v23, %v3280_v57  ;;  %v2264_v10 = vmul.f32 %v6915_v13, %v6869_v24 }
 0x643   : > { %v2271_v59 = vadd.f32 %v2263_v51, %v6967_v14  ;;  %v8175_v14 = vld [vmem:[#allocation28_spill] sm:$0xff] }
 0x644   : > { %v7140_v54 = vpop.permute.xlu1 %3179  ;;  %v3327_v12 = vmul.f32 0.7978846, %v3319_v30  ;;  %v3328_v29 = vmul.f32 0.7978846, %v3320_v37  ;;  %v3287_v37 = vmul.f32 0.5, %v3279_v15  ;;  %v2272_v15 = vadd.f32 %v2264_v10, %v6970_v48 }
 0x645   : > { %v2282_v6 = vpop.permute.xlu2 %2281 }
 0x646   : > { %4080 = vtanh.f32 %v3327_v12 }
 0x647   : > { %v4077_v20 = vpop.eup %4076  ;;  %v7142_v8 = vpop.permute.xlu0 %3187  ;;  %4082 = vtanh.f32 %v3328_v29 }
 0x648   : > { %v4079_v38 = vpop.eup %4078  ;;  %v3341_v36 = vadd.f32 1.0, %v4077_v20 }
 0x649   : > { %v3342_v63 = vadd.f32 1.0, %v4079_v38  ;;  %v3288_v38 = vmul.f32 0.5, %v3280_v57  ;;  %v2266_v57 = vmul.f32 %v6932_v49, %v6835_v55  ;;  %v2273_v55 = vadd.f32 %v2265_v5, %v6981_v53  ;;  %v4234_v53 = vld [vmem:[%s4555_s26 + $0xe0] sm:$0xff] }
 0x64a   : > { %v3349_v7 = vmul.f32 %v3341_v36, %v3285_v52 }
 0x64b   : > { %v3350_v19 = vmul.f32 %v3342_v63, %v3286_v33 }
 0x64c   : > { %v2280_v28 = vpop.permute.xlu1 %2279  ;;  %v4081_v35 = vpop.eup %4080  ;;  %v3357_v20 = vmul.f32 %v3349_v7, %v8173_v25  ;;  %v8174_v7 = vld [vmem:[#allocation13_spill] sm:$0xff] }
 0x64d   : > { %v7148_v23 = vpop.permute.xlu2 %2379  ;;  %v4083_v30 = vpop.eup %4082  ;;  %v3343_v12 = vadd.f32 1.0, %v4081_v35  ;;  %v3358_v36 = vmul.f32 %v3350_v19, %v8173_v25 }
 0x64e   : > { %v3344_v52 = vadd.f32 1.0, %v4083_v30  ;;  %v3365_v51 = vadd.f32 %v3357_v20, %v8175_v14 }
 0x64f   : > { %v2288_v29 = vpop.permute.xlu0 %2287  ;;  %v3351_v13 = vmul.f32 %v3343_v12, %v3287_v37 }
 0x650   : > { %v2295_v24 = vsel %vm559_vm4, %v2280_v28, %v2288_v29  ;;  %v2299_v45 = vsel %vm559_vm4, %v2288_v29, %v2280_v28  ;;  %v3352_v61 = vmul.f32 %v3344_v52, %v3288_v38  ;;  %v8176_v28 = vld [vmem:[#allocation30_spill] sm:$0xff]  ;;  %v2274_v38 = vadd.f32 %v2266_v57, %v6984_v40  ;;  %v7196_v40 = vld [vmem:[#allocation5 + $0x1c8] sm:$0xff] }
 0x651   : > { %v2311_v33 = vmul.f32 %v6906_v46, %v2295_v24  ;;  %v2312_v63 = vmul.f32 %v6908_v58, %v2299_v45  ;;  %v3359_v19 = vmul.f32 %v3351_v13, %v8174_v7  ;;  %v3366_v46 = vadd.f32 %v3358_v36, %v8175_v14  ;;  %v4235_v13 = vld [vmem:[%s4555_s26 + $0xe8] sm:$0xff] }
 0x652   : > { %v3360_v48 = vmul.f32 %v3352_v61, %v8174_v7  ;;  %v3373_v5 = vadd.f32 %v4234_v53, %v3365_v51 }
 0x653   : > { %v7166_v35 = vadd.f32 %v2311_v33, %v2271_v59  ;;  %v7168_v30 = vadd.f32 %v2312_v63, %v2272_v15  ;;  %v3367_v10 = vadd.f32 %v3359_v19, %v8176_v28  ;;  %v4233_v59 = vld [vmem:[%s4555_s26 + $0xf0] sm:$0xff]  ;;  %v3374_v15 = vadd.f32 %v4235_v13, %v3366_v46  ;;  %v4236_v33 = vld [vmem:[%s4555_s26 + $0xf8] sm:$0xff]  ;;  %v7194_v19 = vld [vmem:[#allocation5 + $0x1c0] sm:$0xff] }
 0x654   : > { %v2290_v58 = vpop.permute.xlu1 %2289  ;;  %v3368_v29 = vadd.f32 %v3360_v48, %v8176_v28 }
 0x655   : > { %v2296_v37 = vsel %vm559_vm4, %v2282_v6, %v2290_v58  ;;  %v2300_v12 = vsel %vm559_vm4, %v2290_v58, %v2282_v6  ;;  %v7178_v20 = vpop.permute.xlu2 %2389  ;;  %v3375_v24 = vadd.f32 %v4233_v59, %v3367_v10  ;;  %vm8177_vm4 = vmmov %vm8163_vm0  ;;  %v3194_v59 = vsel %vm8181_vm9, %v7140_v54, %v7142_v8 }
 0x656   : > { %v2313_v52 = vmul.f32 %v6863_v21, %v2296_v37  ;;  %v2314_v36 = vmul.f32 %v6865_v50, %v2300_v12  ;;  %v3376_v6 = vadd.f32 %v4236_v33, %v3368_v29  ;;  %v3193_v21 = vsel %vm8177_vm4, %v7132_v17, %v7128_v22  ;;  %v7212_v37 = vld [vmem:[#allocation5 + $0x208] sm:$0xff]  ;;  %vm8191_vm4 = vmmov %vm8183_vm1 }
 0x657   : > { %v7185_v45 = vpop.permute.xlu0 %2381  ;;  %v3197_v50 = vsel %vm8178_vm13, %v7128_v22, %v7132_v17  ;;  %v3379_v57 = vpack.c.bf16 %v3375_v24, %v3373_v5  ;;  %v3209_v48 = vmul.f32 %v7194_v19, %v3193_v21  ;;  %vm8192_vm13 = vmmov %vm8183_vm1 }
 0x658   : > { %v7190_v63 = vadd.f32 %v2313_v52, %v2273_v55  ;;  %v7192_v61 = vadd.f32 %v2314_v36, %v2274_v38  ;;  %v3380_v51 = vpack.c.bf16 %v3376_v6, %v3374_v15  ;;  %v3210_v46 = vmul.f32 %v7196_v40, %v3197_v50  ;;  %v7210_v55 = vld [vmem:[#allocation5 + $0x200] sm:$0xff]  ;;  %v7220_v52 = vld [vmem:[#allocation5 + $0x1d0] sm:$0xff]  ;;  %v7222_v36 = vld [vmem:[#allocation5 + $0x1d8] sm:$0xff] }
 0x659   : > { %3387 = vmatpush.bf16.msrb.mxu2 %v3379_v57  ;;  %v3217_v29 = vadd.f32 %v3209_v48, %v7035_v9  ;;  %v3198_v9 = vsel %vm8163_vm0, %v7142_v8, %v7140_v54  ;;  %v3211_v13 = vmul.f32 %v7220_v52, %v3194_v59  ;;  %v8182_v6 = vld [vmem:[#allocation25_spill] sm:$0xff]  ;;  %v7246_v8 = vld [vmem:[#allocation5 + $0x218] sm:$0xff]  ;;  %vm8199_vm9 = vmmov %vm8163_vm0 }
 0x65a   : > { %3406 = vmatpush.bf16.msrb.mxu3 %v3380_v51  ;;  %v3218_v22 = vadd.f32 %v3210_v46, %v7038_v42  ;;  %v3212_v15 = vmul.f32 %v7222_v36, %v3198_v9  ;;  %v7244_v54 = vld [vmem:[#allocation5 + $0x210] sm:$0xff] }
 0x65c   : > { %v7208_v58 = vpop.permute.xlu1 %2387 }
 0x65d   : > { %v3234_v10 = vpop.permute.xlu2 %3233 }
 0x65f   : > { %v3226_v12 = vpop.permute.xlu0 %3225 }
 0x660   : > { %v3241_v17 = vsel %vm8179_vm14, %v3226_v12, %v3234_v10  ;;  %v3245_v38 = vsel %vm8180_vm15, %v3234_v10, %v3226_v12  ;;  %v3219_v10 = vadd.f32 %v3211_v13, %v7063_v16  ;;  %v3220_v12 = vadd.f32 %v3212_v15, %v7066_v1  ;;  %vm8193_vm14 = vmmov %vm8183_vm1 }
 0x661   : > { %v3257_v42 = vmul.f32 %v7210_v55, %v3241_v17  ;;  %v3258_v24 = vmul.f32 %v7212_v37, %v3245_v38  ;;  %vm8198_vm15 = vmmov %vm8163_vm0 }
 0x663   : > { %v3265_v53 = vadd.f32 %v3257_v42, %v3217_v29  ;;  %v3266_v5 = vadd.f32 %v3258_v24, %v3218_v22 }
 0x664   : > { %v3228_v33 = vpop.permute.xlu1 %3227 }
 0x665   : > { %v7237_v21 = vadd.f32 %v3265_v53, %v8182_v6  ;;  %v7240_v50 = vadd.f32 %v3266_v5, %v8182_v6  ;;  %v7242_v57 = vpop.permute.xlu2 %2329  ;;  %v8185_v5 = vld [vmem:[#allocation15_spill] sm:$0xff] }
 0x667   : > { %v3289_v51 = vmul.f32 0.044715, %v7237_v21  ;;  %v3290_v48 = vmul.f32 0.044715, %v7240_v50  ;;  %v3236_v46 = vpop.permute.xlu0 %3235 }
 0x668   : > { %v3242_v29 = vsel %vm8183_vm1, %v3228_v33, %v3236_v46  ;;  %v3246_v22 = vsel %vm8184_vm2, %v3236_v46, %v3228_v33  ;;  %vm8205_vm2 = vmmov %vm8183_vm1 }
 0x669   : > { %v3259_v17 = vmul.f32 %v7244_v54, %v3242_v29  ;;  %v3260_v38 = vmul.f32 %v7246_v8, %v3246_v22  ;;  %v3297_v59 = vmul.f32 %v3289_v51, %v7237_v21  ;;  %v3298_v9 = vmul.f32 %v3290_v48, %v7240_v50 }
 0x66b   : > { %v3267_v42 = vadd.f32 %v3259_v17, %v3219_v10  ;;  %v3268_v24 = vadd.f32 %v3260_v38, %v3220_v12  ;;  %v3305_v16 = vmul.f32 %v3297_v59, %v7237_v21  ;;  %v3306_v1 = vmul.f32 %v3298_v9, %v7240_v50 }
 0x66c   : > { %v7262_v53 = vpop.permute.xlu1 %2327  ;;  %v2394_v12 = vsel %vm8186_vm3, %v7185_v45, %v7178_v20  ;;  %v2398_v38 = vsel %vm8187_vm6, %v7178_v20, %v7185_v45  ;;  %vm8206_vm3 = vmmov %vm8183_vm1 }
 0x66d   : > { %v3275_v13 = vadd.f32 %v3267_v42, %v8185_v5  ;;  %v7266_v15 = vadd.f32 %v3268_v24, %v8185_v5  ;;  %v2428_v33 = vpop.permute.xlu2 %2427  ;;  %v3313_v46 = vadd.f32 %v3305_v16, %v7237_v21  ;;  %v3314_v51 = vadd.f32 %v3306_v1, %v7240_v50  ;;  %vm8207_vm6 = vmmov %vm8183_vm1 }
 0x66e   : > { %v2413_v42 = vmul.f32 %v7074_v31, %v2394_v12  ;;  %v2414_v1 = vmul.f32 %v7076_v47, %v2398_v38  ;;  %v2397_v31 = vsel %vm8189_vm7, %v7208_v58, %v7148_v23 }
 0x66f   : > { %v3291_v29 = vmul.f32 0.044715, %v3275_v13  ;;  %v3292_v48 = vmul.f32 0.044715, %v7266_v15  ;;  %v2336_v10 = vpop.permute.xlu0 %2335  ;;  %v3321_v22 = vmul.f32 0.7978846, %v3313_v46  ;;  %v2393_v46 = vsel %vm8188_vm11, %v7148_v23, %v7208_v58 }
 0x670   : > { %v3322_v17 = vmul.f32 0.7978846, %v3314_v51  ;;  %v2411_v38 = vmul.f32 %v7050_v2, %v2393_v46  ;;  %v3281_v2 = vmul.f32 0.5, %v7237_v21 }
 0x671   : > { %v3299_v59 = vmul.f32 %v3291_v29, %v3275_v13  ;;  %v3300_v9 = vmul.f32 %v3292_v48, %v7266_v15  ;;  %4084 = vtanh.f32 %v3321_v22  ;;  %v2421_v29 = vadd.f32 %v2413_v42, %v7119_v32 }
 0x672   : > { %4086 = vtanh.f32 %v3322_v17  ;;  %v2422_v17 = vadd.f32 %v2414_v1, %v7122_v44  ;;  %v2419_v46 = vadd.f32 %v2411_v38, %v7135_v41  ;;  %v2347_v38 = vsel %vm609_vm5, %v2336_v10, %v7262_v53 }
 0x673   : > { %v3307_v24 = vmul.f32 %v3299_v59, %v3275_v13  ;;  %v3308_v16 = vmul.f32 %v3300_v9, %v7266_v15 }
 0x674   : > { %v7283_v49 = vpop.permute.xlu1 %2337 }
 0x675   : > { %v2438_v20 = vpop.permute.xlu2 %2437  ;;  %v3315_v45 = vadd.f32 %v3307_v24, %v3275_v13  ;;  %v3316_v51 = vadd.f32 %v3308_v16, %v7266_v15  ;;  %v2412_v24 = vmul.f32 %v7052_v18, %v2397_v31 }
 0x677   : > { %v2430_v47 = vpop.permute.xlu0 %2429  ;;  %v3323_v48 = vmul.f32 0.7978846, %v3315_v45  ;;  %v3324_v12 = vmul.f32 0.7978846, %v3316_v51  ;;  %v4085_v22 = vpop.eup %4084 }
 0x678   : > { %v2442_v59 = vsel %vm8190_vm12, %v2430_v47, %v2438_v20  ;;  %v2446_v9 = vsel %vm8191_vm4, %v2438_v20, %v2430_v47  ;;  %v3337_v23 = vadd.f32 1.0, %v4085_v22  ;;  %v4087_v58 = vpop.eup %4086  ;;  %v2343_v20 = vsel %vm609_vm5, %v7262_v53, %v2336_v10 }
 0x679   : > { %v2461_v32 = vmul.f32 %v7096_v34, %v2442_v59  ;;  %v2462_v42 = vmul.f32 %v7098_v62, %v2446_v9  ;;  %4088 = vtanh.f32 %v3323_v48  ;;  %v3338_v1 = vadd.f32 1.0, %v4087_v58 }
 0x67a   : > { %4090 = vtanh.f32 %v3324_v12  ;;  %v3282_v62 = vmul.f32 0.5, %v7240_v50  ;;  %v3345_v21 = vmul.f32 %v3337_v23, %v3281_v2  ;;  %v3283_v22 = vmul.f32 0.5, %v3275_v13 }
 0x67b   : > { %v2469_v16 = vadd.f32 %v2461_v32, %v2421_v29  ;;  %v2470_v44 = vadd.f32 %v2462_v42, %v2422_v17  ;;  %v2420_v29 = vadd.f32 %v2412_v24, %v7138_v27  ;;  %v3284_v42 = vmul.f32 0.5, %v7266_v15 }
 0x67c   : > { %v2436_v34 = vpop.permute.xlu1 %2435  ;;  %v3346_v47 = vmul.f32 %v3338_v1, %v3282_v62 }
 0x67d   : > { %v7311_v45 = vadd.f32 %v2469_v16, %v8172_v43  ;;  %v2441_v18 = vsel %vm8192_vm13, %v2428_v33, %v2436_v34  ;;  %v2445_v51 = vsel %vm8193_vm14, %v2436_v34, %v2428_v33  ;;  %v7321_v50 = vadd.f32 %v2470_v44, %v8172_v43  ;;  %v2384_v1 = vpop.permute.xlu2 %2383 }
 0x67e   : > { %v2459_v41 = vmul.f32 %v7070_v26, %v2441_v18  ;;  %v2460_v31 = vmul.f32 %v7072_v39, %v2445_v51  ;;  %v2359_v33 = vmul.f32 %v7016_v4, %v2343_v20  ;;  %v8194_v39 = vld [vmem:[#allocation22_spill] sm:$0xff]  ;;  %v2360_v4 = vmul.f32 %v7018_v3, %v2347_v38  ;;  %v8196_v20 = vld [vmem:[#allocation12_spill] sm:$0xff] }
 0x67f   : > { %v4089_v48 = vpop.eup %4088  ;;  %v2376_v12 = vpop.permute.xlu0 %2375  ;;  %v2493_v26 = vmul.f32 0.044715, %v7311_v45  ;;  %v3353_v32 = vmul.f32 %v3345_v21, %v8194_v39  ;;  %v3354_v53 = vmul.f32 %v3346_v47, %v8194_v39  ;;  %v2494_v10 = vmul.f32 0.044715, %v7321_v50 }
 0x680   : > { %v4091_v17 = vpop.eup %4090  ;;  %v2467_v59 = vadd.f32 %v2459_v41, %v2419_v46  ;;  %v2468_v27 = vadd.f32 %v2460_v31, %v2420_v29  ;;  %v3339_v9 = vadd.f32 1.0, %v4089_v48  ;;  %v2367_v24 = vadd.f32 %v2359_v33, %v7166_v35  ;;  %v8195_v46 = vld [vmem:[#allocation27_spill] sm:$0xff]  ;;  %v8197_v31 = vld [vmem:[#allocation14_spill] sm:$0xff] }
 0x681   : > { %v3340_v23 = vadd.f32 1.0, %v4091_v17  ;;  %v3361_v34 = vadd.f32 %v3353_v32, %v8196_v20  ;;  %v3362_v62 = vadd.f32 %v3354_v53, %v8196_v20  ;;  %v2501_v3 = vmul.f32 %v2493_v26, %v7311_v45  ;;  %v8201_v26 = vld [vmem:[#allocation46_spill] sm:$0xff] }
 0x682   : > { %v7331_v43 = vadd.f32 %v2467_v59, %v8169_v0  ;;  %v7334_v13 = vadd.f32 %v2468_v27, %v8169_v0  ;;  %v3347_v58 = vmul.f32 %v3339_v9, %v3283_v22  ;;  %v2344_v35 = vsel %vm609_vm5, %v7242_v57, %v7283_v49 }
 0x683   : > { %v3348_v2 = vmul.f32 %v3340_v23, %v3284_v42  ;;  %v2348_v29 = vsel %vm609_vm5, %v7283_v49, %v7242_v57  ;;  %v2509_v48 = vmul.f32 %v2501_v3, %v7311_v45  ;;  %v2502_v22 = vmul.f32 %v2494_v10, %v7321_v50  ;;  %v8200_v49 = vld [vmem:[#allocation45_spill] sm:$0xff]  ;;  %v4237_v42 = vld [vmem:[%s4555_s26 + $0xd8] sm:$0xff]  ;;  %vm8202_vm5 = vmmov %vm8163_vm0 }
 0x684   : > { %v2491_v16 = vmul.f32 0.044715, %v7331_v43  ;;  %v2492_v15 = vmul.f32 0.044715, %v7334_v13  ;;  %v2378_v44 = vpop.permute.xlu1 %2377  ;;  %v3355_v0 = vmul.f32 %v3347_v58, %v8195_v46  ;;  %v2391_v17 = vsel %vm8198_vm15, %v2376_v12, %v2384_v1  ;;  %v8203_v3 = vld [vmem:[#allocation55_spill] sm:$0xff] }
 0x685   : > { %v3356_v18 = vmul.f32 %v3348_v2, %v8195_v46  ;;  %v2395_v38 = vsel %vm8199_vm9, %v2384_v1, %v2376_v12  ;;  %v3369_v27 = vadd.f32 %v6891_v11, %v3361_v34  ;;  %v3370_v9 = vadd.f32 %v8201_v26, %v3362_v62 }
 0x686   : > { %v2499_v51 = vmul.f32 %v2491_v16, %v7331_v43  ;;  %v2500_v21 = vmul.f32 %v2492_v15, %v7334_v13  ;;  %v3363_v47 = vadd.f32 %v3355_v0, %v8197_v31  ;;  %v2517_v32 = vadd.f32 %v2509_v48, %v7311_v45 }
 0x687   : > { %v2386_v41 = vpop.permute.xlu0 %2385  ;;  %v3364_v33 = vadd.f32 %v3356_v18, %v8197_v31  ;;  %v2510_v12 = vmul.f32 %v2502_v22, %v7321_v50  ;;  %v2407_v58 = vmul.f32 %v7194_v19, %v2391_v17  ;;  %v2361_v18 = vmul.f32 %v8203_v3, %v2344_v35  ;;  %v8204_v19 = vld [vmem:[#allocation53_spill] sm:$0xff] }
 0x688   : > { %v2507_v59 = vmul.f32 %v2499_v51, %v7331_v43  ;;  %v3371_v57 = vadd.f32 %v8200_v49, %v3363_v47  ;;  %v2508_v10 = vmul.f32 %v2500_v21, %v7334_v13  ;;  %v2392_v16 = vsel %vm8202_vm5, %v2378_v44, %v2386_v41 }
 0x689   : > { %v3372_v23 = vadd.f32 %v4237_v42, %v3364_v33  ;;  %v2525_v15 = vmul.f32 0.7978846, %v2517_v32  ;;  %v2518_v62 = vadd.f32 %v2510_v12, %v7321_v50  ;;  %v2408_v51 = vmul.f32 %v7196_v40, %v2395_v38 }
 0x68a   : > { %v2515_v53 = vadd.f32 %v2507_v59, %v7331_v43  ;;  %v3377_v11 = vpack.c.bf16 %v3371_v57, %v3369_v27  ;;  %v2516_v34 = vadd.f32 %v2508_v10, %v7334_v13  ;;  %v2396_v21 = vsel %vm8163_vm0, %v2386_v41, %v2378_v44  ;;  %v2426_v41 = vpop.permute.xlu2 %2425 }
 0x68b   : > { %v3378_v1 = vpack.c.bf16 %v3372_v23, %v3370_v9  ;;  %4092 = vtanh.f32 %v2525_v15  ;;  %v2362_v47 = vmul.f32 %v8204_v19, %v2348_v29  ;;  %v2526_v22 = vmul.f32 0.7978846, %v2518_v62  ;;  %v7394_v29 = vld [vmem:[%s7812_s2] sm:$0xff] }
 0x68c   : > { %v2424_v2 = vpop.permute.xlu1 %2423  ;;  %v2523_v0 = vmul.f32 0.7978846, %v2515_v53  ;;  %3388 = vmatpush.bf16.msrb.mxu2 %v3377_v11  ;;  %v2524_v48 = vmul.f32 0.7978846, %v2516_v34  ;;  %v2368_v17 = vadd.f32 %v2360_v4, %v7168_v30  ;;  %v2415_v33 = vadd.f32 %v2407_v58, %v2367_v24 }
 0x68d   : > { %3407 = vmatpush.bf16.msrb.mxu3 %v3378_v1  ;;  %v2409_v59 = vmul.f32 %v7220_v52, %v2392_v16  ;;  %v2410_v35 = vmul.f32 %v7222_v36, %v2396_v21  ;;  %v2369_v4 = vadd.f32 %v2361_v18, %v7190_v63  ;;  %v2370_v24 = vadd.f32 %v2362_v47, %v7192_v61 }
 0x68e   : > { %4094 = vtanh.f32 %v2523_v0  ;;  %v2416_v30 = vadd.f32 %v2408_v51, %v2368_v17  ;;  %v2485_v26 = vmul.f32 0.5, %v7311_v45  ;;  %v2486_v3 = vmul.f32 0.5, %v7321_v50 }
 0x68f   : > { %v2432_v27 = vpop.permute.xlu0 %2431  ;;  %3842 = vmatmul.msk.bf16.vlgmr.msrb.gmra.mxu2 %vm929_vm8, %v7394_v29  ;;  %4096 = vtanh.f32 %v2524_v48  ;;  %v2417_v32 = vadd.f32 %v2409_v59, %v2369_v4  ;;  %v2418_v42 = vadd.f32 %v2410_v35, %v2370_v24  ;;  %v7442_v24 = vld [vmem:[%s4555_s26 + $0xa8] sm:$0xff] }
 0x690   : > { %v2439_v40 = vsel %vm8183_vm1, %v2424_v2, %v2432_v27  ;;  %v2443_v44 = vsel %vm8205_vm2, %v2432_v27, %v2424_v2  ;;  %3844 = vmatmul.msk.bf16.vlgmr.msrb.gmra.mxu3 %vm929_vm8, %v7394_v29  ;;  %4098 = vtanh.f32 %v2526_v22 }
 0x691   : > { %v2455_v52 = vmul.f32 %v7210_v55, %v2439_v40  ;;  %v2456_v36 = vmul.f32 %v7212_v37, %v2443_v44  ;;  %v4093_v38 = vpop.eup %4092  ;;  %v2483_v37 = vmul.f32 0.5, %v7331_v43  ;;  %v7436_v40 = vld [vmem:[%s4555_s26 + $0xa0] sm:$0xff] }
 0x692   : > { %v2541_v23 = vadd.f32 1.0, %v4093_v38 }
 0x693   : > { %v2463_v49 = vadd.f32 %v2455_v52, %v2415_v33  ;;  %v2464_v57 = vadd.f32 %v2456_v36, %v2416_v30  ;;  %v8208_v30 = vld [vmem:[#allocation56_spill] sm:$0xff] }
 0x694   : > { %v4095_v9 = vpop.eup %4094  ;;  %v2434_v55 = vpop.permute.xlu1 %2433  ;;  %v2549_v43 = vmul.f32 %v2541_v23, %v2485_v26 }
 0x695   : > { %v7407_v53 = vadd.f32 %v2463_v49, %v8182_v6  ;;  %v7410_v63 = vadd.f32 %v2464_v57, %v8182_v6  ;;  %v2440_v61 = vsel %vm8206_vm3, %v2426_v41, %v2434_v55  ;;  %v2444_v10 = vsel %vm8207_vm6, %v2434_v55, %v2426_v41  ;;  %v4097_v45 = vpop.eup %4096 }
 0x696   : > { %v2457_v12 = vmul.f32 %v7244_v54, %v2440_v61  ;;  %v2458_v58 = vmul.f32 %v7246_v8, %v2444_v10  ;;  %v2539_v16 = vadd.f32 1.0, %v4095_v9  ;;  %v4099_v11 = vpop.eup %4098  ;;  %v2484_v6 = vmul.f32 0.5, %v7334_v13  ;;  %v8209_v9 = vld [vmem:[#allocation21_spill] sm:$0xff] }
 0x697   : > { %v2487_v15 = vmul.f32 0.044715, %v7407_v53  ;;  %v2488_v2 = vmul.f32 0.044715, %v7410_v63  ;;  %v2540_v1 = vadd.f32 1.0, %v4097_v45  ;;  %v2557_v60 = vmul.f32 %v2549_v43, %v8174_v7 }
 0x698   : > { %v2465_v0 = vadd.f32 %v2457_v12, %v2417_v32  ;;  %v2466_v34 = vadd.f32 %v2458_v58, %v2418_v42  ;;  %v2547_v62 = vmul.f32 %v2539_v16, %v2483_v37  ;;  %v2542_v54 = vadd.f32 1.0, %v4099_v11 }
 0x699   : > { %v2548_v18 = vmul.f32 %v2540_v1, %v2484_v6  ;;  %v2495_v8 = vmul.f32 %v2487_v15, %v7407_v53  ;;  %v2565_v13 = vadd.f32 %v2557_v60, %v8176_v28  ;;  %v2496_v50 = vmul.f32 %v2488_v2, %v7410_v63 }
 0x69a   : > { %v2473_v51 = vadd.f32 %v2465_v0, %v8185_v5  ;;  %v2474_v21 = vadd.f32 %v2466_v34, %v8185_v5  ;;  %v2555_v19 = vmul.f32 %v2547_v62, %v8173_v25  ;;  %v2550_v47 = vmul.f32 %v2542_v54, %v2486_v3 }
 0x69b   : > { %v2556_v48 = vmul.f32 %v2548_v18, %v8173_v25  ;;  %v2503_v22 = vmul.f32 %v2495_v8, %v7407_v53  ;;  %v2573_v25 = vadd.f32 %v8208_v30, %v2565_v13  ;;  %v2479_v12 = vmul.f32 0.5, %v7407_v53 }
 0x69c   : > { %v2489_v17 = vmul.f32 0.044715, %v2473_v51  ;;  %v2490_v33 = vmul.f32 0.044715, %v2474_v21  ;;  %v2563_v59 = vadd.f32 %v2555_v19, %v8175_v14  ;;  %v2558_v27 = vmul.f32 %v2550_v47, %v8174_v7 }
 0x69d   : > { %v2564_v5 = vadd.f32 %v2556_v48, %v8175_v14  ;;  %v2511_v35 = vadd.f32 %v2503_v22, %v7407_v53  ;;  %v2504_v7 = vmul.f32 %v2496_v50, %v7410_v63  ;;  %v4241_v14 = vld [vmem:[%s7812_s2 + $0x8] sm:$0xff]  ;;  %v2480_v15 = vmul.f32 0.5, %v7410_v63  ;;  %v7464_v48 = vld [vmem:[%s4555_s26 + $0x80] sm:$0xff] }
 0x69e   : > { %v2571_v44 = vadd.f32 %v7436_v40, %v2563_v59  ;;  %v2497_v52 = vmul.f32 %v2489_v17, %v2473_v51  ;;  %v2498_v36 = vmul.f32 %v2490_v33, %v2474_v21  ;;  %v2566_v4 = vadd.f32 %v2558_v27, %v8176_v28  ;;  %v7469_v50 = vld [vmem:[%s4555_s26 + $0x88] sm:$0xff]  ;;  %v8210_v17 = vld [vmem:[#allocation51_spill] sm:$0xff] }
 0x69f   : > { %v2572_v41 = vadd.f32 %v7442_v24, %v2564_v5  ;;  %v2519_v38 = vmul.f32 0.7978846, %v2511_v35  ;;  %3843 = vmatmul.msk.bf16.gmra.mxu2 %vm929_vm8, %v4241_v14  ;;  %v2512_v32 = vadd.f32 %v2504_v7, %v7410_v63  ;;  %v2481_v1 = vmul.f32 0.5, %v2473_v51 }
 0x6a0   : > { %v2577_v49 = vpack.c.bf16 %v2573_v25, %v2571_v44  ;;  %v2505_v57 = vmul.f32 %v2497_v52, %v2473_v51  ;;  %v2506_v26 = vmul.f32 %v2498_v36, %v2474_v21  ;;  %3845 = vmatmul.msk.bf16.gmra.mxu3 %vm929_vm8, %v4241_v14  ;;  %v2574_v28 = vadd.f32 %v8209_v9, %v2566_v4 }
 0x6a1   : > { %4100 = vtanh.f32 %v2519_v38  ;;  %v2520_v23 = vmul.f32 0.7978846, %v2512_v32  ;;  %v2482_v62 = vmul.f32 0.5, %v2474_v21 }
 0x6a2   : > { %2585 = vmatpush.bf16.msrb.mxu0 %v2577_v49  ;;  %v2513_v42 = vadd.f32 %v2505_v57, %v2473_v51  ;;  %v2514_v55 = vadd.f32 %v2506_v26, %v2474_v21  ;;  %v2578_v37 = vpack.c.bf16 %v2574_v28, %v2572_v41  ;;  %v8212_v57 = vld [vmem:[#allocation32_spill] sm:$0xff] }
 0x6a3   : > { %4102 = vtanh.f32 %v2520_v23 }
 0x6a4   : > { %v2521_v61 = vmul.f32 0.7978846, %v2513_v42  ;;  %v2522_v10 = vmul.f32 0.7978846, %v2514_v55  ;;  %2604 = vmatpush.bf16.msrb.mxu1 %v2578_v37  ;;  %v8213_v42 = vld [vmem:[#allocation29_spill] sm:$0xff] }
 0x6a6   : > { %4104 = vtanh.f32 %v2521_v61 }
 0x6a7   : > { %v4101_v45 = vpop.eup %4100  ;;  %4106 = vtanh.f32 %v2522_v10 }
 0x6a8   : > { %v2535_v58 = vadd.f32 1.0, %v4101_v45 }
 0x6a9   : > { %v4103_v43 = vpop.eup %4102 }
 0x6aa   : > { %v2543_v16 = vmul.f32 %v2535_v58, %v2479_v12  ;;  %v2536_v2 = vadd.f32 1.0, %v4103_v43 }
 0x6ac   : > { %v4105_v11 = vpop.eup %4104  ;;  %v2551_v34 = vmul.f32 %v2543_v16, %v8194_v39  ;;  %v2544_v3 = vmul.f32 %v2536_v2, %v2480_v15 }
 0x6ad   : > { %v4107_v6 = vpop.eup %4106  ;;  %v2537_v0 = vadd.f32 1.0, %v4105_v11 }
 0x6ae   : > { %v2538_v60 = vadd.f32 1.0, %v4107_v6  ;;  %v2552_v53 = vmul.f32 %v2544_v3, %v8194_v39  ;;  %v2559_v19 = vadd.f32 %v2551_v34, %v8196_v20 }
 0x6af   : > { %v2545_v54 = vmul.f32 %v2537_v0, %v2481_v1 }
 0x6b0   : > { %v2546_v18 = vmul.f32 %v2538_v60, %v2482_v62  ;;  %v2560_v13 = vadd.f32 %v2552_v53, %v8196_v20  ;;  %v2567_v21 = vadd.f32 %v7464_v48, %v2559_v19  ;;  %v8211_v20 = vld [vmem:[#allocation33_spill] sm:$0xff]  ;;  %v8214_v62 = vld [vmem:[#allocation39_spill] sm:$0xff]  ;;  %v8215_v53 = vld [vmem:[#allocation38_spill] sm:$0xff] }
 0x6b1   : > { %v2553_v8 = vmul.f32 %v2545_v54, %v8195_v46 }
 0x6b2   : > { %v2554_v63 = vmul.f32 %v2546_v18, %v8195_v46  ;;  %v2568_v39 = vadd.f32 %v7469_v50, %v2560_v13 }
 0x6b3   : > { %v2561_v51 = vadd.f32 %v2553_v8, %v8197_v31 }
 0x6b4   : > { %v2562_v47 = vadd.f32 %v2554_v63, %v8197_v31 }
 0x6b5   : > { %v2569_v22 = vadd.f32 %v6937_v56, %v2561_v51 }
 0x6b6   : > { %v2570_v33 = vadd.f32 %v8210_v17, %v2562_v47 }
 0x6b7   : > { %v2575_v59 = vpack.c.bf16 %v2569_v22, %v2567_v21 }
 0x6b8   : > { %v2576_v46 = vpack.c.bf16 %v2570_v33, %v2568_v39 }
 0x6b9   : > { %2586 = vmatpush.bf16.msrb.mxu0 %v2575_v59 }
 0x6ba   : > { %2605 = vmatpush.bf16.msrb.mxu1 %v2576_v46 }
 0x6bc   : > { %3818 = vmatmul.msk.bf16.vlgmr.msrb.gmra.mxu0 %vm929_vm8, %v7394_v29 }
 0x6bd   : > { %3820 = vmatmul.msk.bf16.vlgmr.msrb.gmra.mxu1 %vm929_vm8, %v7394_v29 }
 0x6cc   : > { %3819 = vmatmul.msk.bf16.gmra.mxu0 %vm929_vm8, %v4241_v14 }
 0x6cd   : > { %3821 = vmatmul.msk.bf16.gmra.mxu1 %vm929_vm8, %v4241_v14 }
 0x712   : > { %v3390_v56 = vpop.f32.mrf.mxu2 }
 0x713   : > { %v3391_v31 = vadd.f32 %v3390_v56, %v8211_v20  ;;  %v3409_v27 = vpop.f32.mrf.mxu3 }
 0x714   : > { %v3410_v5 = vadd.f32 %v3409_v27, %v8211_v20 }
 0x715   : > { %v3427_v35 = vmul.f32 0.044715, %v3391_v31  ;;  %v3419_v45 = vmul.f32 0.5, %v3391_v31 }
 0x716   : > { %v3428_v44 = vmul.f32 0.044715, %v3410_v5  ;;  %v3420_v16 = vmul.f32 0.5, %v3410_v5 }
 0x717   : > { %v3435_v30 = vmul.f32 %v3427_v35, %v3391_v31 }
 0x718   : > { %v3436_v25 = vmul.f32 %v3428_v44, %v3410_v5 }
 0x719   : > { %v3443_v52 = vmul.f32 %v3435_v30, %v3391_v31 }
 0x71a   : > { %v3444_v36 = vmul.f32 %v3436_v25, %v3410_v5  ;;  %v3392_v4 = vpop.f32.mrf.mxu2 }
 0x71b   : > { %v3451_v41 = vadd.f32 %v3443_v52, %v3391_v31  ;;  %v3411_v38 = vpop.f32.mrf.mxu3  ;;  %v7484_v55 = vadd.f32 %v3392_v4, %v8213_v42 }
 0x71c   : > { %v3452_v29 = vadd.f32 %v3444_v36, %v3410_v5  ;;  %v7487_v61 = vadd.f32 %v3411_v38, %v8213_v42  ;;  %v8216_v5 = vld [vmem:[#allocation36_spill] sm:$0xff] }
 0x71d   : > { %v3459_v7 = vmul.f32 0.7978846, %v3451_v41  ;;  %v3429_v2 = vmul.f32 0.044715, %v7484_v55 }
 0x71e   : > { %v3460_v49 = vmul.f32 0.7978846, %v3452_v29  ;;  %v3430_v0 = vmul.f32 0.044715, %v7487_v61 }
 0x71f   : > { %4108 = vtanh.f32 %v3459_v7  ;;  %v3437_v19 = vmul.f32 %v3429_v2, %v7484_v55 }
 0x720   : > { %4110 = vtanh.f32 %v3460_v49  ;;  %v3438_v51 = vmul.f32 %v3430_v0, %v7487_v61 }
 0x721   : > { %v3445_v22 = vmul.f32 %v3437_v19, %v7484_v55 }
 0x722   : > { %v3395_v14 = vpop.f32.mrf.mxu2  ;;  %v3446_v39 = vmul.f32 %v3438_v51, %v7487_v61 }
 0x723   : > { %v3396_v26 = vadd.f32 %v3395_v14, %v8212_v57  ;;  %v3414_v9 = vpop.f32.mrf.mxu3  ;;  %v3453_v59 = vadd.f32 %v3445_v22, %v7484_v55 }
 0x724   : > { %v3415_v28 = vadd.f32 %v3414_v9, %v8212_v57  ;;  %v3454_v56 = vadd.f32 %v3446_v39, %v7487_v61 }
 0x725   : > { %v4109_v32 = vpop.eup %4108  ;;  %v3431_v37 = vmul.f32 0.044715, %v3396_v26  ;;  %v3423_v31 = vmul.f32 0.5, %v3396_v26  ;;  %v3461_v4 = vmul.f32 0.7978846, %v3453_v59 }
 0x726   : > { %v4111_v23 = vpop.eup %4110  ;;  %v3432_v10 = vmul.f32 0.044715, %v3415_v28  ;;  %v3475_v12 = vadd.f32 1.0, %v4109_v32  ;;  %v3424_v30 = vmul.f32 0.5, %v3415_v28  ;;  %v3462_v7 = vmul.f32 0.7978846, %v3454_v56 }
 0x727   : > { %v3439_v58 = vmul.f32 %v3431_v37, %v3396_v26  ;;  %v3476_v43 = vadd.f32 1.0, %v4111_v23 }
 0x728   : > { %v3440_v11 = vmul.f32 %v3432_v10, %v3415_v28  ;;  %v3483_v15 = vmul.f32 %v3475_v12, %v3419_v45  ;;  %v8218_v10 = vld [vmem:[#allocation17_spill] sm:$0xff] }
 0x729   : > { %v3447_v6 = vmul.f32 %v3439_v58, %v3396_v26  ;;  %v3484_v1 = vmul.f32 %v3476_v43, %v3420_v16 }
 0x72a   : > { %v3448_v34 = vmul.f32 %v3440_v11, %v3415_v28  ;;  %v3491_v60 = vmul.f32 %v3483_v15, %v8214_v62  ;;  %v3397_v17 = vpop.f32.mrf.mxu2 }
 0x72b   : > { %v3455_v3 = vadd.f32 %v3447_v6, %v3396_v26  ;;  %v3492_v54 = vmul.f32 %v3484_v1, %v8214_v62  ;;  %v7502_v35 = vadd.f32 %v3397_v17, %v8216_v5  ;;  %v3416_v44 = vpop.f32.mrf.mxu3  ;;  %v8217_v26 = vld [vmem:[#allocation26_spill] sm:$0xff] }
 0x72c   : > { %v3456_v18 = vadd.f32 %v3448_v34, %v3415_v28  ;;  %v3499_v8 = vadd.f32 %v3491_v60, %v8215_v53  ;;  %v7508_v49 = vadd.f32 %v3416_v44, %v8216_v5 }
 0x72d   : > { %v3463_v63 = vmul.f32 0.7978846, %v3455_v3  ;;  %v3500_v13 = vadd.f32 %v3492_v54, %v8215_v53  ;;  %v3433_v28 = vmul.f32 0.044715, %v7502_v35 }
 0x72e   : > { %v3464_v47 = vmul.f32 0.7978846, %v3456_v18 }
 0x72f   : > { %v3507_v21 = vadd.f32 %v3500_v13, %v3499_v8  ;;  %4112 = vtanh.f32 %v3463_v63  ;;  %v3441_v43 = vmul.f32 %v3433_v28, %v7502_v35 }
 0x730   : > { %4114 = vtanh.f32 %v3464_v47 }
 0x731   : > { %3508 = vadd.xlane.f32.xlu1 %v3507_v21  ;;  %4116 = vtanh.f32 %v3461_v4  ;;  %v3449_v8 = vmul.f32 %v3441_v43, %v7502_v35 }
 0x732   : > { %4118 = vtanh.f32 %v3462_v7 }
 0x733   : > { %v3457_v17 = vadd.f32 %v3449_v8, %v7502_v35 }
 0x735   : > { %v4113_v33 = vpop.eup %4112  ;;  %v3465_v7 = vmul.f32 0.7978846, %v3457_v17 }
 0x736   : > { %v4115_v46 = vpop.eup %4114  ;;  %v3479_v27 = vadd.f32 1.0, %v4113_v33 }
 0x737   : > { %v3480_v25 = vadd.f32 1.0, %v4115_v46  ;;  %v4117_v18 = vpop.eup %4116 }
 0x738   : > { %v3487_v36 = vmul.f32 %v3479_v27, %v3423_v31  ;;  %v4119_v13 = vpop.eup %4118  ;;  %v3421_v31 = vmul.f32 0.5, %v7484_v55 }
 0x739   : > { %v2588_v52 = vpop.f32.mrf.mxu0  ;;  %v3488_v29 = vmul.f32 %v3480_v25, %v3424_v30  ;;  %v3478_v59 = vadd.f32 1.0, %v4119_v13  ;;  %v3422_v25 = vmul.f32 0.5, %v7487_v61 }
 0x73a   : > { %v7505_v41 = vadd.f32 %v2588_v52, %v8211_v20  ;;  %v2607_v38 = vpop.f32.mrf.mxu1  ;;  %v3495_v9 = vmul.f32 %v3487_v36, %v8217_v26 }
 0x73b   : > { %v7511_v14 = vadd.f32 %v2607_v38, %v8211_v20  ;;  %v3496_v37 = vmul.f32 %v3488_v29, %v8217_v26  ;;  %v3434_v20 = vmul.f32 0.044715, %v7508_v49  ;;  %v3486_v28 = vmul.f32 %v3478_v59, %v3422_v25  ;;  %v8220_v25 = vld [vmem:[#allocation35_spill] sm:$0xff] }
 0x73c   : > { %v2625_v32 = vmul.f32 0.044715, %v7505_v41  ;;  %v3503_v45 = vadd.f32 %v3495_v9, %v8218_v10  ;;  %v2617_v61 = vmul.f32 0.5, %v7505_v41 }
 0x73d   : > { %v2626_v23 = vmul.f32 0.044715, %v7511_v14  ;;  %v3504_v58 = vadd.f32 %v3496_v37, %v8218_v10  ;;  %v3442_v60 = vmul.f32 %v3434_v20, %v7508_v49 }
 0x73e   : > { %v2633_v12 = vmul.f32 %v2625_v32, %v7505_v41 }
 0x73f   : > { %v2634_v16 = vmul.f32 %v2626_v23, %v7511_v14  ;;  %v3513_v15 = vadd.f32 %v3504_v58, %v3503_v45  ;;  %v3450_v22 = vmul.f32 %v3442_v60, %v7508_v49  ;;  %v2618_v58 = vmul.f32 0.5, %v7511_v14 }
 0x740   : > { %v2641_v11 = vmul.f32 %v2633_v12, %v7505_v41 }
 0x741   : > { %v2642_v2 = vmul.f32 %v2634_v16, %v7511_v14  ;;  %v2590_v6 = vpop.f32.mrf.mxu0  ;;  %3514 = vadd.xlane.f32.xlu1 %v3513_v15  ;;  %v3458_v52 = vadd.f32 %v3450_v22, %v7508_v49 }
 0x742   : > { %v2649_v1 = vadd.f32 %v2641_v11, %v7505_v41  ;;  %v7528_v0 = vadd.f32 %v2590_v6, %v8213_v42  ;;  %v2609_v34 = vpop.f32.mrf.mxu1 }
 0x743   : > { %v2650_v3 = vadd.f32 %v2642_v2, %v7511_v14  ;;  %v7533_v54 = vadd.f32 %v2609_v34, %v8213_v42  ;;  %v3477_v42 = vadd.f32 1.0, %v4117_v18  ;;  %v3466_v20 = vmul.f32 0.7978846, %v3458_v52 }
 0x744   : > { %v2657_v19 = vmul.f32 0.7978846, %v2649_v1  ;;  %v2627_v63 = vmul.f32 0.044715, %v7528_v0  ;;  %v8219_v1 = vld [vmem:[#allocation37_spill] sm:$0xff] }
 0x745   : > { %v2658_v51 = vmul.f32 0.7978846, %v2650_v3  ;;  %v2628_v47 = vmul.f32 0.044715, %v7533_v54  ;;  %v3485_v38 = vmul.f32 %v3477_v42, %v3421_v31  ;;  %v3494_v60 = vmul.f32 %v3486_v28, %v8219_v1 }
 0x746   : > { %v2635_v21 = vmul.f32 %v2627_v63, %v7528_v0  ;;  %4120 = vtanh.f32 %v2657_v19 }
 0x747   : > { %v2636_v39 = vmul.f32 %v2628_v47, %v7533_v54  ;;  %4122 = vtanh.f32 %v2658_v51  ;;  %v3493_v34 = vmul.f32 %v3485_v38, %v8219_v1 }
 0x748   : > { %v2643_v33 = vmul.f32 %v2635_v21, %v7528_v0 }
 0x749   : > { %v2644_v46 = vmul.f32 %v2636_v39, %v7533_v54  ;;  %v2593_v56 = vpop.f32.mrf.mxu0  ;;  %v2619_v39 = vmul.f32 0.5, %v7528_v0  ;;  %v3501_v52 = vadd.f32 %v3493_v34, %v8220_v25 }
 0x74a   : > { %v2651_v27 = vadd.f32 %v2643_v33, %v7528_v0  ;;  %v7547_v44 = vadd.f32 %v2593_v56, %v8212_v57  ;;  %v2612_v30 = vpop.f32.mrf.mxu1  ;;  %v2620_v33 = vmul.f32 0.5, %v7533_v54 }
 0x74b   : > { %v2652_v36 = vadd.f32 %v2644_v46, %v7533_v54  ;;  %v7553_v4 = vadd.f32 %v2612_v30, %v8212_v57 }
 0x74c   : > { %v4121_v29 = vpop.eup %4120  ;;  %v2659_v9 = vmul.f32 0.7978846, %v2651_v27  ;;  %v2629_v55 = vmul.f32 0.044715, %v7547_v44 }
 0x74d   : > { %v4123_v32 = vpop.eup %4122  ;;  %v2660_v37 = vmul.f32 0.7978846, %v2652_v36  ;;  %v2630_v23 = vmul.f32 0.044715, %v7553_v4  ;;  %v2673_v45 = vadd.f32 1.0, %v4121_v29  ;;  %v3502_v36 = vadd.f32 %v3494_v60, %v8220_v25 }
 0x74e   : > { %v2637_v12 = vmul.f32 %v2629_v55, %v7547_v44  ;;  %v2674_v57 = vadd.f32 1.0, %v4123_v32  ;;  %4124 = vtanh.f32 %v2659_v9 }
 0x74f   : > { %v2638_v16 = vmul.f32 %v2630_v23, %v7553_v4  ;;  %v2681_v43 = vmul.f32 %v2673_v45, %v2617_v61  ;;  %4126 = vtanh.f32 %v2660_v37  ;;  %v3510_v61 = vadd.f32 %v3502_v36, %v3501_v52 }
 0x750   : > { %v2645_v11 = vmul.f32 %v2637_v12, %v7547_v44  ;;  %v2682_v15 = vmul.f32 %v2674_v57, %v2618_v58  ;;  %4128 = vtanh.f32 %v3465_v7  ;;  %v2621_v57 = vmul.f32 0.5, %v7547_v44 }
 0x751   : > { %v2646_v2 = vmul.f32 %v2638_v16, %v7553_v4  ;;  %v2595_v6 = vpop.f32.mrf.mxu0  ;;  %v2689_v41 = vmul.f32 %v2681_v43, %v8214_v62  ;;  %4130 = vtanh.f32 %v3466_v20 }
 0x752   : > { %v2653_v14 = vadd.f32 %v2645_v11, %v7547_v44  ;;  %v7568_v3 = vadd.f32 %v2595_v6, %v8216_v5  ;;  %v2614_v18 = vpop.f32.mrf.mxu1  ;;  %v2690_v8 = vmul.f32 %v2682_v15, %v8214_v62  ;;  %v2622_v11 = vmul.f32 0.5, %v7553_v4 }
 0x753   : > { %v2654_v19 = vadd.f32 %v2646_v2, %v7553_v4  ;;  %v7573_v63 = vadd.f32 %v2614_v18, %v8216_v5  ;;  %v2697_v13 = vadd.f32 %v2689_v41, %v8215_v53  ;;  %v3425_v6 = vmul.f32 0.5, %v7502_v35 }
 0x754   : > { %v4125_v51 = vpop.eup %4124  ;;  %v2661_v47 = vmul.f32 0.7978846, %v2653_v14  ;;  %v2631_v21 = vmul.f32 0.044715, %v7568_v3  ;;  %v2698_v22 = vadd.f32 %v2690_v8, %v8215_v53 }
 0x755   : > { %v4127_v42 = vpop.eup %4126  ;;  %v2662_v17 = vmul.f32 0.7978846, %v2654_v19  ;;  %v2632_v62 = vmul.f32 0.044715, %v7573_v63  ;;  %v2675_v59 = vadd.f32 1.0, %v4125_v51  ;;  %v2623_v51 = vmul.f32 0.5, %v7568_v3 }
 0x756   : > { %v2639_v5 = vmul.f32 %v2631_v21, %v7568_v3  ;;  %v2705_v46 = vadd.f32 %v2698_v22, %v2697_v13  ;;  %v2676_v56 = vadd.f32 1.0, %v4127_v42  ;;  %4132 = vtanh.f32 %v2661_v47  ;;  %v4129_v30 = vpop.eup %4128  ;;  %v8221_v13 = vld [vmem:[#allocation40_spill] sm:$0xff] }
 0x757   : > { %v2640_v31 = vmul.f32 %v2632_v62, %v7573_v63  ;;  %v2683_v27 = vmul.f32 %v2675_v59, %v2619_v39  ;;  %4134 = vtanh.f32 %v2662_v17  ;;  %v4131_v54 = vpop.eup %4130  ;;  %v3481_v45 = vadd.f32 1.0, %v4129_v30  ;;  %v8222_v62 = vld [vmem:[#allocation16_spill] sm:$0xff] }
 0x758   : > { %v2647_v53 = vmul.f32 %v2639_v5, %v7568_v3  ;;  %2706 = vadd.xlane.f32.xlu2 %v2705_v46  ;;  %v2684_v0 = vmul.f32 %v2676_v56, %v2620_v33  ;;  %v3482_v16 = vadd.f32 1.0, %v4131_v54  ;;  %v2624_v22 = vmul.f32 0.5, %v7573_v63 }
 0x759   : > { %v2648_v38 = vmul.f32 %v2640_v31, %v7573_v63  ;;  %v2691_v29 = vmul.f32 %v2683_v27, %v8219_v1  ;;  %v3489_v60 = vmul.f32 %v3481_v45, %v3425_v6  ;;  %v4246_v45 = vld [vmem:[%s7813_s3 + $0x10] sm:$0xff] }
 0x75a   : > { %v2655_v7 = vadd.f32 %v2647_v53, %v7568_v3  ;;  %v2692_v9 = vmul.f32 %v2684_v0, %v8219_v1  ;;  %v3426_v1 = vmul.f32 0.5, %v7508_v49  ;;  %v8223_v53 = vld [vmem:[#allocation19_spill] sm:$0xff] }
 0x75b   : > { %v2656_v55 = vadd.f32 %v2648_v38, %v7573_v63  ;;  %v2699_v28 = vadd.f32 %v2691_v29, %v8220_v25  ;;  %v3497_v35 = vmul.f32 %v3489_v60, %v8221_v13  ;;  %v4244_v29 = vld [vmem:[%s7813_s3 + $0x8] sm:$0xff]  ;;  %v4247_v60 = vld [vmem:[%s7813_s3 + $0x18] sm:$0xff] }
 0x75c   : > { %v4133_v32 = vpop.eup %4132  ;;  %v2663_v37 = vmul.f32 0.7978846, %v2655_v7  ;;  %v2700_v23 = vadd.f32 %v2692_v9, %v8220_v25  ;;  %v3490_v14 = vmul.f32 %v3482_v16, %v3426_v1 }
 0x75d   : > { %v4135_v12 = vpop.eup %4134  ;;  %v2664_v58 = vmul.f32 0.7978846, %v2656_v55  ;;  %v2677_v20 = vadd.f32 1.0, %v4133_v32  ;;  %v3505_v33 = vadd.f32 %v3497_v35, %v8222_v62  ;;  %v4245_v55 = vld [vmem:[%s7813_s3] sm:$0xff] }
 0x75e   : > { %v2708_v43 = vadd.f32 %v2700_v23, %v2699_v28  ;;  %v2678_v15 = vadd.f32 1.0, %v4135_v12  ;;  %4136 = vtanh.f32 %v2663_v37  ;;  %v3498_v49 = vmul.f32 %v3490_v14, %v8221_v13 }
 0x75f   : > { %v2685_v2 = vmul.f32 %v2677_v20, %v2621_v57  ;;  %4138 = vtanh.f32 %v2664_v58 }
 0x760   : > { %2709 = vadd.xlane.f32.xlu0 %v2708_v43  ;;  %3511 = vadd.xlane.f32.xlu2 %v3510_v61  ;;  %v2686_v41 = vmul.f32 %v2678_v15, %v2622_v11 }
 0x761   : > { %v2693_v34 = vmul.f32 %v2685_v2, %v8217_v26 }
 0x762   : > { %v2694_v44 = vmul.f32 %v2686_v41, %v8217_v26 }
 0x763   : > { %v2701_v18 = vadd.f32 %v2693_v34, %v8218_v10 }
 0x764   : > { %v4137_v4 = vpop.eup %4136  ;;  %v2702_v8 = vadd.f32 %v2694_v44, %v8218_v10  ;;  %v3506_v10 = vadd.f32 %v3498_v49, %v8222_v62 }
 0x765   : > { %v4139_v19 = vpop.eup %4138  ;;  %v2679_v47 = vadd.f32 1.0, %v4137_v4 }
 0x766   : > { %v2711_v21 = vadd.f32 %v2702_v8, %v2701_v18  ;;  %v2680_v39 = vadd.f32 1.0, %v4139_v19  ;;  %v3516_v46 = vadd.f32 %v3506_v10, %v3505_v33 }
 0x767   : > { %v2687_v42 = vmul.f32 %v2679_v47, %v2623_v51 }
 0x768   : > { %2712 = vadd.xlane.f32.xlu0 %v2711_v21  ;;  %v2688_v26 = vmul.f32 %v2680_v39, %v2624_v22 }
 0x769   : > { %v2695_v17 = vmul.f32 %v2687_v42, %v8221_v13 }
 0x76a   : > { %v2696_v59 = vmul.f32 %v2688_v26, %v8221_v13 }
 0x76b   : > { %v2703_v3 = vadd.f32 %v2695_v17, %v8222_v62 }
 0x76c   : > { %v2704_v5 = vadd.f32 %v2696_v59, %v8222_v62 }
 0x76e   : > { %v2714_v56 = vadd.f32 %v2704_v5, %v2703_v3  ;;  %v4248_v3 = vld [vmem:[%s7814_s4 + $0x10] sm:$0xff] }
 0x770   : > { %3517 = vadd.xlane.f32.xlu0 %v3516_v46  ;;  %2715 = vadd.xlane.f32.xlu2 %v2714_v56  ;;  %v4249_v46 = vld [vmem:[%s7814_s4 + $0x8] sm:$0xff] }
 0x7a4   : > { %v3509_v31 = vpop.xlane.xlu1 %3508 }
 0x7a5   : > { %v3519_v25 = vmul.f32 %v3509_v31, %v8223_v53 }
 0x7a7   : > { %v3523_v28 = vmul.f32 %v4245_v55, %v3519_v25 }
 0x7a9   : > { %v3527_v58 = vsel %vm1121_vm10, %v3523_v28, 0.0 }
 0x7b4   : > { %v3515_v36 = vpop.xlane.xlu1 %3514 }
 0x7b5   : > { %v3521_v32 = vmul.f32 %v3515_v36, %v8223_v53  ;;  %v4251_v36 = vld [vmem:[%s7814_s4 + $0x18] sm:$0xff] }
 0x7b7   : > { %v3525_v57 = vmul.f32 %v4246_v45, %v3521_v32 }
 0x7b9   : > { %v3530_v34 = vsel %vm1121_vm10, %v3525_v57, 0.0 }
 0x7cb   : > { %v2707_v63 = vpop.xlane.xlu2 %2706 }
 0x7cc   : > { %v2717_v38 = vmul.f32 %v2707_v63, %v8223_v53  ;;  %v4250_v63 = vld [vmem:[%s7814_s4] sm:$0xff] }
 0x7ce   : > { %v2721_v23 = vmul.f32 %v4245_v55, %v2717_v38 }
 0x7d0   : > { %v2725_v15 = vsel %vm1121_vm10, %v2721_v23, 0.0 }
 0x7d3   : > { %v2710_v27 = vpop.xlane.xlu0 %2709  ;;  %v3512_v30 = vpop.xlane.xlu2 %3511 }
 0x7d4   : > { %v3520_v0 = vmul.f32 %v3512_v30, %v8223_v53  ;;  %v2718_v52 = vmul.f32 %v2710_v27, %v8223_v53 }
 0x7d6   : > { %v3524_v7 = vmul.f32 %v4244_v29, %v3520_v0  ;;  %v2722_v37 = vmul.f32 %v4244_v29, %v2718_v52 }
 0x7d8   : > { %v3528_v61 = vsel %vm1121_vm10, %v3524_v7, 0.0  ;;  %v2726_v20 = vsel %vm1121_vm10, %v2722_v37, 0.0 }
 0x7d9   : > { %v3529_v16 = vadd.f32 %v3528_v61, %v3527_v58  ;;  %v2727_v1 = vadd.f32 %v2726_v20, %v2725_v15 }
 0x7db   : > { %v2713_v54 = vpop.xlane.xlu0 %2712  ;;  %v3531_v4 = vadd.f32 %v3530_v34, %v3529_v16 }
 0x7dc   : > { %v2719_v9 = vmul.f32 %v2713_v54, %v8223_v53 }
 0x7de   : > { %v2723_v12 = vmul.f32 %v4246_v45, %v2719_v9 }
 0x7e0   : > { %v2728_v2 = vsel %vm1121_vm10, %v2723_v12, 0.0 }
 0x7e1   : > { %v2729_v18 = vadd.f32 %v2728_v2, %v2727_v1 }
 0x7e3   : > { %v3518_v43 = vpop.xlane.xlu0 %3517  ;;  %v2716_v11 = vpop.xlane.xlu2 %2715 }
 0x7e4   : > { %v3522_v6 = vmul.f32 %v3518_v43, %v8223_v53  ;;  %v2720_v41 = vmul.f32 %v2716_v11, %v8223_v53 }
 0x7e6   : > { %v3526_v44 = vmul.f32 %v4247_v60, %v3522_v6  ;;  %v2724_v14 = vmul.f32 %v4247_v60, %v2720_v41 }
 0x7e8   : > { %v3532_v8 = vsel %vm1121_vm10, %v3526_v44, 0.0  ;;  %v2730_v19 = vsel %vm1121_vm10, %v2724_v14, 0.0 }
 0x7e9   : > { %v3533_v13 = vadd.f32 %v3532_v8, %v3531_v4  ;;  %v2731_v35 = vadd.f32 %v2730_v19, %v2729_v18 }
 0x7eb   : > { %v3534_v51 = vrot.slane %v3533_v13, 4  ;;  %v2732_v47 = vrot.slane %v2731_v35, 4 }
 0x7ed   : > { %v3535_v21 = vadd.f32 %v3534_v51, %v3533_v13  ;;  %v2733_v49 = vadd.f32 %v2732_v47, %v2731_v35 }
 0x7ef   : > { %v3536_v22 = vrot.slane %v3535_v21, 2  ;;  %v2734_v39 = vrot.slane %v2733_v49, 2 }
 0x7f1   : > { %v3537_v42 = vadd.f32 %v3536_v22, %v3535_v21  ;;  %v2735_v26 = vadd.f32 %v2734_v39, %v2733_v49 }
 0x7f3   : > { %v3538_v17 = vrot.slane %v3537_v42, 1  ;;  %v2736_v62 = vrot.slane %v2735_v26, 1 }
 0x7f5   : > { %v2737_v33 = vadd.f32 %v2736_v62, %v2735_v26  ;;  %v3539_v10 = vadd.f32 %v3538_v17, %v3537_v42 }
 0x7f7   : > { %v2738_v59 = vmax.f32 %v2737_v33, 0.0  ;;  %v3540_v0 = vmax.f32 %v3539_v10, 0.0 }
 0x7f9   : > { %v2741_v5 = vmul.f32 %v4248_v3, %v2738_v59  ;;  %v2740_v56 = vmul.f32 %v4249_v46, %v2738_v59  ;;  %v2739_v31 = vmul.f32 %v4250_v63, %v2738_v59  ;;  %v3542_v25 = vmul.f32 %v4249_v46, %v3540_v0 }
 0x7fa   : > { %v3541_v52 = vmul.f32 %v4250_v63, %v3540_v0  ;;  %v2742_v54 = vmul.f32 %v4251_v36, %v2738_v59  ;;  %v3544_v9 = vmul.f32 %v4251_v36, %v3540_v0  ;;  %v3543_v55 = vmul.f32 %v4248_v3, %v3540_v0 }
 0x7fb   : > { %v2749_v27 = vsel %vm1121_vm10, %v2741_v5, 0.0  ;;  %v2746_v30 = vsel %vm1121_vm10, %v2740_v56, 0.0  ;;  %v2743_v53 = vsel %vm1121_vm10, %v2739_v31, 0.0  ;;  %v3548_v38 = vsel %vm1121_vm10, %v3542_v25, 0.0 }
 0x7fc   : > { %2750 = vadd.xlane.f32.xlu0 %v2749_v27  ;;  %2747 = vadd.xlane.f32.xlu2 %v2746_v30  ;;  %v3545_v29 = vsel %vm1121_vm10, %v3541_v52, 0.0  ;;  %v2752_v7 = vsel %vm1121_vm10, %v2742_v54, 0.0  ;;  %v3554_v28 = vsel %vm1121_vm10, %v3544_v9, 0.0  ;;  %v3551_v32 = vsel %vm1121_vm10, %v3543_v55, 0.0 }
 0x7fd   : > { %2744 = vadd.xlane.f32.xlu1 %v2743_v53 }
 0x804   : > { %3549 = vadd.xlane.f32.xlu0 %v3548_v38  ;;  %3546 = vadd.xlane.f32.xlu2 %v3545_v29 }
 0x805   : > { %2753 = vadd.xlane.f32.xlu1 %v2752_v7 }
 0x80c   : > { %3555 = vadd.xlane.f32.xlu2 %v3554_v28 }
 0x80d   : > { %3552 = vadd.xlane.f32.xlu1 %v3551_v32 }
 0x86f   : > { %v2751_v37 = vpop.xlane.xlu0 %2750  ;;  %v2748_v23 = vpop.xlane.xlu2 %2747 }
 0x870   : > { %v3824_v61 = vmul.f32 -1.442695, %v2751_v37  ;;  %v3823_v45 = vmul.f32 -1.442695, %v2748_v23  ;;  %v2745_v12 = vpop.xlane.xlu1 %2744 }
 0x871   : > { %v3822_v58 = vmul.f32 -1.442695, %v2745_v12 }
 0x872   : > { %4140 = vpow2.f32 %v3824_v61 }
 0x873   : > { %4142 = vpow2.f32 %v3823_v45 }
 0x874   : > { %4144 = vpow2.f32 %v3822_v58 }
 0x877   : > { %v3550_v57 = vpop.xlane.xlu0 %3549  ;;  %v3547_v20 = vpop.xlane.xlu2 %3546 }
 0x878   : > { %v4141_v16 = vpop.eup %4140  ;;  %v3847_v43 = vmul.f32 -1.442695, %v3550_v57  ;;  %v2754_v11 = vpop.xlane.xlu1 %2753  ;;  %v3846_v6 = vmul.f32 -1.442695, %v3547_v20 }
 0x879   : > { %v4143_v15 = vpop.eup %4142  ;;  %v2769_v2 = vadd.f32 1.0, %v4141_v16  ;;  %v3825_v34 = vmul.f32 -1.442695, %v2754_v11 }
 0x87a   : > { %v4145_v41 = vpop.eup %4144  ;;  %v2768_v1 = vadd.f32 1.0, %v4143_v15  ;;  %4146 = vpow2.f32 %v3847_v43 }
 0x87b   : > { %4148 = vrcp.f32 %v2769_v2  ;;  %v7659_v60 = vadd.f32 1.0, %v4145_v41  ;;  %v2810_v44 = vand.u32 2147483647, %v2769_v2  ;;  %v2812_v14 = vand.u32 2147483648, %v2769_v2 }
 0x87c   : > { %4150 = vrcp.f32 %v2768_v1  ;;  %v2795_v18 = vand.u32 2147483647, %v2768_v1  ;;  %vm2806_vm8 = vweird.f32 %v2769_v2  ;;  %v2797_v35 = vand.u32 2147483648, %v2768_v1 }
 0x87d   : > { %4152 = vpow2.f32 %v3846_v6  ;;  %vm7664_vm10 = vcmp.eq.f32.partialorder %v2810_v44, 8.507059e+37  ;;  %v2813_v39 = vor.u32 1.1754944e-38, %v2812_v14  ;;  %vm2791_vm11 = vweird.f32 %v2768_v1 }
 0x87e   : > { %4154 = vpow2.f32 %v3825_v34  ;;  %vm7668_vm7 = vcmp.eq.f32.partialorder %v2795_v18, 8.507059e+37  ;;  %v2780_v62 = vand.u32 2147483647, %v7659_v60  ;;  %v2798_v56 = vor.u32 1.1754944e-38, %v2797_v35 }
 0x87f   : > { %4156 = vrcp.f32 %v7659_v60  ;;  %v3556_v4 = vpop.xlane.xlu2 %3555  ;;  %v2782_v63 = vand.u32 2147483648, %v7659_v60  ;;  %vm2776_vm4 = vweird.f32 %v7659_v60 }
 0x880   : > { %v4147_v8 = vpop.eup %4146  ;;  %v3849_v19 = vmul.f32 -1.442695, %v3556_v4  ;;  %v3553_v47 = vpop.xlane.xlu1 %3552  ;;  %vm7683_vm14 = vcmp.eq.f32.partialorder %v2780_v62, 8.507059e+37 }
 0x881   : > { %v4149_v13 = vpop.eup %4148  ;;  %v7662_v51 = vadd.f32 1.0, %v4147_v8  ;;  %v3848_v3 = vmul.f32 -1.442695, %v3553_v47  ;;  %v2783_v29 = vor.u32 1.1754944e-38, %v2782_v63 }
 0x882   : > { %v4151_v21 = vpop.eup %4150  ;;  %v2802_v49 = vmul.f32 %v4149_v13, %v2769_v2  ;;  %vm2807_vm12 = vweird.f32 %v4149_v13 }
 0x883   : > { %v4153_v42 = vpop.eup %4152  ;;  %v2787_v26 = vmul.f32 %v4151_v21, %v2768_v1  ;;  %4158 = vrcp.f32 %v7662_v51  ;;  %vm2792_vm13 = vweird.f32 %v4151_v21  ;;  %v3597_v0 = vand.u32 2147483647, %v7662_v51  ;;  %vm2808_vm15 = vmor %vm2806_vm8, %vm2807_vm12 }
 0x884   : > { %v4155_v33 = vpop.eup %4154  ;;  %v2803_v10 = vsub.f32 1.0, %v2802_v49  ;;  %v7674_v59 = vadd.f32 1.0, %v4153_v42  ;;  %4160 = vpow2.f32 %v3849_v19  ;;  %v3599_v7 = vand.u32 2147483648, %v7662_v51  ;;  %vm2793_vm9 = vmor %vm2791_vm11, %vm2792_vm13  ;;  %v4260_v49 = vld [vmem:[%s4555_s26 + $0xf0] sm:$0xff] }
 0x885   : > { %v4157_v5 = vpop.eup %4156  ;;  %v2788_v46 = vsub.f32 1.0, %v2787_v26  ;;  %v7677_v31 = vadd.f32 1.0, %v4155_v33  ;;  %vm3593_vm0 = vweird.f32 %v7662_v51  ;;  %vm7696_vm1 = vcmp.eq.f32.partialorder %v3597_v0, 8.507059e+37 }
 0x886   : > { %v2804_v27 = vmul.f32 %v4149_v13, %v2803_v10  ;;  %v2772_v30 = vmul.f32 %v4157_v5, %v7659_v60  ;;  %4162 = vrcp.f32 %v7674_v59  ;;  %vm2777_vm5 = vweird.f32 %v4157_v5 }
 0x887   : > { %v2789_v53 = vmul.f32 %v4151_v21, %v2788_v46  ;;  %4164 = vpow2.f32 %v3848_v3  ;;  %vm2778_vm2 = vmor %vm2776_vm4, %vm2777_vm5  ;;  %v3600_v43 = vor.u32 1.1754944e-38, %v3599_v7  ;;  %v3582_v44 = vand.u32 2147483647, %v7674_v59 }
 0x888   : > { %v2805_v25 = vadd.f32 %v4149_v13, %v2804_v27  ;;  %v2773_v52 = vsub.f32 1.0, %v2772_v30  ;;  %4166 = vrcp.f32 %v7677_v31  ;;  %v3584_v60 = vand.u32 2147483648, %v7674_v59 }
 0x889   : > { %v4159_v54 = vpop.eup %4158  ;;  %v2790_v38 = vadd.f32 %v4151_v21, %v2789_v53  ;;  %vm3578_vm8 = vweird.f32 %v7674_v59  ;;  %v2825_v19 = vand.u32 2147483647, %v7677_v31  ;;  %vm7720_vm11 = vcmp.eq.f32.partialorder %v3582_v44, 8.507059e+37 }
 0x88a   : > { %v4161_v9 = vpop.eup %4160  ;;  %v2809_v55 = vsel %vm2808_vm15, %v4149_v13, %v2805_v25  ;;  %v2774_v28 = vmul.f32 %v4157_v5, %v2773_v52  ;;  %v3589_v32 = vmul.f32 %v4159_v54, %v7662_v51  ;;  %vm3594_vm3 = vweird.f32 %v4159_v54 }
 0x88b   : > { %v2814_v37 = vsel %vm7664_vm10, %v2813_v39, %v2809_v55  ;;  %v2794_v23 = vsel %vm2793_vm9, %v4151_v21, %v2790_v38  ;;  %v7704_v11 = vadd.f32 1.0, %v4161_v9  ;;  %vm3595_vm6 = vmor %vm3593_vm0, %vm3594_vm3  ;;  %v3585_v51 = vor.u32 1.1754944e-38, %v3584_v60 }
 0x88c   : > { %v2835_v45 = vmul.f32 1.442695, %v2814_v37  ;;  %v2799_v12 = vsel %vm7668_vm7, %v2798_v56, %v2794_v23  ;;  %v2775_v58 = vadd.f32 %v4157_v5, %v2774_v28  ;;  %v3590_v57 = vsub.f32 1.0, %v3589_v32  ;;  %v4163_v20 = vpop.eup %4162  ;;  %v4253_v56 = vld [vmem:[%s4555_s26 + $0x98] sm:$0xff]  ;;  %v4254_v32 = vld [vmem:[%s4555_s26 + $0xd0] sm:$0xff] }
 0x88d   : > { %v2833_v16 = vmul.f32 1.442695, %v2799_v12  ;;  %v4165_v15 = vpop.eup %4164  ;;  %v3574_v41 = vmul.f32 %v4163_v20, %v7674_v59  ;;  %vm3579_vm10 = vweird.f32 %v4163_v20  ;;  %v2827_v62 = vand.u32 2147483648, %v7677_v31  ;;  %v4255_v23 = vld [vmem:[%s4555_s26 + $0xd8] sm:$0xff] }
 0x88e   : > { %4168 = vpow2.f32 %v2835_v45  ;;  %v2779_v2 = vsel %vm2778_vm2, %v4157_v5, %v2775_v58  ;;  %v3591_v6 = vmul.f32 %v4159_v54, %v3590_v57  ;;  %v4167_v1 = vpop.eup %4166  ;;  %v7724_v22 = vadd.f32 1.0, %v4165_v15  ;;  %vm3580_vm7 = vmor %vm3578_vm8, %vm3579_vm10  ;;  %v4252_v5 = vld [vmem:[%s4555_s26 + $0x90] sm:$0xff] }
 0x88f   : > { %4170 = vpow2.f32 %v2833_v16  ;;  %v2784_v34 = vsel %vm7683_vm14, %v2783_v29, %v2779_v2  ;;  %v3575_v4 = vsub.f32 1.0, %v3574_v41  ;;  %v2817_v8 = vmul.f32 %v4167_v1, %v7677_v31  ;;  %v4256_v2 = vld [vmem:[%s4555_s26 + $0xc0] sm:$0xff] }
 0x890   : > { %v2831_v14 = vmul.f32 1.442695, %v2784_v34  ;;  %v3592_v18 = vadd.f32 %v4159_v54, %v3591_v6  ;;  %4172 = vrcp.f32 %v7704_v11  ;;  %vm2822_vm12 = vweird.f32 %v4167_v1  ;;  %v4257_v6 = vld [vmem:[%s4555_s26 + $0xc8] sm:$0xff] }
 0x891   : > { %v3576_v35 = vmul.f32 %v4163_v20, %v3575_v4  ;;  %v2818_v47 = vsub.f32 1.0, %v2817_v8  ;;  %vm2821_vm4 = vweird.f32 %v7677_v31  ;;  %v2828_v0 = vor.u32 1.1754944e-38, %v2827_v62  ;;  %v4259_v8 = vld [vmem:[%s4555_s26 + $0xb8] sm:$0xff]  ;;  %v4263_v62 = vld [vmem:[%s4555_s26 + $0xe8] sm:$0xff] }
 0x892   : > { %4174 = vpow2.f32 %v2831_v14  ;;  %v3596_v13 = vsel %vm3595_vm6, %v4159_v54, %v3592_v18  ;;  %vm2823_vm13 = vmor %vm2821_vm4, %vm2822_vm12  ;;  %vm2826_vm14 = vcmp.eq.f32.partialorder %v2825_v19, 8.507059e+37  ;;  %v3629_v9 = vand.u32 2147483648, %v7704_v11  ;;  %v4258_v18 = vld [vmem:[%s4555_s26 + $0xb0] sm:$0xff] }
 0x893   : > { %v3601_v21 = vsel %vm7696_vm1, %v3600_v43, %v3596_v13  ;;  %v3577_v26 = vadd.f32 %v4163_v20, %v3576_v35  ;;  %v2819_v17 = vmul.f32 %v4167_v1, %v2818_v47  ;;  %4176 = vrcp.f32 %v7724_v22 }
 0x894   : > { %v4169_v39 = vpop.eup %4168  ;;  %v3635_v42 = vmul.f32 1.442695, %v3601_v21  ;;  %vm3623_vm9 = vweird.f32 %v7704_v11  ;;  %v3630_v58 = vor.u32 1.1754944e-38, %v3629_v9  ;;  %v3612_v57 = vand.u32 2147483647, %v7724_v22 }
 0x895   : > { %v4171_v33 = vpop.eup %4170  ;;  %v2843_v10 = vmul.f32 %v7436_v40, %v4169_v39  ;;  %v2844_v3 = vmul.f32 %v7442_v24, %v4169_v39  ;;  %v3581_v27 = vsel %vm3580_vm7, %v4163_v20, %v3577_v26  ;;  %v2820_v24 = vadd.f32 %v4167_v1, %v2819_v17  ;;  %v4262_v26 = vld [vmem:[%s4555_s26 + $0xe0] sm:$0xff] }
 0x896   : > { %v2841_v46 = vmul.f32 %v4252_v5, %v4171_v33  ;;  %v2842_v63 = vmul.f32 %v4253_v56, %v4171_v33  ;;  %4178 = vpow2.f32 %v3635_v42  ;;  %v4173_v30 = vpop.eup %4172  ;;  %v3586_v40 = vsel %vm7720_vm11, %v3585_v51, %v3581_v27 }
 0x897   : > { %3830 = vst [vmem:[%s6024_s15 + $0xa0] sm:$0xff] %v2843_v10  ;;  %v3633_v53 = vmul.f32 1.442695, %v3586_v40  ;;  %v3619_v25 = vmul.f32 %v4173_v30, %v7704_v11  ;;  %v2824_v54 = vsel %vm2823_vm13, %v4167_v1, %v2820_v24  ;;  %vm3624_vm15 = vweird.f32 %v4173_v30 }
 0x898   : > { %v4175_v59 = vpop.eup %4174  ;;  %3831 = vst [vmem:[%s6024_s15 + $0xa8] sm:$0xff] %v2844_v3  ;;  %v2829_v31 = vsel %vm2826_vm14, %v2828_v0, %v2824_v54  ;;  %vm3625_vm5 = vmor %vm3623_vm9, %vm3624_vm15  ;;  %v3614_v20 = vand.u32 2147483648, %v7724_v22  ;;  %vm3608_vm2 = vweird.f32 %v7724_v22  ;;  %vm3613_vm6 = vcmp.eq.f32.partialorder %v3612_v57, 8.507059e+37 }
 0x899   : > { %3828 = vst [vmem:[%s6024_s15 + $0x90] sm:$0xff] %v2841_v46  ;;  %v2839_v52 = vmul.f32 %v7464_v48, %v4175_v59  ;;  %v2840_v36 = vmul.f32 %v7469_v50, %v4175_v59  ;;  %4180 = vpow2.f32 %v3633_v53  ;;  %v3620_v38 = vsub.f32 1.0, %v3619_v25  ;;  %v4177_v29 = vpop.eup %4176 }
 0x89a   : > { %3829 = vst [vmem:[%s6024_s15 + $0x98] sm:$0xff] %v2842_v63  ;;  %v2837_v7 = vmul.f32 1.442695, %v2829_v31  ;;  %v3627_v48 = vand.u32 2147483647, %v7704_v11  ;;  %v3604_v50 = vmul.f32 %v4177_v29, %v7724_v22  ;;  %vm3609_vm1 = vweird.f32 %v4177_v29  ;;  %v4261_v22 = vld [vmem:[%s4555_s26 + $0xf8] sm:$0xff] }
 0x89b   : > { %3826 = vst [vmem:[%s6024_s15 + $0x80] sm:$0xff] %v2839_v52  ;;  %v3621_v28 = vmul.f32 %v4173_v30, %v3620_v38  ;;  %vm3610_vm3 = vmor %vm3608_vm2, %vm3609_vm1  ;;  %v3615_v14 = vor.u32 1.1754944e-38, %v3614_v20 }
 0x89c   : > { %v4179_v55 = vpop.eup %4178  ;;  %3827 = vst [vmem:[%s6024_s15 + $0x88] sm:$0xff] %v2840_v36  ;;  %4182 = vpow2.f32 %v2837_v7  ;;  %v3605_v12 = vsub.f32 1.0, %v3604_v50  ;;  %vm3628_vm0 = vcmp.eq.f32.partialorder %v3627_v48, 8.507059e+37 }
 0x89d   : > { %v3643_v37 = vmul.f32 %v4254_v32, %v4179_v55  ;;  %v3644_v61 = vmul.f32 %v4255_v23, %v4179_v55  ;;  %v3622_v45 = vadd.f32 %v4173_v30, %v3621_v28 }
 0x89e   : > { %v3606_v15 = vmul.f32 %v4177_v29, %v3605_v12 }
 0x89f   : > { %3852 = vst [vmem:[%s6024_s15 + $0xd0] sm:$0xff] %v3643_v37  ;;  %v4181_v16 = vpop.eup %4180  ;;  %v3626_v43 = vsel %vm3625_vm5, %v4173_v30, %v3622_v45 }
 0x8a0   : > { %3853 = vst [vmem:[%s6024_s15 + $0xd8] sm:$0xff] %v3644_v61  ;;  %v3641_v11 = vmul.f32 %v4256_v2, %v4181_v16  ;;  %v3642_v41 = vmul.f32 %v4257_v6, %v4181_v16  ;;  %v3631_v1 = vsel %vm3628_vm0, %v3630_v58, %v3626_v43  ;;  %v3607_v44 = vadd.f32 %v4177_v29, %v3606_v15 }
 0x8a1   : > { %v3639_v34 = vmul.f32 1.442695, %v3631_v1 }
 0x8a2   : > { %v4183_v60 = vpop.eup %4182  ;;  %3850 = vst [vmem:[%s6024_s15 + $0xc0] sm:$0xff] %v3641_v11  ;;  %v3611_v13 = vsel %vm3610_vm3, %v4177_v29, %v3607_v44 }
 0x8a3   : > { %3851 = vst [vmem:[%s6024_s15 + $0xc8] sm:$0xff] %v3642_v41  ;;  %v2845_v4 = vmul.f32 %v4258_v18, %v4183_v60  ;;  %v2846_v19 = vmul.f32 %v4259_v8, %v4183_v60  ;;  %4184 = vpow2.f32 %v3639_v34  ;;  %v3616_v35 = vsel %vm3613_vm6, %v3615_v14, %v3611_v13 }
 0x8a4   : > { %v3637_v47 = vmul.f32 1.442695, %v3616_v35 }
 0x8a5   : > { %3832 = vst [vmem:[%s6024_s15 + $0xb0] sm:$0xff] %v2845_v4 }
 0x8a6   : > { %3833 = vst [vmem:[%s6024_s15 + $0xb8] sm:$0xff] %v2846_v19  ;;  %4186 = vpow2.f32 %v3637_v47 }
 0x8a9   : > { %v4185_v21 = vpop.eup %4184 }
 0x8aa   : > { %v3647_v51 = vmul.f32 %v4260_v49, %v4185_v21  ;;  %v3648_v39 = vmul.f32 %v4261_v22, %v4185_v21 }
 0x8ac   : > { %3856 = vst [vmem:[%s6024_s15 + $0xf0] sm:$0xff] %v3647_v51  ;;  %v4187_v42 = vpop.eup %4186 }
 0x8ad   : > { %3857 = vst [vmem:[%s6024_s15 + $0xf8] sm:$0xff] %v3648_v39  ;;  %v3645_v17 = vmul.f32 %v4262_v26, %v4187_v42  ;;  %v3646_v33 = vmul.f32 %v4263_v62, %v4187_v42 }
 0x8af   : > { %3854 = vst [vmem:[%s6024_s15 + $0xe0] sm:$0xff] %v3645_v17 }
 0x8b0   : > { %3855 = vst [vmem:[%s6024_s15 + $0xe8] sm:$0xff] %v3646_v33 }
 0x8b1   : > { %4351 = shalt.err (!%p4348_p10)
}
 0x8b2   : > { %s4414_s19 = smov 256  }
 0x8b3   : > { %3876 = dma.vmem_to_hbm [thread:$0]  (%p4519_p3), %s3673_s29, 4096, %s3675_s30, %s3659_s25, %s4414_s19, %s4414_s19, %s4400_s8  }
 0x8b4 PF: > { %s3689_s26 = sand.u32 1, %s4382_s21   ;;  %p8234_p12 = scmp.ge.s32.totalorder %s4394_s24, 2 }
 0x8b5   : > { %s3690_s15 = scalar_lea.sflag [#allocation4], %s3689_s26 }
 0x8b6   : > { %p3887_p13 = pnand %p8234_p12, %p4485_p6 }
 0x8b8   : > { %p3888_p0 = pneg %p3887_p13 }
 0x8ba   : > { %4377 = dma.done.wait (%p3888_p0), %s3690_s15, 4096  }
 0x8bb   : > { %4379 = vsyncadd (%p3888_p0), %s3690_s15, 4294963200  ;;  %p20_p5 = scmp.ge.s32.totalorder %s4503_s11, 4   ;;  %s8235_s21 = smov %s4386_s22 }
 0x8bc   : > { %s8236_s22 = smov %s4390_s23  ;;  %s8237_s23 = smov %s4515_s16 }
 0x8bd   : > { %s8238_s24 = smov %s4503_s11  ;;  %22 = sbr.rel (!%p20_p5) target bundleno = 6 (0x6), region = 107 }
 0x8c2   :  { %3696 = vsyncpa [#allocation3], 1 }
 0x8c3   :  { %3698 = vsyncpa [#allocation3 + $0x1], 1 }
 0x8c4   :  { %3699 = vsyncpa [#allocation6], 1 }
 0x8c5   :  { %3700 = vsyncpa [#allocation4], 1 }
 0x8c6   :  { %3702 = vsyncpa [#allocation4 + $0x1], 1 }

</bundles_post_ra>
